<compile_context>
chip_gen: v7x
topology: tpu7x:2x2x1
jax: 0.10.0
libtpu: 0.0.40
codegen_flags: <defaults>
</compile_context>

<pallas_src>
import functools
import math

import numpy as np

import jax
import jax.numpy as jnp
from jax.experimental import pallas as pl
from jax.experimental.pallas import tpu as pltpu


def _round_up(x, m):
    return ((x + m - 1) // m) * m


def _fwm_read_kernel(z_ref, w_ref, b_ref, rep_ref, exp_ref, gs_ref, f_ref, o_ref, *,
                     s_size, t_size, rt, q_off, r_pad, sub_b, eps, precision,
                     use_mxu_bcast):
    # z_ref  : (TB, H)            w_ref : (H, OUT_PAD)     b_ref : (1, OUT_PAD)
    # rep_ref: (S, S*RT) 0/1      exp_ref: (R_PAD, RT)     gs_ref: (RT, T_PAD)
    # f_ref  : (TB, S, RT)        o_ref : (TB, T_PAD)
    tb = z_ref.shape[0]
    inv_t = 1.0 / float(t_size)

    # read_vars = W_read(z) -- one lane-dense MXU matmul for the whole tile.
    # Each field (q, r1, r2, r3) starts at a 128-lane boundary; padded lanes
    # are exactly zero (padded W columns / bias are zero).
    rv = jnp.dot(z_ref[...], w_ref[...],
                 preferred_element_type=jnp.float32,
                 precision=precision) + b_ref[...]                # (TB, OUT_PAD)

    expand = exp_ref[...]                       # 0/1 "repeat r along lanes"
    gsum = gs_ref[...]                          # 0/1 "sum over r groups"
    rep = rep_ref[...] if use_mxu_bcast else None

    # Sub-block the batch rows so the stage-1 accumulator stays in vregs.
    for r0 in range(0, tb, sub_b):
        rows = slice(r0, r0 + sub_b)
        q = rv[rows, 0:s_size]                                    # (SB, S)
        qn = None
        for i in range(3):
            rblk = rv[rows, q_off + i * r_pad: q_off + (i + 1) * r_pad]   # (SB, 128)

            # ---- stage 1: t1[b, r*T+v] = sum_s q[b, s] * F[b, s, r*T+v] ----
            if use_mxu_bcast:
                # Pre-broadcast each q column across R*T lanes on the MXU;
                # the inner loop then uses lane-block-aligned static slices
                # (no per-s lane-extract / lane-broadcast relayout on the VPU/XLU).
                qb = jnp.dot(q, rep, preferred_element_type=jnp.float32,
                             precision=precision)                 # (SB, S*RT)
                t1 = qb[:, 0:rt] * f_ref[rows, 0, :]
                for s in range(1, s_size):
                    t1 = t1 + qb[:, s * rt:(s + 1) * rt] * f_ref[rows, s, :]
            else:
                # Fallback for very large S*R*T where the Rep constant would
                # not fit comfortably in VMEM.
                # TODO(synk): for very large s_size switch this to a
                # lax.fori_loop(..., unroll=8) with a VMEM-resident accumulator.
                t1 = q[:, 0:1] * f_ref[rows, 0, :]
                for s in range(1, s_size):
                    t1 = t1 + q[:, s:s + 1] * f_ref[rows, s, :]

            # ---- stage 2 on the MXU with constant 0/1 matrices ----
            # r_exp[b, r*T+v] = r[b, r] ; qv[b, v] = sum_r r[b,r] * t1[b, r*T+v]
            r_exp = jnp.dot(rblk, expand, preferred_element_type=jnp.float32,
                            precision=precision)                  # (SB, RT)
            qv = jnp.dot(r_exp * t1, gsum, preferred_element_type=jnp.float32,
                         precision=precision)                     # (SB, T_PAD), cols >= T are 0

            # ---- LayerNorm(T, elementwise_affine=False) over the first T lanes
            # (padded lanes are exactly zero, so plain sums / t_size are exact).
            mu = jnp.sum(qv, axis=-1, keepdims=True) * inv_t
            ms = jnp.sum(qv * qv, axis=-1, keepdims=True) * inv_t
            var = jnp.maximum(ms - mu * mu, 0.0)                  # clamp (review note)
            qn = (qv - mu) * jax.lax.rsqrt(var + eps)             # (SB, T_PAD)
            q = qn[:, 0:s_size]                                   # chained read (s_size == t_size)

        # lane-dense, unmasked 128-wide store; wrapper slices to t_size.
        o_ref[rows, :] = qn.astype(o_ref.dtype)


def _pick_tile_b(batch, row_bytes):
    """Batch tile: F tile <= ~2 MiB per buffer; prefer an even number (>=2) of
    grid steps (v7x has 2 TensorCores sharding the parallel axis); no
    wrapper-side padded copies — a ragged last block is handled by Pallas."""
    if batch <= 8:
        return max(batch, 1)
    cap = max(8, min(128, ((2 * 1024 * 1024) // max(row_bytes, 1)) // 8 * 8))
    if batch <= cap:
        # whole batch would fit in one step: split into 2 steps for v7x.
        return max(8, _round_up(pl.cdiv(batch, 2), 8))
    steps = pl.cdiv(batch, cap)
    if steps % 2 == 1:
        # nudge the tile down to make the step count even (costs <= 1 extra step)
        t_even = max(8, _round_up(pl.cdiv(batch, steps + 1), 8))
        if t_even >= max(8, cap // 2):
            return min(cap, t_even)
    return cap


def _pick_sub_b(tile_b):
    """Row sub-block for the stage-1 accumulation (register-resident acc)."""
    if tile_b <= 32:
        return tile_b
    for s in (32, 24, 16, 8):
        if tile_b % s == 0:
            return s
    return tile_b


def fwm_forward(z, F, w_read, b_read, *, s_size, r_size, t_size, eps=1e-5,
                tile_b=None, precision=jax.lax.Precision.HIGHEST):
    """Pallas implementation of FWM.forward(z, F).

    Pass F in bf16 natively (i.e. stored upstream as bf16) to halve its HBM
    traffic on v5e/v6e; this wrapper never casts F (that would add an extra
    HBM pass over F).
    """
    B, H = z.shape
    assert s_size == t_size, "chained reads require s_size == t_size"
    out_dim = s_size + 3 * r_size
    assert w_read.shape == (out_dim, H)
    assert F.shape == (B, s_size, r_size, t_size)
    rt = r_size * t_size

    # Lane-dense packing of F: (B, S, R*T) — a pure contiguous reshape, free.
    f2 = jnp.asarray(F).reshape(B, s_size, rt)

    # --- 128-lane field-aligned read_vars layout: [ q | r1 | r2 | r3 ] ---
    q_pad = _round_up(s_size, 128)
    r_pad = _round_up(r_size, 128)
    t_pad = _round_up(t_size, 128)
    out_pad = q_pad + 3 * r_pad

    wT = jnp.asarray(w_read, jnp.float32).T                      # (H, out_dim)
    b_vec = jnp.asarray(b_read, jnp.float32)
    w_t = jnp.zeros((H, out_pad), jnp.float32)
    bias = jnp.zeros((1, out_pad), jnp.float32)
    w_t = w_t.at[:, :s_size].set(wT[:, :s_size])
    bias = bias.at[:, :s_size].set(b_vec[:s_size][None, :])
    for i in range(3):
        col0 = q_pad + i * r_pad
        src0 = s_size + i * r_size
        w_t = w_t.at[:, col0:col0 + r_size].set(wT[:, src0:src0 + r_size])
        bias = bias.at[:, col0:col0 + r_size].set(b_vec[src0:src0 + r_size][None, :])

    # --- constant 0/1 matrices (trace-time constants) ---
    kk = np.arange(rt)
    expand_np = np.zeros((r_pad, rt), np.float32)
    expand_np[:r_size, :] = (kk[None, :] // t_size == np.arange(r_size)[:, None])
    gsum_np = np.zeros((rt, t_pad), np.float32)
    gsum_np[:, :t_size] = (kk[:, None] % t_size == np.arange(t_size)[None, :])
    expand = jnp.asarray(expand_np)
    gsum = jnp.asarray(gsum_np)

    # MXU pre-broadcast matrix Rep[s, s*RT + k] = 1 (gated on a sane size).
    use_mxu_bcast = (s_size * rt * 4) <= (64 * 1024)
    if use_mxu_bcast:
        rep_np = np.zeros((s_size, s_size * rt), np.float32)
        for s in range(s_size):
            rep_np[s, s * rt:(s + 1) * rt] = 1.0
        rep = jnp.asarray(rep_np)
    else:
        rep = jnp.zeros((1, 128), jnp.float32)                   # unused dummy

    # --- batch blocking (no padded copies; ragged last block is fine) ---
    row_bytes = s_size * rt * f2.dtype.itemsize
    if tile_b is None:
        tile_b = _pick_tile_b(B, row_bytes)
    tile_b = min(tile_b, B) if B < 8 else max(8, min(tile_b, _round_up(B, 8)))
    sub_b = _pick_sub_b(tile_b)
    assert tile_b % sub_b == 0
    grid = (pl.cdiv(B, tile_b),)

    # Explicit VMEM budget (safe on v7x's 64 MiB physical VMEM too).
    vmem_bytes = (
        2 * tile_b * s_size * rt * f2.dtype.itemsize             # F (double-buffered)
        + 2 * tile_b * H * 4                                     # z
        + 2 * (H + 1) * out_pad * 4                              # W, bias
        + 2 * int(expand.size + gsum.size + rep.size) * 4        # constants
        + 2 * tile_b * t_pad * 4                                 # out
        + tile_b * out_pad * 4                                   # rv
        + 2 * sub_b * (s_size * rt + 3 * rt) * 4                 # qb / t1 / r_exp temps
        + (4 << 20))                                             # headroom
    vmem_limit = int(min(max(vmem_bytes, 16 << 20), 32 << 20))

    kernel = functools.partial(
        _fwm_read_kernel, s_size=s_size, t_size=t_size, rt=rt, q_off=q_pad,
        r_pad=r_pad, sub_b=sub_b, eps=eps, precision=precision,
        use_mxu_bcast=use_mxu_bcast)

    out = pl.pallas_call(
        kernel,
        out_shape=jax.ShapeDtypeStruct((B, t_pad), z.dtype),
        grid_spec=pltpu.PrefetchScalarGridSpec(
            num_scalar_prefetch=0,
            grid=grid,
            in_specs=[
                pl.BlockSpec((tile_b, H), lambda i: (i, 0)),                # z
                pl.BlockSpec((H, out_pad), lambda i: (0, 0)),               # W_read^T (field-aligned)
                pl.BlockSpec((1, out_pad), lambda i: (0, 0)),               # bias
                pl.BlockSpec(rep.shape, lambda i: (0, 0)),                  # Rep (q pre-broadcast)
                pl.BlockSpec((r_pad, rt), lambda i: (0, 0)),                # expand
                pl.BlockSpec((rt, t_pad), lambda i: (0, 0)),                # group-sum
                pl.BlockSpec((tile_b, s_size, rt), lambda i: (i, 0, 0)),    # F (lane-dense, no padded copy)
            ],
            out_specs=pl.BlockSpec((tile_b, t_pad), lambda i: (i, 0)),
        ),
        compiler_params=pltpu.CompilerParams(
            dimension_semantics=("parallel",),
            vmem_limit_bytes=vmem_limit),
    )(z, w_t, bias, rep, expand, gsum, f2)

    return out[:, :t_size]


def fwm_forward_reference(z, F, w_read, b_read, *, s_size, r_size, eps=1e-5):
    """Pure-JAX reference mirroring the PyTorch module (f32, highest precision)."""
    rv = jnp.dot(z, w_read.T, precision='highest') + b_read
    q = rv[:, :s_size]
    for i in range(3):
        r = rv[:, s_size + i * r_size: s_size + (i + 1) * r_size]
        q = jnp.einsum('bsrv,bs,br->bv', F, q, r, precision='highest')
        mu = q.mean(-1, keepdims=True)
        var = ((q - mu) ** 2).mean(-1, keepdims=True)
        q = (q - mu) / jnp.sqrt(var + eps)
    return q


if __name__ == "__main__":
    # small shapes consistent with the module (s_size == t_size required by forward)
    B, H, S, R, T = 16, 32, 16, 16, 16

    key = jax.random.PRNGKey(0)
    k1, k2, k3, k4 = jax.random.split(key, 4)

    # deterministic synthetic parameter init (shapes from FWM.__init__)
    a = math.sqrt(6.0 / (H + S))
    w_read = jax.random.uniform(k1, (S + 3 * R, H), jnp.float32, minval=-a, maxval=a)
    bb = 1.0 / math.sqrt(H)
    b_read = jax.random.uniform(k2, (S + 3 * R,), jnp.float32, minval=-bb, maxval=bb)

    # example inputs
    z = jax.random.normal(k3, (B, H), jnp.float32)
    F = 0.1 * jax.random.normal(k4, (B, S, R, T), jnp.float32)

    out = fwm_forward(z, F, w_read, b_read, s_size=S, r_size=R, t_size=T)
    out = jax.block_until_ready(out)

    ref = fwm_forward_reference(z, F, w_read, b_read, s_size=S, r_size=R)
    assert out.shape == (B, T)
    assert bool(jnp.allclose(out, ref, atol=5e-4, rtol=5e-4)), (out, ref)

    print("KERNEL_OK")
</pallas_src>

<mosaic_0001>
module attributes {stable_mosaic.version = 11 : i64} {
  func.func @_fwm_read_kernel(%arg0: i32, %arg1: memref<8x32xf32, #tpu.memory_space<vmem>>, %arg2: memref<32x512xf32, #tpu.memory_space<vmem>>, %arg3: memref<1x512xf32, #tpu.memory_space<vmem>>, %arg4: memref<16x4096xf32, #tpu.memory_space<vmem>>, %arg5: memref<128x256xf32, #tpu.memory_space<vmem>>, %arg6: memref<256x128xf32, #tpu.memory_space<vmem>>, %arg7: memref<8x16x256xf32, #tpu.memory_space<vmem>>, %arg8: memref<8x128xf32, #tpu.memory_space<vmem>>) attributes {dimension_semantics = [#tpu.dimension_semantics<parallel>], iteration_bounds = array<i64: 2>, scalar_prefetch = 0 : i64, scratch_operands = 0 : i64, tpu.core_type = #tpu.core_type<tc>, window_params = [{transform_indices = @transform_0, window_bounds = array<i64: 8, 32>}, {pipeline_mode = #tpu.pipeline_mode<synchronous>, transform_indices = @transform_1, window_bounds = array<i64: 32, 512>}, {pipeline_mode = #tpu.pipeline_mode<synchronous>, transform_indices = @transform_2, window_bounds = array<i64: 1, 512>}, {pipeline_mode = #tpu.pipeline_mode<synchronous>, transform_indices = @transform_3, window_bounds = array<i64: 16, 4096>}, {pipeline_mode = #tpu.pipeline_mode<synchronous>, transform_indices = @transform_4, window_bounds = array<i64: 128, 256>}, {pipeline_mode = #tpu.pipeline_mode<synchronous>, transform_indices = @transform_5, window_bounds = array<i64: 256, 128>}, {transform_indices = @transform_6, window_bounds = array<i64: 8, 16, 256>}, {transform_indices = @transform_7, window_bounds = array<i64: 8, 128>}]} {
    %c0 = arith.constant 0 : index
    %c0_0 = arith.constant 0 : index
    %0 = vector.load %arg1[%c0, %c0_0] : memref<8x32xf32, #tpu.memory_space<vmem>>, vector<8x32xf32>
    %c0_1 = arith.constant 0 : index
    %c0_2 = arith.constant 0 : index
    %1 = vector.load %arg2[%c0_1, %c0_2] : memref<32x512xf32, #tpu.memory_space<vmem>>, vector<32x512xf32>
    %cst = arith.constant dense<0.000000e+00> : vector<8x512xf32>
    %2 = tpu.matmul %0, %1, %cst {dimension_numbers = #tpu.dot_dimension_numbers<[1], [0], [0], [1], [0, 0, 1, 1], [], []>, precision = #tpu.contract_precision<fp32>} : vector<8x32xf32>, vector<32x512xf32>, vector<8x512xf32> -> vector<8x512xf32>
    %c0_3 = arith.constant 0 : index
    %c0_4 = arith.constant 0 : index
    %3 = vector.load %arg3[%c0_3, %c0_4] : memref<1x512xf32, #tpu.memory_space<vmem>>, vector<1x512xf32>
    %4 = vector.broadcast %3 : vector<1x512xf32> to vector<8x512xf32>
    %5 = arith.addf %2, %4 : vector<8x512xf32>
    %c0_5 = arith.constant 0 : index
    %c0_6 = arith.constant 0 : index
    %6 = vector.load %arg5[%c0_5, %c0_6] : memref<128x256xf32, #tpu.memory_space<vmem>>, vector<128x256xf32>
    %c0_7 = arith.constant 0 : index
    %c0_8 = arith.constant 0 : index
    %7 = vector.load %arg6[%c0_7, %c0_8] : memref<256x128xf32, #tpu.memory_space<vmem>>, vector<256x128xf32>
    %c0_9 = arith.constant 0 : index
    %c0_10 = arith.constant 0 : index
    %8 = vector.load %arg4[%c0_9, %c0_10] : memref<16x4096xf32, #tpu.memory_space<vmem>>, vector<16x4096xf32>
    %9 = vector.extract_strided_slice %5 {offsets = [0, 0], sizes = [8, 16], strides = [1, 1]} : vector<8x512xf32> to vector<8x16xf32>
    %10 = vector.extract_strided_slice %5 {offsets = [0, 128], sizes = [8, 128], strides = [1, 1]} : vector<8x512xf32> to vector<8x128xf32>
    %cst_11 = arith.constant dense<0.000000e+00> : vector<8x4096xf32>
    %11 = tpu.matmul %9, %8, %cst_11 {dimension_numbers = #tpu.dot_dimension_numbers<[1], [0], [0], [1], [0, 0, 1, 1], [], []>, precision = #tpu.contract_precision<fp32>} : vector<8x16xf32>, vector<16x4096xf32>, vector<8x4096xf32> -> vector<8x4096xf32>
    %12 = vector.extract_strided_slice %11 {offsets = [0, 0], sizes = [8, 256], strides = [1, 1]} : vector<8x4096xf32> to vector<8x256xf32>
    %c0_12 = arith.constant 0 : index
    %c0_13 = arith.constant 0 : index
    %c0_14 = arith.constant 0 : index
    %13 = vector.load %arg7[%c0_12, %c0_13, %c0_14] : memref<8x16x256xf32, #tpu.memory_space<vmem>>, vector<8x1x256xf32>
    %14 = vector.shape_cast %13 : vector<8x1x256xf32> to vector<8x256xf32>
    %15 = arith.mulf %12, %14 : vector<8x256xf32>
    %16 = vector.extract_strided_slice %11 {offsets = [0, 256], sizes = [8, 256], strides = [1, 1]} : vector<8x4096xf32> to vector<8x256xf32>
    %c0_15 = arith.constant 0 : index
    %c1 = arith.constant 1 : index
    %c0_16 = arith.constant 0 : index
    %17 = vector.load %arg7[%c0_15, %c1, %c0_16] : memref<8x16x256xf32, #tpu.memory_space<vmem>>, vector<8x1x256xf32>
    %18 = vector.shape_cast %17 : vector<8x1x256xf32> to vector<8x256xf32>
    %19 = arith.mulf %16, %18 : vector<8x256xf32>
    %20 = arith.addf %15, %19 : vector<8x256xf32>
    %21 = vector.extract_strided_slice %11 {offsets = [0, 512], sizes = [8, 256], strides = [1, 1]} : vector<8x4096xf32> to vector<8x256xf32>
    %c0_17 = arith.constant 0 : index
    %c2 = arith.constant 2 : index
    %c0_18 = arith.constant 0 : index
    %22 = vector.load %arg7[%c0_17, %c2, %c0_18] : memref<8x16x256xf32, #tpu.memory_space<vmem>>, vector<8x1x256xf32>
    %23 = vector.shape_cast %22 : vector<8x1x256xf32> to vector<8x256xf32>
    %24 = arith.mulf %21, %23 : vector<8x256xf32>
    %25 = arith.addf %20, %24 : vector<8x256xf32>
    %26 = vector.extract_strided_slice %11 {offsets = [0, 768], sizes = [8, 256], strides = [1, 1]} : vector<8x4096xf32> to vector<8x256xf32>
    %c0_19 = arith.constant 0 : index
    %c3 = arith.constant 3 : index
    %c0_20 = arith.constant 0 : index
    %27 = vector.load %arg7[%c0_19, %c3, %c0_20] : memref<8x16x256xf32, #tpu.memory_space<vmem>>, vector<8x1x256xf32>
    %28 = vector.shape_cast %27 : vector<8x1x256xf32> to vector<8x256xf32>
    %29 = arith.mulf %26, %28 : vector<8x256xf32>
    %30 = arith.addf %25, %29 : vector<8x256xf32>
    %31 = vector.extract_strided_slice %11 {offsets = [0, 1024], sizes = [8, 256], strides = [1, 1]} : vector<8x4096xf32> to vector<8x256xf32>
    %c0_21 = arith.constant 0 : index
    %c4 = arith.constant 4 : index
    %c0_22 = arith.constant 0 : index
    %32 = vector.load %arg7[%c0_21, %c4, %c0_22] : memref<8x16x256xf32, #tpu.memory_space<vmem>>, vector<8x1x256xf32>
    %33 = vector.shape_cast %32 : vector<8x1x256xf32> to vector<8x256xf32>
    %34 = arith.mulf %31, %33 : vector<8x256xf32>
    %35 = arith.addf %30, %34 : vector<8x256xf32>
    %36 = vector.extract_strided_slice %11 {offsets = [0, 1280], sizes = [8, 256], strides = [1, 1]} : vector<8x4096xf32> to vector<8x256xf32>
    %c0_23 = arith.constant 0 : index
    %c5 = arith.constant 5 : index
    %c0_24 = arith.constant 0 : index
    %37 = vector.load %arg7[%c0_23, %c5, %c0_24] : memref<8x16x256xf32, #tpu.memory_space<vmem>>, vector<8x1x256xf32>
    %38 = vector.shape_cast %37 : vector<8x1x256xf32> to vector<8x256xf32>
    %39 = arith.mulf %36, %38 : vector<8x256xf32>
    %40 = arith.addf %35, %39 : vector<8x256xf32>
    %41 = vector.extract_strided_slice %11 {offsets = [0, 1536], sizes = [8, 256], strides = [1, 1]} : vector<8x4096xf32> to vector<8x256xf32>
    %c0_25 = arith.constant 0 : index
    %c6 = arith.constant 6 : index
    %c0_26 = arith.constant 0 : index
    %42 = vector.load %arg7[%c0_25, %c6, %c0_26] : memref<8x16x256xf32, #tpu.memory_space<vmem>>, vector<8x1x256xf32>
    %43 = vector.shape_cast %42 : vector<8x1x256xf32> to vector<8x256xf32>
    %44 = arith.mulf %41, %43 : vector<8x256xf32>
    %45 = arith.addf %40, %44 : vector<8x256xf32>
    %46 = vector.extract_strided_slice %11 {offsets = [0, 1792], sizes = [8, 256], strides = [1, 1]} : vector<8x4096xf32> to vector<8x256xf32>
    %c0_27 = arith.constant 0 : index
    %c7 = arith.constant 7 : index
    %c0_28 = arith.constant 0 : index
    %47 = vector.load %arg7[%c0_27, %c7, %c0_28] : memref<8x16x256xf32, #tpu.memory_space<vmem>>, vector<8x1x256xf32>
    %48 = vector.shape_cast %47 : vector<8x1x256xf32> to vector<8x256xf32>
    %49 = arith.mulf %46, %48 : vector<8x256xf32>
    %50 = arith.addf %45, %49 : vector<8x256xf32>
    %51 = vector.extract_strided_slice %11 {offsets = [0, 2048], sizes = [8, 256], strides = [1, 1]} : vector<8x4096xf32> to vector<8x256xf32>
    %c0_29 = arith.constant 0 : index
    %c8 = arith.constant 8 : index
    %c0_30 = arith.constant 0 : index
    %52 = vector.load %arg7[%c0_29, %c8, %c0_30] : memref<8x16x256xf32, #tpu.memory_space<vmem>>, vector<8x1x256xf32>
    %53 = vector.shape_cast %52 : vector<8x1x256xf32> to vector<8x256xf32>
    %54 = arith.mulf %51, %53 : vector<8x256xf32>
    %55 = arith.addf %50, %54 : vector<8x256xf32>
    %56 = vector.extract_strided_slice %11 {offsets = [0, 2304], sizes = [8, 256], strides = [1, 1]} : vector<8x4096xf32> to vector<8x256xf32>
    %c0_31 = arith.constant 0 : index
    %c9 = arith.constant 9 : index
    %c0_32 = arith.constant 0 : index
    %57 = vector.load %arg7[%c0_31, %c9, %c0_32] : memref<8x16x256xf32, #tpu.memory_space<vmem>>, vector<8x1x256xf32>
    %58 = vector.shape_cast %57 : vector<8x1x256xf32> to vector<8x256xf32>
    %59 = arith.mulf %56, %58 : vector<8x256xf32>
    %60 = arith.addf %55, %59 : vector<8x256xf32>
    %61 = vector.extract_strided_slice %11 {offsets = [0, 2560], sizes = [8, 256], strides = [1, 1]} : vector<8x4096xf32> to vector<8x256xf32>
    %c0_33 = arith.constant 0 : index
    %c10 = arith.constant 10 : index
    %c0_34 = arith.constant 0 : index
    %62 = vector.load %arg7[%c0_33, %c10, %c0_34] : memref<8x16x256xf32, #tpu.memory_space<vmem>>, vector<8x1x256xf32>
    %63 = vector.shape_cast %62 : vector<8x1x256xf32> to vector<8x256xf32>
    %64 = arith.mulf %61, %63 : vector<8x256xf32>
    %65 = arith.addf %60, %64 : vector<8x256xf32>
    %66 = vector.extract_strided_slice %11 {offsets = [0, 2816], sizes = [8, 256], strides = [1, 1]} : vector<8x4096xf32> to vector<8x256xf32>
    %c0_35 = arith.constant 0 : index
    %c11 = arith.constant 11 : index
    %c0_36 = arith.constant 0 : index
    %67 = vector.load %arg7[%c0_35, %c11, %c0_36] : memref<8x16x256xf32, #tpu.memory_space<vmem>>, vector<8x1x256xf32>
    %68 = vector.shape_cast %67 : vector<8x1x256xf32> to vector<8x256xf32>
    %69 = arith.mulf %66, %68 : vector<8x256xf32>
    %70 = arith.addf %65, %69 : vector<8x256xf32>
    %71 = vector.extract_strided_slice %11 {offsets = [0, 3072], sizes = [8, 256], strides = [1, 1]} : vector<8x4096xf32> to vector<8x256xf32>
    %c0_37 = arith.constant 0 : index
    %c12 = arith.constant 12 : index
    %c0_38 = arith.constant 0 : index
    %72 = vector.load %arg7[%c0_37, %c12, %c0_38] : memref<8x16x256xf32, #tpu.memory_space<vmem>>, vector<8x1x256xf32>
    %73 = vector.shape_cast %72 : vector<8x1x256xf32> to vector<8x256xf32>
    %74 = arith.mulf %71, %73 : vector<8x256xf32>
    %75 = arith.addf %70, %74 : vector<8x256xf32>
    %76 = vector.extract_strided_slice %11 {offsets = [0, 3328], sizes = [8, 256], strides = [1, 1]} : vector<8x4096xf32> to vector<8x256xf32>
    %c0_39 = arith.constant 0 : index
    %c13 = arith.constant 13 : index
    %c0_40 = arith.constant 0 : index
    %77 = vector.load %arg7[%c0_39, %c13, %c0_40] : memref<8x16x256xf32, #tpu.memory_space<vmem>>, vector<8x1x256xf32>
    %78 = vector.shape_cast %77 : vector<8x1x256xf32> to vector<8x256xf32>
    %79 = arith.mulf %76, %78 : vector<8x256xf32>
    %80 = arith.addf %75, %79 : vector<8x256xf32>
    %81 = vector.extract_strided_slice %11 {offsets = [0, 3584], sizes = [8, 256], strides = [1, 1]} : vector<8x4096xf32> to vector<8x256xf32>
    %c0_41 = arith.constant 0 : index
    %c14 = arith.constant 14 : index
    %c0_42 = arith.constant 0 : index
    %82 = vector.load %arg7[%c0_41, %c14, %c0_42] : memref<8x16x256xf32, #tpu.memory_space<vmem>>, vector<8x1x256xf32>
    %83 = vector.shape_cast %82 : vector<8x1x256xf32> to vector<8x256xf32>
    %84 = arith.mulf %81, %83 : vector<8x256xf32>
    %85 = arith.addf %80, %84 : vector<8x256xf32>
    %86 = vector.extract_strided_slice %11 {offsets = [0, 3840], sizes = [8, 256], strides = [1, 1]} : vector<8x4096xf32> to vector<8x256xf32>
    %c0_43 = arith.constant 0 : index
    %c15 = arith.constant 15 : index
    %c0_44 = arith.constant 0 : index
    %87 = vector.load %arg7[%c0_43, %c15, %c0_44] : memref<8x16x256xf32, #tpu.memory_space<vmem>>, vector<8x1x256xf32>
    %88 = vector.shape_cast %87 : vector<8x1x256xf32> to vector<8x256xf32>
    %89 = arith.mulf %86, %88 : vector<8x256xf32>
    %90 = arith.addf %85, %89 : vector<8x256xf32>
    %cst_45 = arith.constant dense<0.000000e+00> : vector<8x256xf32>
    %91 = tpu.matmul %10, %6, %cst_45 {dimension_numbers = #tpu.dot_dimension_numbers<[1], [0], [0], [1], [0, 0, 1, 1], [], []>, precision = #tpu.contract_precision<fp32>} : vector<8x128xf32>, vector<128x256xf32>, vector<8x256xf32> -> vector<8x256xf32>
    %92 = arith.mulf %91, %90 : vector<8x256xf32>
    %cst_46 = arith.constant dense<0.000000e+00> : vector<8x128xf32>
    %93 = tpu.matmul %92, %7, %cst_46 {dimension_numbers = #tpu.dot_dimension_numbers<[1], [0], [0], [1], [0, 0, 1, 1], [], []>, precision = #tpu.contract_precision<fp32>} : vector<8x256xf32>, vector<256x128xf32>, vector<8x128xf32> -> vector<8x128xf32>
    %cst_47 = arith.constant dense<0.000000e+00> : vector<8xf32>
    %94 = vector.multi_reduction <add>, %93, %cst_47 [1] : vector<8x128xf32> to vector<8xf32>
    %95 = vector.shape_cast %94 : vector<8xf32> to vector<8x1xf32>
    %cst_48 = arith.constant 6.250000e-02 : f32
    %96 = vector.broadcast %cst_48 : f32 to vector<8x1xf32>
    %97 = arith.mulf %95, %96 : vector<8x1xf32>
    %98 = arith.mulf %93, %93 : vector<8x128xf32>
    %cst_49 = arith.constant dense<0.000000e+00> : vector<8xf32>
    %99 = vector.multi_reduction <add>, %98, %cst_49 [1] : vector<8x128xf32> to vector<8xf32>
    %100 = vector.shape_cast %99 : vector<8xf32> to vector<8x1xf32>
    %cst_50 = arith.constant 6.250000e-02 : f32
    %101 = vector.broadcast %cst_50 : f32 to vector<8x1xf32>
    %102 = arith.mulf %100, %101 : vector<8x1xf32>
    %103 = arith.mulf %97, %97 : vector<8x1xf32>
    %104 = arith.subf %102, %103 : vector<8x1xf32>
    %cst_51 = arith.constant 0.000000e+00 : f32
    %105 = vector.broadcast %cst_51 : f32 to vector<8x1xf32>
    %106 = arith.maximumf %104, %105 : vector<8x1xf32>
    %107 = vector.broadcast %97 : vector<8x1xf32> to vector<8x128xf32>
    %108 = arith.subf %93, %107 : vector<8x128xf32>
    %cst_52 = arith.constant 9.99999974E-6 : f32
    %109 = vector.broadcast %cst_52 : f32 to vector<8x1xf32>
    %110 = arith.addf %106, %109 : vector<8x1xf32>
    %111 = math.rsqrt %110 : vector<8x1xf32>
    %112 = vector.broadcast %111 : vector<8x1xf32> to vector<8x128xf32>
    %113 = arith.mulf %108, %112 : vector<8x128xf32>
    %114 = vector.extract_strided_slice %113 {offsets = [0, 0], sizes = [8, 16], strides = [1, 1]} : vector<8x128xf32> to vector<8x16xf32>
    %115 = vector.extract_strided_slice %5 {offsets = [0, 256], sizes = [8, 128], strides = [1, 1]} : vector<8x512xf32> to vector<8x128xf32>
    %cst_53 = arith.constant dense<0.000000e+00> : vector<8x4096xf32>
    %116 = tpu.matmul %114, %8, %cst_53 {dimension_numbers = #tpu.dot_dimension_numbers<[1], [0], [0], [1], [0, 0, 1, 1], [], []>, precision = #tpu.contract_precision<fp32>} : vector<8x16xf32>, vector<16x4096xf32>, vector<8x4096xf32> -> vector<8x4096xf32>
    %117 = vector.extract_strided_slice %116 {offsets = [0, 0], sizes = [8, 256], strides = [1, 1]} : vector<8x4096xf32> to vector<8x256xf32>
    %c0_54 = arith.constant 0 : index
    %c0_55 = arith.constant 0 : index
    %c0_56 = arith.constant 0 : index
    %118 = vector.load %arg7[%c0_54, %c0_55, %c0_56] : memref<8x16x256xf32, #tpu.memory_space<vmem>>, vector<8x1x256xf32>
    %119 = vector.shape_cast %118 : vector<8x1x256xf32> to vector<8x256xf32>
    %120 = arith.mulf %117, %119 : vector<8x256xf32>
    %121 = vector.extract_strided_slice %116 {offsets = [0, 256], sizes = [8, 256], strides = [1, 1]} : vector<8x4096xf32> to vector<8x256xf32>
    %c0_57 = arith.constant 0 : index
    %c1_58 = arith.constant 1 : index
    %c0_59 = arith.constant 0 : index
    %122 = vector.load %arg7[%c0_57, %c1_58, %c0_59] : memref<8x16x256xf32, #tpu.memory_space<vmem>>, vector<8x1x256xf32>
    %123 = vector.shape_cast %122 : vector<8x1x256xf32> to vector<8x256xf32>
    %124 = arith.mulf %121, %123 : vector<8x256xf32>
    %125 = arith.addf %120, %124 : vector<8x256xf32>
    %126 = vector.extract_strided_slice %116 {offsets = [0, 512], sizes = [8, 256], strides = [1, 1]} : vector<8x4096xf32> to vector<8x256xf32>
    %c0_60 = arith.constant 0 : index
    %c2_61 = arith.constant 2 : index
    %c0_62 = arith.constant 0 : index
    %127 = vector.load %arg7[%c0_60, %c2_61, %c0_62] : memref<8x16x256xf32, #tpu.memory_space<vmem>>, vector<8x1x256xf32>
    %128 = vector.shape_cast %127 : vector<8x1x256xf32> to vector<8x256xf32>
    %129 = arith.mulf %126, %128 : vector<8x256xf32>
    %130 = arith.addf %125, %129 : vector<8x256xf32>
    %131 = vector.extract_strided_slice %116 {offsets = [0, 768], sizes = [8, 256], strides = [1, 1]} : vector<8x4096xf32> to vector<8x256xf32>
    %c0_63 = arith.constant 0 : index
    %c3_64 = arith.constant 3 : index
    %c0_65 = arith.constant 0 : index
    %132 = vector.load %arg7[%c0_63, %c3_64, %c0_65] : memref<8x16x256xf32, #tpu.memory_space<vmem>>, vector<8x1x256xf32>
    %133 = vector.shape_cast %132 : vector<8x1x256xf32> to vector<8x256xf32>
    %134 = arith.mulf %131, %133 : vector<8x256xf32>
    %135 = arith.addf %130, %134 : vector<8x256xf32>
    %136 = vector.extract_strided_slice %116 {offsets = [0, 1024], sizes = [8, 256], strides = [1, 1]} : vector<8x4096xf32> to vector<8x256xf32>
    %c0_66 = arith.constant 0 : index
    %c4_67 = arith.constant 4 : index
    %c0_68 = arith.constant 0 : index
    %137 = vector.load %arg7[%c0_66, %c4_67, %c0_68] : memref<8x16x256xf32, #tpu.memory_space<vmem>>, vector<8x1x256xf32>
    %138 = vector.shape_cast %137 : vector<8x1x256xf32> to vector<8x256xf32>
    %139 = arith.mulf %136, %138 : vector<8x256xf32>
    %140 = arith.addf %135, %139 : vector<8x256xf32>
    %141 = vector.extract_strided_slice %116 {offsets = [0, 1280], sizes = [8, 256], strides = [1, 1]} : vector<8x4096xf32> to vector<8x256xf32>
    %c0_69 = arith.constant 0 : index
    %c5_70 = arith.constant 5 : index
    %c0_71 = arith.constant 0 : index
    %142 = vector.load %arg7[%c0_69, %c5_70, %c0_71] : memref<8x16x256xf32, #tpu.memory_space<vmem>>, vector<8x1x256xf32>
    %143 = vector.shape_cast %142 : vector<8x1x256xf32> to vector<8x256xf32>
    %144 = arith.mulf %141, %143 : vector<8x256xf32>
    %145 = arith.addf %140, %144 : vector<8x256xf32>
    %146 = vector.extract_strided_slice %116 {offsets = [0, 1536], sizes = [8, 256], strides = [1, 1]} : vector<8x4096xf32> to vector<8x256xf32>
    %c0_72 = arith.constant 0 : index
    %c6_73 = arith.constant 6 : index
    %c0_74 = arith.constant 0 : index
    %147 = vector.load %arg7[%c0_72, %c6_73, %c0_74] : memref<8x16x256xf32, #tpu.memory_space<vmem>>, vector<8x1x256xf32>
    %148 = vector.shape_cast %147 : vector<8x1x256xf32> to vector<8x256xf32>
    %149 = arith.mulf %146, %148 : vector<8x256xf32>
    %150 = arith.addf %145, %149 : vector<8x256xf32>
    %151 = vector.extract_strided_slice %116 {offsets = [0, 1792], sizes = [8, 256], strides = [1, 1]} : vector<8x4096xf32> to vector<8x256xf32>
    %c0_75 = arith.constant 0 : index
    %c7_76 = arith.constant 7 : index
    %c0_77 = arith.constant 0 : index
    %152 = vector.load %arg7[%c0_75, %c7_76, %c0_77] : memref<8x16x256xf32, #tpu.memory_space<vmem>>, vector<8x1x256xf32>
    %153 = vector.shape_cast %152 : vector<8x1x256xf32> to vector<8x256xf32>
    %154 = arith.mulf %151, %153 : vector<8x256xf32>
    %155 = arith.addf %150, %154 : vector<8x256xf32>
    %156 = vector.extract_strided_slice %116 {offsets = [0, 2048], sizes = [8, 256], strides = [1, 1]} : vector<8x4096xf32> to vector<8x256xf32>
    %c0_78 = arith.constant 0 : index
    %c8_79 = arith.constant 8 : index
    %c0_80 = arith.constant 0 : index
    %157 = vector.load %arg7[%c0_78, %c8_79, %c0_80] : memref<8x16x256xf32, #tpu.memory_space<vmem>>, vector<8x1x256xf32>
    %158 = vector.shape_cast %157 : vector<8x1x256xf32> to vector<8x256xf32>
    %159 = arith.mulf %156, %158 : vector<8x256xf32>
    %160 = arith.addf %155, %159 : vector<8x256xf32>
    %161 = vector.extract_strided_slice %116 {offsets = [0, 2304], sizes = [8, 256], strides = [1, 1]} : vector<8x4096xf32> to vector<8x256xf32>
    %c0_81 = arith.constant 0 : index
    %c9_82 = arith.constant 9 : index
    %c0_83 = arith.constant 0 : index
    %162 = vector.load %arg7[%c0_81, %c9_82, %c0_83] : memref<8x16x256xf32, #tpu.memory_space<vmem>>, vector<8x1x256xf32>
    %163 = vector.shape_cast %162 : vector<8x1x256xf32> to vector<8x256xf32>
    %164 = arith.mulf %161, %163 : vector<8x256xf32>
    %165 = arith.addf %160, %164 : vector<8x256xf32>
    %166 = vector.extract_strided_slice %116 {offsets = [0, 2560], sizes = [8, 256], strides = [1, 1]} : vector<8x4096xf32> to vector<8x256xf32>
    %c0_84 = arith.constant 0 : index
    %c10_85 = arith.constant 10 : index
    %c0_86 = arith.constant 0 : index
    %167 = vector.load %arg7[%c0_84, %c10_85, %c0_86] : memref<8x16x256xf32, #tpu.memory_space<vmem>>, vector<8x1x256xf32>
    %168 = vector.shape_cast %167 : vector<8x1x256xf32> to vector<8x256xf32>
    %169 = arith.mulf %166, %168 : vector<8x256xf32>
    %170 = arith.addf %165, %169 : vector<8x256xf32>
    %171 = vector.extract_strided_slice %116 {offsets = [0, 2816], sizes = [8, 256], strides = [1, 1]} : vector<8x4096xf32> to vector<8x256xf32>
    %c0_87 = arith.constant 0 : index
    %c11_88 = arith.constant 11 : index
    %c0_89 = arith.constant 0 : index
    %172 = vector.load %arg7[%c0_87, %c11_88, %c0_89] : memref<8x16x256xf32, #tpu.memory_space<vmem>>, vector<8x1x256xf32>
    %173 = vector.shape_cast %172 : vector<8x1x256xf32> to vector<8x256xf32>
    %174 = arith.mulf %171, %173 : vector<8x256xf32>
    %175 = arith.addf %170, %174 : vector<8x256xf32>
    %176 = vector.extract_strided_slice %116 {offsets = [0, 3072], sizes = [8, 256], strides = [1, 1]} : vector<8x4096xf32> to vector<8x256xf32>
    %c0_90 = arith.constant 0 : index
    %c12_91 = arith.constant 12 : index
    %c0_92 = arith.constant 0 : index
    %177 = vector.load %arg7[%c0_90, %c12_91, %c0_92] : memref<8x16x256xf32, #tpu.memory_space<vmem>>, vector<8x1x256xf32>
    %178 = vector.shape_cast %177 : vector<8x1x256xf32> to vector<8x256xf32>
    %179 = arith.mulf %176, %178 : vector<8x256xf32>
    %180 = arith.addf %175, %179 : vector<8x256xf32>
    %181 = vector.extract_strided_slice %116 {offsets = [0, 3328], sizes = [8, 256], strides = [1, 1]} : vector<8x4096xf32> to vector<8x256xf32>
    %c0_93 = arith.constant 0 : index
    %c13_94 = arith.constant 13 : index
    %c0_95 = arith.constant 0 : index
    %182 = vector.load %arg7[%c0_93, %c13_94, %c0_95] : memref<8x16x256xf32, #tpu.memory_space<vmem>>, vector<8x1x256xf32>
    %183 = vector.shape_cast %182 : vector<8x1x256xf32> to vector<8x256xf32>
    %184 = arith.mulf %181, %183 : vector<8x256xf32>
    %185 = arith.addf %180, %184 : vector<8x256xf32>
    %186 = vector.extract_strided_slice %116 {offsets = [0, 3584], sizes = [8, 256], strides = [1, 1]} : vector<8x4096xf32> to vector<8x256xf32>
    %c0_96 = arith.constant 0 : index
    %c14_97 = arith.constant 14 : index
    %c0_98 = arith.constant 0 : index
    %187 = vector.load %arg7[%c0_96, %c14_97, %c0_98] : memref<8x16x256xf32, #tpu.memory_space<vmem>>, vector<8x1x256xf32>
    %188 = vector.shape_cast %187 : vector<8x1x256xf32> to vector<8x256xf32>
    %189 = arith.mulf %186, %188 : vector<8x256xf32>
    %190 = arith.addf %185, %189 : vector<8x256xf32>
    %191 = vector.extract_strided_slice %116 {offsets = [0, 3840], sizes = [8, 256], strides = [1, 1]} : vector<8x4096xf32> to vector<8x256xf32>
    %c0_99 = arith.constant 0 : index
    %c15_100 = arith.constant 15 : index
    %c0_101 = arith.constant 0 : index
    %192 = vector.load %arg7[%c0_99, %c15_100, %c0_101] : memref<8x16x256xf32, #tpu.memory_space<vmem>>, vector<8x1x256xf32>
    %193 = vector.shape_cast %192 : vector<8x1x256xf32> to vector<8x256xf32>
    %194 = arith.mulf %191, %193 : vector<8x256xf32>
    %195 = arith.addf %190, %194 : vector<8x256xf32>
    %cst_102 = arith.constant dense<0.000000e+00> : vector<8x256xf32>
    %196 = tpu.matmul %115, %6, %cst_102 {dimension_numbers = #tpu.dot_dimension_numbers<[1], [0], [0], [1], [0, 0, 1, 1], [], []>, precision = #tpu.contract_precision<fp32>} : vector<8x128xf32>, vector<128x256xf32>, vector<8x256xf32> -> vector<8x256xf32>
    %197 = arith.mulf %196, %195 : vector<8x256xf32>
    %cst_103 = arith.constant dense<0.000000e+00> : vector<8x128xf32>
    %198 = tpu.matmul %197, %7, %cst_103 {dimension_numbers = #tpu.dot_dimension_numbers<[1], [0], [0], [1], [0, 0, 1, 1], [], []>, precision = #tpu.contract_precision<fp32>} : vector<8x256xf32>, vector<256x128xf32>, vector<8x128xf32> -> vector<8x128xf32>
    %cst_104 = arith.constant dense<0.000000e+00> : vector<8xf32>
    %199 = vector.multi_reduction <add>, %198, %cst_104 [1] : vector<8x128xf32> to vector<8xf32>
    %200 = vector.shape_cast %199 : vector<8xf32> to vector<8x1xf32>
    %cst_105 = arith.constant 6.250000e-02 : f32
    %201 = vector.broadcast %cst_105 : f32 to vector<8x1xf32>
    %202 = arith.mulf %200, %201 : vector<8x1xf32>
    %203 = arith.mulf %198, %198 : vector<8x128xf32>
    %cst_106 = arith.constant dense<0.000000e+00> : vector<8xf32>
    %204 = vector.multi_reduction <add>, %203, %cst_106 [1] : vector<8x128xf32> to vector<8xf32>
    %205 = vector.shape_cast %204 : vector<8xf32> to vector<8x1xf32>
    %cst_107 = arith.constant 6.250000e-02 : f32
    %206 = vector.broadcast %cst_107 : f32 to vector<8x1xf32>
    %207 = arith.mulf %205, %206 : vector<8x1xf32>
    %208 = arith.mulf %202, %202 : vector<8x1xf32>
    %209 = arith.subf %207, %208 : vector<8x1xf32>
    %cst_108 = arith.constant 0.000000e+00 : f32
    %210 = vector.broadcast %cst_108 : f32 to vector<8x1xf32>
    %211 = arith.maximumf %209, %210 : vector<8x1xf32>
    %212 = vector.broadcast %202 : vector<8x1xf32> to vector<8x128xf32>
    %213 = arith.subf %198, %212 : vector<8x128xf32>
    %cst_109 = arith.constant 9.99999974E-6 : f32
    %214 = vector.broadcast %cst_109 : f32 to vector<8x1xf32>
    %215 = arith.addf %211, %214 : vector<8x1xf32>
    %216 = math.rsqrt %215 : vector<8x1xf32>
    %217 = vector.broadcast %216 : vector<8x1xf32> to vector<8x128xf32>
    %218 = arith.mulf %213, %217 : vector<8x128xf32>
    %219 = vector.extract_strided_slice %218 {offsets = [0, 0], sizes = [8, 16], strides = [1, 1]} : vector<8x128xf32> to vector<8x16xf32>
    %220 = vector.extract_strided_slice %5 {offsets = [0, 384], sizes = [8, 128], strides = [1, 1]} : vector<8x512xf32> to vector<8x128xf32>
    %cst_110 = arith.constant dense<0.000000e+00> : vector<8x4096xf32>
    %221 = tpu.matmul %219, %8, %cst_110 {dimension_numbers = #tpu.dot_dimension_numbers<[1], [0], [0], [1], [0, 0, 1, 1], [], []>, precision = #tpu.contract_precision<fp32>} : vector<8x16xf32>, vector<16x4096xf32>, vector<8x4096xf32> -> vector<8x4096xf32>
    %222 = vector.extract_strided_slice %221 {offsets = [0, 0], sizes = [8, 256], strides = [1, 1]} : vector<8x4096xf32> to vector<8x256xf32>
    %c0_111 = arith.constant 0 : index
    %c0_112 = arith.constant 0 : index
    %c0_113 = arith.constant 0 : index
    %223 = vector.load %arg7[%c0_111, %c0_112, %c0_113] : memref<8x16x256xf32, #tpu.memory_space<vmem>>, vector<8x1x256xf32>
    %224 = vector.shape_cast %223 : vector<8x1x256xf32> to vector<8x256xf32>
    %225 = arith.mulf %222, %224 : vector<8x256xf32>
    %226 = vector.extract_strided_slice %221 {offsets = [0, 256], sizes = [8, 256], strides = [1, 1]} : vector<8x4096xf32> to vector<8x256xf32>
    %c0_114 = arith.constant 0 : index
    %c1_115 = arith.constant 1 : index
    %c0_116 = arith.constant 0 : index
    %227 = vector.load %arg7[%c0_114, %c1_115, %c0_116] : memref<8x16x256xf32, #tpu.memory_space<vmem>>, vector<8x1x256xf32>
    %228 = vector.shape_cast %227 : vector<8x1x256xf32> to vector<8x256xf32>
    %229 = arith.mulf %226, %228 : vector<8x256xf32>
    %230 = arith.addf %225, %229 : vector<8x256xf32>
    %231 = vector.extract_strided_slice %221 {offsets = [0, 512], sizes = [8, 256], strides = [1, 1]} : vector<8x4096xf32> to vector<8x256xf32>
    %c0_117 = arith.constant 0 : index
    %c2_118 = arith.constant 2 : index
    %c0_119 = arith.constant 0 : index
    %232 = vector.load %arg7[%c0_117, %c2_118, %c0_119] : memref<8x16x256xf32, #tpu.memory_space<vmem>>, vector<8x1x256xf32>
    %233 = vector.shape_cast %232 : vector<8x1x256xf32> to vector<8x256xf32>
    %234 = arith.mulf %231, %233 : vector<8x256xf32>
    %235 = arith.addf %230, %234 : vector<8x256xf32>
    %236 = vector.extract_strided_slice %221 {offsets = [0, 768], sizes = [8, 256], strides = [1, 1]} : vector<8x4096xf32> to vector<8x256xf32>
    %c0_120 = arith.constant 0 : index
    %c3_121 = arith.constant 3 : index
    %c0_122 = arith.constant 0 : index
    %237 = vector.load %arg7[%c0_120, %c3_121, %c0_122] : memref<8x16x256xf32, #tpu.memory_space<vmem>>, vector<8x1x256xf32>
    %238 = vector.shape_cast %237 : vector<8x1x256xf32> to vector<8x256xf32>
    %239 = arith.mulf %236, %238 : vector<8x256xf32>
    %240 = arith.addf %235, %239 : vector<8x256xf32>
    %241 = vector.extract_strided_slice %221 {offsets = [0, 1024], sizes = [8, 256], strides = [1, 1]} : vector<8x4096xf32> to vector<8x256xf32>
    %c0_123 = arith.constant 0 : index
    %c4_124 = arith.constant 4 : index
    %c0_125 = arith.constant 0 : index
    %242 = vector.load %arg7[%c0_123, %c4_124, %c0_125] : memref<8x16x256xf32, #tpu.memory_space<vmem>>, vector<8x1x256xf32>
    %243 = vector.shape_cast %242 : vector<8x1x256xf32> to vector<8x256xf32>
    %244 = arith.mulf %241, %243 : vector<8x256xf32>
    %245 = arith.addf %240, %244 : vector<8x256xf32>
    %246 = vector.extract_strided_slice %221 {offsets = [0, 1280], sizes = [8, 256], strides = [1, 1]} : vector<8x4096xf32> to vector<8x256xf32>
    %c0_126 = arith.constant 0 : index
    %c5_127 = arith.constant 5 : index
    %c0_128 = arith.constant 0 : index
    %247 = vector.load %arg7[%c0_126, %c5_127, %c0_128] : memref<8x16x256xf32, #tpu.memory_space<vmem>>, vector<8x1x256xf32>
    %248 = vector.shape_cast %247 : vector<8x1x256xf32> to vector<8x256xf32>
    %249 = arith.mulf %246, %248 : vector<8x256xf32>
    %250 = arith.addf %245, %249 : vector<8x256xf32>
    %251 = vector.extract_strided_slice %221 {offsets = [0, 1536], sizes = [8, 256], strides = [1, 1]} : vector<8x4096xf32> to vector<8x256xf32>
    %c0_129 = arith.constant 0 : index
    %c6_130 = arith.constant 6 : index
    %c0_131 = arith.constant 0 : index
    %252 = vector.load %arg7[%c0_129, %c6_130, %c0_131] : memref<8x16x256xf32, #tpu.memory_space<vmem>>, vector<8x1x256xf32>
    %253 = vector.shape_cast %252 : vector<8x1x256xf32> to vector<8x256xf32>
    %254 = arith.mulf %251, %253 : vector<8x256xf32>
    %255 = arith.addf %250, %254 : vector<8x256xf32>
    %256 = vector.extract_strided_slice %221 {offsets = [0, 1792], sizes = [8, 256], strides = [1, 1]} : vector<8x4096xf32> to vector<8x256xf32>
    %c0_132 = arith.constant 0 : index
    %c7_133 = arith.constant 7 : index
    %c0_134 = arith.constant 0 : index
    %257 = vector.load %arg7[%c0_132, %c7_133, %c0_134] : memref<8x16x256xf32, #tpu.memory_space<vmem>>, vector<8x1x256xf32>
    %258 = vector.shape_cast %257 : vector<8x1x256xf32> to vector<8x256xf32>
    %259 = arith.mulf %256, %258 : vector<8x256xf32>
    %260 = arith.addf %255, %259 : vector<8x256xf32>
    %261 = vector.extract_strided_slice %221 {offsets = [0, 2048], sizes = [8, 256], strides = [1, 1]} : vector<8x4096xf32> to vector<8x256xf32>
    %c0_135 = arith.constant 0 : index
    %c8_136 = arith.constant 8 : index
    %c0_137 = arith.constant 0 : index
    %262 = vector.load %arg7[%c0_135, %c8_136, %c0_137] : memref<8x16x256xf32, #tpu.memory_space<vmem>>, vector<8x1x256xf32>
    %263 = vector.shape_cast %262 : vector<8x1x256xf32> to vector<8x256xf32>
    %264 = arith.mulf %261, %263 : vector<8x256xf32>
    %265 = arith.addf %260, %264 : vector<8x256xf32>
    %266 = vector.extract_strided_slice %221 {offsets = [0, 2304], sizes = [8, 256], strides = [1, 1]} : vector<8x4096xf32> to vector<8x256xf32>
    %c0_138 = arith.constant 0 : index
    %c9_139 = arith.constant 9 : index
    %c0_140 = arith.constant 0 : index
    %267 = vector.load %arg7[%c0_138, %c9_139, %c0_140] : memref<8x16x256xf32, #tpu.memory_space<vmem>>, vector<8x1x256xf32>
    %268 = vector.shape_cast %267 : vector<8x1x256xf32> to vector<8x256xf32>
    %269 = arith.mulf %266, %268 : vector<8x256xf32>
    %270 = arith.addf %265, %269 : vector<8x256xf32>
    %271 = vector.extract_strided_slice %221 {offsets = [0, 2560], sizes = [8, 256], strides = [1, 1]} : vector<8x4096xf32> to vector<8x256xf32>
    %c0_141 = arith.constant 0 : index
    %c10_142 = arith.constant 10 : index
    %c0_143 = arith.constant 0 : index
    %272 = vector.load %arg7[%c0_141, %c10_142, %c0_143] : memref<8x16x256xf32, #tpu.memory_space<vmem>>, vector<8x1x256xf32>
    %273 = vector.shape_cast %272 : vector<8x1x256xf32> to vector<8x256xf32>
    %274 = arith.mulf %271, %273 : vector<8x256xf32>
    %275 = arith.addf %270, %274 : vector<8x256xf32>
    %276 = vector.extract_strided_slice %221 {offsets = [0, 2816], sizes = [8, 256], strides = [1, 1]} : vector<8x4096xf32> to vector<8x256xf32>
    %c0_144 = arith.constant 0 : index
    %c11_145 = arith.constant 11 : index
    %c0_146 = arith.constant 0 : index
    %277 = vector.load %arg7[%c0_144, %c11_145, %c0_146] : memref<8x16x256xf32, #tpu.memory_space<vmem>>, vector<8x1x256xf32>
    %278 = vector.shape_cast %277 : vector<8x1x256xf32> to vector<8x256xf32>
    %279 = arith.mulf %276, %278 : vector<8x256xf32>
    %280 = arith.addf %275, %279 : vector<8x256xf32>
    %281 = vector.extract_strided_slice %221 {offsets = [0, 3072], sizes = [8, 256], strides = [1, 1]} : vector<8x4096xf32> to vector<8x256xf32>
    %c0_147 = arith.constant 0 : index
    %c12_148 = arith.constant 12 : index
    %c0_149 = arith.constant 0 : index
    %282 = vector.load %arg7[%c0_147, %c12_148, %c0_149] : memref<8x16x256xf32, #tpu.memory_space<vmem>>, vector<8x1x256xf32>
    %283 = vector.shape_cast %282 : vector<8x1x256xf32> to vector<8x256xf32>
    %284 = arith.mulf %281, %283 : vector<8x256xf32>
    %285 = arith.addf %280, %284 : vector<8x256xf32>
    %286 = vector.extract_strided_slice %221 {offsets = [0, 3328], sizes = [8, 256], strides = [1, 1]} : vector<8x4096xf32> to vector<8x256xf32>
    %c0_150 = arith.constant 0 : index
    %c13_151 = arith.constant 13 : index
    %c0_152 = arith.constant 0 : index
    %287 = vector.load %arg7[%c0_150, %c13_151, %c0_152] : memref<8x16x256xf32, #tpu.memory_space<vmem>>, vector<8x1x256xf32>
    %288 = vector.shape_cast %287 : vector<8x1x256xf32> to vector<8x256xf32>
    %289 = arith.mulf %286, %288 : vector<8x256xf32>
    %290 = arith.addf %285, %289 : vector<8x256xf32>
    %291 = vector.extract_strided_slice %221 {offsets = [0, 3584], sizes = [8, 256], strides = [1, 1]} : vector<8x4096xf32> to vector<8x256xf32>
    %c0_153 = arith.constant 0 : index
    %c14_154 = arith.constant 14 : index
    %c0_155 = arith.constant 0 : index
    %292 = vector.load %arg7[%c0_153, %c14_154, %c0_155] : memref<8x16x256xf32, #tpu.memory_space<vmem>>, vector<8x1x256xf32>
    %293 = vector.shape_cast %292 : vector<8x1x256xf32> to vector<8x256xf32>
    %294 = arith.mulf %291, %293 : vector<8x256xf32>
    %295 = arith.addf %290, %294 : vector<8x256xf32>
    %296 = vector.extract_strided_slice %221 {offsets = [0, 3840], sizes = [8, 256], strides = [1, 1]} : vector<8x4096xf32> to vector<8x256xf32>
    %c0_156 = arith.constant 0 : index
    %c15_157 = arith.constant 15 : index
    %c0_158 = arith.constant 0 : index
    %297 = vector.load %arg7[%c0_156, %c15_157, %c0_158] : memref<8x16x256xf32, #tpu.memory_space<vmem>>, vector<8x1x256xf32>
    %298 = vector.shape_cast %297 : vector<8x1x256xf32> to vector<8x256xf32>
    %299 = arith.mulf %296, %298 : vector<8x256xf32>
    %300 = arith.addf %295, %299 : vector<8x256xf32>
    %cst_159 = arith.constant dense<0.000000e+00> : vector<8x256xf32>
    %301 = tpu.matmul %220, %6, %cst_159 {dimension_numbers = #tpu.dot_dimension_numbers<[1], [0], [0], [1], [0, 0, 1, 1], [], []>, precision = #tpu.contract_precision<fp32>} : vector<8x128xf32>, vector<128x256xf32>, vector<8x256xf32> -> vector<8x256xf32>
    %302 = arith.mulf %301, %300 : vector<8x256xf32>
    %cst_160 = arith.constant dense<0.000000e+00> : vector<8x128xf32>
    %303 = tpu.matmul %302, %7, %cst_160 {dimension_numbers = #tpu.dot_dimension_numbers<[1], [0], [0], [1], [0, 0, 1, 1], [], []>, precision = #tpu.contract_precision<fp32>} : vector<8x256xf32>, vector<256x128xf32>, vector<8x128xf32> -> vector<8x128xf32>
    %cst_161 = arith.constant dense<0.000000e+00> : vector<8xf32>
    %304 = vector.multi_reduction <add>, %303, %cst_161 [1] : vector<8x128xf32> to vector<8xf32>
    %305 = vector.shape_cast %304 : vector<8xf32> to vector<8x1xf32>
    %cst_162 = arith.constant 6.250000e-02 : f32
    %306 = vector.broadcast %cst_162 : f32 to vector<8x1xf32>
    %307 = arith.mulf %305, %306 : vector<8x1xf32>
    %308 = arith.mulf %303, %303 : vector<8x128xf32>
    %cst_163 = arith.constant dense<0.000000e+00> : vector<8xf32>
    %309 = vector.multi_reduction <add>, %308, %cst_163 [1] : vector<8x128xf32> to vector<8xf32>
    %310 = vector.shape_cast %309 : vector<8xf32> to vector<8x1xf32>
    %cst_164 = arith.constant 6.250000e-02 : f32
    %311 = vector.broadcast %cst_164 : f32 to vector<8x1xf32>
    %312 = arith.mulf %310, %311 : vector<8x1xf32>
    %313 = arith.mulf %307, %307 : vector<8x1xf32>
    %314 = arith.subf %312, %313 : vector<8x1xf32>
    %cst_165 = arith.constant 0.000000e+00 : f32
    %315 = vector.broadcast %cst_165 : f32 to vector<8x1xf32>
    %316 = arith.maximumf %314, %315 : vector<8x1xf32>
    %317 = vector.broadcast %307 : vector<8x1xf32> to vector<8x128xf32>
    %318 = arith.subf %303, %317 : vector<8x128xf32>
    %cst_166 = arith.constant 9.99999974E-6 : f32
    %319 = vector.broadcast %cst_166 : f32 to vector<8x1xf32>
    %320 = arith.addf %316, %319 : vector<8x1xf32>
    %321 = math.rsqrt %320 : vector<8x1xf32>
    %322 = vector.broadcast %321 : vector<8x1xf32> to vector<8x128xf32>
    %323 = arith.mulf %318, %322 : vector<8x128xf32>
    %c0_167 = arith.constant 0 : index
    %c0_168 = arith.constant 0 : index
    %324 = vector.load %arg8[%c0_167, %c0_168] : memref<8x128xf32, #tpu.memory_space<vmem>>, vector<8x128xf32>
    tpu.vector_store %arg8[%c0_167, %c0_168], %323 {strides = array<i32>} : memref<8x128xf32, #tpu.memory_space<vmem>>, vector<8x128xf32>,
    return
  }
  func.func @transform_0(%arg0: i32) -> (i32, i32) {
    %c0_i32 = arith.constant 0 : i32
    %c0_i32_0 = arith.constant 0 : i32
    return %arg0, %c0_i32 : i32, i32
  }
  func.func @transform_1(%arg0: i32) -> (i32, i32) {
    %c0_i32 = arith.constant 0 : i32
    %c0_i32_0 = arith.constant 0 : i32
    %c0_i32_1 = arith.constant 0 : i32
    return %c0_i32, %c0_i32_0 : i32, i32
  }
  func.func @transform_2(%arg0: i32) -> (i32, i32) {
    %c0_i32 = arith.constant 0 : i32
    %c0_i32_0 = arith.constant 0 : i32
    %c0_i32_1 = arith.constant 0 : i32
    return %c0_i32, %c0_i32_0 : i32, i32
  }
  func.func @transform_3(%arg0: i32) -> (i32, i32) {
    %c0_i32 = arith.constant 0 : i32
    %c0_i32_0 = arith.constant 0 : i32
    %c0_i32_1 = arith.constant 0 : i32
    return %c0_i32, %c0_i32_0 : i32, i32
  }
  func.func @transform_4(%arg0: i32) -> (i32, i32) {
    %c0_i32 = arith.constant 0 : i32
    %c0_i32_0 = arith.constant 0 : i32
    %c0_i32_1 = arith.constant 0 : i32
    return %c0_i32, %c0_i32_0 : i32, i32
  }
  func.func @transform_5(%arg0: i32) -> (i32, i32) {
    %c0_i32 = arith.constant 0 : i32
    %c0_i32_0 = arith.constant 0 : i32
    %c0_i32_1 = arith.constant 0 : i32
    return %c0_i32, %c0_i32_0 : i32, i32
  }
  func.func @transform_6(%arg0: i32) -> (i32, i32, i32) {
    %c0_i32 = arith.constant 0 : i32
    %c0_i32_0 = arith.constant 0 : i32
    %c0_i32_1 = arith.constant 0 : i32
    return %arg0, %c0_i32, %c0_i32_0 : i32, i32, i32
  }
  func.func @transform_7(%arg0: i32) -> (i32, i32) {
    %c0_i32 = arith.constant 0 : i32
    %c0_i32_0 = arith.constant 0 : i32
    return %arg0, %c0_i32 : i32, i32
  }
}

</mosaic_0001>

<bundles_post_ra>
// kernel: tpu_custom_call.1
= control target key start
LH: loop header
LB: loop body
LE: loop exit
PB: predicated region body
PF: predicated region fallthrough
CT: control target
= control target key end

     0   :  { %s41455_s0 = inlined_call_operand.hbm [shape: f32[16,32], index: 0, kind: input, shape index: {}]   ;;  %s41456_s1 = inlined_call_operand.hbm [shape: f32[32,512], index: 1, kind: input, shape index: {}]   ;;  %s41457_s2 = inlined_call_operand.vmem [shape: f32[1,512], index: 2, kind: input, shape index: {}]   ;;  %s41458_s3 = inlined_call_operand.hbm [shape: f32[16,4096], index: 3, kind: input, shape index: {}]   ;;  %s41459_s4 = inlined_call_operand.hbm [shape: f32[128,256], index: 4, kind: input, shape index: {}]   ;;  %s41460_s5 = inlined_call_operand.hbm [shape: f32[256,128], index: 5, kind: input, shape index: {}]   ;;  %s41461_s6 = inlined_call_operand.hbm [shape: f32[16,16,256], index: 6, kind: input, shape index: {}]   ;;  %s41462_s7 = inlined_call_operand.hbm [shape: f32[16,128], index: 7, kind: output, shape index: {}]  }
   0x1   :  { %42213 = sst [smem:[#allocation310_spill]] %s41455_s0 }
   0x2   :  { %42214 = sst [smem:[#allocation311_spill]] %s41456_s1 }
   0x3   :  { %12 = vsyncpa [#allocation3], 0 }
   0x4   :  { %14 = vsyncpa [#allocation3 + $0x1], 0 }
   0x5   :  { %15 = vsyncpa [#allocation6], 0 }
   0x6   :  { %16 = vsyncpa [#allocation9], 0 }
   0x7   :  { %17 = vsyncpa [#allocation12], 0 }
   0x8   :  { %19 = vsyncpa [#allocation12 + $0x1], 0 }
   0x9   :  { %20 = vsyncpa [#allocation4], 0 }
   0xa   :  { %22 = vsyncpa [#allocation4 + $0x1], 0  ;;  %s36367_s24 = smov 0   ;;  %s36369_s25 = smov 0  }
   0xb   :  { %s36371_s26 = smov 0   ;;  %s36373_s27 = smov 0  }
   0xc LB: > { %s36311_s28 = smov [#allocation5]   ;;  %s36388_s30 = sadd.s32 4294967295, %s36309_s27   ;;  %s36309_s27 = sphi %s36373_s27, %s43469_s27   ;;  %s36305_s26 = sphi %s36371_s26, %s43468_s26   ;;  %s36301_s25 = sphi %s36369_s25, %s43467_s25   ;;  %s36297_s24 = sphi %s36367_s24, %s43466_s24  }
   0xd   : > { %s228_s29 = sshll.u32 %s36311_s28, 4  ;;  %p32232_p0 = scmp.ge.s32.totalorder %s36309_s27, 1  ;;  %s36393_s29 = int_to_ptr.vmem [resolvable:$true] %s228_s29 }
   0xe   : > { %p41463_p1 = scmp.eq.s32.totalorder %s36388_s30, 0  ;;  %p216_p2 = scmp.lt.s32.totalorder %s36309_s27, 3 }
   0xf   : > { %s36312_s10 = smov [#allocation8]   ;;  %s36313_s12 = smov [#allocation7]  }
  0x10   : > { %p36395_p3 = pnand %p32232_p0, %p216_p2  ;;  %s257_s11 = sshll.u32 %s36312_s10, 4  ;;  %s36408_s11 = int_to_ptr.vmem [resolvable:$true] %s257_s11 }
  0x11   : > { %s36410_s13 = sshll.u32 %s36313_s12, 4  ;;  %s42217_s1 = sld [smem:[#allocation311_spill]]  ;;  %s245_s13 = int_to_ptr.vmem [resolvable:$true] %s36410_s13 }
  0x12   : > { %s42215_s8 = scalar_select %p36395_p3, 1, 0 }
  0x13   : > { %p35971_p5 = pneg %p36395_p3 }
  0x15   : > { %p36404_p6 = pnand %p35971_p5, %p41463_p1 }
  0x17   : > { %s36059_s16 = scalar_lea.hbm %s42217_s1, 2048  ;;  %p36420_p8 = pneg %p36404_p6 }
  0x18   : > { %p36060_p7 = scmp.ne.s32.totalorder %s42217_s1, %s36059_s16  ;;  %p36066_p11 = scmp.lt.u32.totalorder %s36059_s16, %s42217_s1 }
  0x1a   : > { %p36062_p9 = pnand %p36420_p8, %p36060_p7 }
  0x1c   : > { %p36063_p10 = pneg %p36062_p9 }
  0x1e   : > { %p36068_p12 = pnand %p36066_p11, %p36063_p10 }
  0x20   : > { %36071 = shalt.err (!%p36068_p12)
}
  0x21   : > { %s36072_s22 = scalar_lea.vmem %s36393_s29, 2048  ;;  %p36080_p5 = scmp.lt.s32.totalorder %s36393_s29, %s36393_s29 }
  0x22   : > { %p36073_p13 = scmp.ne.s32.totalorder %s36393_s29, %s36072_s22  ;;  %p36081_p4 = scmp.lt.s32.totalorder %s36072_s22, %s36072_s22 }
  0x24   : > { %p36075_p0 = pnand %p36073_p13, %p36420_p8  ;;  %p36082_p7 = por %p36081_p4, %p36080_p5 }
  0x26   : > { %p36076_p2 = pneg %p36075_p0 }
  0x28   : > { %p36083_p9 = pnand %p36082_p7, %p36076_p2 }
  0x2a   : > { %36086 = shalt.err (!%p36083_p9)
}
  0x2b   : > { %s36314_s23 = smov 512   ;;  %s36315_s28 = smov 32  }
  0x2c   : > { %35974 = dma.hbm_to_vmem [thread:$0]  (!%p36404_p6), %s42217_s1, 2048, %s36393_s29, [#allocation6], %s36314_s23, %s36314_s23, %s36315_s28  }
  0x2d   : > { %s36087_s16 = scalar_lea.hbm %s41459_s4, 4096 }
  0x2e   : > { %p36088_p4 = scmp.ne.s32.totalorder %s41459_s4, %s36087_s16  ;;  %p36094_p12 = scmp.lt.u32.totalorder %s36087_s16, %s41459_s4 }
  0x30   : > { %p36090_p10 = pnand %p36088_p4, %p36420_p8 }
  0x32   : > { %p36091_p11 = pneg %p36090_p10 }
  0x34   : > { %p36096_p13 = pnand %p36094_p12, %p36091_p11 }
  0x36   : > { %36099 = shalt.err (!%p36096_p13)
}
  0x37   : > { %s36100_s29 = scalar_lea.vmem %s36408_s11, 4096  ;;  %p36108_p7 = scmp.lt.s32.totalorder %s36408_s11, %s36408_s11 }
  0x38   : > { %p36101_p0 = scmp.ne.s32.totalorder %s36408_s11, %s36100_s29  ;;  %p36109_p9 = scmp.lt.s32.totalorder %s36100_s29, %s36100_s29 }
  0x3a   : > { %p36103_p2 = pnand %p36101_p0, %p36420_p8  ;;  %p36110_p4 = por %p36109_p9, %p36108_p7 }
  0x3c   : > { %p36104_p5 = pneg %p36103_p2 }
  0x3e   : > { %p36111_p10 = pnand %p36110_p4, %p36104_p5 }
  0x40   : > { %36114 = shalt.err (!%p36111_p10)
}
  0x41   : > { %s41465_s22 = smov 256   ;;  %s41466_s23 = smov 16  }
  0x42   : > { %35980 = dma.hbm_to_vmem [thread:$0]  (!%p36404_p6), %s41459_s4, 4096, %s36408_s11, [#allocation9], %s41465_s22, %s41465_s22, %s41466_s23  }
  0x43   : > { %s36115_s15 = scalar_lea.hbm %s41458_s3, 8192 }
  0x44   : > { %p36116_p11 = scmp.ne.s32.totalorder %s41458_s3, %s36115_s15  ;;  %p36122_p0 = scmp.lt.u32.totalorder %s36115_s15, %s41458_s3 }
  0x46   : > { %p36118_p12 = pnand %p36116_p11, %p36420_p8 }
  0x48   : > { %p36119_p13 = pneg %p36118_p12 }
  0x4a   : > { %p36124_p2 = pnand %p36122_p0, %p36119_p13 }
  0x4c   : > { %36127 = shalt.err (!%p36124_p2)
}
  0x4d   : > { %s36128_s21 = scalar_lea.vmem %s245_s13, 8192  ;;  %p36136_p4 = scmp.lt.s32.totalorder %s245_s13, %s245_s13 }
  0x4e   : > { %p36129_p5 = scmp.ne.s32.totalorder %s245_s13, %s36128_s21  ;;  %p36137_p10 = scmp.lt.s32.totalorder %s36128_s21, %s36128_s21 }
  0x50   : > { %p36131_p7 = pnand %p36129_p5, %p36420_p8  ;;  %p36138_p1 = por %p36137_p10, %p36136_p4 }
  0x52   : > { %p36132_p9 = pneg %p36131_p7 }
  0x54   : > { %p36139_p3 = pnand %p36138_p1, %p36132_p9 }
  0x56   : > { %36142 = shalt.err (!%p36139_p3)
}
  0x57   : > { %s36318_s11 = smov 4096   ;;  %s36319_s10 = smov [#allocation10]  }
  0x58   : > { %35977 = dma.hbm_to_vmem [thread:$0]  (!%p36404_p6), %s41458_s3, 8192, %s245_s13, [#allocation6], %s36318_s11, %s36318_s11, %s41465_s22  }
  0x59   : > { %s270_s12 = sshll.u32 %s36319_s10, 4  ;;  %s36143_s16 = scalar_lea.hbm %s41460_s5, 4096  ;;  %s271_s12 = int_to_ptr.vmem [resolvable:$true] %s270_s12 }
  0x5a   : > { %p36144_p1 = scmp.ne.s32.totalorder %s41460_s5, %s36143_s16  ;;  %p36150_p12 = scmp.lt.u32.totalorder %s36143_s16, %s41460_s5 }
  0x5c   : > { %p36146_p3 = pnand %p36144_p1, %p36420_p8 }
  0x5e   : > { %p36147_p11 = pneg %p36146_p3 }
  0x60   : > { %p36152_p13 = pnand %p36150_p12, %p36147_p11 }
  0x62   : > { %36155 = shalt.err (!%p36152_p13)
}
  0x63   : > { %s36156_s13 = scalar_lea.vmem %s271_s12, 4096  ;;  %p36164_p7 = scmp.lt.s32.totalorder %s271_s12, %s271_s12 }
  0x64   : > { %p36157_p0 = scmp.ne.s32.totalorder %s271_s12, %s36156_s13  ;;  %p36165_p9 = scmp.lt.s32.totalorder %s36156_s13, %s36156_s13 }
  0x66   : > { %p36159_p2 = pnand %p36157_p0, %p36420_p8  ;;  %p36166_p4 = por %p36165_p9, %p36164_p7 }
  0x68   : > { %p36160_p5 = pneg %p36159_p2 }
  0x6a   : > { %p36167_p10 = pnand %p36166_p4, %p36160_p5 }
  0x6c   : > { %36170 = shalt.err (!%p36167_p10)
}
  0x6d   : > { %s36320_s11 = smov 128   ;;  %s36321_s19 = smov 8  }
  0x6e   : > { %35983 = dma.hbm_to_vmem [thread:$0]  (!%p36404_p6), %s41460_s5, 4096, %s271_s12, [#allocation9], %s36320_s11, %s36320_s11, %s36321_s19  }
  0x6f   : > { %s32231_s10 = sadd.s32 4294967294, %s36309_s27   ;;  %s36507_s14 = sadd.s32 1, %s36309_s27  }
  0x70   : > { %s35_s15 = sadd.s32 1, %s36305_s26  ;;  %s32_s16 = ssub.s32 %s36309_s27, %s36507_s14 }
  0x71   : > { %p42_p8 = scmp.ne.s32.totalorder %s36305_s26, %s36301_s25  ;;  %p33_p1 = scmp.eq.s32.totalorder %s32_s16, 0 }
  0x72   : > { %p43_p3 = scmp.eq.s32.totalorder %s36309_s27, 0  ;;  %p48_p11 = scmp.ne.s32.totalorder %s36301_s25, %s36297_s24 }
  0x73   : > { %p203_p12 = scmp.eq.s32.totalorder %s36388_s30, 1  ;;  %p42219_p0 = scmp.eq.s32.totalorder %s36388_s30, 0 }
  0x74   : > { %s36519_s17 = scalar_select %p33_p1, %s36305_s26, %s35_s15  }
  0x75   : > { %p44_p13 = por %p43_p3, %p42_p8  ;;  %p36523_p2 = por %p42219_p0, %p48_p11 }
  0x76   : > { %p36527_p6 = por %p203_p12, %p42_p8  ;;  %p209_p5 = scmp.eq.s32.totalorder %s32231_s10, 1 }
  0x77   : > { %p35999_p7 = scmp.lt.s32.totalorder %s36309_s27, 2  ;;  %s36533_s18 = sand.u32 1, %s36305_s26  }
  0x78   : > { %s42221_s12 = scalar_select %p36527_p6, 1, 0 }
  0x79   : > { %p36535_p9 = por %p209_p5, %p48_p11  ;;  %s32238_s21 = sshll.u32 %s36533_s18, 3 }
  0x7a   : > { %s32239_s13 = sshll.u32 %s36309_s27, 7  ;;  %s42223_s0 = sld [smem:[#allocation310_spill]] }
  0x7b   : > { %s42222_s20 = scalar_select %p36535_p9, 1, 0 }
  0x7c   : > { %s288_s28 = scalar_lea.vmem [#allocation2], %s32238_s21  ;;  %p36546_p4 = pnand %p35999_p7, %p44_p13 }
  0x7d   : > { %s295_s10 = sshll.u32 %s288_s28, 4  ;;  %s285_s22 = scalar_lea.sflag [#allocation3], %s36533_s18  ;;  %s36550_s10 = int_to_ptr.vmem [resolvable:$true] %s295_s10 }
  0x7e   : > { %p36173_p8 = pneg %p36546_p4 }
  0x80   : > { %s36544_s29 = scalar_lea.hbm %s42223_s0, %s32239_s13  ;;  %s36176_s11 = scalar_lea.hbm %s42223_s0, 256 }
  0x81   : > { %s36171_s23 = scalar_lea.hbm %s36544_s29, 128  ;;  %p36177_p11 = scmp.lt.u32.totalorder %s36544_s29, %s42223_s0 }
  0x82   : > { %p36172_p10 = scmp.ne.s32.totalorder %s36544_s29, %s36171_s23  ;;  %p36178_p12 = scmp.lt.u32.totalorder %s36176_s11, %s36171_s23 }
  0x83   : > { %p36180_p0 = scmp.lt.u32.totalorder %s36171_s23, %s36544_s29 }
  0x84   : > { %p36174_p1 = pnand %p36173_p8, %p36172_p10  ;;  %p36179_p13 = por %p36178_p12, %p36177_p11 }
  0x86   : > { %p36175_p3 = pneg %p36174_p1  ;;  %p36181_p5 = por %p36180_p0, %p36179_p13 }
  0x88   : > { %p36182_p7 = pnand %p36181_p5, %p36175_p3 }
  0x8a   : > { %36185 = shalt.err (!%p36182_p7)
}
  0x8b   : > { %s36186_s16 = scalar_lea.vmem %s36550_s10, 128  ;;  %s36322_s21 = smov [#allocation2]  }
  0x8c   : > { %p36187_p10 = scmp.ne.s32.totalorder %s36550_s10, %s36186_s16  ;;  %s36191_s13 = sshll.u32 %s36322_s21, 4  ;;  %s36192_s13 = int_to_ptr.vmem [resolvable:$false] %s36191_s13 }
  0x8d   : > { %s36193_s19 = scalar_lea.vmem %s36192_s13, 256  ;;  %p36194_p6 = scmp.lt.s32.totalorder %s36550_s10, %s36192_s13 }
  0x8e   : > { %p36189_p1 = pnand %p36187_p10, %p36173_p8  ;;  %p36195_p11 = scmp.lt.s32.totalorder %s36193_s19, %s36186_s16 }
  0x90   : > { %p36190_p9 = pneg %p36189_p1  ;;  %p36196_p12 = por %p36195_p11, %p36194_p6 }
  0x92   : > { %p36197_p13 = pnand %p36196_p12, %p36190_p9 }
  0x94   : > { %36200 = shalt.err (!%p36197_p13)
}
  0x95   : > { %35987 = dma.hbm_to_vmem [thread:$0]  (!%p36546_p4), %s36544_s29, 128, %s36550_s10, %s285_s22  }
  0x96   : > { %s32384_s23 = sshll.u32 %s36309_s27, 12  ;;  %s42225_s13 = sshll.u32 %s36533_s18, 8 }
  0x97   : > { %s36583_s21 = scalar_lea.hbm %s41461_s6, %s32384_s23  ;;  %s306_s16 = scalar_lea.vmem [#allocation11], %s42225_s13 }
  0x98   : > { %s314_s19 = sshll.u32 %s306_s16, 4  ;;  %s303_s0 = scalar_lea.sflag [#allocation12], %s36533_s18  ;;  %s36587_s19 = int_to_ptr.vmem [resolvable:$true] %s314_s19 }
  0x99   : > { %s36201_s1 = scalar_lea.hbm %s36583_s21, 4096  ;;  %s36206_s10 = scalar_lea.hbm %s41461_s6, 8192 }
  0x9a   : > { %p36202_p6 = scmp.ne.s32.totalorder %s36583_s21, %s36201_s1  ;;  %p36207_p0 = scmp.lt.u32.totalorder %s36583_s21, %s41461_s6 }
  0x9b   : > { %p36208_p5 = scmp.lt.u32.totalorder %s36206_s10, %s36201_s1  ;;  %p36210_p10 = scmp.lt.u32.totalorder %s36201_s1, %s36583_s21 }
  0x9c   : > { %p36204_p9 = pnand %p36202_p6, %p36173_p8 }
  0x9d   : > { %p36209_p7 = por %p36208_p5, %p36207_p0 }
  0x9e   : > { %p36205_p3 = pneg %p36204_p9 }
  0x9f   : > { %p36211_p1 = por %p36210_p10, %p36209_p7 }
  0xa1   : > { %p36212_p11 = pnand %p36211_p1, %p36205_p3 }
  0xa3   : > { %36215 = shalt.err (!%p36212_p11)
}
  0xa4   : > { %s36216_s28 = scalar_lea.vmem %s36587_s19, 4096  ;;  %s36323_s13 = smov [#allocation11]  }
  0xa5   : > { %p36217_p12 = scmp.ne.s32.totalorder %s36587_s19, %s36216_s28  ;;  %s36221_s16 = sshll.u32 %s36323_s13, 4  ;;  %s36222_s16 = int_to_ptr.vmem [resolvable:$false] %s36221_s16 }
  0xa6   : > { %s36223_s22 = scalar_lea.vmem %s36222_s16, 8192  ;;  %p36224_p9 = scmp.lt.s32.totalorder %s36587_s19, %s36222_s16 }
  0xa7   : > { %p36219_p13 = pnand %p36217_p12, %p36173_p8  ;;  %p36225_p0 = scmp.lt.s32.totalorder %s36223_s22, %s36216_s28 }
  0xa9   : > { %p36220_p6 = pneg %p36219_p13  ;;  %p36226_p5 = por %p36225_p0, %p36224_p9 }
  0xab   : > { %p36227_p7 = pnand %p36226_p5, %p36220_p6 }
  0xad   : > { %36230 = shalt.err (!%p36227_p7)
}
  0xae   : > { %s42226_s1 = smov 16   ;;  %s42227_s29 = smov 256  }
  0xaf   : > { %35990 = dma.hbm_to_vmem [thread:$0]  (!%p36546_p4), %s36583_s21, 4096, %s36587_s19, %s303_s0, %s42227_s29, %s42227_s29, %s42226_s1  }
  0xb0   : > { %p42228_p8 = scmp.ne.s32.totalorder %s42215_s8, 0 }
  0xb2   : > { %326 = sbr.rel (%p42228_p8) target bundleno = 4453 (0x1165), region = 48 }
  0xb9   : > { %s36621_s10 = sand.u32 1, %s36301_s25  }
  0xba   : > { %s32245_s23 = sshll.u32 %s36621_s10, 3  ;;  %s329_s15 = scalar_lea.sflag [#allocation3], %s36621_s10 }
  0xbb   : > { %s332_s11 = scalar_lea.vmem [#allocation2], %s32245_s23 }
  0xbc   : > { %36276 = dma.done.wait (%p36523_p2), %s329_s15, 128  }
  0xbd   : > { %36278 = vsyncadd (%p36523_p2), %s329_s15, 4294967168  ;;  %p42229_p4 = scmp.eq.s32.totalorder %s36388_s30, 0 }
  0xbf   : > { %36280 = dma.done.wait (%p42229_p4), [#allocation6], 10240   ;;  %p42230_p3 = pmov %p42229_p4 }
  0xc1   : > { %36282 = vsyncadd (%p42230_p3), [#allocation6], 4294957056  ;;  %p42231_p10 = pmov %p42230_p3 }
  0xc2   : > { %p42232_p1 = pmov %p42230_p3 }
  0xc3   : > { %36284 = dma.done.wait (%p42231_p10), [#allocation9], 8192  }
  0xc4   : > { %36286 = vsyncadd (%p42232_p1), [#allocation9], 4294959104  ;;  %s32250_s0 = sshll.u32 %s36621_s10, 8  ;;  %s354_s8 = scalar_lea.sflag [#allocation12], %s36621_s10 }
  0xc5   : > { %s36641_s18 = scalar_lea.vmem [#allocation11], %s32250_s0 }
  0xc6   : > { %36288 = dma.done.wait (%p36523_p2), %s354_s8, 4096  }
  0xc7   : > { %36290 = vsyncadd (%p36523_p2), %s354_s8, 4294963200  ;;  %v41469_v0 = vmov 0.0   ;;  %v396_v1 = vld [vmem:[#allocation5 + $0x8] sm:$0xff]  ;;  %v395_v3 = vld [vmem:[#allocation5] sm:$0xff]  ;;  %vm433_vm0 = vcmask 261120   ;;  %vm1651_vm1 = vcmask 130048  }
  0xc8   : > { %509 = vmatprep.mubr.f32.mxu0 %v41469_v0  ;;  %1052 = vmatprep.mubr.f32.mxu1 %v41469_v0  ;;  %v400_v2 = vld [vmem:[#allocation5 + $0x28] sm:$0xff]  ;;  %v437_v4 = vand.u32 4294901760, %v396_v1  ;;  %v399_v6 = vld [vmem:[#allocation5 + $0x20] sm:$0xff]  ;;  %v439_v7 = vand.u32 4294901760, %v395_v3  ;;  %v394_v15 = vld [vmem:[%s332_s11] sm:$0xff]  ;;  %s32380_s29 = sshll.u32 %s36388_s30, 7 }
  0xc9   : > { %v441_v5 = vand.u32 4294901760, %v400_v2  ;;  %v404_v8 = vld [vmem:[#allocation5 + $0x48] sm:$0xff]  ;;  %v443_v10 = vand.u32 4294901760, %v399_v6  ;;  %v403_v13 = vld [vmem:[#allocation5 + $0x40] sm:$0xff]  ;;  %v435_v27 = vsel %vm433_vm0, %v394_v15, 0  ;;  %v398_v58 = vld [vmem:[#allocation5 + $0x18] sm:$0xff] }
  0xca   : > { %v408_v9 = vld [vmem:[#allocation5 + $0x68] sm:$0xff]  ;;  %v445_v11 = vand.u32 4294901760, %v404_v8  ;;  %v407_v14 = vld [vmem:[#allocation5 + $0x60] sm:$0xff]  ;;  %v36651_v17 = vsub.f32 %v396_v1, %v437_v4  ;;  %v36655_v19 = vsub.f32 %v395_v3, %v439_v7  ;;  %v447_v25 = vand.u32 4294901760, %v403_v13  ;;  %v402_v59 = vld [vmem:[#allocation5 + $0x38] sm:$0xff]  ;;  %s392_s15 = scalar_lea.vmem [#allocation13], %s32245_s23 }
  0xcb   : > { %v449_v12 = vand.u32 4294901760, %v408_v9  ;;  %v36649_v16 = vpack.c.bf16 %v441_v5, %v437_v4  ;;  %v36653_v18 = vsub.f32 %v400_v2, %v441_v5  ;;  %v36657_v20 = vpack.c.bf16 %v443_v10, %v439_v7  ;;  %v397_v63 = vld [vmem:[#allocation5 + $0x10] sm:$0xff]  ;;  %v406_v2 = vld [vmem:[#allocation5 + $0x58] sm:$0xff]  ;;  %s32100_s11 = sshll.u32 %s392_s15, 4  ;;  %s32087_s9 = scalar_lea.sflag [#allocation4], %s36621_s10  ;;  %s41413_s11 = int_to_ptr.vmem [resolvable:$true] %s32100_s11 }
  0xcc   : > { %v36659_v21 = vsub.f32 %v399_v6, %v443_v10  ;;  %v36663_v23 = vsub.f32 %v404_v8, %v445_v11  ;;  %v451_v26 = vand.u32 4294901760, %v407_v14  ;;  %v36670_v28 = vand.u32 4294901760, %v435_v27  ;;  %v401_v1 = vld [vmem:[#allocation5 + $0x30] sm:$0xff]  ;;  %v410_v6 = vld [vmem:[#allocation5 + $0x78] sm:$0xff]  ;;  %s36231_s21 = scalar_lea.vmem %s41413_s11, 128  ;;  %p43463_p11 = scmp.ne.s32.totalorder %s42221_s12, 0 }
  0xcd   : > { %v36661_v22 = vpack.c.bf16 %v449_v12, %v445_v11  ;;  %33016 = vmatprep.subr.bf16.mxu0 %v36649_v16  ;;  %v36666_v24 = vsub.f32 %v408_v9, %v449_v12  ;;  %v523_v29 = vand.u32 4294901760, %v36651_v17  ;;  %v535_v30 = vand.u32 4294901760, %v36653_v18  ;;  %v405_v7 = vld [vmem:[#allocation5 + $0x50] sm:$0xff]  ;;  %p36232_p2 = scmp.ne.s32.totalorder %s41413_s11, %s36231_s21  ;;  %s36326_s30 = smov [#allocation13]  }
  0xce   : > { %33018 = vmatpush1.bf16.msra.mxu0 %v36657_v20  ;;  %v529_v31 = vand.u32 4294901760, %v36655_v19  ;;  %v36676_v32 = vpack.c.bf16 %v451_v26, %v447_v25  ;;  %v36678_v33 = vsub.f32 %v403_v13, %v447_v25  ;;  %v36680_v34 = vsub.f32 %v407_v14, %v451_v26  ;;  %s36235_s23 = sshll.u32 %s36326_s30, 4  ;;  %s36236_s23 = int_to_ptr.vmem [resolvable:$false] %s36235_s23 }
  0xcf   : > { %33020 = vmatprep.subr.bf16.mxu0 %v36661_v22  ;;  %v541_v35 = vand.u32 4294901760, %v36659_v21  ;;  %v36684_v36 = vsub.f32 %v435_v27, %v36670_v28  ;;  %v524_v37 = vsub.f32 %v36651_v17, %v523_v29  ;;  %v536_v38 = vsub.f32 %v36653_v18, %v535_v30  ;;  %p36233_p12 = pnand %p36232_p2, %p43463_p11  ;;  %s36237_s19 = scalar_lea.vmem %s36236_s23, 256 }
  0xd0   : > { %v530_v39 = vsub.f32 %v36655_v19, %v529_v31  ;;  %v547_v41 = vand.u32 4294901760, %v36663_v23  ;;  %v559_v42 = vand.u32 4294901760, %v36666_v24  ;;  %v553_v43 = vand.u32 4294901760, %v36678_v33  ;;  %p36238_p6 = scmp.lt.s32.totalorder %s41413_s11, %s36236_s23  ;;  %p36239_p9 = scmp.lt.s32.totalorder %s36237_s19, %s36231_s21 }
  0xd1   : > { %v542_v40 = vsub.f32 %v36659_v21, %v541_v35  ;;  %v36703_v44 = vand.u32 4294901760, %v36684_v36  ;;  %v525_v45 = vand.u32 4294901760, %v524_v37  ;;  %v537_v46 = vand.u32 4294901760, %v536_v38  ;;  %v409_v37 = vld [vmem:[#allocation5 + $0x70] sm:$0xff]  ;;  %p36234_p13 = pneg %p36233_p12 }
  0xd2   : > { %33022 = vmatpush1.bf16.msra.mxu0 %v36676_v32  ;;  %v531_v47 = vand.u32 4294901760, %v530_v39  ;;  %v548_v49 = vsub.f32 %v36663_v23, %v547_v41  ;;  %v560_v50 = vsub.f32 %v36666_v24, %v559_v42  ;;  %v554_v51 = vsub.f32 %v36678_v33, %v553_v43  ;;  %p36240_p0 = por %p36239_p9, %p36238_p6 }
  0xd3   : > { %v543_v48 = vand.u32 4294901760, %v542_v40  ;;  %v513_v52 = vsub.f32 %v36684_v36, %v36703_v44  ;;  %v33023_v53 = vpack.c.bf16 %v537_v46, %v525_v45  ;;  %v565_v54 = vand.u32 4294901760, %v36680_v34 }
  0xd4   : > { %v549_v56 = vand.u32 4294901760, %v548_v49  ;;  %v561_v57 = vand.u32 4294901760, %v560_v50  ;;  %v555_v61 = vand.u32 4294901760, %v554_v51  ;;  %v33031_v4 = vpack.c.bf16 %v36653_v18, %v36651_v17  ;;  %p36241_p5 = pnand %p36240_p0, %p36234_p13 }
  0xd5   : > { %v33025_v55 = vpack.c.bf16 %v543_v48, %v531_v47  ;;  %v36717_v60 = vand.u32 4294901760, %v513_v52  ;;  %33024 = vmatprep.subr.bf16.mxu0 %v33023_v53  ;;  %v566_v62 = vsub.f32 %v36680_v34, %v565_v54  ;;  %v33033_v5 = vpack.c.bf16 %v36659_v21, %v36655_v19 }
  0xd6   : > { %v33027_v3 = vpack.c.bf16 %v561_v57, %v549_v56  ;;  %v33035_v9 = vpack.c.bf16 %v36666_v24, %v36663_v23  ;;  %v33037_v10 = vpack.c.bf16 %v36680_v34, %v36678_v33  ;;  %v980_v11 = vand.u32 4294901760, %v398_v58  ;;  %v1620_v24 = vld [vmem:[#allocation7 + $0x108] sm:$0xff]  ;;  %v1587_v34 = vld [vmem:[#allocation7] sm:$0xff] }
  0xd7   : > { %515 = vmatmul.mubr.f32.vlgmr.msra.gmra.mrb[0].mxu0 %v36717_v60  ;;  %v567_v8 = vand.u32 4294901760, %v566_v62  ;;  %v984_v12 = vand.u32 4294901760, %v402_v59  ;;  %v982_v13 = vand.u32 4294901760, %v397_v63  ;;  %v986_v14 = vand.u32 4294901760, %v401_v1 }
  0xd8   : > { %33026 = vmatpush1.bf16.msra.mxu0 %v33025_v55  ;;  %625 = vmatprep.mubr.f32.mxu0 %v41469_v0  ;;  %v988_v15 = vand.u32 4294901760, %v406_v2  ;;  %v36732_v26 = vsub.f32 %v398_v58, %v980_v11  ;;  %v992_v27 = vand.u32 4294901760, %v410_v6  ;;  %v990_v38 = vand.u32 4294901760, %v405_v7 }
  0xd9   : > { %33028 = vmatprep.subr.bf16.mxu0 %v33027_v3  ;;  %v33029_v25 = vpack.c.bf16 %v567_v8, %v555_v61  ;;  %v36734_v39 = vpack.c.bf16 %v984_v12, %v980_v11  ;;  %v36736_v40 = vsub.f32 %v402_v59, %v984_v12  ;;  %v36738_v45 = vpack.c.bf16 %v986_v14, %v982_v13 }
  0xda   : > { %v36740_v46 = vsub.f32 %v397_v63, %v982_v13  ;;  %v36742_v47 = vsub.f32 %v401_v1, %v986_v14  ;;  %v36744_v48 = vpack.c.bf16 %v992_v27, %v988_v15  ;;  %v36746_v49 = vsub.f32 %v406_v2, %v988_v15 }
  0xdb   : > { %v36748_v50 = vsub.f32 %v410_v6, %v992_v27  ;;  %33064 = vmatprep.subr.bf16.mxu1 %v36734_v39  ;;  %v994_v51 = vand.u32 4294901760, %v409_v37  ;;  %v36751_v52 = vsub.f32 %v405_v7, %v990_v38  ;;  %v1066_v53 = vand.u32 4294901760, %v36732_v26 }
  0xdc   : > { %33030 = vmatpush1.bf16.msra.mxu0 %v33029_v25  ;;  %v1078_v55 = vand.u32 4294901760, %v36736_v40  ;;  %33066 = vmatpush1.bf16.msra.mxu1 %v36738_v45  ;;  %v1072_v56 = vand.u32 4294901760, %v36740_v46  ;;  %v1084_v57 = vand.u32 4294901760, %v36742_v47  ;;  %v1090_v58 = vand.u32 4294901760, %v36746_v49 }
  0xdd   : > { %33032 = vmatprep.subr.bf16.mxu0 %v33031_v4  ;;  %v1102_v59 = vand.u32 4294901760, %v36748_v50  ;;  %33068 = vmatprep.subr.bf16.mxu1 %v36744_v48  ;;  %v36761_v61 = vpack.c.bf16 %v994_v51, %v990_v38  ;;  %v36763_v62 = vsub.f32 %v409_v37, %v994_v51  ;;  %v1067_v63 = vsub.f32 %v36732_v26, %v1066_v53 }
  0xde   : > { %v1079_v1 = vsub.f32 %v36736_v40, %v1078_v55  ;;  %v1073_v2 = vsub.f32 %v36740_v46, %v1072_v56  ;;  %v1085_v3 = vsub.f32 %v36742_v47, %v1084_v57  ;;  %v1091_v4 = vsub.f32 %v36746_v49, %v1090_v58 }
  0xdf   : > { %627 = vmatmul.mubr.f32.vlgmr.msra.gmra.mrb[0].mxu0 %v36670_v28  ;;  %v1103_v6 = vsub.f32 %v36748_v50, %v1102_v59  ;;  %v1068_v7 = vand.u32 4294901760, %v1067_v63  ;;  %v1096_v11 = vand.u32 4294901760, %v36751_v52  ;;  %v1108_v12 = vand.u32 4294901760, %v36763_v62 }
  0xe0   : > { %33034 = vmatpush1.bf16.msra.mxu0 %v33033_v5  ;;  %713 = vmatprep.mubr.f32.mxu0 %v41469_v0  ;;  %v1080_v8 = vand.u32 4294901760, %v1079_v1  ;;  %v1074_v13 = vand.u32 4294901760, %v1073_v2  ;;  %v1086_v14 = vand.u32 4294901760, %v1085_v3  ;;  %v1092_v15 = vand.u32 4294901760, %v1091_v4 }
  0xe1   : > { %33036 = vmatprep.subr.bf16.mxu0 %v33035_v9  ;;  %33070 = vmatpush1.bf16.msra.mxu1 %v36761_v61  ;;  %v1104_v25 = vand.u32 4294901760, %v1103_v6  ;;  %v1097_v5 = vsub.f32 %v36751_v52, %v1096_v11  ;;  %v1109_v37 = vsub.f32 %v36763_v62, %v1108_v12  ;;  %v33079_v2 = vpack.c.bf16 %v36736_v40, %v36732_v26 }
  0xe2   : > { %v33071_v27 = vpack.c.bf16 %v1080_v8, %v1068_v7  ;;  %v33073_v38 = vpack.c.bf16 %v1086_v14, %v1074_v13  ;;  %v33083_v3 = vpack.c.bf16 %v36748_v50, %v36746_v49  ;;  %v33049_v4 = vpack.c.bf16 %v541_v35, %v529_v31  ;;  %v1619_v35 = vld [vmem:[#allocation7 + $0x100] sm:$0xff] }
  0xe3   : > { %v33075_v51 = vpack.c.bf16 %v1104_v25, %v1092_v15  ;;  %v1098_v9 = vand.u32 4294901760, %v1097_v5  ;;  %v1110_v63 = vand.u32 4294901760, %v1109_v37  ;;  %v33051_v17 = vpack.c.bf16 %v559_v42, %v547_v41 }
  0xe4   : > { %33038 = vmatpush1.bf16.msra.mxu0 %v33037_v10  ;;  %1058 = vmatmul.mubr.f32.vlgmr.msra.gmra.mrb[0].mxu1 %v36717_v60  ;;  %v33047_v60 = vpack.c.bf16 %v535_v30, %v523_v29  ;;  %v33081_v10 = vpack.c.bf16 %v36742_v47, %v36740_v46  ;;  %v33085_v18 = vpack.c.bf16 %v36763_v62, %v36751_v52  ;;  %v1590_v29 = vld [vmem:[#allocation7 + $0x18] sm:$0xff]  ;;  %v1659_v31 = vand.u32 4294901760, %v1620_v24 }
  0xe5   : > { %33040 = vmatprep.subr.bf16.mxu0 %v36649_v16  ;;  %33072 = vmatprep.subr.bf16.mxu1 %v33071_v27  ;;  %v33077_v1 = vpack.c.bf16 %v1110_v63, %v1098_v9  ;;  %v33053_v19 = vpack.c.bf16 %v565_v54, %v553_v43  ;;  %v33095_v21 = vpack.c.bf16 %v1078_v55, %v1066_v53  ;;  %v2146_v33 = vand.u32 4294901760, %v1590_v29  ;;  %v1589_v43 = vld [vmem:[#allocation7 + $0x10] sm:$0xff] }
  0xe6   : > { %33074 = vmatpush1.bf16.msra.mxu1 %v33073_v38  ;;  %1168 = vmatprep.mubr.f32.mxu1 %v41469_v0  ;;  %v33099_v23 = vpack.c.bf16 %v1102_v59, %v1090_v58  ;;  %v1657_v41 = vand.u32 4294901760, %v1587_v34  ;;  %v1661_v42 = vand.u32 4294901760, %v1619_v35  ;;  %v2148_v26 = vand.u32 4294901760, %v1589_v43 }
  0xe7   : > { %716 = vmatmul.mubr.f32.vlgmr.msra.gmra.mrb[0].mxu0 %v36684_v36  ;;  %33076 = vmatprep.subr.bf16.mxu1 %v33075_v51  ;;  %v1748_v47 = vsub.f32 %v1620_v24, %v1659_v31  ;;  %v2227_v52 = vsub.f32 %v1590_v29, %v2146_v33  ;;  %v413_v24 = vlaneseq }
  0xe8   : > { %33042 = vmatpush1.bf16.msra.mxu0 %v36657_v20  ;;  %794 = vmatprep.mubr.f32.mxu0 %v41469_v0  ;;  %v36874_v40 = vpack.c.bf16 %v1661_v42, %v1657_v41  ;;  %v1754_v49 = vsub.f32 %v1619_v35, %v1661_v42  ;;  %v2233_v58 = vsub.f32 %v1589_v43, %v2148_v26 }
  0xe9   : > { %33044 = vmatprep.subr.bf16.mxu0 %v36661_v22  ;;  %v1749_v55 = vand.u32 4294901760, %v1748_v47  ;;  %v36908_v29 = vshrl.u32 %v413_v24, 7 }
  0xea   : > { %33078 = vmatpush1.bf16.msra.mxu1 %v33077_v1  ;;  %42235 = vst [vmem:[#allocation21_spill] sm:$0xff] %v36874_v40 }
  0xeb   : > { %33080 = vmatprep.subr.bf16.mxu1 %v33079_v2  ;;  %v1750_v6 = vsub.f32 %v1748_v47, %v1749_v55  ;;  %42249 = vst [vmem:[#allocation35_spill] sm:$0xff] %v36908_v29 }
  0xec   : > { %33046 = vmatpush1.bf16.msra.mxu0 %v36676_v32 }
  0xed   : > { %33048 = vmatprep.subr.bf16.mxu0 %v33047_v60  ;;  %1170 = vmatmul.mubr.f32.vlgmr.msra.gmra.mrb[0].mxu1 %v36670_v28  ;;  %v1751_v25 = vand.u32 4294901760, %v1750_v6 }
  0xee   : > { %33082 = vmatpush1.bf16.msra.mxu1 %v33081_v10  ;;  %1256 = vmatprep.mubr.f32.mxu1 %v41469_v0 }
  0xef   : > { %798 = vmatmul.mubr.f32.vlgmr.msra.gmra.mrb[0].mxu0 %v36703_v44  ;;  %33084 = vmatprep.subr.bf16.mxu1 %v33083_v3 }
  0xf0   : > { %33050 = vmatpush1.bf16.msra.mxu0 %v33049_v4  ;;  %892 = vmatprep.mubr.f32.mxu0 %v41469_v0 }
  0xf1   : > { %33052 = vmatprep.subr.bf16.mxu0 %v33051_v17 }
  0xf2   : > { %33086 = vmatpush1.bf16.msra.mxu1 %v33085_v18 }
  0xf3   : > { %33088 = vmatprep.subr.bf16.mxu1 %v36734_v39 }
  0xf4   : > { %33054 = vmatpush1.bf16.msra.mxu0 %v33053_v19 }
  0xf5   : > { %33056 = vmatprep.subr.bf16.mxu0 %v36649_v16  ;;  %1259 = vmatmul.mubr.f32.vlgmr.msra.gmra.mrb[0].mxu1 %v36684_v36  ;;  %v33097_v16 = vpack.c.bf16 %v1084_v57, %v1072_v56  ;;  %v1755_v57 = vand.u32 4294901760, %v1754_v49 }
  0xf6   : > { %33090 = vmatpush1.bf16.msra.mxu1 %v36738_v45  ;;  %1337 = vmatprep.mubr.f32.mxu1 %v41469_v0 }
  0xf7   : > { %894 = vmatmul.mubr.f32.vlgmr.msra.gmra.mrb[0].mxu0 %v36670_v28  ;;  %33092 = vmatprep.subr.bf16.mxu1 %v36744_v48  ;;  %v1756_v8 = vsub.f32 %v1754_v49, %v1755_v57 }
  0xf8   : > { %33058 = vmatpush1.bf16.msra.mxu0 %v36657_v20  ;;  %972 = vmatprep.mubr.f32.mxu0 %v41469_v0  ;;  %v33101_v20 = vpack.c.bf16 %v1108_v12, %v1096_v11  ;;  %v2234_v11 = vand.u32 4294901760, %v2233_v58 }
  0xf9   : > { %33060 = vmatprep.subr.bf16.mxu0 %v36661_v22  ;;  %v1588_v22 = vld [vmem:[#allocation7 + $0x8] sm:$0xff]  ;;  %v1757_v5 = vand.u32 4294901760, %v1756_v8 }
  0xfa   : > { %33094 = vmatpush1.bf16.msra.mxu1 %v36761_v61  ;;  %v1655_v30 = vand.u32 4294901760, %v1588_v22  ;;  %v2235_v37 = vsub.f32 %v2233_v58, %v2234_v11 }
  0xfb   : > { %33096 = vmatprep.subr.bf16.mxu1 %v33095_v21 }
  0xfc   : > { %33062 = vmatpush1.bf16.msra.mxu0 %v36676_v32  ;;  %v1622_v32 = vld [vmem:[#allocation7 + $0x118] sm:$0xff]  ;;  %v36870_v54 = vpack.c.bf16 %v1659_v31, %v1655_v30  ;;  %v2236_v60 = vand.u32 4294901760, %v2235_v37  ;;  %v411_v31 = vld [vmem:[%s41457_s2] sm:$0xf] }
  0xfd   : > { %1341 = vmatmul.mubr.f32.vlgmr.msra.gmra.mrb[0].mxu1 %v36703_v44  ;;  %v2150_v36 = vand.u32 4294901760, %v1622_v32  ;;  %v1621_v44 = vld [vmem:[#allocation7 + $0x110] sm:$0xff] }
  0xfe   : > { %33098 = vmatpush1.bf16.msra.mxu1 %v33097_v16  ;;  %1435 = vmatprep.mubr.f32.mxu1 %v41469_v0  ;;  %42233 = vst [vmem:[#allocation19_spill] sm:$0xff] %v36870_v54 }
  0xff   : > { %974 = vmatmul.mubr.f32.vlgmr.msra.gmra.mrb[0].mxu0 %v36670_v28  ;;  %33100 = vmatprep.subr.bf16.mxu1 %v33099_v23  ;;  %v2239_v53 = vsub.f32 %v1622_v32, %v2150_v36 }
 0x100   : > { %1723 = vmatprep.mubr.f32.mxu0 %v41469_v0  ;;  %33112 = vmatprep.subr.bf16.mxu0 %v36870_v54 }
 0x101   : > { %33114 = vmatpush1.bf16.msra.mxu0 %v36874_v40  ;;  %v2240_v62 = vand.u32 4294901760, %v2239_v53  ;;  %v36896_v19 = vpack.c.bf16 %v2239_v53, %v2227_v52 }
 0x102   : > { %33102 = vmatpush1.bf16.msra.mxu1 %v33101_v20 }
 0x103   : > { %33104 = vmatprep.subr.bf16.mxu1 %v36734_v39  ;;  %v36872_v39 = vpack.c.bf16 %v2150_v36, %v2146_v33  ;;  %v2241_v14 = vsub.f32 %v2239_v53, %v2240_v62  ;;  %42243 = vst [vmem:[#allocation29_spill] sm:$0xff] %v36896_v19  ;;  %v1625_v53 = vld [vmem:[#allocation7 + $0x130] sm:$0xff] }
 0x104   : > { %v3134_v6 = vand.u32 4294901760, %v1625_v53 }
 0x105   : > { %1437 = vmatmul.mubr.f32.vlgmr.msra.gmra.mrb[0].mxu1 %v36670_v28  ;;  %42234 = vst [vmem:[#allocation20_spill] sm:$0xff] %v36872_v39  ;;  %v2242_v51 = vand.u32 4294901760, %v2241_v14 }
 0x106   : > { %33106 = vmatpush1.bf16.msra.mxu1 %v36738_v45  ;;  %1515 = vmatprep.mubr.f32.mxu1 %v41469_v0  ;;  %v1736_v45 = vsub.f32 %v1588_v22, %v1655_v30  ;;  %v415_v30 = vsub.s32 0, %v36908_v29 }
 0x107   : > { %33108 = vmatprep.subr.bf16.mxu1 %v36744_v48  ;;  %v1742_v48 = vsub.f32 %v1587_v34, %v1657_v41 }
 0x108   : > { %v1737_v50 = vand.u32 4294901760, %v1736_v45  ;;  %v36890_v4 = vpack.c.bf16 %v1748_v47, %v1736_v45  ;;  %v416_v32 = vrot.slane %v411_v31, %v415_v30  ;;  %v1594_v47 = vld [vmem:[#allocation7 + $0x38] sm:$0xff] }
 0x109   : > { %v1743_v56 = vand.u32 4294901760, %v1742_v48  ;;  %v36892_v17 = vpack.c.bf16 %v1754_v49, %v1742_v48  ;;  %v36949_v49 = vld [vmem:[#allocation7 + $0x20] sm:$0xff] }
 0x10a   : > { %33110 = vmatpush1.bf16.msra.mxu1 %v36761_v61  ;;  %v1738_v59 = vsub.f32 %v1736_v45, %v1737_v50  ;;  %v2228_v61 = vand.u32 4294901760, %v2227_v52  ;;  %42240 = vst [vmem:[#allocation26_spill] sm:$0xff] %v36890_v4  ;;  %v36900_v16 = vpack.c.bf16 %v1749_v55, %v1737_v50  ;;  %v1624_v45 = vld [vmem:[#allocation7 + $0x128] sm:$0xff]  ;;  %v1623_v50 = vld [vmem:[#allocation7 + $0x120] sm:$0xff] }
 0x10b   : > { %33136 = vmatprep.subr.bf16.mxu1 %v36872_v39  ;;  %v1744_v7 = vsub.f32 %v1742_v48, %v1743_v56  ;;  %42241 = vst [vmem:[#allocation27_spill] sm:$0xff] %v36892_v17  ;;  %v36902_v23 = vpack.c.bf16 %v1755_v57, %v1743_v56  ;;  %v1626_v48 = vld [vmem:[#allocation7 + $0x138] sm:$0xff]  ;;  %v2641_v56 = vand.u32 4294901760, %v1624_v45  ;;  %v3128_v57 = vand.u32 4294901760, %v1594_v47 }
 0x10c   : > { %v1739_v12 = vand.u32 4294901760, %v1738_v59  ;;  %v2229_v13 = vsub.f32 %v2227_v52, %v2228_v61  ;;  %42245 = vst [vmem:[#allocation31_spill] sm:$0xff] %v36900_v16  ;;  %v36904_v20 = vpack.c.bf16 %v2240_v62, %v2228_v61  ;;  %v1593_v52 = vld [vmem:[#allocation7 + $0x30] sm:$0xff]  ;;  %v2639_v59 = vand.u32 4294901760, %v36949_v49 }
 0x10d   : > { %1517 = vmatmul.mubr.f32.vlgmr.msra.gmra.mrb[0].mxu1 %v36670_v28  ;;  %v2152_v28 = vand.u32 4294901760, %v1621_v44  ;;  %v1745_v27 = vand.u32 4294901760, %v1744_v7  ;;  %42246 = vst [vmem:[#allocation32_spill] sm:$0xff] %v36902_v23  ;;  %v2643_v61 = vand.u32 4294901760, %v1623_v50  ;;  %v3130_v62 = vand.u32 4294901760, %v1593_v52 }
 0x10e   : > { %2214 = vmatprep.mubr.f32.mxu1 %v41469_v0  ;;  %v2230_v38 = vand.u32 4294901760, %v2229_v13  ;;  %v36882_v63 = vpack.c.bf16 %v1751_v25, %v1739_v12  ;;  %42247 = vst [vmem:[#allocation33_spill] sm:$0xff] %v36904_v20  ;;  %v36958_v8 = vsub.f32 %v1624_v45, %v2641_v56  ;;  %v36967_v13 = vsub.f32 %v36949_v49, %v2639_v59 }
 0x10f   : > { %v36877_v46 = vpack.c.bf16 %v2152_v28, %v2148_v26  ;;  %v2245_v15 = vsub.f32 %v1621_v44, %v2152_v28  ;;  %v36884_v1 = vpack.c.bf16 %v1757_v5, %v1745_v27  ;;  %v1592_v28 = vld [vmem:[#allocation7 + $0x28] sm:$0xff]  ;;  %v36971_v14 = vsub.f32 %v1623_v50, %v2643_v61 }
 0x110   : > { %42237 = vst [vmem:[#allocation23_spill] sm:$0xff] %v36882_v63  ;;  %v36886_v2 = vpack.c.bf16 %v2242_v51, %v2230_v38  ;;  %33116 = vmatprep.subr.bf16.mxu0 %v36882_v63  ;;  %v2637_v55 = vand.u32 4294901760, %v1592_v28  ;;  %v36975_v25 = vsub.f32 %v1625_v53, %v3134_v6  ;;  %v2731_v5 = vand.u32 4294901760, %v36958_v8 }
 0x111   : > { %42236 = vst [vmem:[#allocation22_spill] sm:$0xff] %v36877_v46  ;;  %33138 = vmatpush1.bf16.msra.mxu1 %v36877_v46  ;;  %v2246_v9 = vand.u32 4294901760, %v2245_v15  ;;  %42238 = vst [vmem:[#allocation24_spill] sm:$0xff] %v36884_v1  ;;  %v36898_v21 = vpack.c.bf16 %v2245_v15, %v2233_v58  ;;  %v3132_v58 = vand.u32 4294901760, %v1626_v48  ;;  %v2725_v51 = vand.u32 4294901760, %v36967_v13 }
 0x112   : > { %42239 = vst [vmem:[#allocation25_spill] sm:$0xff] %v36886_v2  ;;  %33140 = vmatprep.subr.bf16.mxu1 %v36886_v2  ;;  %v36956_v7 = vsub.f32 %v1592_v28, %v2637_v55  ;;  %v2732_v31 = vsub.f32 %v36958_v8, %v2731_v5  ;;  %v37025_v50 = vpack.c.bf16 %v2643_v61, %v2639_v59 }
 0x113   : > { %v2247_v10 = vsub.f32 %v2245_v15, %v2246_v9  ;;  %42244 = vst [vmem:[#allocation30_spill] sm:$0xff] %v36898_v21  ;;  %v36906_v22 = vpack.c.bf16 %v2246_v9, %v2234_v11  ;;  %v36960_v11 = vsub.f32 %v1594_v47, %v3128_v57  ;;  %v36962_v12 = vsub.f32 %v1626_v48, %v3132_v58 }
 0x114   : > { %v36973_v15 = vsub.f32 %v1593_v52, %v3130_v62  ;;  %v2719_v27 = vand.u32 4294901760, %v36956_v7  ;;  %v2737_v9 = vand.u32 4294901760, %v36971_v14  ;;  %v36991_v24 = vpack.c.bf16 %v3132_v58, %v3128_v57  ;;  %42252 = vst [vmem:[#allocation38_spill] sm:$0xff] %v37025_v50 }
 0x115   : > { %v2248_v3 = vand.u32 4294901760, %v2247_v10  ;;  %42248 = vst [vmem:[#allocation34_spill] sm:$0xff] %v36906_v22  ;;  %v3210_v37 = vand.u32 4294901760, %v36960_v11  ;;  %v3222_v38 = vand.u32 4294901760, %v36962_v12  ;;  %v41468_v10 = vand.u32 4294901760, %v36975_v25 }
 0x116   : > { %42251 = vst [vmem:[#allocation37_spill] sm:$0xff] %v36991_v24  ;;  %v2720_v30 = vsub.f32 %v36956_v7, %v2719_v27  ;;  %v2733_v47 = vand.u32 4294901760, %v2732_v31  ;;  %v37027_v52 = vpack.c.bf16 %v3134_v6, %v3130_v62  ;;  %v37047_v62 = vpack.c.bf16 %v36958_v8, %v36956_v7  ;;  %v37093_v7 = vld [vmem:[#allocation7 + $0x40] sm:$0xff] }
 0x117   : > { %v36894_v18 = vpack.c.bf16 %v2248_v3, %v2236_v60  ;;  %v3216_v60 = vand.u32 4294901760, %v36973_v15  ;;  %v36989_v3 = vpack.c.bf16 %v2641_v56, %v2637_v55  ;;  %v3229_v28 = vsub.f32 %v36975_v25, %v41468_v10  ;;  %v1627_v8 = vld [vmem:[#allocation7 + $0x140] sm:$0xff] }
 0x118   : > { %v2721_v45 = vand.u32 4294901760, %v2720_v30  ;;  %42253 = vst [vmem:[#allocation39_spill] sm:$0xff] %v37027_v52  ;;  %42258 = vst [vmem:[#allocation44_spill] sm:$0xff] %v37047_v62  ;;  %v37051_v6 = vpack.c.bf16 %v36962_v12, %v36960_v11  ;;  %v37063_v30 = vpack.c.bf16 %v36971_v14, %v36967_v13  ;;  %v37067_v31 = vpack.c.bf16 %v36975_v25, %v36973_v15 }
 0x119   : > { %42242 = vst [vmem:[#allocation28_spill] sm:$0xff] %v36894_v18  ;;  %42250 = vst [vmem:[#allocation36_spill] sm:$0xff] %v36989_v3  ;;  %v3230_v57 = vand.u32 4294901760, %v3229_v28  ;;  %v1630_v28 = vld [vmem:[#allocation7 + $0x158] sm:$0xff] }
 0x11a   : > { %v37029_v58 = vpack.c.bf16 %v2733_v47, %v2721_v45  ;;  %42259 = vst [vmem:[#allocation45_spill] sm:$0xff] %v37051_v6  ;;  %42260 = vst [vmem:[#allocation46_spill] sm:$0xff] %v37063_v30  ;;  %v37103_v45 = vpack.c.bf16 %v2737_v9, %v2725_v51  ;;  %v3621_v47 = vand.u32 4294901760, %v37093_v7 }
 0x11b   : > { %42261 = vst [vmem:[#allocation47_spill] sm:$0xff] %v37067_v31 }
 0x11c   : > { %42254 = vst [vmem:[#allocation40_spill] sm:$0xff] %v37029_v58  ;;  %42264 = vst [vmem:[#allocation50_spill] sm:$0xff] %v37103_v45 }
 0x1d2   : > { %v975_v33 = vpop.f32.mrb[0].mxu0 }
 0x1d3   : > { %v35415_v34 = vadd.f32 %v975_v33, %v416_v32  ;;  %v36914_v35 = vpop.f32.mrb[1].mxu0  ;;  %v3211_v32 = vsub.f32 %v36960_v11, %v3210_v37  ;;  %v3223_v33 = vsub.f32 %v36962_v12, %v3222_v38  ;;  %v1597_v11 = vld [vmem:[#allocation7 + $0x50] sm:$0xff] }
 0x1d4   : > { %v1629_v12 = vld [vmem:[#allocation7 + $0x150] sm:$0xff] }
 0x1d5   : > { %v1653_v36 = vsel %vm1651_vm1, %v35415_v34, 0  ;;  %v2726_v34 = vsub.f32 %v36967_v13, %v2725_v51  ;;  %v3212_v48 = vand.u32 4294901760, %v3211_v32  ;;  %v3224_v49 = vand.u32 4294901760, %v3223_v33 }
 0x1d6   : > { %v36917_v41 = vand.u32 4294901760, %v1653_v36  ;;  %v37081_v32 = vpack.c.bf16 %v2731_v5, %v2719_v27  ;;  %v37087_v33 = vpack.c.bf16 %v3222_v38, %v3210_v37  ;;  %v4114_v38 = vand.u32 4294901760, %v1630_v28 }
 0x1d7   : > { %v2727_v53 = vand.u32 4294901760, %v2726_v34  ;;  %v37031_v10 = vpack.c.bf16 %v3224_v49, %v3212_v48  ;;  %v1596_v34 = vld [vmem:[#allocation7 + $0x48] sm:$0xff]  ;;  %v42265_v48 = vand.u32 4294901760, %v36975_v25 }
 0x1d8   : > { %v36920_v42 = vsub.f32 %v1653_v36, %v36917_v41  ;;  %v2738_v36 = vsub.f32 %v36971_v14, %v2737_v9  ;;  %42262 = vst [vmem:[#allocation48_spill] sm:$0xff] %v37081_v32  ;;  %42263 = vst [vmem:[#allocation49_spill] sm:$0xff] %v37087_v33  ;;  %v3619_v27 = vand.u32 4294901760, %v1596_v34  ;;  %v37118_v14 = vsub.f32 %v1630_v28, %v4114_v38 }
 0x1d9   : > { %42255 = vst [vmem:[#allocation41_spill] sm:$0xff] %v37031_v10  ;;  %v37110_v49 = vpack.c.bf16 %v42265_v48, %v3216_v60 }
 0x1da   : > { %v36923_v43 = vand.u32 4294901760, %v36920_v42  ;;  %v2739_v55 = vand.u32 4294901760, %v2738_v36  ;;  %v1628_v36 = vld [vmem:[#allocation7 + $0x148] sm:$0xff] }
 0x1db   : > { %v3623_v5 = vand.u32 4294901760, %v1628_v36  ;;  %42266 = vst [vmem:[#allocation51_spill] sm:$0xff] %v37110_v49 }
 0x1dc   : > { %v1727_v44 = vsub.f32 %v36920_v42, %v36923_v43  ;;  %v37037_v59 = vpack.c.bf16 %v2739_v55, %v2727_v53  ;;  %v3625_v53 = vand.u32 4294901760, %v1627_v8  ;;  %v4112_v55 = vand.u32 4294901760, %v1597_v11 }
 0x1dd   : > { %v37145_v48 = vpack.c.bf16 %v3623_v5, %v3619_v27 }
 0x1de   : > { %v36927_v26 = vand.u32 4294901760, %v1727_v44  ;;  %v3217_v44 = vsub.f32 %v36973_v15, %v3216_v60  ;;  %42256 = vst [vmem:[#allocation42_spill] sm:$0xff] %v37037_v59  ;;  %v37123_v15 = vsub.f32 %v37093_v7, %v3621_v47  ;;  %v37127_v25 = vsub.f32 %v1627_v8, %v3625_v53 }
 0x1df   : > { %v37129_v51 = vsub.f32 %v1597_v11, %v4112_v55  ;;  %v42267_v60 = vmov 0.0   ;;  %42268 = vst [vmem:[#allocation52_spill] sm:$0xff] %v37145_v48  ;;  %v42272_v11 = vand.u32 4294901760, %v37118_v14 }
 0x1e0   : > { %1729 = vmatmul.mubr.f32.vlgmr.msra.gmra.mrb[2].mxu0 %v36927_v26  ;;  %2220 = vmatmul.mubr.f32.vlgmr.msra.gmra.mrb[2].mxu1 %v36927_v26  ;;  %v3218_v56 = vand.u32 4294901760, %v3217_v44  ;;  %v1598_v44 = vld [vmem:[#allocation7 + $0x58] sm:$0xff] }
 0x1e1   : > { %33118 = vmatpush1.bf16.msra.mxu0 %v36884_v1  ;;  %33142 = vmatpush1.bf16.msra.mxu1 %v36894_v18  ;;  %v4110_v37 = vand.u32 4294901760, %v1598_v44 }
 0x1e2   : > { %1819 = vmatprep.mubr.f32.mxu0 %v41469_v0  ;;  %2310 = vmatprep.mubr.f32.mxu1 %v41469_v0  ;;  %v37039_v61 = vpack.c.bf16 %v3230_v57, %v3218_v56  ;;  %v4116_v56 = vand.u32 4294901760, %v1629_v12  ;;  %v37112_v57 = vsub.f32 %v1596_v34, %v3619_v27  ;;  %v42273_v27 = vand.u32 4294901760, %v37123_v15 }
 0x1e3   : > { %33120 = vmatprep.subr.bf16.mxu0 %v36890_v4  ;;  %33144 = vmatprep.subr.bf16.mxu1 %v36896_v19  ;;  %v37116_v13 = vsub.f32 %v1598_v44, %v4110_v37 }
 0x1e4   : > { %42257 = vst [vmem:[#allocation43_spill] sm:$0xff] %v37039_v61  ;;  %v37131_v9 = vsub.f32 %v1629_v12, %v4116_v56  ;;  %v41473_v34 = vand.u32 4294901760, %v37112_v57  ;;  %v4205_v12 = vsub.f32 %v37118_v14, %v42272_v11 }
 0x1e5   : > { %v42271_v7 = vand.u32 4294901760, %v37116_v13 }
 0x1e6   : > { %v42276_v11 = vand.u32 4294901760, %v37131_v9 }
 0x1e7   : > { %v4193_v8 = vsub.f32 %v37116_v13, %v42271_v7 }
 0x1e8   : > { %1821 = vmatmul.mubr.f32.vlgmr.msra.gmra.mrb[2].mxu0 %v36917_v41  ;;  %2312 = vmatmul.mubr.f32.vlgmr.msra.gmra.mrb[2].mxu1 %v36917_v41 }
 0x1e9   : > { %33122 = vmatpush1.bf16.msra.mxu0 %v36892_v17  ;;  %33146 = vmatpush1.bf16.msra.mxu1 %v36898_v21 }
 0x1ea   : > { %1899 = vmatprep.mubr.f32.mxu0 %v41469_v0  ;;  %2390 = vmatprep.mubr.f32.mxu1 %v41469_v0 }
 0x1eb   : > { %33124 = vmatprep.subr.bf16.mxu0 %v36870_v54  ;;  %33148 = vmatprep.subr.bf16.mxu1 %v36872_v39 }
 0x1f0   : > { %1902 = vmatmul.mubr.f32.vlgmr.msra.gmra.mrb[2].mxu0 %v36920_v42  ;;  %2393 = vmatmul.mubr.f32.vlgmr.msra.gmra.mrb[2].mxu1 %v36920_v42 }
 0x1f1   : > { %33126 = vmatpush1.bf16.msra.mxu0 %v36874_v40  ;;  %33150 = vmatpush1.bf16.msra.mxu1 %v36877_v46 }
 0x1f2   : > { %1976 = vmatprep.mubr.f32.mxu0 %v41469_v0  ;;  %2467 = vmatprep.mubr.f32.mxu1 %v41469_v0 }
 0x1f3   : > { %33128 = vmatprep.subr.bf16.mxu0 %v36900_v16  ;;  %33152 = vmatprep.subr.bf16.mxu1 %v36904_v20 }
 0x1f8   : > { %1980 = vmatmul.mubr.f32.vlgmr.msra.gmra.mrb[2].mxu0 %v36923_v43  ;;  %2471 = vmatmul.mubr.f32.vlgmr.msra.gmra.mrb[2].mxu1 %v36923_v43 }
 0x1f9   : > { %33130 = vmatpush1.bf16.msra.mxu0 %v36902_v23  ;;  %33154 = vmatpush1.bf16.msra.mxu1 %v36906_v22  ;;  %v32299_v23 = vld [vmem:[%s36641_s18 + $0x6] ss:$8 sm:$0x3] }
 0x1fa   : > { %2062 = vmatprep.mubr.f32.mxu0 %v41469_v0  ;;  %2553 = vmatprep.mubr.f32.mxu1 %v41469_v0 }
 0x1fb   : > { %33132 = vmatprep.subr.bf16.mxu0 %v36870_v54  ;;  %33156 = vmatprep.subr.bf16.mxu1 %v36872_v39 }
 0x200   : > { %2064 = vmatmul.mubr.f32.vlgmr.msra.gmra.mrb[2].mxu0 %v36917_v41  ;;  %2555 = vmatmul.mubr.f32.vlgmr.msra.gmra.mrb[2].mxu1 %v36917_v41 }
 0x201   : > { %33134 = vmatpush1.bf16.msra.mxu0 %v36874_v40  ;;  %33158 = vmatpush1.bf16.msra.mxu1 %v36877_v46 }
 0x202   : > { %2138 = vmatprep.mubr.f32.mxu0 %v41469_v0  ;;  %2629 = vmatprep.mubr.f32.mxu1 %v41469_v0 }
 0x203   : > { %33160 = vmatprep.subr.bf16.mxu0 %v36989_v3  ;;  %33184 = vmatprep.subr.bf16.mxu1 %v36991_v24 }
 0x208   : > { %2140 = vmatmul.mubr.f32.vlgmr.msra.gmra.mrb[2].mxu0 %v36917_v41  ;;  %2631 = vmatmul.mubr.f32.vlgmr.msra.gmra.mrb[2].mxu1 %v36917_v41 }
 0x209   : > { %33162 = vmatpush1.bf16.msra.mxu0 %v37025_v50  ;;  %33186 = vmatpush1.bf16.msra.mxu1 %v37027_v52 }
 0x20a   : > { %2705 = vmatprep.mubr.f32.mxu0 %v41469_v0  ;;  %3196 = vmatprep.mubr.f32.mxu1 %v41469_v0 }
 0x20b   : > { %33164 = vmatprep.subr.bf16.mxu0 %v37029_v58  ;;  %33188 = vmatprep.subr.bf16.mxu1 %v37031_v10  ;;  %v32266_v10 = vld [vmem:[%s36641_s18 + $0xe1] ss:$8 sm:$0x3] }
 0x20c   : > { %2711 = vmatmul.mubr.f32.vlgmr.msra.gmra.mrb[4].mxu0 %v36927_v26  ;;  %3202 = vmatmul.mubr.f32.vlgmr.msra.gmra.mrb[4].mxu1 %v36927_v26 }
 0x20d   : > { %33166 = vmatpush1.bf16.msra.mxu0 %v37037_v59  ;;  %33190 = vmatpush1.bf16.msra.mxu1 %v37039_v61  ;;  %v32265_v59 = vld [vmem:[%s36641_s18 + $0xc1] ss:$8 sm:$0x3] }
 0x20e   : > { %2801 = vmatprep.mubr.f32.mxu0 %v41469_v0  ;;  %3292 = vmatprep.mubr.f32.mxu1 %v41469_v0 }
 0x20f   : > { %33168 = vmatprep.subr.bf16.mxu0 %v37047_v62  ;;  %33192 = vmatprep.subr.bf16.mxu1 %v37051_v6 }
 0x214   : > { %2803 = vmatmul.mubr.f32.vlgmr.msra.gmra.mrb[4].mxu0 %v36917_v41  ;;  %3294 = vmatmul.mubr.f32.vlgmr.msra.gmra.mrb[4].mxu1 %v36917_v41 }
 0x215   : > { %33170 = vmatpush1.bf16.msra.mxu0 %v37063_v30  ;;  %33194 = vmatpush1.bf16.msra.mxu1 %v37067_v31  ;;  %v37183_v31 = vpack.c.bf16 %v4116_v56, %v4112_v55  ;;  %v42287_v55 = vand.u32 4294901760, %v37112_v57 }
 0x216   : > { %2881 = vmatprep.mubr.f32.mxu0 %v41469_v0  ;;  %3372 = vmatprep.mubr.f32.mxu1 %v41469_v0 }
 0x217   : > { %33172 = vmatprep.subr.bf16.mxu0 %v36989_v3  ;;  %33196 = vmatprep.subr.bf16.mxu1 %v36991_v24  ;;  %42278 = vst [vmem:[#allocation55_spill] sm:$0xff] %v37183_v31 }
 0x21c   : > { %2884 = vmatmul.mubr.f32.vlgmr.msra.gmra.mrb[4].mxu0 %v36920_v42  ;;  %3375 = vmatmul.mubr.f32.vlgmr.msra.gmra.mrb[4].mxu1 %v36920_v42 }
 0x21d   : > { %33174 = vmatpush1.bf16.msra.mxu0 %v37025_v50  ;;  %33198 = vmatpush1.bf16.msra.mxu1 %v37027_v52 }
 0x21e   : > { %2958 = vmatprep.mubr.f32.mxu0 %v41469_v0  ;;  %3449 = vmatprep.mubr.f32.mxu1 %v41469_v0  ;;  %v37114_v0 = vsub.f32 %v1628_v36, %v3623_v5  ;;  %v3702_v36 = vsub.f32 %v37112_v57, %v41473_v34  ;;  %v3708_v5 = vsub.f32 %v37123_v15, %v42273_v27 }
 0x21f   : > { %33176 = vmatprep.subr.bf16.mxu0 %v37081_v32  ;;  %33200 = vmatprep.subr.bf16.mxu1 %v37087_v33  ;;  %v4211_v34 = vsub.f32 %v37131_v9, %v42276_v11  ;;  %v4194_v33 = vand.u32 4294901760, %v4193_v8  ;;  %v37181_v32 = vpack.c.bf16 %v3625_v53, %v3621_v47 }
 0x220   : > { %v42270_v44 = vand.u32 4294901760, %v37114_v0  ;;  %v3703_v27 = vand.u32 4294901760, %v3702_v36  ;;  %v42288_v56 = vand.u32 4294901760, %v37114_v0  ;;  %v42290_v36 = vand.u32 4294901760, %v37116_v13 }
 0x221   : > { %42277 = vst [vmem:[#allocation54_spill] sm:$0xff] %v37181_v32  ;;  %v4212_v11 = vand.u32 4294901760, %v4211_v34 }
 0x222   : > { %v3714_v28 = vsub.f32 %v37114_v0, %v42270_v44  ;;  %v42275_v44 = vand.u32 4294901760, %v37129_v51  ;;  %v37237_v34 = vpack.c.bf16 %v42288_v56, %v42287_v55  ;;  %v42293_v55 = vand.u32 4294901760, %v37123_v15 }
 0x223   : > { %v42294_v56 = vand.u32 4294901760, %v37127_v25 }
 0x224   : > { %2962 = vmatmul.mubr.f32.vlgmr.msra.gmra.mrb[4].mxu0 %v36923_v43  ;;  %3453 = vmatmul.mubr.f32.vlgmr.msra.gmra.mrb[4].mxu1 %v36923_v43  ;;  %v4199_v7 = vsub.f32 %v37129_v51, %v42275_v44  ;;  %v3709_v44 = vand.u32 4294901760, %v3708_v5  ;;  %42289 = vst [vmem:[#allocation64_spill] sm:$0xff] %v37237_v34  ;;  %v1632_v5 = vld [vmem:[#allocation7 + $0x168] sm:$0xff] }
 0x225   : > { %33178 = vmatpush1.bf16.msra.mxu0 %v37103_v45  ;;  %33202 = vmatpush1.bf16.msra.mxu1 %v37110_v49  ;;  %v37147_v49 = vpack.c.bf16 %v4114_v38, %v4110_v37  ;;  %v42274_v37 = vand.u32 4294901760, %v37127_v25  ;;  %v3715_v45 = vand.u32 4294901760, %v3714_v28  ;;  %v42291_v28 = vand.u32 4294901760, %v37118_v14 }
 0x226   : > { %3044 = vmatprep.mubr.f32.mxu0 %v42267_v60  ;;  %3535 = vmatprep.mubr.f32.mxu1 %v42267_v60  ;;  %v4200_v6 = vand.u32 4294901760, %v4199_v7  ;;  %v1634_v7 = vld [vmem:[#allocation7 + $0x178] sm:$0xff] }
 0x227   : > { %33180 = vmatprep.subr.bf16.mxu0 %v36989_v3  ;;  %33204 = vmatprep.subr.bf16.mxu1 %v36991_v24  ;;  %42269 = vst [vmem:[#allocation53_spill] sm:$0xff] %v37147_v49  ;;  %v3720_v38 = vsub.f32 %v37127_v25, %v42274_v37  ;;  %v4206_v37 = vand.u32 4294901760, %v4205_v12  ;;  %v37185_v62 = vpack.c.bf16 %v3715_v45, %v3703_v27  ;;  %v1600_v12 = vld [vmem:[#allocation7 + $0x68] sm:$0xff] }
 0x228   : > { %v37195_v53 = vpack.c.bf16 %v4212_v11, %v4200_v6  ;;  %v37207_v45 = vpack.c.bf16 %v37118_v14, %v37116_v13  ;;  %v37219_v6 = vpack.c.bf16 %v37127_v25, %v37123_v15  ;;  %v37243_v8 = vpack.c.bf16 %v42291_v28, %v42290_v36  ;;  %v37255_v13 = vld [vmem:[#allocation7 + $0x70] sm:$0xff] }
 0x229   : > { %v3721_v30 = vand.u32 4294901760, %v3720_v38  ;;  %42279 = vst [vmem:[#allocation56_spill] sm:$0xff] %v37185_v62  ;;  %v37187_v61 = vpack.c.bf16 %v4206_v37, %v4194_v33  ;;  %v37203_v33 = vpack.c.bf16 %v37114_v0, %v37112_v57  ;;  %v1602_v38 = vld [vmem:[#allocation7 + $0x78] sm:$0xff]  ;;  %v37249_v0 = vld [vmem:[#allocation7 + $0x60] sm:$0xff]  ;;  %v37257_v14 = vld [vmem:[#allocation7 + $0x170] sm:$0xff]  ;;  %v4601_v27 = vand.u32 4294901760, %v1600_v12 }
 0x22a   : > { %42282 = vst [vmem:[#allocation59_spill] sm:$0xff] %v37195_v53  ;;  %42284 = vst [vmem:[#allocation61_spill] sm:$0xff] %v37207_v45  ;;  %v37253_v57 = vld [vmem:[#allocation7 + $0x160] sm:$0xff]  ;;  %v4605_v37 = vand.u32 4294901760, %v1632_v5  ;;  %v5096_v11 = vand.u32 4294901760, %v1634_v7  ;;  %v37265_v36 = vpack.c.bf16 %v42294_v56, %v42293_v55  ;;  %v4603_v28 = vand.u32 4294901760, %v37249_v0 }
 0x22b   : > { %42280 = vst [vmem:[#allocation57_spill] sm:$0xff] %v37187_v61  ;;  %v37193_v47 = vpack.c.bf16 %v3721_v30, %v3709_v44  ;;  %42283 = vst [vmem:[#allocation60_spill] sm:$0xff] %v37203_v33  ;;  %v37223_v30 = vpack.c.bf16 %v37131_v9, %v37129_v51  ;;  %v5092_v44 = vand.u32 4294901760, %v1602_v38  ;;  %v37313_v56 = vpop.f32.mrb[0].mxu1 }
 0x22c   : > { %3046 = vmatmul.mubr.f32.vlgmr.msra.gmra.mrb[4].mxu0 %v36917_v41  ;;  %3537 = vmatmul.mubr.f32.vlgmr.msra.gmra.mrb[4].mxu1 %v36917_v41  ;;  %42285 = vst [vmem:[#allocation62_spill] sm:$0xff] %v37219_v6  ;;  %42292 = vst [vmem:[#allocation65_spill] sm:$0xff] %v37243_v8  ;;  %v37279_v15 = vsub.f32 %v1632_v5, %v4605_v37  ;;  %v37283_v55 = vsub.f32 %v1634_v7, %v5096_v11 }
 0x22d   : > { %33182 = vmatpush1.bf16.msra.mxu0 %v37025_v50  ;;  %33206 = vmatpush1.bf16.msra.mxu1 %v37027_v52  ;;  %42281 = vst [vmem:[#allocation58_spill] sm:$0xff] %v37193_v47  ;;  %42286 = vst [vmem:[#allocation63_spill] sm:$0xff] %v37223_v30  ;;  %v37281_v25 = vsub.f32 %v1602_v38, %v5092_v44 }
 0x22e   : > { %3120 = vmatprep.mubr.f32.mxu0 %v42267_v60  ;;  %3611 = vmatprep.mubr.f32.mxu1 %v42267_v60  ;;  %42295 = vst [vmem:[#allocation66_spill] sm:$0xff] %v37265_v36  ;;  %v41508_v5 = vand.u32 4294901760, %v37279_v15  ;;  %42299 = vst [vmem:[#allocation68_spill] sm:$0xff] %v37313_v56 }
 0x22f   : > { %33208 = vmatprep.subr.bf16.mxu0 %v37145_v48  ;;  %33232 = vmatprep.subr.bf16.mxu1 %v37147_v49 }
 0x234   : > { %3122 = vmatmul.mubr.f32.vlgmr.msra.gmra.mrb[4].mxu0 %v36917_v41  ;;  %3613 = vmatmul.mubr.f32.vlgmr.msra.gmra.mrb[4].mxu1 %v36917_v41 }
 0x235   : > { %33210 = vmatpush1.bf16.msra.mxu0 %v37181_v32  ;;  %33234 = vmatpush1.bf16.msra.mxu1 %v37183_v31 }
 0x236   : > { %3687 = vmatprep.mubr.f32.mxu0 %v42267_v60  ;;  %4178 = vmatprep.mubr.f32.mxu1 %v42267_v60 }
 0x237   : > { %33212 = vmatprep.subr.bf16.mxu0 %v37185_v62  ;;  %33236 = vmatprep.subr.bf16.mxu1 %v37187_v61 }
 0x238   : > { %3693 = vmatmul.mubr.f32.vlgmr.msra.gmra.mrb[6].mxu0 %v36927_v26  ;;  %4184 = vmatmul.mubr.f32.vlgmr.msra.gmra.mrb[6].mxu1 %v36927_v26 }
 0x239   : > { %33214 = vmatpush1.bf16.msra.mxu0 %v37193_v47  ;;  %33238 = vmatpush1.bf16.msra.mxu1 %v37195_v53  ;;  %v37277_v53 = vsub.f32 %v1600_v12, %v4601_v27  ;;  %v37319_v12 = vpop.f32.mrb[1].mxu1 }
 0x23a   : > { %3783 = vmatprep.mubr.f32.mxu0 %v42267_v60  ;;  %4274 = vmatprep.mubr.f32.mxu1 %v42267_v60  ;;  %42302 = vst [vmem:[#allocation71_spill] sm:$0xff] %v37319_v12 }
 0x23b   : > { %33216 = vmatprep.subr.bf16.mxu0 %v37203_v33  ;;  %33240 = vmatprep.subr.bf16.mxu1 %v37207_v45  ;;  %v5098_v33 = vand.u32 4294901760, %v37257_v14  ;;  %v42303_v38 = vand.u32 4294901760, %v37277_v53 }
 0x23d   : > { %v4684_v7 = vsub.f32 %v37277_v53, %v42303_v38 }
 0x240   : > { %3785 = vmatmul.mubr.f32.vlgmr.msra.gmra.mrb[6].mxu0 %v36917_v41  ;;  %4276 = vmatmul.mubr.f32.vlgmr.msra.gmra.mrb[6].mxu1 %v36917_v41 }
 0x241   : > { %33218 = vmatpush1.bf16.msra.mxu0 %v37219_v6  ;;  %33242 = vmatpush1.bf16.msra.mxu1 %v37223_v30  ;;  %v42296_v30 = vand.u32 4294901760, %v37129_v51  ;;  %v42297_v6 = vand.u32 4294901760, %v37131_v9  ;;  %v37288_v51 = vsub.f32 %v37249_v0, %v4603_v28  ;;  %v42305_v0 = vand.u32 4294901760, %v37283_v55 }
 0x242   : > { %3863 = vmatprep.mubr.f32.mxu0 %v42267_v60  ;;  %4354 = vmatprep.mubr.f32.mxu1 %v42267_v60 }
 0x243   : > { %33220 = vmatprep.subr.bf16.mxu0 %v37145_v48  ;;  %33244 = vmatprep.subr.bf16.mxu1 %v37147_v49  ;;  %v37272_v45 = vpack.c.bf16 %v42297_v6, %v42296_v30  ;;  %v37299_v30 = vsub.f32 %v37257_v14, %v5098_v33 }
 0x245   : > { %42298 = vst [vmem:[#allocation67_spill] sm:$0xff] %v37272_v45 }
 0x248   : > { %3866 = vmatmul.mubr.f32.vlgmr.msra.gmra.mrb[6].mxu0 %v36920_v42  ;;  %4357 = vmatmul.mubr.f32.vlgmr.msra.gmra.mrb[6].mxu1 %v36920_v42 }
 0x249   : > { %33222 = vmatpush1.bf16.msra.mxu0 %v37181_v32  ;;  %33246 = vmatpush1.bf16.msra.mxu1 %v37183_v31 }
 0x24a   : > { %3940 = vmatprep.mubr.f32.mxu0 %v42267_v60  ;;  %4431 = vmatprep.mubr.f32.mxu1 %v42267_v60 }
 0x24b   : > { %33224 = vmatprep.subr.bf16.mxu0 %v37237_v34  ;;  %33248 = vmatprep.subr.bf16.mxu1 %v37243_v8  ;;  %v4607_v8 = vand.u32 4294901760, %v37253_v57  ;;  %v5094_v34 = vand.u32 4294901760, %v37255_v13 }
 0x24d   : > { %v37293_v9 = vsub.f32 %v37253_v57, %v4607_v8  ;;  %v37296_v6 = vsub.f32 %v37255_v13, %v5094_v34  ;;  %v4696_v57 = vsub.f32 %v37279_v15, %v41508_v5  ;;  %v42304_v13 = vand.u32 4294901760, %v37281_v25 }
 0x24e   : > { %v42309_v5 = vand.u32 4294901760, %v37299_v30  ;;  %v37353_v61 = vpack.c.bf16 %v4607_v8, %v4603_v28  ;;  %v37355_v62 = vpack.c.bf16 %v5098_v33, %v5094_v34  ;;  %v37379_v34 = vpack.c.bf16 %v37283_v55, %v37281_v25 }
 0x24f   : > { %v5175_v14 = vsub.f32 %v37281_v25, %v42304_v13  ;;  %v42308_v13 = vand.u32 4294901760, %v37296_v6  ;;  %v4697_v56 = vand.u32 4294901760, %v4696_v57  ;;  %v42320_v28 = vand.u32 4294901760, %v37277_v53 }
 0x250   : > { %3944 = vmatmul.mubr.f32.vlgmr.msra.gmra.mrb[6].mxu0 %v36923_v43  ;;  %4435 = vmatmul.mubr.f32.vlgmr.msra.gmra.mrb[6].mxu1 %v36923_v43  ;;  %v5193_v12 = vsub.f32 %v37299_v30, %v42309_v5  ;;  %42310 = vst [vmem:[#allocation72_spill] sm:$0xff] %v37353_v61  ;;  %42311 = vst [vmem:[#allocation73_spill] sm:$0xff] %v37355_v62  ;;  %v42323_v57 = vand.u32 4294901760, %v37281_v25  ;;  %v1605_v25 = vld [vmem:[#allocation7 + $0x90] sm:$0xff] }
 0x251   : > { %33226 = vmatpush1.bf16.msra.mxu0 %v37265_v36  ;;  %33250 = vmatpush1.bf16.msra.mxu1 %v37272_v45  ;;  %v37315_v45 = vpack.c.bf16 %v4605_v37, %v4601_v27  ;;  %v37317_v36 = vpack.c.bf16 %v5096_v11, %v5092_v44  ;;  %v5187_v27 = vsub.f32 %v37283_v55, %v42305_v0  ;;  %v42306_v37 = vand.u32 4294901760, %v37288_v51 }
 0x252   : > { %4026 = vmatprep.mubr.f32.mxu0 %v42267_v60  ;;  %4517 = vmatprep.mubr.f32.mxu1 %v42267_v60  ;;  %v42307_v11 = vand.u32 4294901760, %v37293_v9  ;;  %v5181_v0 = vsub.f32 %v37296_v6, %v42308_v13  ;;  %v5176_v47 = vand.u32 4294901760, %v5175_v14  ;;  %v5194_v5 = vand.u32 4294901760, %v5193_v12  ;;  %42317 = vst [vmem:[#allocation79_spill] sm:$0xff] %v37379_v34 }
 0x253   : > { %33228 = vmatprep.subr.bf16.mxu0 %v37145_v48  ;;  %33252 = vmatprep.subr.bf16.mxu1 %v37147_v49  ;;  %42300 = vst [vmem:[#allocation69_spill] sm:$0xff] %v37315_v45  ;;  %42301 = vst [vmem:[#allocation70_spill] sm:$0xff] %v37317_v36  ;;  %v4690_v44 = vsub.f32 %v37288_v51, %v42306_v37  ;;  %v4685_v37 = vand.u32 4294901760, %v4684_v7  ;;  %v42321_v12 = vand.u32 4294901760, %v37279_v15  ;;  %v42324_v14 = vand.u32 4294901760, %v37283_v55  ;;  %v1637_v55 = vld [vmem:[#allocation7 + $0x190] sm:$0xff] }
 0x254   : > { %v4702_v38 = vsub.f32 %v37293_v9, %v42307_v11  ;;  %v5188_v11 = vand.u32 4294901760, %v5187_v27  ;;  %v1604_v27 = vld [vmem:[#allocation7 + $0x88] sm:$0xff] }
 0x255   : > { %v4691_v13 = vand.u32 4294901760, %v4690_v44  ;;  %v37357_v49 = vpack.c.bf16 %v4697_v56, %v4685_v37  ;;  %v37409_v7 = vpack.c.bf16 %v42321_v12, %v42320_v28  ;;  %v37415_v56 = vpack.c.bf16 %v42324_v14, %v42323_v57  ;;  %v1636_v44 = vld [vmem:[#allocation7 + $0x188] sm:$0xff] }
 0x256   : > { %v37359_v48 = vpack.c.bf16 %v5188_v11, %v5176_v47  ;;  %v37375_v47 = vpack.c.bf16 %v37279_v15, %v37277_v53  ;;  %v37421_v53 = vld [vmem:[#allocation7 + $0x80] sm:$0xff]  ;;  %v5583_v37 = vand.u32 4294901760, %v1604_v27  ;;  %v5587_v11 = vand.u32 4294901760, %v1636_v44 }
 0x257   : > { %42312 = vst [vmem:[#allocation74_spill] sm:$0xff] %v37357_v49  ;;  %42322 = vst [vmem:[#allocation82_spill] sm:$0xff] %v37409_v7  ;;  %v1635_v15 = vld [vmem:[#allocation7 + $0x180] sm:$0xff]  ;;  %v42326_v28 = vand.u32 4294901760, %v37288_v51  ;;  %v42327_v12 = vand.u32 4294901760, %v37293_v9  ;;  %v5585_v14 = vand.u32 4294901760, %v37421_v53 }
 0x258   : > { %4028 = vmatmul.mubr.f32.vlgmr.msra.gmra.mrb[6].mxu0 %v36917_v41  ;;  %4519 = vmatmul.mubr.f32.vlgmr.msra.gmra.mrb[6].mxu1 %v36917_v41  ;;  %42313 = vst [vmem:[#allocation75_spill] sm:$0xff] %v37359_v48  ;;  %42316 = vst [vmem:[#allocation78_spill] sm:$0xff] %v37375_v47 }
 0x259   : > { %33230 = vmatpush1.bf16.msra.mxu0 %v37181_v32  ;;  %33254 = vmatpush1.bf16.msra.mxu1 %v37183_v31  ;;  %v4703_v31 = vand.u32 4294901760, %v4702_v38  ;;  %v5182_v32 = vand.u32 4294901760, %v5181_v0  ;;  %42325 = vst [vmem:[#allocation83_spill] sm:$0xff] %v37415_v56  ;;  %v1606_v38 = vld [vmem:[#allocation7 + $0x98] sm:$0xff]  ;;  %v37431_v57 = vpack.c.bf16 %v42327_v12, %v42326_v28  ;;  %v37473_v28 = vpack.c.bf16 %v5587_v11, %v5583_v37 }
 0x25a   : > { %4102 = vmatprep.mubr.f32.mxu0 %v42267_v60  ;;  %4593 = vmatprep.mubr.f32.mxu1 %v42267_v60  ;;  %v1638_v0 = vld [vmem:[#allocation7 + $0x198] sm:$0xff] }
 0x25b   : > { %33256 = vmatprep.subr.bf16.mxu0 %v37315_v45  ;;  %33280 = vmatprep.subr.bf16.mxu1 %v37317_v36  ;;  %v37365_v8 = vpack.c.bf16 %v4703_v31, %v4691_v13  ;;  %v37367_v33 = vpack.c.bf16 %v5194_v5, %v5182_v32  ;;  %v37391_v31 = vpack.c.bf16 %v37293_v9, %v37288_v51  ;;  %v6074_v13 = vand.u32 4294901760, %v1606_v38 }
 0x25c   : > { %v37395_v32 = vpack.c.bf16 %v37299_v30, %v37296_v6  ;;  %v6078_v5 = vand.u32 4294901760, %v1638_v0  ;;  %42328 = vst [vmem:[#allocation84_spill] sm:$0xff] %v37431_v57  ;;  %42332 = vst [vmem:[#allocation86_spill] sm:$0xff] %v37473_v28 }
 0x25d   : > { %42314 = vst [vmem:[#allocation76_spill] sm:$0xff] %v37365_v8  ;;  %42315 = vst [vmem:[#allocation77_spill] sm:$0xff] %v37367_v33  ;;  %v37444_v51 = vsub.f32 %v1606_v38, %v6074_v13 }
 0x25e   : > { %42318 = vst [vmem:[#allocation80_spill] sm:$0xff] %v37391_v31  ;;  %42319 = vst [vmem:[#allocation81_spill] sm:$0xff] %v37395_v32  ;;  %v37446_v9 = vsub.f32 %v1638_v0, %v6078_v5  ;;  %v37475_v12 = vpack.c.bf16 %v6078_v5, %v6074_v13 }
 0x260   : > { %4104 = vmatmul.mubr.f32.vlgmr.msra.gmra.mrb[6].mxu0 %v36917_v41  ;;  %4595 = vmatmul.mubr.f32.vlgmr.msra.gmra.mrb[6].mxu1 %v36917_v41  ;;  %42333 = vst [vmem:[#allocation87_spill] sm:$0xff] %v37475_v12 }
 0x261   : > { %33258 = vmatpush1.bf16.msra.mxu0 %v37353_v61  ;;  %33282 = vmatpush1.bf16.msra.mxu1 %v37355_v62 }
 0x262   : > { %4669 = vmatprep.mubr.f32.mxu0 %v42267_v60  ;;  %5160 = vmatprep.mubr.f32.mxu1 %v42267_v60 }
 0x263   : > { %33260 = vmatprep.subr.bf16.mxu0 %v37357_v49  ;;  %33284 = vmatprep.subr.bf16.mxu1 %v37359_v48 }
 0x264   : > { %4675 = vmatmul.mubr.f32.vlgmr.msra.gmra.mrb[8].mxu0 %v36927_v26  ;;  %5166 = vmatmul.mubr.f32.vlgmr.msra.gmra.mrb[8].mxu1 %v36927_v26 }
 0x265   : > { %33262 = vmatpush1.bf16.msra.mxu0 %v37365_v8  ;;  %33286 = vmatpush1.bf16.msra.mxu1 %v37367_v33  ;;  %v37440_v33 = vsub.f32 %v1604_v27, %v5583_v37  ;;  %v37442_v8 = vsub.f32 %v1636_v44, %v5587_v11 }
 0x266   : > { %4765 = vmatprep.mubr.f32.mxu0 %v42267_v60  ;;  %5256 = vmatprep.mubr.f32.mxu1 %v42267_v60 }
 0x267   : > { %33264 = vmatprep.subr.bf16.mxu0 %v37375_v47  ;;  %33288 = vmatprep.subr.bf16.mxu1 %v37379_v34  ;;  %v6080_v47 = vand.u32 4294901760, %v1637_v55  ;;  %v41539_v27 = vand.u32 4294901760, %v37440_v33  ;;  %v42334_v38 = vand.u32 4294901760, %v37442_v8 }
 0x269   : > { %v5666_v44 = vsub.f32 %v37440_v33, %v41539_v27  ;;  %v5678_v0 = vsub.f32 %v37442_v8, %v42334_v38 }
 0x26c   : > { %4767 = vmatmul.mubr.f32.vlgmr.msra.gmra.mrb[8].mxu0 %v36917_v41  ;;  %5258 = vmatmul.mubr.f32.vlgmr.msra.gmra.mrb[8].mxu1 %v36917_v41 }
 0x26d   : > { %33266 = vmatpush1.bf16.msra.mxu0 %v37391_v31  ;;  %33290 = vmatpush1.bf16.msra.mxu1 %v37395_v32  ;;  %v42329_v32 = vand.u32 4294901760, %v37296_v6  ;;  %v42330_v31 = vand.u32 4294901760, %v37299_v30  ;;  %v37451_v6 = vsub.f32 %v37421_v53, %v5585_v14  ;;  %v42335_v53 = vand.u32 4294901760, %v37444_v51 }
 0x26e   : > { %4845 = vmatprep.mubr.f32.mxu0 %v42267_v60  ;;  %5336 = vmatprep.mubr.f32.mxu1 %v42267_v60 }
 0x26f   : > { %33268 = vmatprep.subr.bf16.mxu0 %v37315_v45  ;;  %33292 = vmatprep.subr.bf16.mxu1 %v37317_v36  ;;  %v37438_v34 = vpack.c.bf16 %v42330_v31, %v42329_v32  ;;  %v37459_v32 = vsub.f32 %v1637_v55, %v6080_v47  ;;  %v42337_v37 = vand.u32 4294901760, %v37451_v6 }
 0x271   : > { %42331 = vst [vmem:[#allocation85_spill] sm:$0xff] %v37438_v34  ;;  %v5672_v11 = vsub.f32 %v37451_v6, %v42337_v37  ;;  %v5667_v37 = vand.u32 4294901760, %v5666_v44  ;;  %v42354_v44 = vand.u32 4294901760, %v37444_v51 }
 0x274   : > { %4848 = vmatmul.mubr.f32.vlgmr.msra.gmra.mrb[8].mxu0 %v36920_v42  ;;  %5339 = vmatmul.mubr.f32.vlgmr.msra.gmra.mrb[8].mxu1 %v36920_v42 }
 0x275   : > { %33270 = vmatpush1.bf16.msra.mxu0 %v37353_v61  ;;  %33294 = vmatpush1.bf16.msra.mxu1 %v37355_v62 }
 0x276   : > { %4922 = vmatprep.mubr.f32.mxu0 %v42267_v60  ;;  %5413 = vmatprep.mubr.f32.mxu1 %v42267_v60 }
 0x277   : > { %33272 = vmatprep.subr.bf16.mxu0 %v37409_v7  ;;  %33296 = vmatprep.subr.bf16.mxu1 %v37415_v56  ;;  %v5589_v7 = vand.u32 4294901760, %v1635_v15  ;;  %v6076_v56 = vand.u32 4294901760, %v1605_v25 }
 0x279   : > { %v37455_v30 = vsub.f32 %v1635_v15, %v5589_v7  ;;  %v37457_v31 = vsub.f32 %v1605_v25, %v6076_v56  ;;  %v6157_v15 = vsub.f32 %v37444_v51, %v42335_v53  ;;  %v42336_v25 = vand.u32 4294901760, %v37446_v9 }
 0x27a   : > { %v37509_v48 = vpack.c.bf16 %v5589_v7, %v5585_v14  ;;  %v37511_v49 = vpack.c.bf16 %v6080_v47, %v6076_v56  ;;  %v37535_v56 = vpack.c.bf16 %v37446_v9, %v37444_v51  ;;  %v42352_v14 = vand.u32 4294901760, %v37442_v8  ;;  %v1609_v51 = vld [vmem:[#allocation7 + $0xb0] sm:$0xff] }
 0x27b   : > { %v6169_v55 = vsub.f32 %v37446_v9, %v42336_v25  ;;  %v42338_v13 = vand.u32 4294901760, %v37455_v30  ;;  %v42339_v38 = vand.u32 4294901760, %v37457_v31  ;;  %v42340_v25 = vand.u32 4294901760, %v37459_v32 }
 0x27c   : > { %4926 = vmatmul.mubr.f32.vlgmr.msra.gmra.mrb[8].mxu0 %v36923_v43  ;;  %5417 = vmatmul.mubr.f32.vlgmr.msra.gmra.mrb[8].mxu1 %v36923_v43  ;;  %42341 = vst [vmem:[#allocation88_spill] sm:$0xff] %v37509_v48  ;;  %42342 = vst [vmem:[#allocation89_spill] sm:$0xff] %v37511_v49 }
 0x27d   : > { %33274 = vmatpush1.bf16.msra.mxu0 %v37431_v57  ;;  %33298 = vmatpush1.bf16.msra.mxu1 %v37438_v34  ;;  %v5684_v5 = vsub.f32 %v37455_v30, %v42338_v13  ;;  %v6163_v53 = vsub.f32 %v37457_v31, %v42339_v38  ;;  %v6175_v27 = vsub.f32 %v37459_v32, %v42340_v25  ;;  %v5679_v34 = vand.u32 4294901760, %v5678_v0 }
 0x27e   : > { %5008 = vmatprep.mubr.f32.mxu0 %v42267_v60  ;;  %5499 = vmatprep.mubr.f32.mxu1 %v42267_v60  ;;  %v6158_v57 = vand.u32 4294901760, %v6157_v15  ;;  %v6170_v13 = vand.u32 4294901760, %v6169_v55  ;;  %v5673_v38 = vand.u32 4294901760, %v5672_v11  ;;  %42348 = vst [vmem:[#allocation95_spill] sm:$0xff] %v37535_v56  ;;  %v42355_v0 = vand.u32 4294901760, %v37446_v9  ;;  %v1608_v55 = vld [vmem:[#allocation7 + $0xa8] sm:$0xff] }
 0x27f   : > { %33276 = vmatprep.subr.bf16.mxu0 %v37315_v45  ;;  %33300 = vmatprep.subr.bf16.mxu1 %v37317_v36  ;;  %v6176_v25 = vand.u32 4294901760, %v6175_v27  ;;  %v37513_v36 = vpack.c.bf16 %v5679_v34, %v5667_v37  ;;  %v37531_v34 = vpack.c.bf16 %v37442_v8, %v37440_v33  ;;  %v1640_v11 = vld [vmem:[#allocation7 + $0x1a8] sm:$0xff]  ;;  %v37577_v8 = vld [vmem:[#allocation7 + $0xa0] sm:$0xff]  ;;  %v1641_v9 = vld [vmem:[#allocation7 + $0x1b0] sm:$0xff]  ;;  %v6565_v37 = vand.u32 4294901760, %v1608_v55 }
 0x280   : > { %v37515_v45 = vpack.c.bf16 %v6170_v13, %v6158_v57  ;;  %v42351_v57 = vand.u32 4294901760, %v37440_v33  ;;  %v37571_v15 = vpack.c.bf16 %v42355_v0, %v42354_v44  ;;  %v1639_v33 = vld [vmem:[#allocation7 + $0x1a0] sm:$0xff]  ;;  %v6569_v13 = vand.u32 4294901760, %v1640_v11 }
 0x281   : > { %42343 = vst [vmem:[#allocation90_spill] sm:$0xff] %v37513_v36  ;;  %42347 = vst [vmem:[#allocation94_spill] sm:$0xff] %v37531_v34  ;;  %v6567_v0 = vand.u32 4294901760, %v37577_v8 }
 0x282   : > { %42344 = vst [vmem:[#allocation91_spill] sm:$0xff] %v37515_v45  ;;  %v37565_v27 = vpack.c.bf16 %v42352_v14, %v42351_v57  ;;  %42356 = vst [vmem:[#allocation99_spill] sm:$0xff] %v37571_v15  ;;  %v42357_v57 = vand.u32 4294901760, %v37451_v6  ;;  %v42358_v14 = vand.u32 4294901760, %v37455_v30 }
 0x284   : > { %5010 = vmatmul.mubr.f32.vlgmr.msra.gmra.mrb[8].mxu0 %v36917_v41  ;;  %5501 = vmatmul.mubr.f32.vlgmr.msra.gmra.mrb[8].mxu1 %v36917_v41  ;;  %42353 = vst [vmem:[#allocation98_spill] sm:$0xff] %v37565_v27  ;;  %v37587_v44 = vpack.c.bf16 %v42358_v14, %v42357_v57  ;;  %v37629_v57 = vpack.c.bf16 %v6569_v13, %v6565_v37 }
 0x285   : > { %33278 = vmatpush1.bf16.msra.mxu0 %v37353_v61  ;;  %33302 = vmatpush1.bf16.msra.mxu1 %v37355_v62  ;;  %v5685_v62 = vand.u32 4294901760, %v5684_v5  ;;  %v6164_v61 = vand.u32 4294901760, %v6163_v53  ;;  %v1610_v5 = vld [vmem:[#allocation7 + $0xb8] sm:$0xff] }
 0x286   : > { %5084 = vmatprep.mubr.f32.mxu0 %v42267_v60  ;;  %5575 = vmatprep.mubr.f32.mxu1 %v42267_v60  ;;  %v1642_v53 = vld [vmem:[#allocation7 + $0x1b8] sm:$0xff]  ;;  %42359 = vst [vmem:[#allocation100_spill] sm:$0xff] %v37587_v44  ;;  %42363 = vst [vmem:[#allocation102_spill] sm:$0xff] %v37629_v57 }
 0x287   : > { %33304 = vmatprep.subr.bf16.mxu0 %v37473_v28  ;;  %33328 = vmatprep.subr.bf16.mxu1 %v37475_v12  ;;  %v37521_v7 = vpack.c.bf16 %v5685_v62, %v5673_v38  ;;  %v37523_v47 = vpack.c.bf16 %v6176_v25, %v6164_v61  ;;  %v37547_v61 = vpack.c.bf16 %v37455_v30, %v37451_v6  ;;  %v7056_v38 = vand.u32 4294901760, %v1610_v5 }
 0x288   : > { %v37551_v62 = vpack.c.bf16 %v37459_v32, %v37457_v31  ;;  %v7060_v25 = vand.u32 4294901760, %v1642_v53 }
 0x289   : > { %42345 = vst [vmem:[#allocation92_spill] sm:$0xff] %v37521_v7  ;;  %42346 = vst [vmem:[#allocation93_spill] sm:$0xff] %v37523_v47  ;;  %v37600_v6 = vsub.f32 %v1610_v5, %v7056_v38 }
 0x28a   : > { %42349 = vst [vmem:[#allocation96_spill] sm:$0xff] %v37547_v61  ;;  %42350 = vst [vmem:[#allocation97_spill] sm:$0xff] %v37551_v62  ;;  %v37602_v30 = vsub.f32 %v1642_v53, %v7060_v25  ;;  %v37631_v14 = vpack.c.bf16 %v7060_v25, %v7056_v38 }
 0x28c   : > { %5086 = vmatmul.mubr.f32.vlgmr.msra.gmra.mrb[8].mxu0 %v36917_v41  ;;  %5577 = vmatmul.mubr.f32.vlgmr.msra.gmra.mrb[8].mxu1 %v36917_v41  ;;  %42364 = vst [vmem:[#allocation103_spill] sm:$0xff] %v37631_v14 }
 0x28d   : > { %33306 = vmatpush1.bf16.msra.mxu0 %v37509_v48  ;;  %33330 = vmatpush1.bf16.msra.mxu1 %v37511_v49 }
 0x28e   : > { %5651 = vmatprep.mubr.f32.mxu0 %v42267_v60  ;;  %6142 = vmatprep.mubr.f32.mxu1 %v42267_v60 }
 0x28f   : > { %33308 = vmatprep.subr.bf16.mxu0 %v37513_v36  ;;  %33332 = vmatprep.subr.bf16.mxu1 %v37515_v45 }
 0x290   : > { %5657 = vmatmul.mubr.f32.vlgmr.msra.gmra.mrb[10].mxu0 %v36927_v26  ;;  %6148 = vmatmul.mubr.f32.vlgmr.msra.gmra.mrb[10].mxu1 %v36927_v26 }
 0x291   : > { %33310 = vmatpush1.bf16.msra.mxu0 %v37521_v7  ;;  %33334 = vmatpush1.bf16.msra.mxu1 %v37523_v47  ;;  %v37596_v47 = vsub.f32 %v1608_v55, %v6565_v37  ;;  %v37598_v7 = vsub.f32 %v1640_v11, %v6569_v13 }
 0x292   : > { %5747 = vmatprep.mubr.f32.mxu0 %v42267_v60  ;;  %6238 = vmatprep.mubr.f32.mxu1 %v42267_v60 }
 0x293   : > { %33312 = vmatprep.subr.bf16.mxu0 %v37531_v34  ;;  %33336 = vmatprep.subr.bf16.mxu1 %v37535_v56  ;;  %v7062_v34 = vand.u32 4294901760, %v1641_v9  ;;  %v41572_v55 = vand.u32 4294901760, %v37596_v47  ;;  %v42365_v5 = vand.u32 4294901760, %v37598_v7 }
 0x295   : > { %v6648_v11 = vsub.f32 %v37596_v47, %v41572_v55  ;;  %v6660_v53 = vsub.f32 %v37598_v7, %v42365_v5 }
 0x298   : > { %5749 = vmatmul.mubr.f32.vlgmr.msra.gmra.mrb[10].mxu0 %v36917_v41  ;;  %6240 = vmatmul.mubr.f32.vlgmr.msra.gmra.mrb[10].mxu1 %v36917_v41 }
 0x299   : > { %33314 = vmatpush1.bf16.msra.mxu0 %v37547_v61  ;;  %33338 = vmatpush1.bf16.msra.mxu1 %v37551_v62  ;;  %v42360_v62 = vand.u32 4294901760, %v37457_v31  ;;  %v42361_v61 = vand.u32 4294901760, %v37459_v32  ;;  %v37607_v31 = vsub.f32 %v37577_v8, %v6567_v0  ;;  %v42366_v8 = vand.u32 4294901760, %v37600_v6 }
 0x29a   : > { %5827 = vmatprep.mubr.f32.mxu0 %v42267_v60  ;;  %6318 = vmatprep.mubr.f32.mxu1 %v42267_v60 }
 0x29b   : > { %33316 = vmatprep.subr.bf16.mxu0 %v37473_v28  ;;  %33340 = vmatprep.subr.bf16.mxu1 %v37475_v12  ;;  %v37594_v56 = vpack.c.bf16 %v42361_v61, %v42360_v62  ;;  %v37615_v62 = vsub.f32 %v1641_v9, %v7062_v34  ;;  %v42368_v37 = vand.u32 4294901760, %v37607_v31 }
 0x29d   : > { %42362 = vst [vmem:[#allocation101_spill] sm:$0xff] %v37594_v56  ;;  %v6654_v13 = vsub.f32 %v37607_v31, %v42368_v37  ;;  %v6649_v37 = vand.u32 4294901760, %v6648_v11  ;;  %v32254_v11 = vld [vmem:[%s36641_s18 + $0x60] ss:$8 sm:$0x3] }
 0x2a0   : > { %5830 = vmatmul.mubr.f32.vlgmr.msra.gmra.mrb[10].mxu0 %v36920_v42  ;;  %6321 = vmatmul.mubr.f32.vlgmr.msra.gmra.mrb[10].mxu1 %v36920_v42 }
 0x2a1   : > { %33318 = vmatpush1.bf16.msra.mxu0 %v37509_v48  ;;  %33342 = vmatpush1.bf16.msra.mxu1 %v37511_v49 }
 0x2a2   : > { %5904 = vmatprep.mubr.f32.mxu0 %v42267_v60  ;;  %6395 = vmatprep.mubr.f32.mxu1 %v42267_v60 }
 0x2a3   : > { %33320 = vmatprep.subr.bf16.mxu0 %v37565_v27  ;;  %33344 = vmatprep.subr.bf16.mxu1 %v37571_v15  ;;  %v6571_v27 = vand.u32 4294901760, %v1639_v33  ;;  %v7058_v15 = vand.u32 4294901760, %v1609_v51 }
 0x2a5   : > { %v37611_v32 = vsub.f32 %v1639_v33, %v6571_v27  ;;  %v37613_v61 = vsub.f32 %v1609_v51, %v7058_v15  ;;  %v7139_v33 = vsub.f32 %v37600_v6, %v42366_v8  ;;  %v42367_v51 = vand.u32 4294901760, %v37602_v30 }
 0x2a6   : > { %v37665_v45 = vpack.c.bf16 %v6571_v27, %v6567_v0  ;;  %v37667_v36 = vpack.c.bf16 %v7062_v34, %v7058_v15  ;;  %v32252_v0 = vld [vmem:[%s36641_s18 + $0x20] ss:$8 sm:$0x3] }
 0x2a7   : > { %v7151_v9 = vsub.f32 %v37602_v30, %v42367_v51  ;;  %v42369_v38 = vand.u32 4294901760, %v37611_v32  ;;  %v42370_v5 = vand.u32 4294901760, %v37613_v61  ;;  %v42371_v51 = vand.u32 4294901760, %v37615_v62 }
 0x2a8   : > { %5908 = vmatmul.mubr.f32.vlgmr.msra.gmra.mrb[10].mxu0 %v36923_v43  ;;  %6399 = vmatmul.mubr.f32.vlgmr.msra.gmra.mrb[10].mxu1 %v36923_v43  ;;  %42372 = vst [vmem:[#allocation104_spill] sm:$0xff] %v37665_v45  ;;  %42373 = vst [vmem:[#allocation105_spill] sm:$0xff] %v37667_v36 }
 0x2a9   : > { %33322 = vmatpush1.bf16.msra.mxu0 %v37587_v44  ;;  %33346 = vmatpush1.bf16.msra.mxu1 %v37594_v56  ;;  %v6666_v25 = vsub.f32 %v37611_v32, %v42369_v38  ;;  %v7145_v8 = vsub.f32 %v37613_v61, %v42370_v5  ;;  %v7157_v55 = vsub.f32 %v37615_v62, %v42371_v51  ;;  %v6661_v56 = vand.u32 4294901760, %v6660_v53 }
 0x2aa   : > { %5990 = vmatprep.mubr.f32.mxu0 %v42267_v60  ;;  %6481 = vmatprep.mubr.f32.mxu1 %v42267_v60  ;;  %v7140_v44 = vand.u32 4294901760, %v7139_v33  ;;  %v7152_v38 = vand.u32 4294901760, %v7151_v9  ;;  %v6655_v5 = vand.u32 4294901760, %v6654_v13  ;;  %v32255_v33 = vld [vmem:[%s36641_s18 + $0x80] ss:$8 sm:$0x3]  ;;  %v37709_v13 = vpack.c.bf16 %v37611_v32, %v37607_v31 }
 0x2ab   : > { %33324 = vmatprep.subr.bf16.mxu0 %v37473_v28  ;;  %33348 = vmatprep.subr.bf16.mxu1 %v37475_v12  ;;  %v7158_v51 = vand.u32 4294901760, %v7157_v55  ;;  %v37669_v12 = vpack.c.bf16 %v6661_v56, %v6649_v37  ;;  %v37687_v56 = vpack.c.bf16 %v37598_v7, %v37596_v47  ;;  %v32253_v55 = vld [vmem:[%s36641_s18 + $0x40] ss:$8 sm:$0x3] }
 0x2ac   : > { %v37671_v28 = vpack.c.bf16 %v7152_v38, %v7140_v44  ;;  %v9511_v44 = vld [vmem:[%s36641_s18] ss:$8 sm:$0x3]  ;;  %42380 = vst [vmem:[#allocation112_spill] sm:$0xff] %v37709_v13 }
 0x2ad   : > { %42374 = vst [vmem:[#allocation106_spill] sm:$0xff] %v37669_v12  ;;  %42378 = vst [vmem:[#allocation110_spill] sm:$0xff] %v37687_v56  ;;  %v32256_v9 = vld [vmem:[%s36641_s18 + $0xa0] ss:$8 sm:$0x3] }
 0x2ae   : > { %42375 = vst [vmem:[#allocation107_spill] sm:$0xff] %v37671_v28  ;;  %v32258_v37 = vld [vmem:[%s36641_s18 + $0xe0] ss:$8 sm:$0x3] }
 0x2af   : > { %v32259_v38 = vld [vmem:[%s36641_s18 + $0x1] ss:$8 sm:$0x3] }
 0x2b0   : > { %5992 = vmatmul.mubr.f32.vlgmr.msra.gmra.mrb[10].mxu0 %v36917_v41  ;;  %6483 = vmatmul.mubr.f32.vlgmr.msra.gmra.mrb[10].mxu1 %v36917_v41 }
 0x2b1   : > { %33326 = vmatpush1.bf16.msra.mxu0 %v37509_v48  ;;  %33350 = vmatpush1.bf16.msra.mxu1 %v37511_v49  ;;  %v6667_v49 = vand.u32 4294901760, %v6666_v25  ;;  %v7146_v48 = vand.u32 4294901760, %v7145_v8  ;;  %v37713_v25 = vpack.c.bf16 %v37615_v62, %v37613_v61  ;;  %v32257_v8 = vld [vmem:[%s36641_s18 + $0xc0] ss:$8 sm:$0x3] }
 0x2b2   : > { %6066 = vmatprep.mubr.f32.mxu0 %v42267_v60  ;;  %6557 = vmatprep.mubr.f32.mxu1 %v42267_v60 }
 0x2b3   : > { %33352 = vmatprep.subr.bf16.mxu0 %v37629_v57  ;;  %33376 = vmatprep.subr.bf16.mxu1 %v37631_v14  ;;  %v37677_v27 = vpack.c.bf16 %v6667_v49, %v6655_v5  ;;  %v37679_v34 = vpack.c.bf16 %v7158_v51, %v7146_v48  ;;  %v37691_v49 = vpack.c.bf16 %v37602_v30, %v37600_v6  ;;  %v36325_v48 = vmov 1966171168   ;;  %v32260_v5 = vld [vmem:[%s36641_s18 + $0x21] ss:$8 sm:$0x3] }
 0x2b4   : > { %v9539_v15 = vunpack.c.l.s4 %v36325_v48  ;;  %42381 = vst [vmem:[#allocation113_spill] sm:$0xff] %v37713_v25  ;;  %v32261_v51 = vld [vmem:[%s36641_s18 + $0x41] ss:$8 sm:$0x3] }
 0x2b5   : > { %42376 = vst [vmem:[#allocation108_spill] sm:$0xff] %v37677_v27  ;;  %42377 = vst [vmem:[#allocation109_spill] sm:$0xff] %v37679_v34  ;;  %v32262_v48 = vld [vmem:[%s36641_s18 + $0x61] ss:$8 sm:$0x3] }
 0x2b6   : > { %42379 = vst [vmem:[#allocation111_spill] sm:$0xff] %v37691_v49  ;;  %v9540_v53 = vunpack.c.0.s8 %v9539_v15  ;;  %v9629_v58 = vcombine.low %v32261_v51, %v32262_v48  ;;  %v42389_v48 = vand.u32 4294901760, %v37611_v32 }
 0x2b8   : > { %6068 = vmatmul.mubr.f32.vlgmr.msra.gmra.mrb[10].mxu0 %v36917_v41  ;;  %6559 = vmatmul.mubr.f32.vlgmr.msra.gmra.mrb[10].mxu1 %v36917_v41  ;;  %v37722_v15 = vsub.s32 %v9540_v53, %v36908_v29  ;;  %v9628_v53 = vcombine.low %v32259_v38, %v32260_v5  ;;  %v42382_v38 = vand.u32 4294901760, %v37596_v47  ;;  %v42383_v5 = vand.u32 4294901760, %v37598_v7  ;;  %v37764_v47 = vld [vmem:[#allocation7 + $0x1d8] sm:$0xff] }
 0x2b9   : > { %33354 = vmatpush1.bf16.msra.mxu0 %v37665_v45  ;;  %33378 = vmatpush1.bf16.msra.mxu1 %v37667_v36 }
 0x2ba   : > { %6633 = vmatprep.mubr.f32.mxu0 %v42267_v60  ;;  %7124 = vmatprep.mubr.f32.mxu1 %v42267_v60  ;;  %v37746_v51 = vpack.c.bf16 %v42383_v5, %v42382_v38 }
 0x2bb   : > { %33356 = vmatprep.subr.bf16.mxu0 %v37669_v12  ;;  %33380 = vmatprep.subr.bf16.mxu1 %v37671_v28  ;;  %v9536_v28 = vcombine.low %v32255_v33, %v32256_v9  ;;  %v9537_v12 = vcombine.low %v32257_v8, %v32258_v37  ;;  %v9638_v8 = vrot.slane %v9628_v53, %v37722_v15 }
 0x2bc   : > { %6639 = vmatmul.mubr.f32.vlgmr.msra.gmra.mrb[12].mxu0 %v36927_v26  ;;  %7130 = vmatmul.mubr.f32.vlgmr.msra.gmra.mrb[12].mxu1 %v36927_v26  ;;  %v9645_v37 = vrot.slane %v9629_v58, %v37722_v15  ;;  %42384 = vst [vmem:[#allocation114_spill] sm:$0xff] %v37746_v51 }
 0x2bd   : > { %33358 = vmatpush1.bf16.msra.mxu0 %v37677_v27  ;;  %33382 = vmatpush1.bf16.msra.mxu1 %v37679_v34  ;;  %v32263_v34 = vld [vmem:[%s36641_s18 + $0x81] ss:$8 sm:$0x3]  ;;  %v9558_v33 = vrot.slane %v9536_v28, %v37722_v15  ;;  %v9565_v9 = vrot.slane %v9537_v12, %v37722_v15  ;;  %v37758_v28 = vld [vmem:[#allocation7 + $0xd8] sm:$0xff] }
 0x2be   : > { %6729 = vmatprep.mubr.f32.mxu0 %v42267_v60  ;;  %7220 = vmatprep.mubr.f32.mxu1 %v42267_v60  ;;  %v32264_v27 = vld [vmem:[%s36641_s18 + $0xa1] ss:$8 sm:$0x3]  ;;  %v9661_v50 = vcombine.high %v9638_v8, %v9645_v37 }
 0x2bf   : > { %33360 = vmatprep.subr.bf16.mxu0 %v37687_v56  ;;  %33384 = vmatprep.subr.bf16.mxu1 %v37691_v49  ;;  %v9534_v49 = vcombine.low %v9511_v44, %v32252_v0  ;;  %v9535_v56 = vcombine.low %v32253_v55, %v32254_v11  ;;  %v9630_v55 = vcombine.low %v32263_v34, %v32264_v27  ;;  %v42388_v34 = vand.u32 4294901760, %v37607_v31 }
 0x2c0   : > { %v9631_v11 = vcombine.low %v32265_v59, %v32266_v10  ;;  %v37754_v10 = vld [vmem:[#allocation7 + $0xc8] sm:$0xff]  ;;  %v9568_v5 = vcombine.low %v9558_v33, %v9565_v9 }
 0x2c1   : > { %v9544_v44 = vrot.slane %v9534_v49, %v37722_v15  ;;  %v9551_v0 = vrot.slane %v9535_v56, %v37722_v15  ;;  %v42385_v49 = vand.u32 4294901760, %v37600_v6  ;;  %v42386_v56 = vand.u32 4294901760, %v37602_v30  ;;  %v37756_v59 = vld [vmem:[#allocation7 + $0x1c8] sm:$0xff]  ;;  %v37766_v6 = vld [vmem:[#allocation7 + $0xc0] sm:$0xff] }
 0x2c2   : > { %v9652_v12 = vrot.slane %v9630_v55, %v37722_v15  ;;  %v9659_v7 = vrot.slane %v9631_v11, %v37722_v15  ;;  %v37768_v30 = vld [vmem:[#allocation7 + $0x1c0] sm:$0xff]  ;;  %v37776_v53 = vpack.c.bf16 %v42389_v48, %v42388_v34  ;;  %v42391_v55 = vand.u32 4294901760, %v37613_v61  ;;  %v37790_v34 = vld [vmem:[#allocation7 + $0x1d0] sm:$0xff] }
 0x2c3   : > { %v37752_v27 = vpack.c.bf16 %v42386_v56, %v42385_v49  ;;  %v9566_v58 = vcombine.low %v9544_v44, %v9551_v0  ;;  %v42392_v11 = vand.u32 4294901760, %v37615_v62  ;;  %v37784_v49 = vld [vmem:[#allocation7 + $0xd0] sm:$0xff]  ;;  %v9660_v56 = vcombine.low %v9638_v8, %v9645_v37 }
 0x2c4   : > { %6731 = vmatmul.mubr.f32.vlgmr.msra.gmra.mrb[12].mxu0 %v36917_v41  ;;  %7222 = vmatmul.mubr.f32.vlgmr.msra.gmra.mrb[12].mxu1 %v36917_v41  ;;  %42390 = vst [vmem:[#allocation116_spill] sm:$0xff] %v37776_v53  ;;  %v7547_v31 = vand.u32 4294901760, %v37754_v10  ;;  %v7551_v32 = vand.u32 4294901760, %v37756_v59  ;;  %v8038_v61 = vand.u32 4294901760, %v37758_v28  ;;  %v8042_v62 = vand.u32 4294901760, %v37764_v47 }
 0x2c5   : > { %33362 = vmatpush1.bf16.msra.mxu0 %v37709_v13  ;;  %33386 = vmatpush1.bf16.msra.mxu1 %v37713_v25  ;;  %42387 = vst [vmem:[#allocation115_spill] sm:$0xff] %v37752_v27  ;;  %v37782_v38 = vpack.c.bf16 %v42392_v11, %v42391_v55  ;;  %v9567_v25 = vcombine.high %v9544_v44, %v9551_v0  ;;  %v41624_v13 = vand.u32 4294901760, %v37784_v49  ;;  %v42395_v8 = vand.u32 4294901760, %v37768_v30 }
 0x2c6   : > { %6809 = vmatprep.mubr.f32.mxu0 %v42267_v60  ;;  %7300 = vmatprep.mubr.f32.mxu1 %v42267_v60  ;;  %v9576_v44 = vrot.slane %v9566_v58, %v37722_v15  ;;  %v9662_v0 = vcombine.low %v9652_v12, %v9659_v7  ;;  %v9569_v11 = vcombine.high %v9558_v33, %v9565_v9  ;;  %v42394_v33 = vand.u32 4294901760, %v37766_v6 }
 0x2c7   : > { %33364 = vmatprep.subr.bf16.mxu0 %v37629_v57  ;;  %33388 = vmatprep.subr.bf16.mxu1 %v37631_v14  ;;  %42393 = vst [vmem:[#allocation117_spill] sm:$0xff] %v37782_v38  ;;  %v9590_v52 = vrot.slane %v9568_v5, %v37722_v15  ;;  %v9670_v24 = vrot.slane %v9660_v56, %v37722_v15 }
 0x2c8   : > { %v9583_v3 = vrot.slane %v9567_v25, %v37722_v15  ;;  %v37805_v48 = vsub.f32 %v37754_v10, %v7547_v31  ;;  %v37808_v55 = vsub.f32 %v37756_v59, %v7551_v32  ;;  %v37813_v9 = vsub.f32 %v37766_v6, %v42394_v33 }
 0x2c9   : > { %v37818_v37 = vsub.f32 %v37768_v30, %v42395_v8  ;;  %v37821_v58 = vsub.f32 %v37758_v28, %v8038_v61  ;;  %v37824_v25 = vsub.f32 %v37764_v47, %v8042_v62  ;;  %v9684_v10 = vrot.slane %v9662_v0, %v37722_v15 }
 0x2ca   : > { %v9597_v59 = vrot.slane %v9569_v11, %v37722_v15  ;;  %v9677_v28 = vrot.slane %v9661_v50, %v37722_v15  ;;  %v37854_v33 = vcombine.low %v9576_v44, %v9590_v52  ;;  %v37866_v50 = vpack.c.bf16 %v8042_v62, %v8038_v61 }
 0x2cb   : > { %v37856_v8 = vcombine.low %v9670_v24, %v9684_v10  ;;  %v42402_v0 = vand.u32 4294901760, %v37805_v48  ;;  %v42403_v52 = vand.u32 4294901760, %v37808_v55  ;;  %v42406_v62 = vand.u32 4294901760, %v37824_v25 }
 0x2cc   : > { %6812 = vmatmul.mubr.f32.vlgmr.msra.gmra.mrb[12].mxu0 %v36920_v42  ;;  %7303 = vmatmul.mubr.f32.vlgmr.msra.gmra.mrb[12].mxu1 %v36920_v42  ;;  %42396 = vst [vmem:[#allocation118_spill] sm:$0xff] %v37854_v33  ;;  %42401 = vst [vmem:[#allocation123_spill] sm:$0xff] %v37866_v50 }
 0x2cd   : > { %33366 = vmatpush1.bf16.msra.mxu0 %v37665_v45  ;;  %33390 = vmatpush1.bf16.msra.mxu1 %v37667_v36  ;;  %42397 = vst [vmem:[#allocation119_spill] sm:$0xff] %v37856_v8  ;;  %v7630_v11 = vsub.f32 %v37805_v48, %v42402_v0  ;;  %v7642_v24 = vsub.f32 %v37808_v55, %v42403_v52 }
 0x2ce   : > { %6886 = vmatprep.mubr.f32.mxu0 %v42267_v60  ;;  %7377 = vmatprep.mubr.f32.mxu1 %v42267_v60 }
 0x2cf   : > { %33368 = vmatprep.subr.bf16.mxu0 %v37746_v51  ;;  %33392 = vmatprep.subr.bf16.mxu1 %v37752_v27  ;;  %v9663_v51 = vcombine.high %v9652_v12, %v9659_v7  ;;  %v41623_v27 = vand.u32 4294901760, %v37790_v34  ;;  %v37833_v12 = vsub.f32 %v37784_v49, %v41624_v13  ;;  %v37859_v13 = vcombine.low %v9583_v3, %v9597_v59 }
 0x2d0   : > { %v42404_v3 = vand.u32 4294901760, %v37813_v9 }
 0x2d1   : > { %v9691_v7 = vrot.slane %v9663_v51, %v37722_v15  ;;  %v37842_v47 = vsub.f32 %v37790_v34, %v41623_v27  ;;  %v41627_v51 = vand.u32 4294901760, %v37818_v37  ;;  %v41630_v27 = vand.u32 4294901760, %v37833_v12  ;;  %42398 = vst [vmem:[#allocation120_spill] sm:$0xff] %v37859_v13 }
 0x2d2   : > { %v7636_v59 = vsub.f32 %v37813_v9, %v42404_v3 }
 0x2d3   : > { %v37861_v56 = vcombine.low %v9677_v28, %v9691_v7  ;;  %v8133_v28 = vsub.f32 %v37824_v25, %v42406_v62  ;;  %v8127_v3 = vsub.f32 %v37833_v12, %v41630_v27 }
 0x2d4   : > { %6890 = vmatmul.mubr.f32.vlgmr.msra.gmra.mrb[12].mxu0 %v36923_v43  ;;  %7381 = vmatmul.mubr.f32.vlgmr.msra.gmra.mrb[12].mxu1 %v36923_v43 }
 0x2d5   : > { %33370 = vmatpush1.bf16.msra.mxu0 %v37776_v53  ;;  %33394 = vmatpush1.bf16.msra.mxu1 %v37782_v38  ;;  %42399 = vst [vmem:[#allocation121_spill] sm:$0xff] %v37861_v56  ;;  %v37864_v38 = vpack.c.bf16 %v7551_v32, %v7547_v31  ;;  %v7648_v31 = vsub.f32 %v37818_v37, %v41627_v51  ;;  %v42405_v32 = vand.u32 4294901760, %v37821_v58  ;;  %v8128_v53 = vand.u32 4294901760, %v8127_v3 }
 0x2d6   : > { %6972 = vmatprep.mubr.f32.mxu0 %v42267_v60  ;;  %7463 = vmatprep.mubr.f32.mxu1 %v42267_v60 }
 0x2d7   : > { %33372 = vmatprep.subr.bf16.mxu0 %v37629_v57  ;;  %33396 = vmatprep.subr.bf16.mxu1 %v37631_v14  ;;  %42400 = vst [vmem:[#allocation122_spill] sm:$0xff] %v37864_v38  ;;  %v8121_v61 = vsub.f32 %v37821_v58, %v42405_v32 }
 0x2db   : > { %v2141_v44 = vpop.f32.mrb[2].mxu0  ;;  %v2632_v10 = vpop.f32.mrb[2].mxu1 }
 0x2dc   : > { %v9602_v7 = vmul.f32 %v37854_v33, %v2141_v44  ;;  %v9696_v0 = vmul.f32 %v37856_v8, %v2632_v10  ;;  %v2143_v52 = vpop.f32.mrb[3].mxu0  ;;  %v2634_v5 = vpop.f32.mrb[3].mxu1  ;;  %6974 = vmatmul.mubr.f32.vlgmr.msra.gmra.mrb[12].mxu0 %v36917_v41  ;;  %7465 = vmatmul.mubr.f32.vlgmr.msra.gmra.mrb[12].mxu1 %v36917_v41  ;;  %v42407_v44 = vand.u32 4294901760, %v37842_v47  ;;  %v7631_v8 = vand.u32 4294901760, %v7630_v11 }
 0x2dd   : > { %v9603_v32 = vmul.f32 %v37859_v13, %v2143_v52  ;;  %v9697_v51 = vmul.f32 %v37861_v56, %v2634_v5  ;;  %33374 = vmatpush1.bf16.msra.mxu0 %v37665_v45  ;;  %33398 = vmatpush1.bf16.msra.mxu1 %v37667_v36  ;;  %v7643_v5 = vand.u32 4294901760, %v7642_v24  ;;  %v8122_v52 = vand.u32 4294901760, %v8121_v61  ;;  %v32273_v61 = vld [vmem:[%s36641_s18 + $0xc2] ss:$8 sm:$0x3] }
 0x2de   : > { %v8139_v10 = vsub.f32 %v37842_v47, %v42407_v44  ;;  %v37900_v62 = vadd.f32 %v9696_v0, %v9602_v7  ;;  %7048 = vmatprep.mubr.f32.mxu0 %v42267_v60  ;;  %7539 = vmatprep.mubr.f32.mxu1 %v42267_v60  ;;  %v8134_v56 = vand.u32 4294901760, %v8133_v28  ;;  %v42408_v13 = vand.u32 4294901760, %v37766_v6  ;;  %v32274_v28 = vld [vmem:[%s36641_s18 + $0xe2] ss:$8 sm:$0x3] }
 0x2df   : > { %v37904_v27 = vadd.f32 %v9697_v51, %v9603_v32  ;;  %33400 = vmatprep.subr.bf16.mxu0 %v37864_v38  ;;  %33424 = vmatprep.subr.bf16.mxu1 %v37866_v50  ;;  %v42409_v44 = vand.u32 4294901760, %v37768_v30  ;;  %v42411_v0 = vand.u32 4294901760, %v37784_v49  ;;  %v42412_v33 = vand.u32 4294901760, %v37790_v34  ;;  %v32268_v49 = vld [vmem:[%s36641_s18 + $0x22] ss:$8 sm:$0x3] }
 0x2e0   : > { %v7637_v51 = vand.u32 4294901760, %v7636_v59  ;;  %v7649_v32 = vand.u32 4294901760, %v7648_v31  ;;  %v8140_v36 = vand.u32 4294901760, %v8139_v10  ;;  %v37920_v45 = vpack.c.bf16 %v7643_v5, %v7631_v8  ;;  %v32269_v34 = vld [vmem:[%s36641_s18 + $0x42] ss:$8 sm:$0x3] }
 0x2e1   : > { %v37912_v7 = vpack.c.bf16 %v42409_v44, %v42408_v13  ;;  %v37918_v11 = vpack.c.bf16 %v42412_v33, %v42411_v0  ;;  %v37922_v24 = vpack.c.bf16 %v8134_v56, %v8122_v52  ;;  %v37938_v30 = vpack.c.bf16 %v37808_v55, %v37805_v48  ;;  %v32270_v56 = vld [vmem:[%s36641_s18 + $0x62] ss:$8 sm:$0x3]  ;;  %v32275_v5 = vld [vmem:[%s36641_s18 + $0x3] ss:$8 sm:$0x3] }
 0x2e2   : > { %42414 = vst [vmem:[#allocation126_spill] sm:$0xff] %v37920_v45  ;;  %v37928_v13 = vpack.c.bf16 %v7649_v32, %v7637_v51  ;;  %v37930_v6 = vpack.c.bf16 %v8140_v36, %v8128_v53  ;;  %v37942_v36 = vpack.c.bf16 %v37824_v25, %v37821_v58  ;;  %v32267_v53 = vld [vmem:[%s36641_s18 + $0x2] ss:$8 sm:$0x3]  ;;  %v37958_v33 = vpack.c.bf16 %v37818_v37, %v37813_v9 }
 0x2e3   : > { %42410 = vst [vmem:[#allocation124_spill] sm:$0xff] %v37912_v7  ;;  %42413 = vst [vmem:[#allocation125_spill] sm:$0xff] %v37918_v11  ;;  %v37962_v8 = vpack.c.bf16 %v37842_v47, %v37833_v12  ;;  %v32271_v59 = vld [vmem:[%s36641_s18 + $0x82] ss:$8 sm:$0x3]  ;;  %v9724_v3 = vcombine.low %v32267_v53, %v32268_v49  ;;  %v9725_v10 = vcombine.low %v32269_v34, %v32270_v56 }
 0x2e4   : > { %42415 = vst [vmem:[#allocation127_spill] sm:$0xff] %v37922_v24  ;;  %7050 = vmatmul.mubr.f32.vlgmr.msra.gmra.mrb[12].mxu0 %v36917_v41  ;;  %7541 = vmatmul.mubr.f32.vlgmr.msra.gmra.mrb[12].mxu1 %v36917_v41  ;;  %42416 = vst [vmem:[#allocation128_spill] sm:$0xff] %v37928_v13  ;;  %v32272_v31 = vld [vmem:[%s36641_s18 + $0xa2] ss:$8 sm:$0x3]  ;;  %v9727_v0 = vcombine.low %v32273_v61, %v32274_v28 }
 0x2e5   : > { %33402 = vmatpush1.bf16.msra.mxu0 %v37912_v7  ;;  %33426 = vmatpush1.bf16.msra.mxu1 %v37918_v11  ;;  %42417 = vst [vmem:[#allocation129_spill] sm:$0xff] %v37930_v6  ;;  %42418 = vst [vmem:[#allocation130_spill] sm:$0xff] %v37938_v30  ;;  %v32276_v52 = vld [vmem:[%s36641_s18 + $0x23] ss:$8 sm:$0x3]  ;;  %v9726_v44 = vcombine.low %v32271_v59, %v32272_v31  ;;  %v9734_v34 = vrot.slane %v9724_v3, %v37722_v15  ;;  %v42426_v3 = vand.u32 4294901760, %v37824_v25 }
 0x2e6   : > { %7615 = vmatprep.mubr.f32.mxu0 %v42267_v60  ;;  %8106 = vmatprep.mubr.f32.mxu1 %v42267_v60  ;;  %42419 = vst [vmem:[#allocation131_spill] sm:$0xff] %v37942_v36  ;;  %42420 = vst [vmem:[#allocation132_spill] sm:$0xff] %v37958_v33  ;;  %v32277_v51 = vld [vmem:[%s36641_s18 + $0x43] ss:$8 sm:$0x3]  ;;  %v9741_v56 = vrot.slane %v9725_v10, %v37722_v15  ;;  %v9820_v59 = vcombine.low %v32275_v5, %v32276_v52  ;;  %v42429_v25 = vand.u32 4294901760, %v37818_v37 }
 0x2e7   : > { %33404 = vmatprep.subr.bf16.mxu0 %v37920_v45  ;;  %33428 = vmatprep.subr.bf16.mxu1 %v37922_v24  ;;  %42421 = vst [vmem:[#allocation133_spill] sm:$0xff] %v37962_v8  ;;  %v32278_v32 = vld [vmem:[%s36641_s18 + $0x63] ss:$8 sm:$0x3]  ;;  %v9748_v61 = vrot.slane %v9726_v44, %v37722_v15  ;;  %v9755_v28 = vrot.slane %v9727_v0, %v37722_v15  ;;  %v42425_v45 = vand.u32 4294901760, %v37821_v58  ;;  %v38010_v58 = vld [vmem:[#allocation7 + $0x1f8] sm:$0xff] }
 0x2e8   : > { %7621 = vmatmul.mubr.f32.vlgmr.msra.gmra.mrb[14].mxu0 %v36927_v26  ;;  %8112 = vmatmul.mubr.f32.vlgmr.msra.gmra.mrb[14].mxu1 %v36927_v26  ;;  %v32281_v53 = vld [vmem:[%s36641_s18 + $0xc3] ss:$8 sm:$0x3]  ;;  %v9821_v31 = vcombine.low %v32277_v51, %v32278_v32  ;;  %v42432_v52 = vand.u32 4294901760, %v37842_v47  ;;  %v38036_v47 = vld [vmem:[#allocation7 + $0xf0] sm:$0xff] }
 0x2e9   : > { %33406 = vmatpush1.bf16.msra.mxu0 %v37928_v13  ;;  %33430 = vmatpush1.bf16.msra.mxu1 %v37930_v6  ;;  %v32282_v49 = vld [vmem:[%s36641_s18 + $0xe3] ss:$8 sm:$0x3]  ;;  %v42422_v6 = vand.u32 4294901760, %v37805_v48  ;;  %v42423_v13 = vand.u32 4294901760, %v37808_v55  ;;  %v37998_v14 = vpack.c.bf16 %v42426_v3, %v42425_v45  ;;  %v9830_v48 = vrot.slane %v9820_v59, %v37722_v15 }
 0x2ea   : > { %7711 = vmatprep.mubr.f32.mxu0 %v42267_v60  ;;  %8202 = vmatprep.mubr.f32.mxu1 %v42267_v60  ;;  %v38000_v10 = vld [vmem:[#allocation7 + $0xe8] sm:$0xff]  ;;  %v9837_v55 = vrot.slane %v9821_v31, %v37722_v15  ;;  %v42428_v45 = vand.u32 4294901760, %v37813_v9  ;;  %v9758_v0 = vcombine.low %v9748_v61, %v9755_v28  ;;  %v38026_v51 = vld [vmem:[#allocation7 + $0xe0] sm:$0xff]  ;;  %v9757_v59 = vcombine.high %v9734_v34, %v9741_v56 }
 0x2eb   : > { %33408 = vmatprep.subr.bf16.mxu0 %v37938_v30  ;;  %33432 = vmatprep.subr.bf16.mxu1 %v37942_v36  ;;  %v32279_v36 = vld [vmem:[%s36641_s18 + $0x83] ss:$8 sm:$0x3]  ;;  %v37992_v24 = vpack.c.bf16 %v42423_v13, %v42422_v6  ;;  %42427 = vst [vmem:[#allocation135_spill] sm:$0xff] %v37998_v14  ;;  %v38008_v13 = vld [vmem:[#allocation7 + $0xf8] sm:$0xff]  ;;  %v9759_v31 = vcombine.high %v9748_v61, %v9755_v28 }
 0x2ec   : > { %v32280_v30 = vld [vmem:[%s36641_s18 + $0xa3] ss:$8 sm:$0x3]  ;;  %v38018_v6 = vpack.c.bf16 %v42429_v25, %v42428_v45  ;;  %v9020_v3 = vand.u32 4294901760, %v38008_v13  ;;  %v9852_v45 = vcombine.low %v9830_v48, %v9837_v55  ;;  %v9853_v57 = vcombine.high %v9830_v48, %v9837_v55 }
 0x2ed   : > { %42424 = vst [vmem:[#allocation134_spill] sm:$0xff] %v37992_v24  ;;  %v38002_v5 = vld [vmem:[#allocation7 + $0x1e8] sm:$0xff]  ;;  %v38028_v32 = vld [vmem:[#allocation7 + $0x1e0] sm:$0xff]  ;;  %v9787_v25 = vrot.slane %v9759_v31, %v37722_v15  ;;  %v42434_v55 = vand.u32 4294901760, %v38026_v51 }
 0x2ee   : > { %42430 = vst [vmem:[#allocation136_spill] sm:$0xff] %v38018_v6 }
 0x2f0   : > { %7713 = vmatmul.mubr.f32.vlgmr.msra.gmra.mrb[14].mxu0 %v36917_v41  ;;  %8204 = vmatmul.mubr.f32.vlgmr.msra.gmra.mrb[14].mxu1 %v36917_v41 }
 0x2f1   : > { %33410 = vmatpush1.bf16.msra.mxu0 %v37958_v33  ;;  %33434 = vmatpush1.bf16.msra.mxu1 %v37962_v8  ;;  %v9822_v8 = vcombine.low %v32279_v36, %v32280_v30  ;;  %v9823_v33 = vcombine.low %v32281_v53, %v32282_v49  ;;  %v9756_v30 = vcombine.low %v9734_v34, %v9741_v56  ;;  %v42431_v36 = vand.u32 4294901760, %v37833_v12  ;;  %v38038_v49 = vld [vmem:[#allocation7 + $0x1f0] sm:$0xff] }
 0x2f2   : > { %7791 = vmatprep.mubr.f32.mxu0 %v42267_v60  ;;  %8282 = vmatprep.mubr.f32.mxu1 %v42267_v60  ;;  %v8529_v53 = vand.u32 4294901760, %v38000_v10  ;;  %v8533_v12 = vand.u32 4294901760, %v38002_v5 }
 0x2f3   : > { %33412 = vmatprep.subr.bf16.mxu0 %v37864_v38  ;;  %33436 = vmatprep.subr.bf16.mxu1 %v37866_v50  ;;  %v38024_v44 = vpack.c.bf16 %v42432_v52, %v42431_v36  ;;  %v9844_v9 = vrot.slane %v9822_v8, %v37722_v15  ;;  %v9851_v37 = vrot.slane %v9823_v33, %v37722_v15  ;;  %v9024_v8 = vand.u32 4294901760, %v38010_v58 }
 0x2f4   : > { %v9766_v33 = vrot.slane %v9756_v30, %v37722_v15  ;;  %v9780_v52 = vrot.slane %v9758_v0, %v37722_v15  ;;  %v38051_v61 = vsub.f32 %v38000_v10, %v8529_v53  ;;  %v38054_v28 = vsub.f32 %v38002_v5, %v8533_v12 }
 0x2f5   : > { %42433 = vst [vmem:[#allocation137_spill] sm:$0xff] %v38024_v44  ;;  %v9854_v34 = vcombine.low %v9844_v9, %v9851_v37  ;;  %v9855_v56 = vcombine.high %v9844_v9, %v9851_v37  ;;  %v9773_v30 = vrot.slane %v9757_v59, %v37722_v15  ;;  %v38059_v36 = vsub.f32 %v38008_v13, %v9020_v3 }
 0x2f6   : > { %v38062_v48 = vsub.f32 %v38010_v58, %v9024_v8  ;;  %v9862_v10 = vrot.slane %v9852_v45, %v37722_v15  ;;  %v38070_v5 = vsub.f32 %v38026_v51, %v42434_v55  ;;  %v42435_v0 = vand.u32 4294901760, %v38028_v32 }
 0x2f7   : > { %v9869_v13 = vrot.slane %v9853_v57, %v37722_v15  ;;  %v9876_v59 = vrot.slane %v9854_v34, %v37722_v15  ;;  %v9883_v31 = vrot.slane %v9855_v56, %v37722_v15  ;;  %v42440_v55 = vand.u32 4294901760, %v38051_v61 }
 0x2f8   : > { %7794 = vmatmul.mubr.f32.vlgmr.msra.gmra.mrb[14].mxu0 %v36920_v42  ;;  %8285 = vmatmul.mubr.f32.vlgmr.msra.gmra.mrb[14].mxu1 %v36920_v42  ;;  %v38075_v9 = vsub.f32 %v38028_v32, %v42435_v0  ;;  %v42444_v45 = vand.u32 4294901760, %v38059_v36 }
 0x2f9   : > { %33414 = vmatpush1.bf16.msra.mxu0 %v37912_v7  ;;  %33438 = vmatpush1.bf16.msra.mxu1 %v37918_v11  ;;  %v38108_v57 = vcombine.low %v9862_v10, %v9876_v59  ;;  %v8612_v0 = vsub.f32 %v38051_v61, %v42440_v55 }
 0x2fa   : > { %7868 = vmatprep.mubr.f32.mxu0 %v42267_v60  ;;  %8359 = vmatprep.mubr.f32.mxu1 %v42267_v60  ;;  %v9103_v10 = vsub.f32 %v38059_v36, %v42444_v45 }
 0x2fb   : > { %33416 = vmatprep.subr.bf16.mxu0 %v37992_v24  ;;  %33440 = vmatprep.subr.bf16.mxu1 %v37998_v14  ;;  %v41668_v24 = vand.u32 4294901760, %v38036_v47  ;;  %v41667_v14 = vand.u32 4294901760, %v38038_v49  ;;  %42438 = vst [vmem:[#allocation140_spill] sm:$0xff] %v38108_v57 }
 0x2fd   : > { %v38083_v58 = vsub.f32 %v38036_v47, %v41668_v24  ;;  %v38088_v37 = vsub.f32 %v38038_v49, %v41667_v14  ;;  %v38100_v14 = vcombine.low %v9766_v33, %v9780_v52  ;;  %v42441_v33 = vand.u32 4294901760, %v38054_v28 }
 0x2ff   : > { %42436 = vst [vmem:[#allocation138_spill] sm:$0xff] %v38100_v14  ;;  %v8624_v52 = vsub.f32 %v38054_v28, %v42441_v33 }
 0x300   : > { %7872 = vmatmul.mubr.f32.vlgmr.msra.gmra.mrb[14].mxu0 %v36923_v43  ;;  %8363 = vmatmul.mubr.f32.vlgmr.msra.gmra.mrb[14].mxu1 %v36923_v43 }
 0x301   : > { %33418 = vmatpush1.bf16.msra.mxu0 %v38018_v6  ;;  %33442 = vmatpush1.bf16.msra.mxu1 %v38024_v44  ;;  %v38104_v44 = vcombine.low %v9773_v30, %v9787_v25  ;;  %v38110_v6 = vcombine.low %v9869_v13, %v9883_v31  ;;  %v38118_v25 = vpack.c.bf16 %v8533_v12, %v8529_v53  ;;  %v42445_v13 = vand.u32 4294901760, %v38062_v48 }
 0x302   : > { %7954 = vmatprep.mubr.f32.mxu0 %v42267_v60  ;;  %8445 = vmatprep.mubr.f32.mxu1 %v42267_v60  ;;  %v38120_v30 = vpack.c.bf16 %v9024_v8, %v9020_v3  ;;  %v42446_v53 = vand.u32 4294901760, %v38070_v5  ;;  %v42447_v3 = vand.u32 4294901760, %v38075_v9 }
 0x303   : > { %33420 = vmatprep.subr.bf16.mxu0 %v37864_v38  ;;  %33444 = vmatprep.subr.bf16.mxu1 %v37866_v50  ;;  %42437 = vst [vmem:[#allocation139_spill] sm:$0xff] %v38104_v44  ;;  %42439 = vst [vmem:[#allocation141_spill] sm:$0xff] %v38110_v6  ;;  %v9115_v59 = vsub.f32 %v38062_v48, %v42445_v13  ;;  %v42449_v13 = vand.u32 4294901760, %v38088_v37 }
 0x304   : > { %42442 = vst [vmem:[#allocation142_spill] sm:$0xff] %v38118_v25  ;;  %42443 = vst [vmem:[#allocation143_spill] sm:$0xff] %v38120_v30  ;;  %v8618_v12 = vsub.f32 %v38070_v5, %v42446_v53  ;;  %v8630_v8 = vsub.f32 %v38075_v9, %v42447_v3  ;;  %v8625_v3 = vand.u32 4294901760, %v8624_v52 }
 0x307   : > { %v3123_v34 = vpop.f32.mrb[4].mxu0  ;;  %v3614_v24 = vpop.f32.mrb[4].mxu1 }
 0x308   : > { %v9792_v31 = vmul.f32 %v38100_v14, %v3123_v34  ;;  %v3125_v55 = vpop.f32.mrb[5].mxu0  ;;  %v3616_v56 = vpop.f32.mrb[5].mxu1  ;;  %7956 = vmatmul.mubr.f32.vlgmr.msra.gmra.mrb[14].mxu0 %v36917_v41  ;;  %8447 = vmatmul.mubr.f32.vlgmr.msra.gmra.mrb[14].mxu1 %v36917_v41  ;;  %v42448_v34 = vand.u32 4294901760, %v38083_v58  ;;  %v9121_v14 = vsub.f32 %v38088_v37, %v42449_v13  ;;  %v9888_v50 = vmul.f32 %v38108_v57, %v3614_v24 }
 0x309   : > { %v9793_v45 = vmul.f32 %v38104_v44, %v3125_v55  ;;  %33422 = vmatpush1.bf16.msra.mxu0 %v37912_v7  ;;  %33446 = vmatpush1.bf16.msra.mxu1 %v37918_v11  ;;  %v8613_v55 = vand.u32 4294901760, %v8612_v0  ;;  %v9889_v11 = vmul.f32 %v38110_v6, %v3616_v56  ;;  %v9116_v13 = vand.u32 4294901760, %v9115_v59 }
 0x30a   : > { %v9109_v33 = vsub.f32 %v38083_v58, %v42448_v34  ;;  %v9794_v53 = vadd.f32 %v9792_v31, %v37900_v62  ;;  %8030 = vmatprep.mubr.f32.mxu0 %v42267_v60  ;;  %8521 = vmatprep.mubr.f32.mxu1 %v42267_v60  ;;  %v9104_v34 = vand.u32 4294901760, %v9103_v10  ;;  %v42450_v62 = vand.u32 4294901760, %v38026_v51 }
 0x30b   : > { %v9795_v44 = vadd.f32 %v9793_v45, %v37904_v27  ;;  %33448 = vmatprep.subr.bf16.mxu0 %v38118_v25  ;;  %33472 = vmatprep.subr.bf16.mxu1 %v38120_v30  ;;  %v42451_v24 = vand.u32 4294901760, %v38028_v32  ;;  %v42453_v0 = vand.u32 4294901760, %v38036_v47  ;;  %v42454_v27 = vand.u32 4294901760, %v38038_v49  ;;  %v32284_v49 = vld [vmem:[%s36641_s18 + $0x24] ss:$8 sm:$0x3] }
 0x30c   : > { %v38154_v7 = vadd.f32 %v9888_v50, %v9794_v53  ;;  %v8619_v56 = vand.u32 4294901760, %v8618_v12  ;;  %v8631_v6 = vand.u32 4294901760, %v8630_v8  ;;  %v9110_v10 = vand.u32 4294901760, %v9109_v33  ;;  %v32285_v12 = vld [vmem:[%s36641_s18 + $0x44] ss:$8 sm:$0x3] }
 0x30d   : > { %v38160_v31 = vpack.c.bf16 %v42451_v24, %v42450_v62  ;;  %v38166_v52 = vpack.c.bf16 %v42454_v27, %v42453_v0  ;;  %v38168_v45 = vadd.f32 %v9889_v11, %v9795_v44  ;;  %v9122_v59 = vand.u32 4294901760, %v9121_v14  ;;  %v36056_v44 = vld [vmem:[%s41457_s2] sm:$0xf]  ;;  %v32286_v8 = vld [vmem:[%s36641_s18 + $0x64] ss:$8 sm:$0x3] }
 0x30e   : > { %v38170_v50 = vpack.c.bf16 %v8625_v3, %v8613_v55  ;;  %v38172_v53 = vpack.c.bf16 %v9116_v13, %v9104_v34  ;;  %v419_v51 = vsub.s32 1, %v36908_v29  ;;  %v38179_v32 = vpack.c.bf16 %v8631_v6, %v8619_v56  ;;  %v32287_v34 = vld [vmem:[%s36641_s18 + $0x84] ss:$8 sm:$0x3] }
 0x30f   : > { %42452 = vst [vmem:[#allocation144_spill] sm:$0xff] %v38160_v31  ;;  %42455 = vst [vmem:[#allocation145_spill] sm:$0xff] %v38166_v52  ;;  %v38181_v11 = vpack.c.bf16 %v9122_v59, %v9110_v10  ;;  %v38189_v14 = vpack.c.bf16 %v38054_v28, %v38051_v61  ;;  %v38193_v6 = vpack.c.bf16 %v38062_v48, %v38059_v36  ;;  %v32288_v13 = vld [vmem:[%s36641_s18 + $0xa4] ss:$8 sm:$0x3] }
 0x310   : > { %42456 = vst [vmem:[#allocation146_spill] sm:$0xff] %v38170_v50  ;;  %42457 = vst [vmem:[#allocation147_spill] sm:$0xff] %v38172_v53  ;;  %8032 = vmatmul.mubr.f32.vlgmr.msra.gmra.mrb[14].mxu0 %v36917_v41  ;;  %8523 = vmatmul.mubr.f32.vlgmr.msra.gmra.mrb[14].mxu1 %v36917_v41  ;;  %v420_v47 = vrot.slane %v36056_v44, %v419_v51  ;;  %v38213_v55 = vpack.c.bf16 %v38075_v9, %v38070_v5  ;;  %v32289_v62 = vld [vmem:[%s36641_s18 + $0xc4] ss:$8 sm:$0x3] }
 0x311   : > { %33450 = vmatpush1.bf16.msra.mxu0 %v38160_v31  ;;  %33474 = vmatpush1.bf16.msra.mxu1 %v38166_v52  ;;  %42458 = vst [vmem:[#allocation148_spill] sm:$0xff] %v38179_v32  ;;  %42459 = vst [vmem:[#allocation149_spill] sm:$0xff] %v38181_v11  ;;  %v38217_v3 = vpack.c.bf16 %v38088_v37, %v38083_v58  ;;  %v32290_v24 = vld [vmem:[%s36641_s18 + $0xe4] ss:$8 sm:$0x3] }
 0x312   : > { %8597 = vmatprep.mubr.f32.mxu0 %v42267_v60  ;;  %9088 = vmatprep.mubr.f32.mxu1 %v42267_v60  ;;  %42460 = vst [vmem:[#allocation150_spill] sm:$0xff] %v38189_v14  ;;  %42461 = vst [vmem:[#allocation151_spill] sm:$0xff] %v38193_v6  ;;  %v35416_v33 = vadd.f32 %v36914_v35, %v420_v47  ;;  %v32291_v0 = vld [vmem:[%s36641_s18 + $0x5] ss:$8 sm:$0x3] }
 0x313   : > { %33452 = vmatprep.subr.bf16.mxu0 %v38170_v50  ;;  %33476 = vmatprep.subr.bf16.mxu1 %v38172_v53  ;;  %42462 = vst [vmem:[#allocation152_spill] sm:$0xff] %v38213_v55  ;;  %42463 = vst [vmem:[#allocation153_spill] sm:$0xff] %v38217_v3  ;;  %v32292_v27 = vld [vmem:[%s36641_s18 + $0x25] ss:$8 sm:$0x3] }
 0x314   : > { %8603 = vmatmul.mubr.f32.vlgmr.msra.gmra.mrb[16].mxu0 %v36927_v26  ;;  %9094 = vmatmul.mubr.f32.vlgmr.msra.gmra.mrb[16].mxu1 %v36927_v26  ;;  %v32283_v26 = vld [vmem:[%s36641_s18 + $0x4] ss:$8 sm:$0x3]  ;;  %v32293_v56 = vld [vmem:[%s36641_s18 + $0x45] ss:$8 sm:$0x3] }
 0x315   : > { %33454 = vmatpush1.bf16.msra.mxu0 %v38179_v32  ;;  %33478 = vmatpush1.bf16.msra.mxu1 %v38181_v11  ;;  %v32294_v10 = vld [vmem:[%s36641_s18 + $0x65] ss:$8 sm:$0x3]  ;;  %v38233_v47 = vand.u32 4294901760, %v35416_v33  ;;  %v9916_v29 = vcombine.low %v32283_v26, %v32284_v49  ;;  %v9919_v11 = vcombine.low %v32289_v62, %v32290_v24  ;;  %v10012_v32 = vcombine.low %v32291_v0, %v32292_v27 }
 0x316   : > { %8693 = vmatprep.mubr.f32.mxu0 %v42267_v60  ;;  %9184 = vmatprep.mubr.f32.mxu1 %v42267_v60  ;;  %v32295_v59 = vld [vmem:[%s36641_s18 + $0x85] ss:$8 sm:$0x3]  ;;  %v10013_v53 = vcombine.low %v32293_v56, %v32294_v10  ;;  %v42470_v62 = vand.u32 4294901760, %v38062_v48  ;;  %v42472_v56 = vand.u32 4294901760, %v38070_v5  ;;  %v42473_v10 = vand.u32 4294901760, %v38075_v9 }
 0x317   : > { %33456 = vmatprep.subr.bf16.mxu0 %v38189_v14  ;;  %33480 = vmatprep.subr.bf16.mxu1 %v38193_v6  ;;  %v32296_v51 = vld [vmem:[%s36641_s18 + $0xa5] ss:$8 sm:$0x3]  ;;  %42464 = vst [vmem:[#allocation154_spill] sm:$0xff] %v38233_v47  ;;  %v9917_v6 = vcombine.low %v32285_v12, %v32286_v8  ;;  %v9918_v14 = vcombine.low %v32287_v34, %v32288_v13  ;;  %v42466_v12 = vand.u32 4294901760, %v38051_v61  ;;  %v42467_v8 = vand.u32 4294901760, %v38054_v28 }
 0x318   : > { %v32297_v35 = vld [vmem:[%s36641_s18 + $0xc5] ss:$8 sm:$0x3]  ;;  %v10014_v50 = vcombine.low %v32295_v59, %v32296_v51  ;;  %v9926_v26 = vrot.slane %v9916_v29, %v37722_v15  ;;  %v42469_v13 = vand.u32 4294901760, %v38059_v36  ;;  %v10022_v29 = vrot.slane %v10012_v32, %v37722_v15  ;;  %v38296_v5 = vld [vmem:[#allocation8 + $0x18] sm:$0xff] }
 0x319   : > { %v32298_v44 = vld [vmem:[%s36641_s18 + $0xe5] ss:$8 sm:$0x3]  ;;  %v9933_v49 = vrot.slane %v9917_v6, %v37722_v15  ;;  %v38250_v34 = vpack.c.bf16 %v42467_v8, %v42466_v12  ;;  %v9940_v0 = vrot.slane %v9918_v14, %v37722_v15  ;;  %v10029_v6 = vrot.slane %v10013_v53, %v37722_v15 }
 0x31a   : > { %v10015_v57 = vcombine.low %v32297_v35, %v32298_v44  ;;  %v38256_v24 = vpack.c.bf16 %v42470_v62, %v42469_v13  ;;  %v10036_v61 = vrot.slane %v10014_v50, %v37722_v15  ;;  %v38282_v59 = vpack.c.bf16 %v42473_v10, %v42472_v56  ;;  %v38294_v13 = vld [vmem:[#allocation8 + $0x8] sm:$0xff]  ;;  %v38298_v9 = vld [vmem:[#allocation8] sm:$0xff]  ;;  %v38302_v62 = vld [vmem:[#allocation8 + $0x10] sm:$0xff] }
 0x31b   : > { %42468 = vst [vmem:[#allocation156_spill] sm:$0xff] %v38250_v34  ;;  %v9948_v48 = vcombine.low %v9926_v26, %v9933_v49  ;;  %v9949_v32 = vcombine.high %v9926_v26, %v9933_v49  ;;  %v42475_v51 = vand.u32 4294901760, %v38083_v58  ;;  %v42476_v35 = vand.u32 4294901760, %v38088_v37  ;;  %v38354_v10 = vld [vmem:[#allocation8 + $0x98] sm:$0xff] }
 0x31c   : > { %8695 = vmatmul.mubr.f32.vlgmr.msra.gmra.mrb[16].mxu0 %v36917_v41  ;;  %9186 = vmatmul.mubr.f32.vlgmr.msra.gmra.mrb[16].mxu1 %v36917_v41  ;;  %42471 = vst [vmem:[#allocation157_spill] sm:$0xff] %v38256_v24  ;;  %v10043_v28 = vrot.slane %v10015_v57, %v37722_v15  ;;  %v10044_v57 = vcombine.low %v10022_v29, %v10029_v6  ;;  %42474 = vst [vmem:[#allocation158_spill] sm:$0xff] %v38282_v59  ;;  %v42515_v18 = vand.u32 4294901760, %v38354_v10 }
 0x31d   : > { %33458 = vmatpush1.bf16.msra.mxu0 %v38213_v55  ;;  %33482 = vmatpush1.bf16.msra.mxu1 %v38217_v3  ;;  %v38242_v55 = vsub.f32 %v35416_v33, %v38233_v47  ;;  %v9947_v33 = vrot.slane %v9919_v11, %v37722_v15  ;;  %v10045_v11 = vcombine.high %v10022_v29, %v10029_v6 }
 0x31e   : > { %8773 = vmatprep.mubr.f32.mxu0 %v42267_v60  ;;  %9264 = vmatprep.mubr.f32.mxu1 %v42267_v60  ;;  %v10047_v14 = vcombine.high %v10036_v61, %v10043_v28  ;;  %v38288_v44 = vpack.c.bf16 %v42476_v35, %v42475_v51  ;;  %v9958_v26 = vrot.slane %v9948_v48, %v37722_v15  ;;  %v38316_v48 = vld [vmem:[#allocation8 + $0x48] sm:$0xff]  ;;  %v38339_v35 = vld [vmem:[#allocation8 + $0x78] sm:$0xff] }
 0x31f   : > { %33460 = vmatprep.subr.bf16.mxu0 %v38118_v25  ;;  %33484 = vmatprep.subr.bf16.mxu1 %v38120_v30  ;;  %42465 = vst [vmem:[#allocation155_spill] sm:$0xff] %v38242_v55  ;;  %v41703_v36 = vand.u32 4294901760, %v38242_v55  ;;  %v9950_v53 = vcombine.low %v9940_v0, %v9947_v33  ;;  %v9951_v50 = vcombine.high %v9940_v0, %v9947_v33  ;;  %v38304_v0 = vld [vmem:[#allocation8 + $0x28] sm:$0xff]  ;;  %v38306_v33 = vld [vmem:[#allocation8 + $0x38] sm:$0xff] }
 0x320   : > { %42477 = vst [vmem:[#allocation159_spill] sm:$0xff] %v38288_v44  ;;  %v9965_v12 = vrot.slane %v9949_v32, %v37722_v15  ;;  %v10054_v58 = vrot.slane %v10044_v57, %v37722_v15  ;;  %v10061_v29 = vrot.slane %v10045_v11, %v37722_v15  ;;  %v10075_v6 = vrot.slane %v10047_v14, %v37722_v15  ;;  %v38326_v57 = vld [vmem:[#allocation8 + $0x50] sm:$0xff]  ;;  %v38337_v51 = vld [vmem:[#allocation8 + $0x68] sm:$0xff] }
 0x321   : > { %v38276_v27 = vsub.f32 %v38242_v55, %v41703_v36  ;;  %v9972_v49 = vrot.slane %v9950_v53, %v37722_v15  ;;  %v9979_v8 = vrot.slane %v9951_v50, %v37722_v15  ;;  %v11044_v53 = vand.u32 4294901760, %v38294_v13  ;;  %v38322_v50 = vld [vmem:[#allocation8 + $0x58] sm:$0xff]  ;;  %v38341_v36 = vld [vmem:[#allocation8 + $0x60] sm:$0xff]  ;;  %v38546_v55 = vld [vmem:[#allocation8 + $0xf0] sm:$0xff] }
 0x322   : > { %v38356_v56 = vcombine.low %v10061_v29, %v10075_v6  ;;  %v32301_v29 = vld [vmem:[%s36641_s18 + $0x46] ss:$8 sm:$0x3]  ;;  %42520 = vst [vmem:[#allocation180_spill] sm:$0xff] %v38546_v55 }
 0x323   : > { %v38329_v11 = vcombine.low %v9958_v26, %v9972_v49  ;;  %v38333_v14 = vcombine.low %v9965_v12, %v9979_v8  ;;  %v38350_v8 = vld [vmem:[#allocation8 + $0x70] sm:$0xff]  ;;  %v38365_v49 = vld [vmem:[#allocation8 + $0xa8] sm:$0xff]  ;;  %v42482_v12 = vand.u32 4294901760, %v38296_v5 }
 0x324   : > { %8776 = vmatmul.mubr.f32.vlgmr.msra.gmra.mrb[16].mxu0 %v36920_v42  ;;  %9267 = vmatmul.mubr.f32.vlgmr.msra.gmra.mrb[16].mxu1 %v36920_v42  ;;  %v10046_v42 = vcombine.low %v10036_v61, %v10043_v28  ;;  %v38312_v61 = vld [vmem:[#allocation8 + $0x20] sm:$0xff]  ;;  %v38314_v28 = vld [vmem:[#allocation8 + $0x30] sm:$0xff]  ;;  %42481 = vst [vmem:[#allocation163_spill] sm:$0xff] %v38356_v56 }
 0x325   : > { %33462 = vmatpush1.bf16.msra.mxu0 %v38160_v31  ;;  %33486 = vmatpush1.bf16.msra.mxu1 %v38166_v52  ;;  %42478 = vst [vmem:[#allocation160_spill] sm:$0xff] %v38329_v11  ;;  %42479 = vst [vmem:[#allocation161_spill] sm:$0xff] %v38333_v14  ;;  %v38363_v26 = vld [vmem:[#allocation8 + $0x90] sm:$0xff] }
 0x326   : > { %8850 = vmatprep.mubr.f32.mxu0 %v42267_v60  ;;  %9341 = vmatprep.mubr.f32.mxu1 %v42267_v60  ;;  %v10068_v37 = vrot.slane %v10046_v42, %v37722_v15  ;;  %v38352_v42 = vld [vmem:[#allocation8 + $0x88] sm:$0xff]  ;;  %v42518_v46 = vand.u32 4294901760, %v38363_v26 }
 0x327   : > { %33464 = vmatprep.subr.bf16.mxu0 %v38250_v34  ;;  %33488 = vmatprep.subr.bf16.mxu1 %v38256_v24  ;;  %v38369_v24 = vpack.c.bf16 %v42482_v12, %v11044_v53  ;;  %v42514_v4 = vand.u32 4294901760, %v38352_v42 }
 0x328   : > { %v38343_v32 = vcombine.low %v10054_v58, %v10068_v37  ;;  %v38374_v58 = vld [vmem:[#allocation8 + $0xb8] sm:$0xff]  ;;  %v38376_v37 = vld [vmem:[#allocation8 + $0xa0] sm:$0xff] }
 0x329   : > { %42483 = vst [vmem:[#allocation164_spill] sm:$0xff] %v38369_v24  ;;  %v38513_v1 = vpack.c.bf16 %v42515_v18, %v42514_v4  ;;  %v32313_v4 = vld [vmem:[%s36641_s18 + $0xc7] ss:$8 sm:$0x3] }
 0x32a   : > { %42480 = vst [vmem:[#allocation162_spill] sm:$0xff] %v38343_v32  ;;  %v32314_v18 = vld [vmem:[%s36641_s18 + $0xe7] ss:$8 sm:$0x3] }
 0x32b   : > { %42516 = vst [vmem:[#allocation178_spill] sm:$0xff] %v38513_v1  ;;  %v10207_v47 = vcombine.low %v32313_v4, %v32314_v18 }
 0x32c   : > { %8854 = vmatmul.mubr.f32.vlgmr.msra.gmra.mrb[16].mxu0 %v36923_v43  ;;  %9345 = vmatmul.mubr.f32.vlgmr.msra.gmra.mrb[16].mxu1 %v36923_v43  ;;  %v38324_v43 = vld [vmem:[#allocation8 + $0x40] sm:$0xff] }
 0x32d   : > { %33466 = vmatpush1.bf16.msra.mxu0 %v38282_v59  ;;  %33490 = vmatpush1.bf16.msra.mxu1 %v38288_v44  ;;  %v38361_v59 = vld [vmem:[#allocation8 + $0x80] sm:$0xff]  ;;  %v38378_v44 = vld [vmem:[#allocation8 + $0xb0] sm:$0xff] }
 0x32e   : > { %8936 = vmatprep.mubr.f32.mxu0 %v42267_v60  ;;  %9427 = vmatprep.mubr.f32.mxu1 %v42267_v60  ;;  %v42517_v2 = vand.u32 4294901760, %v38361_v59 }
 0x32f   : > { %33468 = vmatprep.subr.bf16.mxu0 %v38118_v25  ;;  %33492 = vmatprep.subr.bf16.mxu1 %v38120_v30  ;;  %v32300_v25 = vld [vmem:[%s36641_s18 + $0x26] ss:$8 sm:$0x3] }
 0x330   : > { %v38519_v39 = vpack.c.bf16 %v42518_v46, %v42517_v2 }
 0x332   : > { %42519 = vst [vmem:[#allocation179_spill] sm:$0xff] %v38519_v39 }
 0x333   : > { %v4105_v38 = vpop.f32.mrb[6].mxu0  ;;  %v4596_v34 = vpop.f32.mrb[6].mxu1 }
 0x334   : > { %v9984_v3 = vmul.f32 %v38329_v11, %v4105_v38  ;;  %v4107_v20 = vpop.f32.mrb[7].mxu0  ;;  %v4598_v30 = vpop.f32.mrb[7].mxu1  ;;  %8938 = vmatmul.mubr.f32.vlgmr.msra.gmra.mrb[16].mxu0 %v36917_v41  ;;  %9429 = vmatmul.mubr.f32.vlgmr.msra.gmra.mrb[16].mxu1 %v36917_v41  ;;  %v38398_v38 = vsub.f32 %v38294_v13, %v11044_v53  ;;  %v10080_v12 = vmul.f32 %v38343_v32, %v4596_v34  ;;  %v32302_v13 = vld [vmem:[%s36641_s18 + $0x66] ss:$8 sm:$0x3]  ;;  %v42487_v32 = vand.u32 4294901760, %v38298_v9 }
 0x335   : > { %v9985_v22 = vmul.f32 %v38333_v14, %v4107_v20  ;;  %33470 = vmatpush1.bf16.msra.mxu0 %v38160_v31  ;;  %33494 = vmatpush1.bf16.msra.mxu1 %v38166_v52  ;;  %v42485_v20 = vand.u32 4294901760, %v38296_v5  ;;  %v10081_v14 = vmul.f32 %v38356_v56, %v4598_v30  ;;  %v42488_v52 = vand.u32 4294901760, %v38302_v62 }
 0x336   : > { %42484 = vst [vmem:[#allocation165_spill] sm:$0xff] %v38398_v38  ;;  %v9986_v11 = vadd.f32 %v9984_v3, %v38154_v7  ;;  %9012 = vmatprep.mubr.f32.mxu0 %v42267_v60  ;;  %9503 = vmatprep.mubr.f32.mxu1 %v42267_v60  ;;  %v32303_v7 = vld [vmem:[%s36641_s18 + $0x86] ss:$8 sm:$0x3]  ;;  %v10109_v21 = vcombine.low %v32301_v29, %v32302_v13  ;;  %v42505_v13 = vand.u32 4294901760, %v38324_v43 }
 0x337   : > { %v38409_v6 = vsub.f32 %v38296_v5, %v42485_v20  ;;  %v9987_v53 = vadd.f32 %v9985_v22, %v38168_v45  ;;  %33496 = vmatprep.subr.bf16.mxu0 %v38369_v24  ;;  %v32304_v3 = vld [vmem:[%s36641_s18 + $0xa6] ss:$8 sm:$0x3]  ;;  %v38424_v31 = vpack.c.bf16 %v42488_v52, %v42487_v32  ;;  %v42490_v5 = vand.u32 4294901760, %v38304_v0 }
 0x338   : > { %v38418_v34 = vadd.f32 %v10080_v12, %v9986_v11  ;;  %v42491_v20 = vand.u32 4294901760, %v38306_v33  ;;  %v42493_v22 = vmov %v42487_v32  ;;  %v32305_v45 = vld [vmem:[%s36641_s18 + $0xc6] ss:$8 sm:$0x3]  ;;  %v38444_v32 = vsub.f32 %v38302_v62, %v42488_v52 }
 0x339   : > { %42486 = vst [vmem:[#allocation166_spill] sm:$0xff] %v38409_v6  ;;  %42489 = vst [vmem:[#allocation167_spill] sm:$0xff] %v38424_v31  ;;  %v38435_v30 = vsub.f32 %v38298_v9, %v42493_v22  ;;  %v32306_v11 = vld [vmem:[%s36641_s18 + $0xe6] ss:$8 sm:$0x3]  ;;  %v38439_v12 = vadd.f32 %v10081_v14, %v9987_v53  ;;  %v42496_v56 = vmov %v42490_v5  ;;  %v10108_v53 = vcombine.low %v32299_v23, %v32300_v25  ;;  %v38472_v22 = vld [vmem:[#allocation8 + $0xd8] sm:$0xff] }
 0x33a   : > { %v38430_v16 = vpack.c.bf16 %v42491_v20, %v42490_v5  ;;  %42495 = vst [vmem:[#allocation170_spill] sm:$0xff] %v38444_v32  ;;  %v38449_v5 = vsub.f32 %v38304_v0, %v42496_v56  ;;  %v38454_v9 = vsub.f32 %v38306_v33, %v42491_v20  ;;  %v42499_v62 = vand.u32 4294901760, %v38312_v61  ;;  %v38470_v20 = vld [vmem:[#allocation8 + $0xc8] sm:$0xff] }
 0x33b   : > { %42494 = vst [vmem:[#allocation169_spill] sm:$0xff] %v38435_v30  ;;  %v42500_v52 = vand.u32 4294901760, %v38314_v28  ;;  %v42502_v0 = vand.u32 4294901760, %v38316_v48  ;;  %v42503_v56 = vand.u32 4294901760, %v38322_v50  ;;  %v10110_v14 = vcombine.low %v32303_v7, %v32304_v3 }
 0x33c   : > { %42492 = vst [vmem:[#allocation168_spill] sm:$0xff] %v38430_v16  ;;  %42497 = vst [vmem:[#allocation171_spill] sm:$0xff] %v38449_v5  ;;  %v10111_v23 = vcombine.low %v32305_v45, %v32306_v11  ;;  %v32307_v25 = vld [vmem:[%s36641_s18 + $0x7] ss:$8 sm:$0x3]  ;;  %9014 = vmatmul.mubr.f32.vlgmr.msra.gmra.mrb[16].mxu0 %v36917_v41  ;;  %9505 = vmatmul.mubr.f32.vlgmr.msra.gmra.mrb[16].mxu1 %v36917_v41  ;;  %v42511_v7 = vand.u32 4294901760, %v38341_v36 }
 0x33d   : > { %42498 = vst [vmem:[#allocation172_spill] sm:$0xff] %v38454_v9  ;;  %v38462_v17 = vpack.c.bf16 %v42500_v52, %v42499_v62  ;;  %v38468_v33 = vpack.c.bf16 %v42503_v56, %v42502_v0  ;;  %v32308_v29 = vld [vmem:[%s36641_s18 + $0x27] ss:$8 sm:$0x3]  ;;  %v42506_v62 = vand.u32 4294901760, %v38326_v57  ;;  %v42508_v0 = vand.u32 4294901760, %v38337_v51  ;;  %33498 = vmatpush1.bf16.msra.mxu0 %v38424_v31  ;;  %11140 = vmatprep.mubr.f32.mxu0 %v42267_v60 }
 0x33e   : > { %v42509_v56 = vand.u32 4294901760, %v38339_v35  ;;  %v42512_v3 = vand.u32 4294901760, %v38350_v8  ;;  %v32309_v41 = vld [vmem:[%s36641_s18 + $0x47] ss:$8 sm:$0x3]  ;;  %33500 = vmatprep.subr.bf16.mxu0 %v38430_v16  ;;  %v38528_v63 = vrot.slane %v10110_v14, %v37722_v15  ;;  %v38531_v40 = vrot.slane %v10111_v23, %v37722_v15  ;;  %v38542_v14 = vld [vmem:[#allocation8 + $0xf8] sm:$0xff] }
 0x33f   : > { %42501 = vst [vmem:[#allocation173_spill] sm:$0xff] %v38462_v17  ;;  %42504 = vst [vmem:[#allocation174_spill] sm:$0xff] %v38468_v33  ;;  %v38482_v52 = vpack.c.bf16 %v42506_v62, %v42505_v13  ;;  %v32310_v11 = vld [vmem:[%s36641_s18 + $0x67] ss:$8 sm:$0x3]  ;;  %v38501_v62 = vld [vmem:[#allocation8 + $0xd0] sm:$0xff]  ;;  %v10204_v54 = vcombine.low %v32307_v25, %v32308_v29 }
 0x340   : > { %v38488_v19 = vpack.c.bf16 %v42509_v56, %v42508_v0  ;;  %v38494_v45 = vpack.c.bf16 %v42512_v3, %v42511_v7  ;;  %v38499_v13 = vld [vmem:[#allocation8 + $0xc0] sm:$0xff]  ;;  %v38522_v56 = vrot.slane %v10108_v53, %v37722_v15  ;;  %v10125_v7 = vrot.slane %v10109_v21, %v37722_v15  ;;  %v38539_v31 = vld [vmem:[#allocation8 + $0xe8] sm:$0xff] }
 0x341   : > { %42507 = vst [vmem:[#allocation175_spill] sm:$0xff] %v38482_v52  ;;  %v32311_v3 = vld [vmem:[%s36641_s18 + $0x87] ss:$8 sm:$0x3]  ;;  %v10205_v16 = vcombine.low %v32309_v41, %v32310_v11  ;;  %33502 = vmatpush1.bf16.msra.mxu0 %v38462_v17  ;;  %v42521_v25 = vand.u32 4294901760, %v38398_v38  ;;  %v42522_v41 = vand.u32 4294901760, %v38409_v6 }
 0x342   : > { %42510 = vst [vmem:[#allocation176_spill] sm:$0xff] %v38488_v19  ;;  %42513 = vst [vmem:[#allocation177_spill] sm:$0xff] %v38494_v45  ;;  %v32312_v0 = vld [vmem:[%s36641_s18 + $0xa7] ss:$8 sm:$0x3]  ;;  %v42523_v21 = vand.u32 4294901760, %v38435_v30  ;;  %33504 = vmatprep.subr.bf16.mxu0 %v38468_v33  ;;  %v10140_v17 = vcombine.low %v38522_v56, %v10125_v7  ;;  %v10235_v33 = vrot.slane %v10207_v47, %v37722_v15 }
 0x343   : > { %v38544_v23 = vld [vmem:[#allocation8 + $0xe0] sm:$0xff]  ;;  %v11155_v29 = vsub.f32 %v38398_v38, %v42521_v25  ;;  %v11167_v11 = vsub.f32 %v38409_v6, %v42522_v41  ;;  %v42524_v2 = vand.u32 4294901760, %v38444_v32  ;;  %v10206_v24 = vcombine.low %v32311_v3, %v32312_v0 }
 0x344   : > { %v11161_v53 = vsub.f32 %v38435_v30, %v42523_v21  ;;  %v42525_v25 = vand.u32 4294901760, %v38449_v5  ;;  %v10142_v41 = vcombine.low %v38528_v63, %v38531_v40  ;;  %v10214_v6 = vrot.slane %v10204_v54, %v37722_v15 }
 0x345   : > { %v11173_v46 = vsub.f32 %v38444_v32, %v42524_v2  ;;  %v10221_v21 = vrot.slane %v10205_v16, %v37722_v15  ;;  %v42526_v30 = vand.u32 4294901760, %v38454_v9  ;;  %33506 = vmatpush1.bf16.msra.mxu0 %v38482_v52  ;;  %v11156_v18 = vand.u32 4294901760, %v11155_v29 }
 0x346   : > { %v11179_v38 = vsub.f32 %v38449_v5, %v42525_v25  ;;  %v11168_v25 = vand.u32 4294901760, %v11167_v11  ;;  %v11162_v5 = vand.u32 4294901760, %v11161_v53  ;;  %33508 = vmatprep.subr.bf16.mxu0 %v38488_v19  ;;  %v10150_v16 = vrot.slane %v10140_v17, %v37722_v15 }
 0x347   : > { %v11191_v2 = vsub.f32 %v38454_v9, %v42526_v30  ;;  %v11174_v54 = vand.u32 4294901760, %v11173_v46  ;;  %v10228_v30 = vrot.slane %v10206_v24, %v37722_v15  ;;  %v10141_v0 = vcombine.high %v38522_v56, %v10125_v7 }
 0x348   : > { %v10164_v3 = vrot.slane %v10142_v41, %v37722_v15  ;;  %v10236_v9 = vcombine.low %v10214_v6, %v10221_v21  ;;  %v11180_v4 = vand.u32 4294901760, %v11179_v38  ;;  %v42527_v29 = vand.u32 4294901760, %v38365_v49 }
 0x349   : > { %v11192_v32 = vand.u32 4294901760, %v11191_v2  ;;  %v42528_v53 = vand.u32 4294901760, %v38374_v58  ;;  %v42530_v11 = vand.u32 4294901760, %v38376_v37  ;;  %v42531_v17 = vand.u32 4294901760, %v38378_v44  ;;  %33510 = vmatpush1.bf16.msra.mxu0 %v38494_v45 }
 0x34a   : > { %v42533_v47 = vand.u32 4294901760, %v38470_v20  ;;  %v42534_v56 = vand.u32 4294901760, %v38472_v22  ;;  %v10143_v38 = vcombine.high %v38528_v63, %v38531_v40  ;;  %v42536_v41 = vand.u32 4294901760, %v38499_v13  ;;  %33512 = vmatprep.subr.bf16.mxu0 %v38513_v1 }
 0x34b   : > { %v38587_v46 = vpack.c.bf16 %v42528_v53, %v42527_v29  ;;  %v38593_v24 = vpack.c.bf16 %v42531_v17, %v42530_v11  ;;  %v42537_v2 = vand.u32 4294901760, %v38501_v62  ;;  %v42539_v53 = vand.u32 4294901760, %v38539_v31 }
 0x34c   : > { %v38599_v7 = vpack.c.bf16 %v42534_v56, %v42533_v47  ;;  %v42540_v11 = vand.u32 4294901760, %v38542_v14  ;;  %v42542_v47 = vand.u32 4294901760, %v38544_v23  ;;  %v42543_v56 = vand.u32 4294901760, %v38546_v55 }
 0x34d   : > { %42529 = vst [vmem:[#allocation181_spill] sm:$0xff] %v38587_v46  ;;  %42532 = vst [vmem:[#allocation182_spill] sm:$0xff] %v38593_v24  ;;  %v38608_v29 = vpack.c.bf16 %v42537_v2, %v42536_v41  ;;  %v38622_v40 = vpack.c.bf16 %v11168_v25, %v11156_v18  ;;  %v38625_v63 = vpack.c.bf16 %v11174_v54, %v11162_v5  ;;  %v42549_v55 = vand.u32 4294901760, %v38312_v61 }
 0x34e   : > { %42535 = vst [vmem:[#allocation183_spill] sm:$0xff] %v38599_v7  ;;  %v38614_v17 = vpack.c.bf16 %v42540_v11, %v42539_v53  ;;  %v38620_v19 = vpack.c.bf16 %v42543_v56, %v42542_v47  ;;  %v10238_v41 = vcombine.low %v10228_v30, %v10235_v33  ;;  %v10157_v2 = vrot.slane %v10141_v0, %v37722_v15 }
 0x34f   : > { %42538 = vst [vmem:[#allocation184_spill] sm:$0xff] %v38608_v29  ;;  %42545 = vst [vmem:[#allocation187_spill] sm:$0xff] %v38622_v40  ;;  %v10237_v45 = vcombine.high %v10214_v6, %v10221_v21  ;;  %v38628_v52 = vcombine.low %v10150_v16, %v10164_v3  ;;  %v10246_v53 = vrot.slane %v10236_v9, %v37722_v15  ;;  %v42550_v5 = vand.u32 4294901760, %v38314_v28 }
 0x350   : > { %42541 = vst [vmem:[#allocation185_spill] sm:$0xff] %v38614_v17  ;;  %42544 = vst [vmem:[#allocation186_spill] sm:$0xff] %v38620_v19  ;;  %v38631_v11 = vpack.c.bf16 %v11192_v32, %v11180_v4  ;;  %v38636_v47 = vsub.f32 %v38312_v61, %v42549_v55  ;;  %v10171_v18 = vrot.slane %v10143_v38, %v37722_v15  ;;  %v42551_v6 = vand.u32 4294901760, %v38316_v48 }
 0x351   : > { %42546 = vst [vmem:[#allocation188_spill] sm:$0xff] %v38625_v63  ;;  %42547 = vst [vmem:[#allocation189_spill] sm:$0xff] %v38628_v52  ;;  %v38642_v25 = vsub.f32 %v38314_v28, %v42550_v5  ;;  %v42552_v32 = vand.u32 4294901760, %v38322_v50  ;;  %33514 = vmatpush1.bf16.msra.mxu0 %v38519_v39  ;;  %v42553_v55 = vand.u32 4294901760, %v38324_v43  ;;  %v42554_v28 = vand.u32 4294901760, %v38326_v57 }
 0x352   : > { %42548 = vst [vmem:[#allocation190_spill] sm:$0xff] %v38631_v11  ;;  %v38647_v21 = vsub.f32 %v38316_v48, %v42551_v6  ;;  %v42555_v48 = vand.u32 4294901760, %v38337_v51  ;;  %33516 = vmatprep.subr.bf16.mxu0 %v38587_v46  ;;  %v10239_v54 = vcombine.high %v10228_v30, %v10235_v33  ;;  %v42557_v16 = vand.u32 4294901760, %v38341_v36 }
 0x353   : > { %v38652_v9 = vsub.f32 %v38322_v50, %v42552_v32  ;;  %v38658_v61 = vsub.f32 %v38324_v43, %v42553_v55  ;;  %v38663_v0 = vsub.f32 %v38326_v57, %v42554_v28  ;;  %v42556_v50 = vand.u32 4294901760, %v38339_v35 }
 0x354   : > { %v38668_v3 = vsub.f32 %v38337_v51, %v42555_v48  ;;  %v10260_v43 = vrot.slane %v10238_v41, %v37722_v15  ;;  %v38680_v57 = vsub.f32 %v38341_v36, %v42557_v16  ;;  %v42558_v38 = vand.u32 4294901760, %v38350_v8 }
 0x355   : > { %v38673_v4 = vsub.f32 %v38339_v35, %v42556_v50  ;;  %v10253_v56 = vrot.slane %v10237_v45, %v37722_v15  ;;  %v41798_v35 = vand.u32 4294901760, %v38636_v47  ;;  %v42559_v5 = vand.u32 4294901760, %v38352_v42  ;;  %33518 = vmatpush1.bf16.msra.mxu0 %v38593_v24 }
 0x356   : > { %v38685_v51 = vsub.f32 %v38350_v8, %v42558_v38  ;;  %v42560_v33 = vand.u32 4294901760, %v38354_v10  ;;  %v38699_v36 = vcombine.low %v10157_v2, %v10171_v18  ;;  %v41803_v41 = vand.u32 4294901760, %v38642_v25  ;;  %33520 = vmatprep.subr.bf16.mxu0 %v38599_v7 }
 0x357   : > { %v38692_v6 = vsub.f32 %v38352_v42, %v42559_v5  ;;  %v41800_v8 = vand.u32 4294901760, %v38647_v21  ;;  %v41799_v45 = vand.u32 4294901760, %v38652_v9  ;;  %v41801_v32 = vand.u32 4294901760, %v38658_v61 }
 0x358   : > { %v38697_v30 = vsub.f32 %v38354_v10, %v42560_v33  ;;  %42561 = vst [vmem:[#allocation191_spill] sm:$0xff] %v38699_v36  ;;  %v41802_v42 = vand.u32 4294901760, %v38663_v0  ;;  %v41804_v55 = vand.u32 4294901760, %v38668_v3  ;;  %v41805_v28 = vand.u32 4294901760, %v38673_v4 }
 0x359   : > { %v10267_v10 = vrot.slane %v10239_v54, %v37722_v15  ;;  %v41812_v18 = vand.u32 4294901760, %v38685_v51  ;;  %v42562_v48 = vand.u32 4294901760, %v38361_v59  ;;  %v11185_v16 = vsub.f32 %v38636_v47, %v41798_v35  ;;  %33522 = vmatpush1.bf16.msra.mxu0 %v38608_v29 }
 0x35a   : > { %v41817_v38 = vand.u32 4294901760, %v38692_v6  ;;  %v42563_v33 = vand.u32 4294901760, %v38363_v26  ;;  %v38728_v2 = vcombine.low %v10246_v53, %v10260_v43  ;;  %v11215_v35 = vsub.f32 %v38652_v9, %v41799_v45  ;;  %33524 = vmatprep.subr.bf16.mxu0 %v38614_v17 }
 0x35b   : > { %v38716_v50 = vsub.f32 %v38361_v59, %v42562_v48  ;;  %v11197_v59 = vsub.f32 %v38642_v25, %v41803_v41  ;;  %v11203_v48 = vsub.f32 %v38647_v21, %v41800_v8  ;;  %v11221_v53 = vsub.f32 %v38663_v0, %v41802_v42 }
 0x35c   : > { %v38726_v54 = vsub.f32 %v38363_v26, %v42563_v33  ;;  %42564 = vst [vmem:[#allocation192_spill] sm:$0xff] %v38728_v2  ;;  %v11209_v26 = vsub.f32 %v38658_v61, %v41801_v32  ;;  %v11227_v43 = vsub.f32 %v38668_v3, %v41804_v55  ;;  %v11239_v33 = vsub.f32 %v38673_v4, %v41805_v28 }
 0x35d   : > { %v42565_v45 = vand.u32 4294901760, %v38680_v57  ;;  %v11245_v32 = vsub.f32 %v38685_v51, %v41812_v18  ;;  %v42566_v41 = vand.u32 4294901760, %v38365_v49  ;;  %v11186_v5 = vand.u32 4294901760, %v11185_v16  ;;  %33526 = vmatpush1.bf16.msra.mxu0 %v38620_v19 }
 0x35e   : > { %v11251_v28 = vsub.f32 %v38692_v6, %v41817_v38  ;;  %v42567_v17 = vand.u32 4294901760, %v38697_v30  ;;  %v11198_v7 = vand.u32 4294901760, %v11197_v59  ;;  %v11204_v18 = vand.u32 4294901760, %v11203_v48  ;;  %33528 = vmatprep.subr.bf16.mxu0 %v38622_v40 }
 0x35f   : > { %v11233_v8 = vsub.f32 %v38680_v57, %v42565_v45  ;;  %v38763_v55 = vsub.f32 %v38365_v49, %v42566_v41  ;;  %v11216_v24 = vand.u32 4294901760, %v11215_v35  ;;  %v42568_v42 = vand.u32 4294901760, %v38374_v58 }
 0x360   : > { %v11263_v45 = vsub.f32 %v38697_v30, %v42567_v17  ;;  %v11210_v49 = vand.u32 4294901760, %v11209_v26  ;;  %v11222_v41 = vand.u32 4294901760, %v11221_v53  ;;  %v11228_v16 = vand.u32 4294901760, %v11227_v43 }
 0x361   : > { %v38775_v46 = vsub.f32 %v38374_v58, %v42568_v42  ;;  %v11240_v38 = vand.u32 4294901760, %v11239_v33  ;;  %v11234_v39 = vand.u32 4294901760, %v11233_v8  ;;  %v11246_v17 = vand.u32 4294901760, %v11245_v32 }
 0x362   : > { %v42569_v29 = vand.u32 4294901760, %v38716_v50  ;;  %v41823_v35 = vand.u32 4294901760, %v38763_v55  ;;  %v11252_v48 = vand.u32 4294901760, %v11251_v28  ;;  %v11264_v1 = vand.u32 4294901760, %v11263_v45 }
 0x363   : > { %v42570_v58 = vand.u32 4294901760, %v38726_v54  ;;  %v42571_v26 = vand.u32 4294901760, %v38376_v37  ;;  %v42572_v8 = vand.u32 4294901760, %v38276_v27  ;;  %v38793_v32 = vcombine.low %v10253_v56, %v10267_v10 }
 0x364   : > { %v11257_v59 = vsub.f32 %v38716_v50, %v42569_v29  ;;  %v38795_v43 = vpack.c.bf16 %v11198_v7, %v11186_v5  ;;  %v41822_v29 = vand.u32 4294901760, %v38775_v46  ;;  %v42575_v28 = vand.u32 4294901760, %v38378_v44  ;;  %v5087_v5 = vpop.f32.mrb[8].mxu0 }
 0x365   : > { %v11269_v42 = vsub.f32 %v38726_v54, %v42570_v58  ;;  %v38789_v53 = vsub.f32 %v38376_v37, %v42571_v26  ;;  %11146 = vmatmul.mubr.f32.vlgmr.msra.gmra.mrb[18].mxu0 %v42572_v8  ;;  %42573 = vst [vmem:[#allocation193_spill] sm:$0xff] %v38793_v32  ;;  %v38804_v45 = vpack.c.bf16 %v11216_v24, %v11204_v18  ;;  %v42578_v27 = vand.u32 4294901760, %v38470_v20 }
 0x366   : > { %42574 = vst [vmem:[#allocation194_spill] sm:$0xff] %v38795_v43  ;;  %v38801_v33 = vsub.f32 %v38378_v44, %v42575_v28  ;;  %33530 = vmatpush1.bf16.msra.mxu0 %v38625_v63  ;;  %v38806_v37 = vpack.c.bf16 %v11222_v41, %v11210_v49  ;;  %11376 = vmatprep.mubr.f32.mxu0 %v42267_v60  ;;  %v42582_v24 = vand.u32 4294901760, %v38472_v22  ;;  %v11258_v41 = vand.u32 4294901760, %v11257_v59 }
 0x367   : > { %42576 = vst [vmem:[#allocation195_spill] sm:$0xff] %v38804_v45  ;;  %v38811_v56 = vsub.f32 %v38470_v20, %v42578_v27  ;;  %33532 = vmatprep.subr.bf16.mxu0 %v38631_v11  ;;  %v38815_v7 = vpack.c.bf16 %v11240_v38, %v11228_v16  ;;  %v38817_v10 = vpack.c.bf16 %v11246_v17, %v11234_v39  ;;  %v5578_v20 = vpop.f32.mrb[8].mxu1  ;;  %v11270_v58 = vand.u32 4294901760, %v11269_v42  ;;  %v5089_v16 = vpop.f32.mrb[9].mxu0 }
 0x368   : > { %42577 = vst [vmem:[#allocation196_spill] sm:$0xff] %v38806_v37  ;;  %v11275_v44 = vsub.f32 %v38763_v55, %v41823_v35  ;;  %v38825_v18 = vsub.f32 %v38472_v22, %v42582_v24  ;;  %v38827_v49 = vpack.c.bf16 %v11264_v1, %v11252_v48  ;;  %v41827_v38 = vand.u32 4294901760, %v38789_v53  ;;  %v5580_v17 = vpop.f32.mrb[9].mxu1 }
 0x369   : > { %42579 = vst [vmem:[#allocation197_spill] sm:$0xff] %v38811_v56  ;;  %42580 = vst [vmem:[#allocation198_spill] sm:$0xff] %v38815_v7  ;;  %v10176_v39 = vmul.f32 %v38628_v52, %v5087_v5  ;;  %v11287_v26 = vsub.f32 %v38775_v46, %v41822_v29  ;;  %v41826_v8 = vand.u32 4294901760, %v38801_v33  ;;  %v42585_v22 = vand.u32 4294901760, %v38499_v13 }
 0x36a   : > { %42581 = vst [vmem:[#allocation199_spill] sm:$0xff] %v38817_v10  ;;  %42583 = vst [vmem:[#allocation200_spill] sm:$0xff] %v38825_v18  ;;  %v10177_v1 = vmul.f32 %v38699_v36, %v5089_v16  ;;  %33534 = vmatpush1.bf16.msra.mxu0 %v38795_v43  ;;  %v41824_v59 = vand.u32 4294901760, %v38811_v56  ;;  %v42587_v48 = vand.u32 4294901760, %v38501_v62  ;;  %v42589_v27 = vand.u32 4294901760, %v38539_v31  ;;  %v42611_v36 = vld [vmem:[#allocation171_spill] sm:$0xff] }
 0x36b   : > { %42584 = vst [vmem:[#allocation201_spill] sm:$0xff] %v38827_v49  ;;  %v38838_v28 = vsub.f32 %v38499_v13, %v42585_v22  ;;  %v10178_v5 = vadd.f32 %v10176_v39, %v38418_v34  ;;  %v10272_v13 = vmul.f32 %v38728_v2, %v5578_v20  ;;  %33536 = vmatprep.subr.bf16.mxu0 %v38804_v45  ;;  %v41825_v16 = vand.u32 4294901760, %v38825_v18 }
 0x36c   : > { %v38846_v42 = vsub.f32 %v38501_v62, %v42587_v48  ;;  %v38851_v24 = vsub.f32 %v38539_v31, %v42589_v27  ;;  %v42591_v22 = vand.u32 4294901760, %v38542_v14  ;;  %v10179_v62 = vadd.f32 %v10177_v1, %v38439_v12  ;;  %v42595_v1 = vld [vmem:[#allocation180_spill] sm:$0xff] }
 0x36d   : > { %42586 = vst [vmem:[#allocation202_spill] sm:$0xff] %v38838_v28  ;;  %v10273_v48 = vmul.f32 %v38793_v32, %v5580_v17  ;;  %v11276_v35 = vand.u32 4294901760, %v11275_v44  ;;  %v11281_v31 = vsub.f32 %v38789_v53, %v41827_v38  ;;  %v38867_v34 = vadd.f32 %v10272_v13, %v10178_v5 }
 0x36e   : > { %42588 = vst [vmem:[#allocation203_spill] sm:$0xff] %v38846_v42  ;;  %42590 = vst [vmem:[#allocation204_spill] sm:$0xff] %v38851_v24  ;;  %v38860_v29 = vsub.f32 %v38542_v14, %v42591_v22  ;;  %v11288_v20 = vand.u32 4294901760, %v11287_v26  ;;  %v11293_v39 = vsub.f32 %v38801_v33, %v41826_v8  ;;  %v41833_v27 = vand.u32 4294901760, %v38838_v28  ;;  %33538 = vmatpush1.bf16.msra.mxu0 %v38806_v37 }
 0x36f   : > { %v38873_v14 = vadd.f32 %v10273_v48, %v10179_v62  ;;  %v41828_v12 = vand.u32 4294901760, %v38846_v42  ;;  %v42593_v44 = vand.u32 4294901760, %v38544_v23  ;;  %v42596_v5 = vand.u32 4294901760, %v42595_v1  ;;  %33540 = vmatprep.subr.bf16.mxu0 %v38815_v7  ;;  %v32329_v7 = vld [vmem:[%s36641_s18 + $0xd1] ss:$8 sm:$0x3] }
 0x370   : > { %42592 = vst [vmem:[#allocation205_spill] sm:$0xff] %v38860_v29  ;;  %v11299_v13 = vsub.f32 %v38811_v56, %v41824_v59  ;;  %v11311_v22 = vsub.f32 %v38825_v18, %v41825_v16  ;;  %v41832_v62 = vand.u32 4294901760, %v38851_v24  ;;  %v38896_v48 = vpack.c.bf16 %v11270_v58, %v11258_v41  ;;  %v32330_v37 = vld [vmem:[%s36641_s18 + $0xf1] ss:$8 sm:$0x3] }
 0x371   : > { %v38880_v17 = vsub.f32 %v38544_v23, %v42593_v44  ;;  %v38885_v26 = vsub.f32 %v42595_v1, %v42596_v5  ;;  %v41830_v23 = vand.u32 4294901760, %v38860_v29  ;;  %v38898_v44 = vpack.c.bf16 %v11288_v20, %v11276_v35 }
 0x372   : > { %42598 = vst [vmem:[#allocation207_spill] sm:$0xff] %v38896_v48  ;;  %v11282_v1 = vand.u32 4294901760, %v11281_v31  ;;  %v11294_v5 = vand.u32 4294901760, %v11293_v39  ;;  %33542 = vmatpush1.bf16.msra.mxu0 %v38817_v10  ;;  %v11305_v59 = vsub.f32 %v38838_v28, %v41833_v27  ;;  %v11317_v16 = vsub.f32 %v38846_v42, %v41828_v12  ;;  %v32322_v27 = vld [vmem:[%s36641_s18 + $0xf0] ss:$8 sm:$0x3] }
 0x373   : > { %42594 = vst [vmem:[#allocation206_spill] sm:$0xff] %v38880_v17  ;;  %42597 = vst [vmem:[#allocation180_spill] sm:$0xff] %v38885_v26  ;;  %v41829_v8 = vand.u32 4294901760, %v38880_v17  ;;  %v41831_v38 = vand.u32 4294901760, %v38885_v26  ;;  %33544 = vmatprep.subr.bf16.mxu0 %v38827_v49  ;;  %v11300_v35 = vand.u32 4294901760, %v11299_v13  ;;  %v11312_v41 = vand.u32 4294901760, %v11311_v22 }
 0x374   : > { %42599 = vst [vmem:[#allocation208_spill] sm:$0xff] %v38898_v44  ;;  %v11323_v58 = vsub.f32 %v38851_v24, %v41832_v62  ;;  %v11335_v31 = vsub.f32 %v38860_v29, %v41830_v23  ;;  %v38916_v20 = vpack.c.bf16 %v11294_v5, %v11282_v1  ;;  %v11306_v39 = vand.u32 4294901760, %v11305_v59  ;;  %v32315_v62 = vld [vmem:[%s36641_s18 + $0x10] ss:$8 sm:$0x3] }
 0x375   : > { %v11318_v12 = vand.u32 4294901760, %v11317_v16  ;;  %v11329_v13 = vsub.f32 %v38880_v17, %v41829_v8  ;;  %v11341_v22 = vsub.f32 %v38885_v26, %v41831_v38  ;;  %v38926_v1 = vpack.c.bf16 %v11312_v41, %v11300_v35  ;;  %v32316_v35 = vld [vmem:[%s36641_s18 + $0x30] ss:$8 sm:$0x3] }
 0x376   : > { %42600 = vst [vmem:[#allocation209_spill] sm:$0xff] %v38916_v20  ;;  %33546 = vmatpush1.bf16.msra.mxu0 %v38896_v48  ;;  %v11324_v59 = vand.u32 4294901760, %v11323_v58  ;;  %v11336_v5 = vand.u32 4294901760, %v11335_v31  ;;  %v32317_v41 = vld [vmem:[%s36641_s18 + $0x50] ss:$8 sm:$0x3]  ;;  %v10300_v32 = vcombine.low %v32315_v62, %v32316_v35  ;;  %v10399_v19 = vcombine.low %v32329_v7, %v32330_v37 }
 0x377   : > { %33548 = vmatprep.subr.bf16.mxu0 %v38898_v44  ;;  %42601 = vst [vmem:[#allocation210_spill] sm:$0xff] %v38926_v1  ;;  %v38929_v16 = vpack.c.bf16 %v11318_v12, %v11306_v39  ;;  %v11330_v8 = vand.u32 4294901760, %v11329_v13  ;;  %v11342_v23 = vand.u32 4294901760, %v11341_v22  ;;  %v32318_v58 = vld [vmem:[%s36641_s18 + $0x70] ss:$8 sm:$0x3] }
 0x378   : > { %v38932_v38 = vpack.c.bf16 %v11336_v5, %v11324_v59  ;;  %v32319_v31 = vld [vmem:[%s36641_s18 + $0x90] ss:$8 sm:$0x3]  ;;  %v32323_v22 = vld [vmem:[%s36641_s18 + $0x11] ss:$8 sm:$0x3]  ;;  %v10301_v45 = vcombine.low %v32317_v41, %v32318_v58  ;;  %v10427_v37 = vrot.slane %v10399_v19, %v37722_v15 }
 0x379   : > { %42602 = vst [vmem:[#allocation211_spill] sm:$0xff] %v38929_v16  ;;  %v32320_v12 = vld [vmem:[%s36641_s18 + $0xb0] ss:$8 sm:$0x3]  ;;  %v38943_v13 = vpack.c.bf16 %v11342_v23, %v11330_v8  ;;  %v42606_v44 = vld [vmem:[#allocation166_spill] sm:$0xff]  ;;  %v42608_v8 = vld [vmem:[#allocation169_spill] sm:$0xff] }
 0x37a   : > { %33550 = vmatpush1.bf16.msra.mxu0 %v38916_v20  ;;  %42603 = vst [vmem:[#allocation212_spill] sm:$0xff] %v38932_v38  ;;  %v32321_v39 = vld [vmem:[%s36641_s18 + $0xd0] ss:$8 sm:$0x3]  ;;  %v42605_v20 = vld [vmem:[#allocation165_spill] sm:$0xff]  ;;  %v10302_v2 = vcombine.low %v32319_v31, %v32320_v12  ;;  %v42609_v23 = vld [vmem:[#allocation170_spill] sm:$0xff]  ;;  %v10317_v35 = vrot.slane %v10301_v45, %v37722_v15  ;;  %v38976_v31 = vpack.c.bf16 %v38642_v25, %v38636_v47 }
 0x37b   : > { %33552 = vmatprep.subr.bf16.mxu0 %v38926_v1  ;;  %42604 = vst [vmem:[#allocation213_spill] sm:$0xff] %v38943_v13  ;;  %v32324_v1 = vld [vmem:[%s36641_s18 + $0x31] ss:$8 sm:$0x3]  ;;  %v38952_v48 = vpack.c.bf16 %v42606_v44, %v42605_v20  ;;  %v38961_v43 = vpack.c.bf16 %v42609_v23, %v42608_v8  ;;  %v42614_v62 = vld [vmem:[#allocation154_spill] sm:$0xff] }
 0x37c   : > { %v32325_v59 = vld [vmem:[%s36641_s18 + $0x51] ss:$8 sm:$0x3]  ;;  %v10396_v11 = vcombine.low %v32323_v22, %v32324_v1  ;;  %v10324_v41 = vrot.slane %v10302_v2, %v37722_v15  ;;  %42615 = vst [vmem:[#allocation170_spill] sm:$0xff] %v38976_v31  ;;  %v38991_v1 = vpack.c.bf16 %v38663_v0, %v38658_v61 }
 0x37d   : > { %v32326_v5 = vld [vmem:[%s36641_s18 + $0x71] ss:$8 sm:$0x3]  ;;  %42607 = vst [vmem:[#allocation165_spill] sm:$0xff] %v38952_v48  ;;  %42610 = vst [vmem:[#allocation166_spill] sm:$0xff] %v38961_v43 }
 0x37e   : > { %33554 = vmatpush1.bf16.msra.mxu0 %v38929_v16  ;;  %v32327_v49 = vld [vmem:[%s36641_s18 + $0x91] ss:$8 sm:$0x3]  ;;  %v10303_v16 = vcombine.low %v32321_v39, %v32322_v27  ;;  %v10397_v63 = vcombine.low %v32325_v59, %v32326_v5  ;;  %v10310_v27 = vrot.slane %v10300_v32, %v37722_v15  ;;  %v10406_v32 = vrot.slane %v10396_v11, %v37722_v15 }
 0x37f   : > { %33556 = vmatprep.subr.bf16.mxu0 %v38932_v38  ;;  %v32328_v10 = vld [vmem:[%s36641_s18 + $0xb1] ss:$8 sm:$0x3]  ;;  %v38996_v11 = vpack.c.bf16 %v38673_v4, %v38668_v3  ;;  %v39003_v5 = vpack.c.bf16 %v38685_v51, %v38680_v57 }
 0x380   : > { %v42612_v38 = vld [vmem:[#allocation172_spill] sm:$0xff]  ;;  %v10398_v40 = vcombine.low %v32327_v49, %v32328_v10  ;;  %v10331_v58 = vrot.slane %v10303_v16, %v37722_v15  ;;  %v38980_v10 = vpack.c.bf16 %v38652_v9, %v38647_v21  ;;  %v10413_v2 = vrot.slane %v10397_v63, %v37722_v15 }
 0x381   : > { %v38965_v52 = vpack.c.bf16 %v42612_v38, %v42611_v36  ;;  %v10332_v7 = vcombine.low %v10310_v27, %v10317_v35  ;;  %42617 = vst [vmem:[#allocation172_spill] sm:$0xff] %v38991_v1  ;;  %v10333_v16 = vcombine.high %v10310_v27, %v10317_v35  ;;  %42618 = vst [vmem:[#allocation214_spill] sm:$0xff] %v38996_v11 }
 0x382   : > { %33558 = vmatpush1.bf16.msra.mxu0 %v38943_v13  ;;  %42616 = vst [vmem:[#allocation171_spill] sm:$0xff] %v38980_v10  ;;  %v10420_v45 = vrot.slane %v10398_v40, %v37722_v15  ;;  %v10334_v49 = vcombine.low %v10324_v41, %v10331_v58  ;;  %v10335_v12 = vcombine.high %v10324_v41, %v10331_v58  ;;  %42619 = vst [vmem:[#allocation215_spill] sm:$0xff] %v39003_v5 }
 0x383   : > { %42613 = vst [vmem:[#allocation169_spill] sm:$0xff] %v38965_v52  ;;  %33560 = vmatprep.subr.bf16.mxu0 %v38952_v48  ;;  %v10428_v63 = vcombine.low %v10406_v32, %v10413_v2  ;;  %v10429_v39 = vcombine.high %v10406_v32, %v10413_v2  ;;  %v10342_v22 = vrot.slane %v10332_v7, %v37722_v15  ;;  %v39149_v48 = vld [vmem:[#allocation10 + $0x38] sm:$0xff] }
 0x384   : > { %v10430_v40 = vcombine.low %v10420_v45, %v10427_v37  ;;  %v10431_v19 = vcombine.high %v10420_v45, %v10427_v37  ;;  %v10356_v59 = vrot.slane %v10334_v49, %v37722_v15  ;;  %v10349_v27 = vrot.slane %v10333_v16, %v37722_v15  ;;  %42658 = vst [vmem:[#allocation248_spill] sm:$0xff] %v39149_v48 }
 0x385   : > { %11378 = vmatmul.mubr.f32.vlgmr.msra.gmra.mrb[18].mxu0 %v42614_v62  ;;  %v10363_v35 = vrot.slane %v10335_v12, %v37722_v15  ;;  %v10438_v41 = vrot.slane %v10428_v63, %v37722_v15  ;;  %v39012_v32 = vpack.c.bf16 %v38697_v30, %v38692_v6  ;;  %v10445_v2 = vrot.slane %v10429_v39, %v37722_v15  ;;  %v32341_v62 = vld [vmem:[%s36641_s18 + $0x53] ss:$8 sm:$0x3] }
 0x386   : > { %33562 = vmatpush1.bf16.msra.mxu0 %v38961_v43  ;;  %11512 = vmatprep.mubr.f32.mxu0 %v42267_v60  ;;  %v10452_v58 = vrot.slane %v10430_v40, %v37722_v15  ;;  %v10459_v45 = vrot.slane %v10431_v19, %v37722_v15  ;;  %v39016_v37 = vcombine.low %v10342_v22, %v10356_v59 }
 0x387   : > { %33564 = vmatprep.subr.bf16.mxu0 %v38965_v52  ;;  %42620 = vst [vmem:[#allocation216_spill] sm:$0xff] %v39012_v32  ;;  %v39019_v7 = vcombine.low %v10349_v27, %v10363_v35  ;;  %v39023_v49 = vpack.c.bf16 %v38726_v54, %v38716_v50  ;;  %v39030_v12 = vpack.c.bf16 %v38775_v46, %v38763_v55 }
 0x388   : > { %42621 = vst [vmem:[#allocation217_spill] sm:$0xff] %v39016_v37  ;;  %v39025_v16 = vcombine.low %v10438_v41, %v10452_v58  ;;  %v39032_v39 = vcombine.low %v10445_v2, %v10459_v45  ;;  %v39039_v35 = vpack.c.bf16 %v38801_v33, %v38789_v53  ;;  %v39046_v2 = vpack.c.bf16 %v38825_v18, %v38811_v56  ;;  %v42678_v18 = vld [vmem:[#allocation176_spill] sm:$0xff] }
 0x389   : > { %42622 = vst [vmem:[#allocation218_spill] sm:$0xff] %v39019_v7  ;;  %42623 = vst [vmem:[#allocation219_spill] sm:$0xff] %v39023_v49 }
 0x38a   : > { %33566 = vmatpush1.bf16.msra.mxu0 %v38976_v31  ;;  %42624 = vst [vmem:[#allocation220_spill] sm:$0xff] %v39025_v16  ;;  %42625 = vst [vmem:[#allocation221_spill] sm:$0xff] %v39030_v12 }
 0x38b   : > { %33568 = vmatprep.subr.bf16.mxu0 %v38980_v10  ;;  %v6069_v63 = vpop.f32.mrb[10].mxu0  ;;  %v6560_v40 = vpop.f32.mrb[10].mxu1  ;;  %42626 = vst [vmem:[#allocation222_spill] sm:$0xff] %v39032_v39  ;;  %42627 = vst [vmem:[#allocation223_spill] sm:$0xff] %v39039_v35 }
 0x38c   : > { %v10368_v19 = vmul.f32 %v39016_v37, %v6069_v63  ;;  %v6071_v22 = vpop.f32.mrb[11].mxu0  ;;  %v6562_v59 = vpop.f32.mrb[11].mxu1  ;;  %v10464_v58 = vmul.f32 %v39025_v16, %v6560_v40  ;;  %42628 = vst [vmem:[#allocation224_spill] sm:$0xff] %v39046_v2  ;;  %v39062_v40 = vpack.c.bf16 %v38860_v29, %v38851_v24  ;;  %v39088_v16 = vld [vmem:[#allocation10 + $0xa0] sm:$0xff]  ;;  %v39093_v37 = vld [vmem:[#allocation10 + $0xa8] sm:$0xff] }
 0x38d   : > { %v10369_v27 = vmul.f32 %v39019_v7, %v6071_v22  ;;  %v10465_v63 = vmul.f32 %v39032_v39, %v6562_v59  ;;  %v39068_v59 = vld [vmem:[#allocation10] sm:$0xff]  ;;  %v39084_v39 = vld [vmem:[#allocation10 + $0x10] sm:$0xff]  ;;  %42640 = vst [vmem:[#allocation236_spill] sm:$0xff] %v39088_v16  ;;  %42641 = vst [vmem:[#allocation237_spill] sm:$0xff] %v39093_v37  ;;  %v41922_v52 = vand.u32 4294901760, %v39093_v37 }
 0x38e   : > { %33570 = vmatpush1.bf16.msra.mxu0 %v38991_v1  ;;  %v10370_v41 = vadd.f32 %v10368_v19, %v38867_v34  ;;  %v39057_v34 = vpack.c.bf16 %v38846_v42, %v38838_v28  ;;  %42630 = vst [vmem:[#allocation226_spill] sm:$0xff] %v39062_v40  ;;  %v39064_v19 = vld [vmem:[#allocation10 + $0x80] sm:$0xff]  ;;  %42633 = vst [vmem:[#allocation229_spill] sm:$0xff] %v39068_v59  ;;  %v42645_v7 = vand.u32 4294901760, %v39068_v59  ;;  %v42672_v59 = vand.u32 4294901760, %v39149_v48 }
 0x38f   : > { %33572 = vmatprep.subr.bf16.mxu0 %v38996_v11  ;;  %v10371_v45 = vadd.f32 %v10369_v27, %v38873_v14  ;;  %42631 = vst [vmem:[#allocation227_spill] sm:$0xff] %v39064_v19  ;;  %v39066_v14 = vld [vmem:[#allocation10 + $0x88] sm:$0xff]  ;;  %42638 = vst [vmem:[#allocation234_spill] sm:$0xff] %v39084_v39  ;;  %v39104_v1 = vld [vmem:[#allocation10 + $0x20] sm:$0xff] }
 0x390   : > { %v39050_v22 = vadd.f32 %v10464_v58, %v10370_v41  ;;  %42629 = vst [vmem:[#allocation225_spill] sm:$0xff] %v39057_v34  ;;  %42632 = vst [vmem:[#allocation228_spill] sm:$0xff] %v39066_v14  ;;  %v39070_v27 = vld [vmem:[#allocation10 + $0x8] sm:$0xff]  ;;  %v39072_v41 = vld [vmem:[#allocation10 + $0x90] sm:$0xff]  ;;  %v42663_v13 = vand.u32 4294901760, %v39104_v1 }
 0x391   : > { %42634 = vst [vmem:[#allocation230_spill] sm:$0xff] %v39070_v27  ;;  %42635 = vst [vmem:[#allocation231_spill] sm:$0xff] %v39072_v41  ;;  %v39074_v58 = vld [vmem:[#allocation10 + $0x98] sm:$0xff]  ;;  %v42649_v11 = vand.u32 4294901760, %v39072_v41 }
 0x392   : > { %33574 = vmatpush1.bf16.msra.mxu0 %v39003_v5  ;;  %42636 = vst [vmem:[#allocation232_spill] sm:$0xff] %v39074_v58  ;;  %42643 = vst [vmem:[#allocation239_spill] sm:$0xff] %v39104_v1  ;;  %v32334_v41 = vld [vmem:[%s36641_s18 + $0x72] ss:$8 sm:$0x3] }
 0x393   : > { %33576 = vmatprep.subr.bf16.mxu0 %v39012_v32  ;;  %v32337_v1 = vld [vmem:[%s36641_s18 + $0xd2] ss:$8 sm:$0x3]  ;;  %v32345_v29 = vld [vmem:[%s36641_s18 + $0xd3] ss:$8 sm:$0x3] }
 0x394   : > { %v32346_v24 = vld [vmem:[%s36641_s18 + $0xf3] ss:$8 sm:$0x3] }
 0x395   : > { %v10591_v56 = vcombine.low %v32345_v29, %v32346_v24  ;;  %v42683_v24 = vld [vmem:[#allocation178_spill] sm:$0xff] }
 0x396   : > { %33578 = vmatpush1.bf16.msra.mxu0 %v39023_v49  ;;  %v39052_v49 = vadd.f32 %v10465_v63, %v10371_v45  ;;  %v39079_v45 = vpack.c.bf16 %v38885_v26, %v38880_v17  ;;  %v41907_v63 = vand.u32 4294901760, %v39064_v19  ;;  %v39187_v19 = vld [vmem:[#allocation10 + $0x48] sm:$0xff] }
 0x397   : > { %33580 = vmatprep.subr.bf16.mxu0 %v39030_v12  ;;  %v39086_v12 = vld [vmem:[#allocation10 + $0x18] sm:$0xff] }
 0x398   : > { %42637 = vst [vmem:[#allocation233_spill] sm:$0xff] %v39079_v45  ;;  %42639 = vst [vmem:[#allocation235_spill] sm:$0xff] %v39086_v12  ;;  %v42653_v31 = vand.u32 4294901760, %v39086_v12  ;;  %v32331_v12 = vld [vmem:[%s36641_s18 + $0x12] ss:$8 sm:$0x3] }
 0x39a   : > { %33582 = vmatpush1.bf16.msra.mxu0 %v39039_v35  ;;  %v41917_v35 = vand.u32 4294901760, %v39074_v58  ;;  %v32333_v58 = vld [vmem:[%s36641_s18 + $0x52] ss:$8 sm:$0x3] }
 0x39b   : > { %33584 = vmatprep.subr.bf16.mxu0 %v39046_v2  ;;  %v41906_v2 = vand.u32 4294901760, %v39066_v14  ;;  %v39185_v14 = vld [vmem:[#allocation10 + $0x40] sm:$0xff] }
 0x39c   : > { %v39125_v5 = vpack.c.bf16 %v41917_v35, %v42649_v11  ;;  %v42655_v11 = vand.u32 4294901760, %v39088_v16 }
 0x39d   : > { %v39099_v32 = vpack.c.bf16 %v41906_v2, %v41907_v63  ;;  %v39115_v2 = vld [vmem:[#allocation10 + $0xb0] sm:$0xff]  ;;  %v39117_v63 = vld [vmem:[#allocation10 + $0xb8] sm:$0xff] }
 0x39e   : > { %33586 = vmatpush1.bf16.msra.mxu0 %v39057_v34  ;;  %v41910_v34 = vand.u32 4294901760, %v39070_v27  ;;  %42647 = vst [vmem:[#allocation242_spill] sm:$0xff] %v39115_v2  ;;  %42648 = vst [vmem:[#allocation243_spill] sm:$0xff] %v39117_v63  ;;  %v39143_v35 = vpack.c.bf16 %v41922_v52, %v42655_v11  ;;  %v39154_v11 = vld [vmem:[#allocation10 + $0xc8] sm:$0xff]  ;;  %v42661_v52 = vld [vmem:[#allocation167_spill] sm:$0xff] }
 0x39f   : > { %33588 = vmatprep.subr.bf16.mxu0 %v39062_v40  ;;  %42642 = vst [vmem:[#allocation238_spill] sm:$0xff] %v39099_v32  ;;  %v39106_v40 = vld [vmem:[#allocation10 + $0x28] sm:$0xff]  ;;  %33688 = vmatprep.subr.bf16.mxu1 %v39099_v32  ;;  %42650 = vst [vmem:[#allocation244_spill] sm:$0xff] %v39125_v5  ;;  %v32336_v27 = vld [vmem:[%s36641_s18 + $0xb2] ss:$8 sm:$0x3] }
 0x3a0   : > { %42644 = vst [vmem:[#allocation240_spill] sm:$0xff] %v39106_v40  ;;  %v39112_v10 = vpack.c.bf16 %v41910_v34, %v42645_v7  ;;  %v42651_v7 = vld [vmem:[#allocation164_spill] sm:$0xff]  ;;  %v42652_v34 = vand.u32 4294901760, %v39084_v39  ;;  %42656 = vst [vmem:[#allocation246_spill] sm:$0xff] %v39143_v35 }
 0x3a1   : > { %v32332_v39 = vld [vmem:[%s36641_s18 + $0x32] ss:$8 sm:$0x3] }
 0x3a2   : > { %42646 = vst [vmem:[#allocation241_spill] sm:$0xff] %v39112_v10  ;;  %33590 = vmatpush1.bf16.msra.mxu0 %v39079_v45  ;;  %33690 = vmatpush3.bf16.msra.mxu1 %v39112_v10  ;;  %v39134_v43 = vpack.c.bf16 %v42653_v31, %v42652_v34  ;;  %v39147_v34 = vld [vmem:[#allocation10 + $0x30] sm:$0xff]  ;;  %v42662_v31 = vld [vmem:[#allocation168_spill] sm:$0xff]  ;;  %v42664_v10 = vand.u32 4294901760, %v39106_v40 }
 0x3a3   : > { %33592 = vmatprep.subr.bf16.mxu0 %v42651_v7  ;;  %33692 = vmatprep.subr.bf16.mxu1 %v39125_v5  ;;  %42657 = vst [vmem:[#allocation247_spill] sm:$0xff] %v39147_v34  ;;  %v42659_v45 = vld [vmem:[#allocation155_spill] sm:$0xff]  ;;  %v39152_v5 = vld [vmem:[#allocation10 + $0xc0] sm:$0xff] }
 0x3a4   : > { %42654 = vst [vmem:[#allocation245_spill] sm:$0xff] %v39134_v43  ;;  %42660 = vst [vmem:[#allocation155_spill] sm:$0xff] %v39154_v11  ;;  %v39164_v32 = vpack.c.bf16 %v42664_v10, %v42663_v13  ;;  %v32338_v40 = vld [vmem:[%s36641_s18 + $0xf2] ss:$8 sm:$0x3]  ;;  %v42666_v13 = vand.u32 4294901760, %v39115_v2 }
 0x3a5   : > { %11515 = vmatmul.mubr.f32.vlgmr.msra.gmra.mrb[18].mxu0 %v42659_v45  ;;  %v42667_v10 = vand.u32 4294901760, %v39117_v63  ;;  %v32342_v2 = vld [vmem:[%s36641_s18 + $0x73] ss:$8 sm:$0x3]  ;;  %v42670_v63 = vld [vmem:[#allocation174_spill] sm:$0xff]  ;;  %v10495_v48 = vcombine.low %v32337_v1, %v32338_v40 }
 0x3a6   : > { %33594 = vmatpush1.bf16.msra.mxu0 %v42661_v52  ;;  %11617 = vmatprep.mubr.f32.mxu0 %v42267_v60  ;;  %42665 = vst [vmem:[#allocation249_spill] sm:$0xff] %v39164_v32  ;;  %v32340_v52 = vld [vmem:[%s36641_s18 + $0x33] ss:$8 sm:$0x3]  ;;  %v10589_v26 = vcombine.low %v32341_v62, %v32342_v2  ;;  %v10619_v2 = vrot.slane %v10591_v56, %v37722_v15 }
 0x3a7   : > { %33596 = vmatprep.subr.bf16.mxu0 %v42662_v31  ;;  %33694 = vmatpush3.bf16.msra.mxu1 %v39134_v43  ;;  %v32335_v43 = vld [vmem:[%s36641_s18 + $0x92] ss:$8 sm:$0x3]  ;;  %v39181_v16 = vpack.c.bf16 %v42667_v10, %v42666_v13  ;;  %v32339_v31 = vld [vmem:[%s36641_s18 + $0x13] ss:$8 sm:$0x3]  ;;  %v10523_v62 = vrot.slane %v10495_v48, %v37722_v15 }
 0x3a8   : > { %33696 = vmatprep.subr.bf16.mxu1 %v39143_v35  ;;  %v42669_v35 = vld [vmem:[#allocation173_spill] sm:$0xff]  ;;  %v32343_v7 = vld [vmem:[%s36641_s18 + $0x93] ss:$8 sm:$0x3]  ;;  %v42671_v10 = vand.u32 4294901760, %v39147_v34  ;;  %v10493_v34 = vcombine.low %v32333_v58, %v32334_v41  ;;  %v10494_v28 = vcombine.low %v32335_v43, %v32336_v27 }
 0x3a9   : > { %42668 = vst [vmem:[#allocation250_spill] sm:$0xff] %v39181_v16  ;;  %v32344_v13 = vld [vmem:[%s36641_s18 + $0xb3] ss:$8 sm:$0x3]  ;;  %v42685_v41 = vld [vmem:[#allocation181_spill] sm:$0xff] }
 0x3aa   : > { %33598 = vmatpush1.bf16.msra.mxu0 %v42669_v35  ;;  %v39202_v37 = vpack.c.bf16 %v42672_v59, %v42671_v10  ;;  %v42674_v35 = vand.u32 4294901760, %v39152_v5  ;;  %v42677_v59 = vld [vmem:[#allocation175_spill] sm:$0xff]  ;;  %v10588_v10 = vcombine.low %v32339_v31, %v32340_v52  ;;  %v10590_v17 = vcombine.low %v32343_v7, %v32344_v13 }
 0x3ab   : > { %33600 = vmatprep.subr.bf16.mxu0 %v42670_v63  ;;  %33698 = vmatpush3.bf16.msra.mxu1 %v39164_v32  ;;  %v42675_v63 = vand.u32 4294901760, %v39154_v11  ;;  %v10492_v32 = vcombine.low %v32331_v12, %v32332_v39  ;;  %v42680_v11 = vand.u32 4294901760, %v39187_v19  ;;  %v10509_v1 = vrot.slane %v10493_v34, %v37722_v15  ;;  %v42682_v12 = vld [vmem:[#allocation177_spill] sm:$0xff]  ;;  %v42684_v27 = vld [vmem:[#allocation179_spill] sm:$0xff]  ;;  %v42686_v34 = vld [vmem:[#allocation182_spill] sm:$0xff] }
 0x3ac   : > { %42673 = vst [vmem:[#allocation251_spill] sm:$0xff] %v39202_v37  ;;  %33700 = vmatprep.subr.bf16.mxu1 %v39181_v16  ;;  %v42679_v16 = vand.u32 4294901760, %v39185_v14  ;;  %v10516_v52 = vrot.slane %v10494_v28, %v37722_v15  ;;  %v10598_v29 = vrot.slane %v10588_v10, %v37722_v15  ;;  %v10605_v39 = vrot.slane %v10589_v26, %v37722_v15  ;;  %v42687_v13 = vld [vmem:[#allocation183_spill] sm:$0xff] }
 0x3ad   : > { %v39213_v42 = vpack.c.bf16 %v42675_v63, %v42674_v35  ;;  %v10502_v43 = vrot.slane %v10492_v32, %v37722_v15 }
 0x3ae   : > { %33602 = vmatpush1.bf16.msra.mxu0 %v42677_v59  ;;  %v39222_v35 = vpack.c.bf16 %v42680_v11, %v42679_v16  ;;  %v10612_v16 = vrot.slane %v10590_v17, %v37722_v15  ;;  %v10526_v40 = vcombine.low %v10516_v52, %v10523_v62  ;;  %v10527_v48 = vcombine.high %v10516_v52, %v10523_v62 }
 0x3af   : > { %42676 = vst [vmem:[#allocation252_spill] sm:$0xff] %v39213_v42  ;;  %33604 = vmatprep.subr.bf16.mxu0 %v42678_v18  ;;  %33702 = vmatpush3.bf16.msra.mxu1 %v39202_v37  ;;  %v10524_v32 = vcombine.low %v10502_v43, %v10509_v1  ;;  %v10525_v28 = vcombine.high %v10502_v43, %v10509_v1 }
 0x3b0   : > { %42681 = vst [vmem:[#allocation253_spill] sm:$0xff] %v39222_v35  ;;  %33704 = vmatprep.subr.bf16.mxu1 %v39213_v42  ;;  %v10620_v58 = vcombine.low %v10598_v29, %v10605_v39  ;;  %v10622_v63 = vcombine.low %v10612_v16, %v10619_v2  ;;  %v10621_v7 = vcombine.high %v10598_v29, %v10605_v39  ;;  %v42689_v29 = vld [vmem:[#allocation184_spill] sm:$0xff] }
 0x3b1   : > { %v10623_v31 = vcombine.high %v10612_v16, %v10619_v2  ;;  %v10534_v26 = vrot.slane %v10524_v32, %v37722_v15  ;;  %v10548_v17 = vrot.slane %v10526_v40, %v37722_v15  ;;  %v10541_v56 = vrot.slane %v10525_v28, %v37722_v15  ;;  %v42692_v2 = vld [vmem:[#allocation185_spill] sm:$0xff] }
 0x3b2   : > { %33606 = vmatpush1.bf16.msra.mxu0 %v42682_v12  ;;  %v10555_v11 = vrot.slane %v10527_v48, %v37722_v15  ;;  %v10630_v10 = vrot.slane %v10620_v58, %v37722_v15  ;;  %v10644_v43 = vrot.slane %v10622_v63, %v37722_v15  ;;  %v10637_v1 = vrot.slane %v10621_v7, %v37722_v15 }
 0x3b3   : > { %33608 = vmatprep.subr.bf16.mxu0 %v42683_v24  ;;  %33706 = vmatpush3.bf16.msra.mxu1 %v39222_v35  ;;  %v10651_v52 = vrot.slane %v10623_v31, %v37722_v15  ;;  %v39248_v62 = vcombine.low %v10534_v26, %v10548_v17  ;;  %v42693_v32 = vand.u32 4294901760, %v42605_v20  ;;  %v42694_v40 = vand.u32 4294901760, %v42606_v44 }
 0x3b4   : > { %v39251_v39 = vcombine.low %v10541_v56, %v10555_v11  ;;  %v39253_v16 = vcombine.low %v10630_v10, %v10644_v43  ;;  %v42697_v56 = vld [vmem:[#allocation186_spill] sm:$0xff]  ;;  %v42698_v11 = vand.u32 4294901760, %v42608_v8  ;;  %v42699_v20 = vand.u32 4294901760, %v42609_v23 }
 0x3b5   : > { %42688 = vst [vmem:[#allocation254_spill] sm:$0xff] %v39248_v62  ;;  %v39260_v28 = vpack.c.bf16 %v42694_v40, %v42693_v32  ;;  %v39262_v63 = vcombine.low %v10637_v1, %v10651_v52  ;;  %v42701_v1 = vand.u32 4294901760, %v42611_v36  ;;  %v42702_v52 = vand.u32 4294901760, %v42612_v38 }
 0x3b6   : > { %33610 = vmatpush1.bf16.msra.mxu0 %v42684_v27  ;;  %42690 = vst [vmem:[#allocation255_spill] sm:$0xff] %v39251_v39  ;;  %42691 = vst [vmem:[#allocation256_spill] sm:$0xff] %v39253_v16  ;;  %v39271_v10 = vpack.c.bf16 %v42699_v20, %v42698_v11  ;;  %v42704_v23 = vand.u32 4294901760, %v42659_v45  ;;  %v42706_v36 = vand.u32 4294901760, %v38642_v25  ;;  %v42709_v45 = vand.u32 4294901760, %v38652_v9 }
 0x3b7   : > { %33612 = vmatprep.subr.bf16.mxu0 %v42685_v41  ;;  %42695 = vst [vmem:[#allocation257_spill] sm:$0xff] %v39260_v28  ;;  %v7051_v48 = vpop.f32.mrb[12].mxu0  ;;  %v7542_v58 = vpop.f32.mrb[12].mxu1  ;;  %42696 = vst [vmem:[#allocation258_spill] sm:$0xff] %v39262_v63  ;;  %v39280_v32 = vpack.c.bf16 %v42702_v52, %v42701_v1  ;;  %v42712_v25 = vand.u32 4294901760, %v38663_v0  ;;  %v42715_v9 = vand.u32 4294901760, %v38673_v4 }
 0x3b8   : > { %v10560_v7 = vmul.f32 %v39248_v62, %v7051_v48  ;;  %v7053_v31 = vpop.f32.mrb[13].mxu0  ;;  %v7544_v26 = vpop.f32.mrb[13].mxu1  ;;  %42700 = vst [vmem:[#allocation259_spill] sm:$0xff] %v39271_v10  ;;  %v10656_v43 = vmul.f32 %v39253_v16, %v7542_v58  ;;  %v42705_v58 = vand.u32 4294901760, %v38636_v47  ;;  %v42711_v47 = vand.u32 4294901760, %v38658_v61 }
 0x3b9   : > { %v10561_v17 = vmul.f32 %v39251_v39, %v7053_v31  ;;  %42703 = vst [vmem:[#allocation260_spill] sm:$0xff] %v39280_v32  ;;  %v10657_v8 = vmul.f32 %v39262_v63, %v7544_v26  ;;  %v42717_v61 = vand.u32 4294901760, %v38680_v57  ;;  %v42718_v0 = vand.u32 4294901760, %v38685_v51  ;;  %v32348_v1 = vld [vmem:[%s36641_s18 + $0x34] ss:$8 sm:$0x3] }
 0x3ba   : > { %33614 = vmatpush1.bf16.msra.mxu0 %v42686_v34  ;;  %v10562_v44 = vadd.f32 %v10560_v7, %v39050_v22  ;;  %v39295_v38 = vpack.c.bf16 %v42706_v36, %v42705_v58  ;;  %v39310_v31 = vpack.c.bf16 %v42712_v25, %v42711_v47  ;;  %v42720_v11 = vand.u32 4294901760, %v38692_v6  ;;  %v32349_v52 = vld [vmem:[%s36641_s18 + $0x54] ss:$8 sm:$0x3]  ;;  %v42732_v25 = vld [vmem:[#allocation197_spill] sm:$0xff] }
 0x3bb   : > { %33616 = vmatprep.subr.bf16.mxu0 %v42687_v13  ;;  %v10563_v40 = vadd.f32 %v10561_v17, %v39052_v49  ;;  %v42708_v49 = vand.u32 4294901760, %v38647_v21  ;;  %v42714_v21 = vand.u32 4294901760, %v38668_v3  ;;  %v39324_v17 = vpack.c.bf16 %v42718_v0, %v42717_v61  ;;  %v32355_v36 = vld [vmem:[%s36641_s18 + $0x15] ss:$8 sm:$0x3] }
 0x3bc   : > { %v39284_v48 = vadd.f32 %v10656_v43, %v10562_v44  ;;  %42707 = vst [vmem:[#allocation261_spill] sm:$0xff] %v39295_v38  ;;  %42713 = vst [vmem:[#allocation263_spill] sm:$0xff] %v39310_v31  ;;  %v42721_v3 = vand.u32 4294901760, %v38697_v30  ;;  %v42723_v20 = vand.u32 4294901760, %v38716_v50  ;;  %v42724_v57 = vand.u32 4294901760, %v38726_v54 }
 0x3bd   : > { %v39288_v22 = vadd.f32 %v10657_v8, %v10563_v40  ;;  %v39303_v7 = vpack.c.bf16 %v42709_v45, %v42708_v49  ;;  %v39317_v26 = vpack.c.bf16 %v42715_v9, %v42714_v21  ;;  %42719 = vst [vmem:[#allocation265_spill] sm:$0xff] %v39324_v17  ;;  %v42726_v6 = vand.u32 4294901760, %v38763_v55  ;;  %v32347_v43 = vld [vmem:[%s36641_s18 + $0x14] ss:$8 sm:$0x3] }
 0x3be   : > { %33618 = vmatpush1.bf16.msra.mxu0 %v42689_v29  ;;  %v39331_v4 = vpack.c.bf16 %v42721_v3, %v42720_v11  ;;  %v39338_v51 = vpack.c.bf16 %v42724_v57, %v42723_v20  ;;  %v42727_v30 = vand.u32 4294901760, %v38775_v46  ;;  %v32350_v50 = vld [vmem:[%s36641_s18 + $0x74] ss:$8 sm:$0x3]  ;;  %v42729_v55 = vand.u32 4294901760, %v38789_v53 }
 0x3bf   : > { %33620 = vmatprep.subr.bf16.mxu0 %v42692_v2  ;;  %42710 = vst [vmem:[#allocation262_spill] sm:$0xff] %v39303_v7  ;;  %42716 = vst [vmem:[#allocation264_spill] sm:$0xff] %v39317_v26  ;;  %v32351_v54 = vld [vmem:[%s36641_s18 + $0x94] ss:$8 sm:$0x3]  ;;  %v42730_v46 = vand.u32 4294901760, %v38801_v33  ;;  %v10684_v57 = vcombine.low %v32347_v43, %v32348_v1  ;;  %v10685_v33 = vcombine.low %v32349_v52, %v32350_v50 }
 0x3c0   : > { %42722 = vst [vmem:[#allocation266_spill] sm:$0xff] %v39331_v4  ;;  %42725 = vst [vmem:[#allocation267_spill] sm:$0xff] %v39338_v51  ;;  %v39345_v44 = vpack.c.bf16 %v42727_v30, %v42726_v6  ;;  %v32352_v40 = vld [vmem:[%s36641_s18 + $0xb4] ss:$8 sm:$0x3]  ;;  %v42733_v21 = vand.u32 4294901760, %v42732_v25 }
 0x3c1   : > { %v32353_v8 = vld [vmem:[%s36641_s18 + $0xd4] ss:$8 sm:$0x3]  ;;  %v39360_v58 = vpack.c.bf16 %v42730_v46, %v42729_v55  ;;  %v32356_v49 = vld [vmem:[%s36641_s18 + $0x35] ss:$8 sm:$0x3]  ;;  %v10686_v6 = vcombine.low %v32351_v54, %v32352_v40  ;;  %v10694_v54 = vrot.slane %v10684_v57, %v37722_v15  ;;  %v10701_v40 = vrot.slane %v10685_v33, %v37722_v15 }
 0x3c2   : > { %33622 = vmatpush1.bf16.msra.mxu0 %v42697_v56  ;;  %42728 = vst [vmem:[#allocation268_spill] sm:$0xff] %v39345_v44  ;;  %v32357_v45 = vld [vmem:[%s36641_s18 + $0x55] ss:$8 sm:$0x3]  ;;  %v42737_v55 = vld [vmem:[#allocation202_spill] sm:$0xff]  ;;  %v10780_v43 = vcombine.low %v32355_v36, %v32356_v49 }
 0x3c3   : > { %33624 = vmatprep.subr.bf16.mxu0 %v39260_v28  ;;  %42731 = vst [vmem:[#allocation269_spill] sm:$0xff] %v39360_v58  ;;  %v32358_v47 = vld [vmem:[%s36641_s18 + $0x75] ss:$8 sm:$0x3]  ;;  %v42738_v46 = vand.u32 4294901760, %v42737_v55 }
 0x3c4   : > { %v42734_v9 = vld [vmem:[#allocation200_spill] sm:$0xff]  ;;  %v10781_v1 = vcombine.low %v32357_v45, %v32358_v47  ;;  %v10790_v36 = vrot.slane %v10780_v43, %v37722_v15 }
 0x3c5   : > { %11621 = vmatmul.mubr.f32.vlgmr.msra.gmra.mrb[18].mxu0 %v42704_v23  ;;  %v32354_v23 = vld [vmem:[%s36641_s18 + $0xf4] ss:$8 sm:$0x3]  ;;  %v42735_v61 = vand.u32 4294901760, %v42734_v9 }
 0x3c6   : > { %33626 = vmatpush1.bf16.msra.mxu0 %v39271_v10  ;;  %11787 = vmatprep.mubr.f32.mxu0 %v42267_v60  ;;  %v32359_v11 = vld [vmem:[%s36641_s18 + $0x95] ss:$8 sm:$0x3]  ;;  %v10687_v30 = vcombine.low %v32353_v8, %v32354_v23  ;;  %v42747_v8 = vld [vmem:[#allocation206_spill] sm:$0xff]  ;;  %v10797_v49 = vrot.slane %v10781_v1, %v37722_v15 }
 0x3c7   : > { %33628 = vmatprep.subr.bf16.mxu0 %v39280_v32  ;;  %v39371_v0 = vpack.c.bf16 %v42735_v61, %v42733_v21  ;;  %v32360_v3 = vld [vmem:[%s36641_s18 + $0xb5] ss:$8 sm:$0x3]  ;;  %v42744_v21 = vld [vmem:[#allocation205_spill] sm:$0xff]  ;;  %v42748_v23 = vand.u32 4294901760, %v42747_v8 }
 0x3c8   : > { %v32361_v20 = vld [vmem:[%s36641_s18 + $0xd5] ss:$8 sm:$0x3]  ;;  %v42745_v61 = vand.u32 4294901760, %v42744_v21  ;;  %v10782_v52 = vcombine.low %v32359_v11, %v32360_v3  ;;  %v10716_v11 = vcombine.low %v10694_v54, %v10701_v40  ;;  %v10812_v33 = vcombine.low %v10790_v36, %v10797_v49  ;;  %v42753_v21 = vld [vmem:[#allocation154_spill] sm:$0xff] }
 0x3c9   : > { %42736 = vst [vmem:[#allocation197_spill] sm:$0xff] %v39371_v0  ;;  %v32362_v53 = vld [vmem:[%s36641_s18 + $0xf5] ss:$8 sm:$0x3] }
 0x3ca   : > { %33630 = vmatpush1.bf16.msra.mxu0 %v39295_v38  ;;  %v42742_v25 = vld [vmem:[#allocation204_spill] sm:$0xff]  ;;  %v10783_v50 = vcombine.low %v32361_v20, %v32362_v53  ;;  %v10804_v45 = vrot.slane %v10782_v52, %v37722_v15  ;;  %v10717_v20 = vcombine.high %v10694_v54, %v10701_v40  ;;  %v42754_v1 = vld [vmem:[#allocation167_spill] sm:$0xff]  ;;  %v10822_v40 = vrot.slane %v10812_v33, %v37722_v15 }
 0x3cb   : > { %33632 = vmatprep.subr.bf16.mxu0 %v39303_v7  ;;  %v42743_v9 = vand.u32 4294901760, %v42742_v25  ;;  %v42749_v55 = vld [vmem:[#allocation180_spill] sm:$0xff]  ;;  %v1569_v32 = vld [vmem:[#allocation10 + $0x70] sm:$0xff] }
 0x3cc   : > { %v10811_v47 = vrot.slane %v10783_v50, %v37722_v15  ;;  %v42752_v57 = vld [vmem:[#allocation164_spill] sm:$0xff]  ;;  %v10733_v52 = vrot.slane %v10717_v20, %v37722_v15 }
 0x3cd   : > { %v42755_v54 = vld [vmem:[#allocation168_spill] sm:$0xff] }
 0x3ce   : > { %33634 = vmatpush1.bf16.msra.mxu0 %v39310_v31  ;;  %v1570_v10 = vld [vmem:[#allocation10 + $0x78] sm:$0xff] }
 0x3cf   : > { %33636 = vmatprep.subr.bf16.mxu0 %v39317_v26  ;;  %v42764_v26 = vld [vmem:[#allocation23_spill] sm:$0xff]  ;;  %v11947_v28 = vand.u32 4294901760, %v1570_v10 }
 0x3d2   : > { %33638 = vmatpush1.bf16.msra.mxu0 %v39324_v17  ;;  %v39388_v17 = vpack.c.bf16 %v42745_v61, %v42743_v9  ;;  %v10815_v9 = vcombine.high %v10804_v45, %v10811_v47  ;;  %v10726_v61 = vrot.slane %v10716_v11, %v37722_v15 }
 0x3d3   : > { %33640 = vmatprep.subr.bf16.mxu0 %v39331_v4 }
 0x3d4   : > { %42746 = vst [vmem:[#allocation202_spill] sm:$0xff] %v39388_v17  ;;  %v10843_v8 = vrot.slane %v10815_v9, %v37722_v15 }
 0x3d6   : > { %33642 = vmatpush1.bf16.msra.mxu0 %v39338_v51  ;;  %v42739_v51 = vld [vmem:[#allocation203_spill] sm:$0xff] }
 0x3d7   : > { %33644 = vmatprep.subr.bf16.mxu0 %v39345_v44  ;;  %v42740_v44 = vand.u32 4294901760, %v42739_v51  ;;  %v10708_v51 = vrot.slane %v10686_v6, %v37722_v15  ;;  %v10814_v6 = vcombine.low %v10804_v45, %v10811_v47 }
 0x3d9   : > { %v39382_v4 = vpack.c.bf16 %v42740_v44, %v42738_v46  ;;  %v10715_v44 = vrot.slane %v10687_v30, %v37722_v15  ;;  %v42750_v46 = vand.u32 4294901760, %v42749_v55  ;;  %v10813_v30 = vcombine.high %v10790_v36, %v10797_v49  ;;  %v42757_v55 = vld [vmem:[#allocation173_spill] sm:$0xff]  ;;  %v42760_v49 = vld [vmem:[#allocation174_spill] sm:$0xff] }
 0x3da   : > { %33646 = vmatpush1.bf16.msra.mxu0 %v39360_v58 }
 0x3db   : > { %42741 = vst [vmem:[#allocation200_spill] sm:$0xff] %v39382_v4  ;;  %33648 = vmatprep.subr.bf16.mxu0 %v39371_v0  ;;  %v39400_v25 = vpack.c.bf16 %v42750_v46, %v42748_v23  ;;  %v10718_v3 = vcombine.low %v10708_v51, %v10715_v44  ;;  %v10719_v53 = vcombine.high %v10708_v51, %v10715_v44 }
 0x3dc   : > { %v10836_v51 = vrot.slane %v10814_v6, %v37722_v15  ;;  %v10829_v44 = vrot.slane %v10813_v30, %v37722_v15 }
 0x3dd   : > { %42751 = vst [vmem:[#allocation203_spill] sm:$0xff] %v39400_v25  ;;  %v10740_v43 = vrot.slane %v10718_v3, %v37722_v15  ;;  %v10747_v50 = vrot.slane %v10719_v53, %v37722_v15 }
 0x3de   : > { %33650 = vmatpush1.bf16.msra.mxu0 %v39382_v4  ;;  %v39426_v36 = vcombine.low %v10822_v40, %v10836_v51  ;;  %v39429_v11 = vcombine.low %v10829_v44, %v10843_v8  ;;  %v32366_v40 = vld [vmem:[%s36641_s18 + $0x76] ss:$8 sm:$0x3] }
 0x3df   : > { %33652 = vmatprep.subr.bf16.mxu0 %v39388_v17  ;;  %v39421_v23 = vcombine.low %v10726_v61, %v10740_v43  ;;  %v39424_v46 = vcombine.low %v10733_v52, %v10747_v50  ;;  %v32365_v50 = vld [vmem:[%s36641_s18 + $0x56] ss:$8 sm:$0x3] }
 0x3e0   : > { %42759 = vst [vmem:[#allocation206_spill] sm:$0xff] %v39426_v36  ;;  %42761 = vst [vmem:[#allocation180_spill] sm:$0xff] %v39429_v11  ;;  %v32367_v51 = vld [vmem:[%s36641_s18 + $0x96] ss:$8 sm:$0x3] }
 0x3e1   : > { %42756 = vst [vmem:[#allocation204_spill] sm:$0xff] %v39421_v23  ;;  %42758 = vst [vmem:[#allocation205_spill] sm:$0xff] %v39424_v46  ;;  %v32368_v44 = vld [vmem:[%s36641_s18 + $0xb6] ss:$8 sm:$0x3] }
 0x3e2   : > { %33654 = vmatpush1.bf16.msra.mxu0 %v39400_v25  ;;  %v32369_v8 = vld [vmem:[%s36641_s18 + $0xd6] ss:$8 sm:$0x3]  ;;  %v42763_v25 = vld [vmem:[#allocation21_spill] sm:$0xff] }
 0x3e3   : > { %33656 = vmatprep.subr.bf16.mxu0 %v42752_v57  ;;  %v8033_v45 = vpop.f32.mrb[14].mxu0  ;;  %v8524_v47 = vpop.f32.mrb[14].mxu1 }
 0x3e4   : > { %v10752_v3 = vmul.f32 %v39421_v23, %v8033_v45  ;;  %v8035_v20 = vpop.f32.mrb[15].mxu0  ;;  %v8526_v53 = vpop.f32.mrb[15].mxu1  ;;  %v10848_v30 = vmul.f32 %v39426_v36, %v8524_v47  ;;  %v32370_v45 = vld [vmem:[%s36641_s18 + $0xf6] ss:$8 sm:$0x3]  ;;  %v10877_v36 = vcombine.low %v32365_v50, %v32366_v40 }
 0x3e5   : > { %11789 = vmatmul.mubr.f32.vlgmr.msra.gmra.mrb[18].mxu0 %v42753_v21  ;;  %v10753_v33 = vmul.f32 %v39424_v46, %v8035_v20  ;;  %v10849_v61 = vmul.f32 %v39429_v11, %v8526_v53  ;;  %v32371_v47 = vld [vmem:[%s36641_s18 + $0x17] ss:$8 sm:$0x3]  ;;  %v10878_v46 = vcombine.low %v32367_v51, %v32368_v44  ;;  %v10879_v23 = vcombine.low %v32369_v8, %v32370_v45 }
 0x3e6   : > { %33658 = vmatpush1.bf16.msra.mxu0 %v42754_v1  ;;  %11891 = vmatprep.mubr.f32.mxu0 %v42267_v60  ;;  %v10754_v6 = vadd.f32 %v10752_v3, %v39284_v48  ;;  %v32363_v48 = vld [vmem:[%s36641_s18 + $0x16] ss:$8 sm:$0x3]  ;;  %v32372_v3 = vld [vmem:[%s36641_s18 + $0x37] ss:$8 sm:$0x3]  ;;  %v10893_v7 = vrot.slane %v10877_v36, %v37722_v15 }
 0x3e7   : > { %33660 = vmatprep.subr.bf16.mxu0 %v42755_v54  ;;  %v10755_v9 = vadd.f32 %v10753_v33, %v39288_v22  ;;  %v32364_v22 = vld [vmem:[%s36641_s18 + $0x36] ss:$8 sm:$0x3]  ;;  %v32373_v20 = vld [vmem:[%s36641_s18 + $0x57] ss:$8 sm:$0x3]  ;;  %v10972_v17 = vcombine.low %v32371_v47, %v32372_v3 }
 0x3e8   : > { %v39439_v43 = vadd.f32 %v10848_v30, %v10754_v6  ;;  %v32374_v53 = vld [vmem:[%s36641_s18 + $0x77] ss:$8 sm:$0x3]  ;;  %v10876_v11 = vcombine.low %v32363_v48, %v32364_v22  ;;  %v10907_v48 = vrot.slane %v10879_v23, %v37722_v15 }
 0x3e9   : > { %v39441_v52 = vadd.f32 %v10849_v61, %v10755_v9  ;;  %v32375_v33 = vld [vmem:[%s36641_s18 + $0x97] ss:$8 sm:$0x3]  ;;  %v10973_v4 = vcombine.low %v32373_v20, %v32374_v53  ;;  %v10982_v22 = vrot.slane %v10972_v17, %v37722_v15 }
 0x3ea   : > { %33662 = vmatpush1.bf16.msra.mxu0 %v42757_v55  ;;  %v32376_v6 = vld [vmem:[%s36641_s18 + $0xb7] ss:$8 sm:$0x3]  ;;  %v10886_v31 = vrot.slane %v10876_v11, %v37722_v15 }
 0x3eb   : > { %33664 = vmatprep.subr.bf16.mxu0 %v42760_v49  ;;  %v42762_v30 = vld [vmem:[#allocation19_spill] sm:$0xff]  ;;  %v10974_v0 = vcombine.low %v32375_v33, %v32376_v6  ;;  %v10989_v50 = vrot.slane %v10973_v4, %v37722_v15 }
 0x3ec   : > { %v32377_v9 = vld [vmem:[%s36641_s18 + $0xd7] ss:$8 sm:$0x3]  ;;  %v10908_v44 = vcombine.low %v10886_v31, %v10893_v7  ;;  %v10909_v45 = vcombine.high %v10886_v31, %v10893_v7 }
 0x3ed   : > { %v32378_v61 = vld [vmem:[%s36641_s18 + $0xf7] ss:$8 sm:$0x3]  ;;  %v10996_v40 = vrot.slane %v10974_v0, %v37722_v15  ;;  %v11004_v3 = vcombine.low %v10982_v22, %v10989_v50  ;;  %v11005_v20 = vcombine.high %v10982_v22, %v10989_v50  ;;  %s41411_s18 = scalar_lea.hbm %s41462_s7, %s32380_s29 }
 0x3ee   : > { %33666 = vmatpush1.bf16.msra.mxu0 %v42677_v59  ;;  %v10975_v58 = vcombine.low %v32377_v9, %v32378_v61  ;;  %v10925_v17 = vrot.slane %v10909_v45, %v37722_v15 }
 0x3ef   : > { %33668 = vmatprep.subr.bf16.mxu0 %v42678_v18  ;;  %v11014_v0 = vrot.slane %v11004_v3, %v37722_v15  ;;  %v11021_v53 = vrot.slane %v11005_v20, %v37722_v15  ;;  %v1581_v3 = vld [vmem:[#allocation10 + $0xd0] sm:$0xff] }
 0x3f0   : > { %v11003_v51 = vrot.slane %v10975_v58, %v37722_v15  ;;  %v11980_v20 = vand.u32 4294901760, %v1581_v3 }
 0x3f2   : > { %33670 = vmatpush1.bf16.msra.mxu0 %v42682_v12  ;;  %v11006_v11 = vcombine.low %v10996_v40, %v11003_v51  ;;  %v11007_v36 = vcombine.high %v10996_v40, %v11003_v51 }
 0x3f3   : > { %33672 = vmatprep.subr.bf16.mxu0 %v42683_v24 }
 0x3f4   : > { %v11028_v58 = vrot.slane %v11006_v11, %v37722_v15  ;;  %v11035_v7 = vrot.slane %v11007_v36, %v37722_v15  ;;  %v1582_v11 = vld [vmem:[#allocation10 + $0xd8] sm:$0xff] }
 0x3f5   : > { %v11983_v36 = vand.u32 4294901760, %v1582_v11 }
 0x3f6   : > { %33674 = vmatpush1.bf16.msra.mxu0 %v42684_v27  ;;  %v39493_v6 = vcombine.low %v11014_v0, %v11028_v58  ;;  %v1583_v58 = vld [vmem:[#allocation10 + $0xe0] sm:$0xff] }
 0x3f7   : > { %33676 = vmatprep.subr.bf16.mxu0 %v42685_v41  ;;  %v39507_v0 = vpack.c.bf16 %v11983_v36, %v11980_v20  ;;  %v42813_v41 = vld [vmem:[#allocation232_spill] sm:$0xff] }
 0x3f8   : > { %42767 = vst [vmem:[#allocation271_spill] sm:$0xff] %v39493_v6  ;;  %v42814_v27 = vand.u32 4294901760, %v42813_v41 }
 0x3f9   : > { %42769 = vst [vmem:[#allocation273_spill] sm:$0xff] %v39507_v0  ;;  %33708 = vmatprep.subr.bf16.mxu1 %v39507_v0 }
 0x3fa   : > { %33678 = vmatpush1.bf16.msra.mxu0 %v42686_v34  ;;  %v39676_v24 = vsub.f32 %v42813_v41, %v42814_v27  ;;  %v42817_v41 = vld [vmem:[#allocation235_spill] sm:$0xff] }
 0x3fb   : > { %33680 = vmatprep.subr.bf16.mxu0 %v42687_v13  ;;  %v39549_v13 = vsub.f32 %v1582_v11, %v11983_v36 }
 0x3fc   : > { %v42824_v57 = vand.u32 4294901760, %v39676_v24 }
 0x3fd   : > { %42783 = vst [vmem:[#allocation281_spill] sm:$0xff] %v39549_v13 }
 0x3fe   : > { %33682 = vmatpush1.bf16.msra.mxu0 %v42689_v29  ;;  %v39546_v29 = vsub.f32 %v1581_v3, %v11980_v20 }
 0x3ff   : > { %33684 = vmatprep.subr.bf16.mxu0 %v42692_v2 }
 0x400   : > { %42782 = vst [vmem:[#allocation280_spill] sm:$0xff] %v39546_v29 }
 0x402   : > { %33686 = vmatpush1.bf16.msra.mxu0 %v42697_v56 }
 0x403   : > { %33880 = vmatprep.subr.bf16.mxu0 %v42762_v30 }
 0x405   : > { %11893 = vmatmul.mubr.f32.vlgmr.msra.gmra.mrb[18].mxu0 %v42753_v21  ;;  %v10900_v21 = vrot.slane %v10878_v46, %v37722_v15  ;;  %v10918_v46 = vrot.slane %v10908_v44, %v37722_v15 }
 0x406   : > { %33882 = vmatpush1.bf16.msra.mxu0 %v42763_v25  ;;  %12848 = vmatprep.mubr.f32.mxu0 %v42267_v60 }
 0x407   : > { %33884 = vmatprep.subr.bf16.mxu0 %v42764_v26  ;;  %v10910_v8 = vcombine.low %v10900_v21, %v10907_v48  ;;  %v10911_v47 = vcombine.high %v10900_v21, %v10907_v48  ;;  %v39495_v21 = vcombine.low %v11021_v53, %v11035_v7  ;;  %v11986_v53 = vand.u32 4294901760, %v1583_v58 }
 0x409   : > { %v10932_v23 = vrot.slane %v10910_v8, %v37722_v15  ;;  %v10939_v4 = vrot.slane %v10911_v47, %v37722_v15  ;;  %42768 = vst [vmem:[#allocation272_spill] sm:$0xff] %v39495_v21 }
 0x40b   : > { %v39489_v31 = vcombine.low %v10918_v46, %v10932_v23  ;;  %v39491_v33 = vcombine.low %v10925_v17, %v10939_v4  ;;  %v1565_v46 = vld [vmem:[#allocation10 + $0x50] sm:$0xff]  ;;  %v1566_v23 = vld [vmem:[#allocation10 + $0x58] sm:$0xff] }
 0x40c   : > { %v11932_v17 = vand.u32 4294901760, %v1565_v46  ;;  %v11935_v4 = vand.u32 4294901760, %v1566_v23 }
 0x40d   : > { %42765 = vst [vmem:[#allocation154_spill] sm:$0xff] %v39489_v31  ;;  %42766 = vst [vmem:[#allocation270_spill] sm:$0xff] %v39491_v33 }
 0x40e   : > { %v39551_v34 = vsub.f32 %v1565_v46, %v11932_v17 }
 0x40f   : > { %v9015_v9 = vpop.f32.mrb[16].mxu0  ;;  %v9506_v61 = vpop.f32.mrb[16].mxu1 }
 0x410   : > { %v10944_v48 = vmul.f32 %v39489_v31, %v9015_v9  ;;  %v9017_v22 = vpop.f32.mrb[17].mxu0  ;;  %v9508_v50 = vpop.f32.mrb[17].mxu1  ;;  %v11040_v15 = vmul.f32 %v39493_v6, %v9506_v61  ;;  %v1567_v9 = vld [vmem:[#allocation10 + $0x60] sm:$0xff]  ;;  %v1568_v61 = vld [vmem:[#allocation10 + $0x68] sm:$0xff]  ;;  %v1586_v31 = vld [vmem:[#allocation10 + $0xf8] sm:$0xff]  ;;  %42784 = vst [vmem:[#allocation282_spill] sm:$0xff] %v39551_v34 }
 0x411   : > { %v10945_v40 = vmul.f32 %v39491_v33, %v9017_v22  ;;  %v11041_v8 = vmul.f32 %v39495_v21, %v9508_v50  ;;  %v11941_v22 = vand.u32 4294901760, %v1568_v61  ;;  %v1585_v33 = vld [vmem:[#allocation10 + $0xf0] sm:$0xff]  ;;  %v11995_v38 = vand.u32 4294901760, %v1586_v31 }
 0x412   : > { %v10946_v51 = vadd.f32 %v10944_v48, %v39439_v43  ;;  %v39509_v43 = vpack.c.bf16 %v11935_v4, %v11932_v17  ;;  %v11938_v48 = vand.u32 4294901760, %v1567_v9  ;;  %v11992_v26 = vand.u32 4294901760, %v1585_v33 }
 0x413   : > { %v10947_v44 = vadd.f32 %v10945_v40, %v39441_v52  ;;  %v1584_v52 = vld [vmem:[#allocation10 + $0xe8] sm:$0xff]  ;;  %v42772_v40 = vld [vmem:[#allocation227_spill] sm:$0xff] }
 0x414   : > { %v39503_v45 = vadd.f32 %v11040_v15, %v10946_v51  ;;  %42770 = vst [vmem:[#allocation274_spill] sm:$0xff] %v39509_v43  ;;  %v11989_v7 = vand.u32 4294901760, %v1584_v52  ;;  %33710 = vmatpush3.bf16.msra.mxu1 %v39509_v43  ;;  %v42773_v51 = vand.u32 4294901760, %v42772_v40  ;;  %v39525_v6 = vpack.c.bf16 %v11941_v22, %v11938_v48 }
 0x415   : > { %v39505_v47 = vadd.f32 %v11041_v8, %v10947_v44  ;;  %v42775_v44 = vld [vmem:[#allocation228_spill] sm:$0xff]  ;;  %v39572_v17 = vsub.f32 %v1567_v9, %v11938_v48 }
 0x416   : > { %v39513_v50 = vpack.c.bf16 %v11989_v7, %v11986_v53  ;;  %v39518_v15 = vsub.f32 %v42772_v40, %v42773_v51  ;;  %v42776_v8 = vand.u32 4294901760, %v42775_v44  ;;  %42778 = vst [vmem:[#allocation276_spill] sm:$0xff] %v39525_v6  ;;  %v11944_v51 = vand.u32 4294901760, %v1569_v32 }
 0x417   : > { %v39566_v36 = vsub.f32 %v1584_v52, %v11989_v7  ;;  %42788 = vst [vmem:[#allocation286_spill] sm:$0xff] %v39572_v17  ;;  %v42044_v7 = vand.u32 4294901760, %v39572_v17 }
 0x418   : > { %42771 = vst [vmem:[#allocation275_spill] sm:$0xff] %v39513_v50  ;;  %42774 = vst [vmem:[#allocation227_spill] sm:$0xff] %v39518_v15  ;;  %v39523_v21 = vsub.f32 %v42775_v44, %v42776_v8  ;;  %33712 = vmatprep.subr.bf16.mxu1 %v39513_v50  ;;  %v42036_v63 = vand.u32 4294901760, %v39518_v15  ;;  %v39531_v44 = vpack.c.bf16 %v11995_v38, %v11992_v26 }
 0x419   : > { %33714 = vmatpush3.bf16.msra.mxu1 %v39525_v6  ;;  %v39539_v39 = vpack.c.bf16 %v11947_v28, %v11944_v51  ;;  %42787 = vst [vmem:[#allocation285_spill] sm:$0xff] %v39566_v36 }
 0x41a   : > { %42777 = vst [vmem:[#allocation228_spill] sm:$0xff] %v39523_v21  ;;  %v42039_v40 = vand.u32 4294901760, %v39523_v21  ;;  %42779 = vst [vmem:[#allocation277_spill] sm:$0xff] %v39531_v44  ;;  %v12129_v8 = vsub.f32 %v39518_v15, %v42036_v63  ;;  %33716 = vmatprep.subr.bf16.mxu1 %v39531_v44  ;;  %v42051_v63 = vand.u32 4294901760, %v39546_v29 }
 0x41b   : > { %42780 = vst [vmem:[#allocation278_spill] sm:$0xff] %v39539_v39 }
 0x41c   : > { %v12136_v16 = vsub.f32 %v39523_v21, %v42039_v40  ;;  %v12130_v62 = vand.u32 4294901760, %v12129_v8  ;;  %v12199_v40 = vsub.f32 %v39546_v29, %v42051_v63  ;;  %v39557_v8 = vsub.f32 %v1566_v23, %v11935_v4 }
 0x41d   : > { %33718 = vmatpush3.bf16.msra.mxu1 %v39539_v39 }
 0x41e   : > { %v12137_v56 = vand.u32 4294901760, %v12136_v16  ;;  %v42040_v16 = vand.u32 4294901760, %v39549_v13  ;;  %42785 = vst [vmem:[#allocation283_spill] sm:$0xff] %v39557_v8  ;;  %v12200_v3 = vand.u32 4294901760, %v12199_v40  ;;  %v42042_v20 = vand.u32 4294901760, %v39557_v8 }
 0x41f   : > { %v39578_v40 = vsub.f32 %v1568_v61, %v11941_v22  ;;  %v12101_v22 = vsub.f32 %v39572_v17, %v42044_v7 }
 0x420   : > { %v39543_v2 = vpack.c.bf16 %v12137_v56, %v12130_v62  ;;  %v42041_v62 = vand.u32 4294901760, %v39551_v34  ;;  %v39560_v56 = vsub.f32 %v1583_v58, %v11986_v53  ;;  %v12206_v11 = vsub.f32 %v39549_v13, %v42040_v16 }
 0x421   : > { %v12094_v58 = vsub.f32 %v39557_v8, %v42042_v20  ;;  %v42045_v53 = vand.u32 4294901760, %v39566_v36  ;;  %42789 = vst [vmem:[#allocation287_spill] sm:$0xff] %v39578_v40  ;;  %v42050_v20 = vand.u32 4294901760, %v39578_v40 }
 0x422   : > { %42781 = vst [vmem:[#allocation279_spill] sm:$0xff] %v39543_v2  ;;  %33720 = vmatprep.subr.bf16.mxu1 %v39543_v2  ;;  %42786 = vst [vmem:[#allocation284_spill] sm:$0xff] %v39560_v56  ;;  %v12087_v46 = vsub.f32 %v39551_v34, %v42041_v62  ;;  %v42043_v23 = vand.u32 4294901760, %v39560_v56  ;;  %v12207_v4 = vand.u32 4294901760, %v12206_v11  ;;  %v39584_v62 = vsub.f32 %v1585_v33, %v11992_v26 }
 0x423   : > { %v12095_v48 = vand.u32 4294901760, %v12094_v58  ;;  %v12220_v11 = vsub.f32 %v39566_v36, %v42045_v53  ;;  %v12102_v58 = vand.u32 4294901760, %v12101_v22  ;;  %v39609_v53 = vsub.f32 %v1570_v10, %v11947_v28 }
 0x424   : > { %v12088_v16 = vand.u32 4294901760, %v12087_v46  ;;  %v12213_v52 = vsub.f32 %v39560_v56, %v42043_v23  ;;  %42790 = vst [vmem:[#allocation288_spill] sm:$0xff] %v39584_v62  ;;  %v39586_v9 = vpack.c.bf16 %v12207_v4, %v12200_v3  ;;  %v42049_v46 = vand.u32 4294901760, %v39584_v62 }
 0x425   : > { %v39596_v23 = vsub.f32 %v1586_v31, %v11995_v38  ;;  %v12221_v33 = vand.u32 4294901760, %v12220_v11  ;;  %v12108_v3 = vsub.f32 %v39578_v40, %v42050_v20  ;;  %v39603_v4 = vsub.f32 %v1569_v32, %v11944_v51  ;;  %42795 = vst [vmem:[#allocation293_spill] sm:$0xff] %v39609_v53  ;;  %v42811_v20 = vld [vmem:[#allocation231_spill] sm:$0xff] }
 0x426   : > { %42791 = vst [vmem:[#allocation289_spill] sm:$0xff] %v39586_v9  ;;  %v12214_v61 = vand.u32 4294901760, %v12213_v52  ;;  %v39598_v26 = vpack.c.bf16 %v12095_v48, %v12088_v16  ;;  %v12227_v52 = vsub.f32 %v39584_v62, %v42049_v46  ;;  %v42047_v51 = vand.u32 4294901760, %v39609_v53 }
 0x427   : > { %42792 = vst [vmem:[#allocation290_spill] sm:$0xff] %v39596_v23  ;;  %42794 = vst [vmem:[#allocation292_spill] sm:$0xff] %v39603_v4  ;;  %v42046_v7 = vand.u32 4294901760, %v39596_v23  ;;  %v12109_v31 = vand.u32 4294901760, %v12108_v3  ;;  %v42048_v16 = vand.u32 4294901760, %v39603_v4  ;;  %v42812_v63 = vand.u32 4294901760, %v42811_v20 }
 0x428   : > { %42793 = vst [vmem:[#allocation291_spill] sm:$0xff] %v39598_v26  ;;  %v39611_v38 = vpack.c.bf16 %v12221_v33, %v12214_v61  ;;  %v12228_v48 = vand.u32 4294901760, %v12227_v52  ;;  %v12122_v10 = vsub.f32 %v39609_v53, %v42047_v51  ;;  %v39630_v52 = vpack.c.bf16 %v39523_v21, %v39518_v15  ;;  %v42809_v51 = vld [vmem:[#allocation230_spill] sm:$0xff] }
 0x429   : > { %v12234_v32 = vsub.f32 %v39596_v23, %v42046_v7  ;;  %v39618_v11 = vpack.c.bf16 %v12109_v31, %v12102_v58  ;;  %v12115_v22 = vsub.f32 %v39603_v4, %v42048_v16  ;;  %v39636_v58 = vpack.c.bf16 %v39549_v13, %v39546_v29 }
 0x42a   : > { %42796 = vst [vmem:[#allocation294_spill] sm:$0xff] %v39611_v38  ;;  %v12123_v3 = vand.u32 4294901760, %v12122_v10  ;;  %42799 = vst [vmem:[#allocation297_spill] sm:$0xff] %v39630_v52  ;;  %v39640_v31 = vpack.c.bf16 %v39557_v8, %v39551_v34  ;;  %v42807_v10 = vld [vmem:[#allocation229_spill] sm:$0xff]  ;;  %v42810_v16 = vand.u32 4294901760, %v42809_v51  ;;  %v39671_v2 = vsub.f32 %v42811_v20, %v42812_v63  ;;  %v42840_v34 = vld [vmem:[#allocation248_spill] sm:$0xff] }
 0x42b   : > { %42797 = vst [vmem:[#allocation295_spill] sm:$0xff] %v39618_v11  ;;  %v12235_v28 = vand.u32 4294901760, %v12234_v32  ;;  %v12116_v61 = vand.u32 4294901760, %v12115_v22  ;;  %42801 = vst [vmem:[#allocation299_spill] sm:$0xff] %v39636_v58  ;;  %v39644_v32 = vpack.c.bf16 %v39566_v36, %v39560_v56  ;;  %v39652_v22 = vpack.c.bf16 %v39596_v23, %v39584_v62 }
 0x42c   : > { %42802 = vst [vmem:[#allocation300_spill] sm:$0xff] %v39640_v31  ;;  %v39666_v46 = vsub.f32 %v42809_v51, %v42810_v16  ;;  %v42815_v16 = vld [vmem:[#allocation234_spill] sm:$0xff]  ;;  %v42818_v20 = vand.u32 4294901760, %v42817_v41  ;;  %v42823_v1 = vand.u32 4294901760, %v39671_v2  ;;  %v42842_v13 = vand.u32 4294901760, %v39152_v5 }
 0x42d   : > { %v39626_v33 = vpack.c.bf16 %v12235_v28, %v12228_v48  ;;  %v39632_v7 = vpack.c.bf16 %v12123_v3, %v12116_v61  ;;  %42803 = vst [vmem:[#allocation301_spill] sm:$0xff] %v39644_v32  ;;  %v39648_v48 = vpack.c.bf16 %v39578_v40, %v39572_v17  ;;  %42805 = vst [vmem:[#allocation303_spill] sm:$0xff] %v39652_v22  ;;  %v42808_v61 = vand.u32 4294901760, %v42807_v10  ;;  %v42833_v40 = vld [vmem:[#allocation243_spill] sm:$0xff] }
 0x42e   : > { %v39656_v28 = vpack.c.bf16 %v39609_v53, %v39603_v4  ;;  %v42816_v51 = vand.u32 4294901760, %v42815_v16  ;;  %v39696_v49 = vsub.f32 %v42817_v41, %v42818_v20  ;;  %v12150_v41 = vsub.f32 %v39676_v24, %v42824_v57  ;;  %v42827_v20 = vld [vmem:[#allocation240_spill] sm:$0xff] }
 0x42f   : > { %42798 = vst [vmem:[#allocation296_spill] sm:$0xff] %v39626_v33  ;;  %42800 = vst [vmem:[#allocation298_spill] sm:$0xff] %v39632_v7  ;;  %v39661_v3 = vsub.f32 %v42807_v10, %v42808_v61  ;;  %v42061_v10 = vand.u32 4294901760, %v39666_v46  ;;  %v42819_v61 = vld [vmem:[#allocation236_spill] sm:$0xff] }
 0x430   : > { %42804 = vst [vmem:[#allocation302_spill] sm:$0xff] %v39648_v48  ;;  %42806 = vst [vmem:[#allocation304_spill] sm:$0xff] %v39656_v28  ;;  %v39685_v59 = vsub.f32 %v42815_v16, %v42816_v51  ;;  %v42820_v18 = vand.u32 4294901760, %v42819_v61  ;;  %v42821_v16 = vld [vmem:[#allocation237_spill] sm:$0xff] }
 0x431   : > { %v42060_v12 = vand.u32 4294901760, %v39661_v3  ;;  %v12024_v27 = vsub.f32 %v39666_v46, %v42061_v10  ;;  %v42822_v51 = vand.u32 4294901760, %v42821_v16  ;;  %v12143_v10 = vsub.f32 %v39671_v2, %v42823_v1  ;;  %v42825_v1 = vld [vmem:[#allocation239_spill] sm:$0xff] }
 0x432   : > { %v39701_v55 = vsub.f32 %v42819_v61, %v42820_v18  ;;  %v42826_v4 = vand.u32 4294901760, %v42825_v1  ;;  %v42831_v60 = vand.u32 4294901760, %v39685_v59 }
 0x433   : > { %v12017_v63 = vsub.f32 %v39661_v3, %v42060_v12  ;;  %v39706_v54 = vsub.f32 %v42821_v16, %v42822_v51  ;;  %v12025_v30 = vand.u32 4294901760, %v12024_v27  ;;  %v12144_v53 = vand.u32 4294901760, %v12143_v10 }
 0x434   : > { %v39723_v23 = vsub.f32 %v42825_v1, %v42826_v4  ;;  %v12151_v51 = vand.u32 4294901760, %v12150_v41  ;;  %v12031_v4 = vsub.f32 %v39685_v59, %v42831_v60  ;;  %v42835_v41 = vand.u32 4294901760, %v39701_v55 }
 0x435   : > { %v12018_v61 = vand.u32 4294901760, %v12017_v63  ;;  %v42829_v63 = vld [vmem:[#allocation242_spill] sm:$0xff] }
 0x436   : > { %v42830_v27 = vand.u32 4294901760, %v42829_v63  ;;  %v12157_v60 = vsub.f32 %v39701_v55, %v42835_v41  ;;  %v39774_v41 = vpack.c.bf16 %v12151_v51, %v12144_v53  ;;  %v12032_v8 = vand.u32 4294901760, %v12031_v4 }
 0x437   : > { %v39745_v62 = vpack.c.bf16 %v12025_v30, %v12018_v61 }
 0x438   : > { %42839 = vst [vmem:[#allocation229_spill] sm:$0xff] %v39774_v41 }
 0x4d8   : > { %v11894_v12 = vpop.f32.mrb[18].mxu0 }
 0x4d9   : > { %v11899_v25 = vmul.f32 %v11894_v12, %v39503_v45  ;;  %v11896_v18 = vpop.f32.mrb[19].mxu0  ;;  %v42828_v12 = vand.u32 4294901760, %v42827_v20 }
 0x4da   : > { %v11900_v16 = vmul.f32 %v11896_v18, %v39505_v47  ;;  %v39735_v47 = vsub.f32 %v42829_v63, %v42830_v27  ;;  %v42834_v63 = vand.u32 4294901760, %v42833_v40 }
 0x4db   : > { %v39725_v57 = vand.u32 4294901760, %v11899_v25  ;;  %v39730_v45 = vsub.f32 %v42827_v20, %v42828_v12  ;;  %v42832_v20 = vand.u32 4294901760, %v39696_v49 }
 0x4dc   : > { %v39737_v18 = vand.u32 4294901760, %v11900_v16  ;;  %v39753_v27 = vsub.f32 %v42833_v40, %v42834_v63  ;;  %v42837_v63 = vld [vmem:[#allocation247_spill] sm:$0xff] }
 0x4dd   : > { %v39743_v1 = vsub.f32 %v11899_v25, %v39725_v57  ;;  %v12038_v12 = vsub.f32 %v39696_v49, %v42832_v20  ;;  %v42836_v25 = vand.u32 4294901760, %v39706_v54  ;;  %v42838_v36 = vand.u32 4294901760, %v42837_v63 }
 0x4de   : > { %v39756_v10 = vsub.f32 %v11900_v16, %v39737_v18  ;;  %v42846_v39 = vand.u32 4294901760, %v39730_v45  ;;  %v42850_v15 = vand.u32 4294901760, %v39753_v27 }
 0x4df   : > { %v12164_v30 = vsub.f32 %v39706_v54, %v42836_v25  ;;  %v42074_v20 = vand.u32 4294901760, %v39743_v1  ;;  %v39771_v16 = vsub.f32 %v42837_v63, %v42838_v36  ;;  %v42841_v25 = vand.u32 4294901760, %v42840_v34  ;;  %v42843_v63 = vld [vmem:[#allocation155_spill] sm:$0xff] }
 0x4e0   : > { %v42079_v56 = vand.u32 4294901760, %v39756_v10  ;;  %v39788_v36 = vsub.f32 %v39152_v5, %v42842_v13  ;;  %v42844_v53 = vand.u32 4294901760, %v42843_v63  ;;  %v12039_v4 = vand.u32 4294901760, %v12038_v12 }
 0x4e1   : > { %v39779_v61 = vsub.f32 %v42840_v34, %v42841_v25  ;;  %v12006_v17 = vsub.f32 %v39743_v1, %v42074_v20  ;;  %v12158_v25 = vand.u32 4294901760, %v12157_v60  ;;  %v42845_v20 = vand.u32 4294901760, %v39723_v23 }
 0x4e2   : > { %v39793_v51 = vsub.f32 %v42843_v63, %v42844_v53  ;;  %v12000_v34 = vsub.f32 %v39756_v10, %v42079_v56  ;;  %v12165_v29 = vand.u32 4294901760, %v12164_v30  ;;  %v12052_v5 = vsub.f32 %v39730_v45, %v42846_v39 }
 0x4e3   : > { %v12045_v40 = vsub.f32 %v39723_v23, %v42845_v20  ;;  %v42847_v13 = vand.u32 4294901760, %v39735_v47  ;;  %v42848_v12 = vand.u32 4294901760, %v39185_v14  ;;  %v42849_v30 = vand.u32 4294901760, %v39187_v19 }
 0x4e4   : > { %v12001_v21 = vand.u32 4294901760, %v12000_v34  ;;  %v12007_v39 = vand.u32 4294901760, %v12006_v17  ;;  %v42083_v53 = vand.u32 4294901760, %v39788_v36  ;;  %v42084_v34 = vand.u32 4294901760, %v39793_v51 }
 0x4e5   : > { %v12171_v63 = vsub.f32 %v39735_v47, %v42847_v13  ;;  %v39812_v60 = vsub.f32 %v39185_v14, %v42848_v12  ;;  %v39817_v20 = vsub.f32 %v39187_v19, %v42849_v30  ;;  %v12178_v13 = vsub.f32 %v39753_v27, %v42850_v15 }
 0x4e6   : > { %12002 = vmatprep.mubr.f32.mxu1 %v12001_v21  ;;  %v39824_v56 = vpack.c.bf16 %v12039_v4, %v12032_v8  ;;  %v39826_v14 = vpack.c.bf16 %v12165_v29, %v12158_v25  ;;  %v12046_v12 = vand.u32 4294901760, %v12045_v40  ;;  %v12053_v44 = vand.u32 4294901760, %v12052_v5 }
 0x4e7   : > { %12008 = vmatmul.mubr.f32.vlgmr.msra.gmra.mrb[18].mxu1 %v12007_v39  ;;  %v42853_v19 = vand.u32 4294901760, %v39771_v16  ;;  %v42854_v17 = vand.u32 4294901760, %v39779_v61  ;;  %v42085_v21 = vand.u32 4294901760, %v39812_v60  ;;  %v42086_v8 = vand.u32 4294901760, %v39817_v20 }
 0x4e8   : > { %42851 = vst [vmem:[#allocation230_spill] sm:$0xff] %v39824_v56  ;;  %42852 = vst [vmem:[#allocation231_spill] sm:$0xff] %v39826_v14  ;;  %33722 = vmatpush3.bf16.msra.mxu1 %v39745_v62  ;;  %12238 = vmatprep.mubr.f32.mxu1 %v39737_v18  ;;  %v12172_v29 = vand.u32 4294901760, %v12171_v63  ;;  %v12179_v40 = vand.u32 4294901760, %v12178_v13  ;;  %v12185_v4 = vsub.f32 %v39788_v36, %v42083_v53 }
 0x4e9   : > { %v12059_v15 = vsub.f32 %v39771_v16, %v42853_v19  ;;  %v12066_v30 = vsub.f32 %v39779_v61, %v42854_v17  ;;  %33724 = vmatprep.subr.bf16.mxu1 %v39774_v41  ;;  %v12192_v25 = vsub.f32 %v39793_v51, %v42084_v34  ;;  %v39845_v5 = vpack.c.bf16 %v12053_v44, %v12046_v12 }
 0x4ea   : > { %v12073_v17 = vsub.f32 %v39812_v60, %v42085_v21  ;;  %v12080_v63 = vsub.f32 %v39817_v20, %v42086_v8  ;;  %v39855_v13 = vpack.c.bf16 %v12179_v40, %v12172_v29  ;;  %v12186_v53 = vand.u32 4294901760, %v12185_v4  ;;  %v42872_v8 = vld [vmem:[#allocation244_spill] sm:$0xff] }
 0x4eb   : > { %42855 = vst [vmem:[#allocation232_spill] sm:$0xff] %v39845_v5  ;;  %v12060_v39 = vand.u32 4294901760, %v12059_v15  ;;  %v12067_v19 = vand.u32 4294901760, %v12066_v30  ;;  %v12193_v34 = vand.u32 4294901760, %v12192_v25  ;;  %v39888_v29 = vpack.c.bf16 %v39696_v49, %v39685_v59 }
 0x4ec   : > { %33726 = vmatpush3.bf16.msra.mxu1 %v39824_v56  ;;  %42856 = vst [vmem:[#allocation234_spill] sm:$0xff] %v39855_v13  ;;  %v12074_v12 = vand.u32 4294901760, %v12073_v17  ;;  %v12081_v15 = vand.u32 4294901760, %v12080_v63  ;;  %v39893_v40 = vpack.c.bf16 %v39706_v54, %v39701_v55  ;;  %v39898_v4 = vpack.c.bf16 %v39730_v45, %v39723_v23  ;;  %v42869_v63 = vld [vmem:[#allocation238_spill] sm:$0xff] }
 0x4ed   : > { %33728 = vmatprep.subr.bf16.mxu1 %v39826_v14  ;;  %v39858_v44 = vpack.c.bf16 %v12067_v19, %v12060_v39  ;;  %v39861_v30 = vpack.c.bf16 %v12193_v34, %v12186_v53  ;;  %v39876_v53 = vpack.c.bf16 %v39666_v46, %v39661_v3  ;;  %v39881_v34 = vpack.c.bf16 %v39676_v24, %v39671_v2 }
 0x4ee   : > { %v39864_v21 = vpack.c.bf16 %v12081_v15, %v12074_v12  ;;  %42862 = vst [vmem:[#allocation242_spill] sm:$0xff] %v39888_v29  ;;  %42863 = vst [vmem:[#allocation243_spill] sm:$0xff] %v39893_v40  ;;  %v39903_v25 = vpack.c.bf16 %v39753_v27, %v39735_v47  ;;  %v39908_v39 = vpack.c.bf16 %v39779_v61, %v39771_v16  ;;  %v42870_v12 = vld [vmem:[#allocation241_spill] sm:$0xff]  ;;  %v42871_v15 = vand.u32 4294901760, %v39756_v10 }
 0x4ef   : > { %42857 = vst [vmem:[#allocation235_spill] sm:$0xff] %v39858_v44  ;;  %42858 = vst [vmem:[#allocation236_spill] sm:$0xff] %v39861_v30  ;;  %v39913_v19 = vpack.c.bf16 %v39793_v51, %v39788_v36  ;;  %v39918_v17 = vpack.c.bf16 %v39817_v20, %v39812_v60 }
 0x4f0   : > { %33730 = vmatpush3.bf16.msra.mxu1 %v39845_v5  ;;  %42859 = vst [vmem:[#allocation237_spill] sm:$0xff] %v39864_v21  ;;  %42860 = vst [vmem:[#allocation239_spill] sm:$0xff] %v39876_v53 }
 0x4f1   : > { %33732 = vmatprep.subr.bf16.mxu1 %v39855_v13  ;;  %42861 = vst [vmem:[#allocation240_spill] sm:$0xff] %v39881_v34  ;;  %42864 = vst [vmem:[#allocation247_spill] sm:$0xff] %v39898_v4 }
 0x4f2   : > { %42865 = vst [vmem:[#allocation248_spill] sm:$0xff] %v39903_v25  ;;  %42866 = vst [vmem:[#allocation155_spill] sm:$0xff] %v39908_v39 }
 0x4f3   : > { %42867 = vst [vmem:[#allocation305_spill] sm:$0xff] %v39913_v19  ;;  %42868 = vst [vmem:[#allocation306_spill] sm:$0xff] %v39918_v17 }
 0x4f4   : > { %33734 = vmatpush3.bf16.msra.mxu1 %v39858_v44 }
 0x4f5   : > { %33736 = vmatprep.subr.bf16.mxu1 %v39861_v30 }
 0x4f8   : > { %33738 = vmatpush3.bf16.msra.mxu1 %v39864_v21 }
 0x4f9   : > { %33740 = vmatprep.subr.bf16.mxu1 %v39586_v9 }
 0x4fc   : > { %33742 = vmatpush3.bf16.msra.mxu1 %v39598_v26 }
 0x4fd   : > { %33744 = vmatprep.subr.bf16.mxu1 %v39611_v38 }
 0x500   : > { %33746 = vmatpush3.bf16.msra.mxu1 %v39618_v11 }
 0x501   : > { %33748 = vmatprep.subr.bf16.mxu1 %v39626_v33 }
 0x504   : > { %33750 = vmatpush3.bf16.msra.mxu1 %v39632_v7 }
 0x505   : > { %33752 = vmatprep.subr.bf16.mxu1 %v39630_v52 }
 0x507   : > { %12240 = vmatmul.mubr.f32.vlgmr.msra.gmra.mrb[20].mxu1 %v39725_v57 }
 0x508   : > { %33754 = vmatpush3.bf16.msra.mxu1 %v39876_v53  ;;  %12375 = vmatprep.mubr.f32.mxu1 %v39756_v10  ;;  %v42877_v10 = vld [vmem:[#allocation277_spill] sm:$0xff] }
 0x509   : > { %33756 = vmatprep.subr.bf16.mxu1 %v39881_v34  ;;  %v42888_v34 = vand.u32 4294901760, %v39676_v24  ;;  %v42895_v24 = vand.u32 4294901760, %v39706_v54  ;;  %v42903_v54 = vand.u32 4294901760, %v39771_v16 }
 0x50c   : > { %33758 = vmatpush3.bf16.msra.mxu1 %v39888_v29  ;;  %v42887_v29 = vand.u32 4294901760, %v39671_v2  ;;  %v42894_v2 = vand.u32 4294901760, %v39701_v55  ;;  %v42904_v55 = vand.u32 4294901760, %v39779_v61  ;;  %v42912_v61 = vld [vmem:[#allocation280_spill] sm:$0xff] }
 0x50d   : > { %33760 = vmatprep.subr.bf16.mxu1 %v39893_v40  ;;  %v42913_v16 = vand.u32 4294901760, %v42912_v61  ;;  %v42932_v61 = vld [vmem:[#allocation288_spill] sm:$0xff] }
 0x50e   : > { %v39964_v53 = vpack.c.bf16 %v42888_v34, %v42887_v29  ;;  %v39981_v34 = vpack.c.bf16 %v42895_v24, %v42894_v2  ;;  %v42898_v29 = vand.u32 4294901760, %v39730_v45  ;;  %v42907_v45 = vand.u32 4294901760, %v39793_v51  ;;  %v42919_v24 = vld [vmem:[#allocation283_spill] sm:$0xff] }
 0x510   : > { %33762 = vmatpush3.bf16.msra.mxu1 %v39898_v4  ;;  %v42885_v4 = vand.u32 4294901760, %v39666_v46  ;;  %42889 = vst [vmem:[#allocation244_spill] sm:$0xff] %v39964_v53  ;;  %v42892_v46 = vand.u32 4294901760, %v39696_v49  ;;  %v42901_v49 = vand.u32 4294901760, %v39753_v27  ;;  %v42910_v27 = vand.u32 4294901760, %v39817_v20 }
 0x511   : > { %33764 = vmatprep.subr.bf16.mxu1 %v39903_v25  ;;  %v42884_v25 = vand.u32 4294901760, %v39661_v3 }
 0x513   : > { %v39957_v40 = vpack.c.bf16 %v42885_v4, %v42884_v25 }
 0x514   : > { %33766 = vmatpush3.bf16.msra.mxu1 %v39908_v39  ;;  %v42883_v39 = vld [vmem:[#allocation278_spill] sm:$0xff] }
 0x515   : > { %33768 = vmatprep.subr.bf16.mxu1 %v39913_v19  ;;  %42886 = vst [vmem:[#allocation241_spill] sm:$0xff] %v39957_v40 }
 0x518   : > { %33770 = vmatpush3.bf16.msra.mxu1 %v39918_v17 }
 0x519   : > { %33772 = vmatprep.subr.bf16.mxu1 %v39636_v58  ;;  %v42880_v58 = vld [vmem:[#allocation228_spill] sm:$0xff] }
 0x51a   : > { %v42881_v17 = vand.u32 4294901760, %v42880_v58  ;;  %v42890_v58 = vand.u32 4294901760, %v39743_v1 }
 0x51c   : > { %33774 = vmatpush3.bf16.msra.mxu1 %v39640_v31  ;;  %v42873_v31 = vld [vmem:[#allocation245_spill] sm:$0xff] }
 0x51d   : > { %33776 = vmatprep.subr.bf16.mxu1 %v39644_v32  ;;  %v42874_v32 = vld [vmem:[#allocation246_spill] sm:$0xff] }
 0x51e   : > { %42896 = vst [vmem:[#allocation246_spill] sm:$0xff] %v39981_v34 }
 0x520   : > { %33778 = vmatpush3.bf16.msra.mxu1 %v39648_v48  ;;  %v42875_v48 = vld [vmem:[#allocation249_spill] sm:$0xff] }
 0x521   : > { %33780 = vmatprep.subr.bf16.mxu1 %v39652_v22  ;;  %v42876_v22 = vld [vmem:[#allocation250_spill] sm:$0xff] }
 0x524   : > { %33782 = vmatpush3.bf16.msra.mxu1 %v39656_v28 }
 0x525   : > { %33784 = vmatprep.subr.bf16.mxu1 %v42869_v63 }
 0x527   : > { %12378 = vmatmul.mubr.f32.vlgmr.msra.gmra.mrb[22].mxu1 %v39743_v1  ;;  %v42897_v1 = vand.u32 4294901760, %v39723_v23  ;;  %v42906_v23 = vand.u32 4294901760, %v39788_v36  ;;  %v42917_v36 = vld [vmem:[#allocation282_spill] sm:$0xff] }
 0x528   : > { %33786 = vmatpush3.bf16.msra.mxu1 %v42870_v12  ;;  %12482 = vmatprep.mubr.f32.mxu1 %v42871_v15  ;;  %v42878_v15 = vld [vmem:[#allocation227_spill] sm:$0xff]  ;;  %v42918_v51 = vand.u32 4294901760, %v42917_v36 }
 0x529   : > { %33788 = vmatprep.subr.bf16.mxu1 %v42872_v8  ;;  %v42879_v28 = vand.u32 4294901760, %v42878_v15  ;;  %v39988_v4 = vpack.c.bf16 %v42898_v29, %v42897_v1  ;;  %v40009_v15 = vpack.c.bf16 %v42907_v45, %v42906_v23  ;;  %v42920_v1 = vand.u32 4294901760, %v42919_v24  ;;  %v42929_v45 = vld [vmem:[#allocation287_spill] sm:$0xff] }
 0x52b   : > { %v39950_v19 = vpack.c.bf16 %v42881_v17, %v42879_v28  ;;  %v42891_v28 = vand.u32 4294901760, %v39685_v59  ;;  %42899 = vst [vmem:[#allocation227_spill] sm:$0xff] %v39988_v4  ;;  %v42900_v59 = vand.u32 4294901760, %v39735_v47  ;;  %v40002_v17 = vpack.c.bf16 %v42904_v55, %v42903_v54  ;;  %42908 = vst [vmem:[#allocation308_spill] sm:$0xff] %v40009_v15  ;;  %v42927_v55 = vld [vmem:[#allocation286_spill] sm:$0xff] }
 0x52c   : > { %33790 = vmatpush3.bf16.msra.mxu1 %v42873_v31  ;;  %v42909_v47 = vand.u32 4294901760, %v39812_v60  ;;  %v40030_v29 = vpack.c.bf16 %v42920_v1, %v42918_v51  ;;  %v42922_v60 = vld [vmem:[#allocation284_spill] sm:$0xff]  ;;  %v42928_v23 = vand.u32 4294901760, %v42927_v55  ;;  %v42939_v1 = vld [vmem:[#allocation293_spill] sm:$0xff] }
 0x52d   : > { %33792 = vmatprep.subr.bf16.mxu1 %v42874_v32  ;;  %42882 = vst [vmem:[#allocation238_spill] sm:$0xff] %v39950_v19  ;;  %v39974_v3 = vpack.c.bf16 %v42892_v46, %v42891_v28  ;;  %v39995_v25 = vpack.c.bf16 %v42901_v49, %v42900_v59  ;;  %42905 = vst [vmem:[#allocation307_spill] sm:$0xff] %v40002_v17  ;;  %v42914_v28 = vld [vmem:[#allocation281_spill] sm:$0xff]  ;;  %v42923_v20 = vand.u32 4294901760, %v42922_v60  ;;  %v42937_v51 = vld [vmem:[#allocation292_spill] sm:$0xff]  ;;  %v42940_v60 = vand.u32 4294901760, %v42939_v1 }
 0x52e   : > { %v42915_v46 = vand.u32 4294901760, %v42914_v28  ;;  %42921 = vst [vmem:[#allocation281_spill] sm:$0xff] %v40030_v29  ;;  %v42924_v59 = vld [vmem:[#allocation285_spill] sm:$0xff]  ;;  %v42934_v28 = vld [vmem:[#allocation290_spill] sm:$0xff]  ;;  %v42938_v24 = vand.u32 4294901760, %v42937_v51 }
 0x52f   : > { %42893 = vst [vmem:[#allocation245_spill] sm:$0xff] %v39974_v3  ;;  %42902 = vst [vmem:[#allocation228_spill] sm:$0xff] %v39995_v25  ;;  %v42925_v49 = vand.u32 4294901760, %v42924_v59  ;;  %v42943_v59 = vld [vmem:[#allocation22_spill] sm:$0xff]  ;;  %v42945_v55 = vld [vmem:[#allocation25_spill] sm:$0xff] }
 0x530   : > { %33794 = vmatpush3.bf16.msra.mxu1 %v42875_v48  ;;  %v40023_v2 = vpack.c.bf16 %v42915_v46, %v42913_v16  ;;  %v42933_v16 = vand.u32 4294901760, %v42932_v61  ;;  %v42935_v46 = vand.u32 4294901760, %v42934_v28 }
 0x531   : > { %33796 = vmatprep.subr.bf16.mxu1 %v42876_v22  ;;  %v40037_v54 = vpack.c.bf16 %v42925_v49, %v42923_v20  ;;  %v40058_v20 = vpack.c.bf16 %v42940_v60, %v42938_v24  ;;  %v42944_v49 = vmov 0.0  }
 0x532   : > { %42916 = vst [vmem:[#allocation280_spill] sm:$0xff] %v40023_v2  ;;  %v40051_v36 = vpack.c.bf16 %v42935_v46, %v42933_v16 }
 0x533   : > { %42926 = vst [vmem:[#allocation282_spill] sm:$0xff] %v40037_v54  ;;  %42941 = vst [vmem:[#allocation285_spill] sm:$0xff] %v40058_v20 }
 0x534   : > { %33798 = vmatpush3.bf16.msra.mxu1 %v39202_v37  ;;  %42936 = vst [vmem:[#allocation284_spill] sm:$0xff] %v40051_v36 }
 0x535   : > { %33800 = vmatprep.subr.bf16.mxu1 %v39213_v42 }
 0x538   : > { %33802 = vmatpush3.bf16.msra.mxu1 %v39222_v35 }
 0x539   : > { %33804 = vmatprep.subr.bf16.mxu1 %v39507_v0 }
 0x53c   : > { %33806 = vmatpush3.bf16.msra.mxu1 %v39509_v43 }
 0x53d   : > { %33808 = vmatprep.subr.bf16.mxu1 %v39513_v50 }
 0x540   : > { %33810 = vmatpush3.bf16.msra.mxu1 %v39525_v6 }
 0x541   : > { %33812 = vmatprep.subr.bf16.mxu1 %v42877_v10 }
 0x544   : > { %33814 = vmatpush3.bf16.msra.mxu1 %v42883_v39 }
 0x545   : > { %33816 = vmatprep.subr.bf16.mxu1 %v39950_v19  ;;  %v43104_v19 = vld [vmem:[#allocation189_spill] sm:$0xff] }
 0x547   : > { %12486 = vmatmul.mubr.f32.vlgmr.msra.gmra.mrb[24].mxu1 %v42890_v58  ;;  %v40016_v58 = vpack.c.bf16 %v42910_v27, %v42909_v47  ;;  %v42930_v47 = vand.u32 4294901760, %v42929_v45 }
 0x548   : > { %33818 = vmatpush3.bf16.msra.mxu1 %v39957_v40  ;;  %12652 = vmatprep.mubr.f32.mxu1 %v39737_v18 }
 0x549   : > { %33820 = vmatprep.subr.bf16.mxu1 %v39964_v53  ;;  %42911 = vst [vmem:[#allocation309_spill] sm:$0xff] %v40016_v58  ;;  %v40044_v27 = vpack.c.bf16 %v42930_v47, %v42928_v23 }
 0x54b   : > { %42931 = vst [vmem:[#allocation283_spill] sm:$0xff] %v40044_v27 }
 0x54c   : > { %33822 = vmatpush3.bf16.msra.mxu1 %v39974_v3  ;;  %v43102_v3 = vld [vmem:[#allocation188_spill] sm:$0xff] }
 0x54d   : > { %33824 = vmatprep.subr.bf16.mxu1 %v39981_v34  ;;  %v43101_v34 = vld [vmem:[#allocation279_spill] sm:$0xff] }
 0x550   : > { %33826 = vmatpush3.bf16.msra.mxu1 %v39988_v4  ;;  %v43100_v4 = vld [vmem:[#allocation187_spill] sm:$0xff] }
 0x551   : > { %33828 = vmatprep.subr.bf16.mxu1 %v39995_v25 }
 0x554   : > { %33830 = vmatpush3.bf16.msra.mxu1 %v40002_v17 }
 0x555   : > { %33832 = vmatprep.subr.bf16.mxu1 %v40009_v15 }
 0x558   : > { %33834 = vmatpush3.bf16.msra.mxu1 %v40016_v58 }
 0x559   : > { %33836 = vmatprep.subr.bf16.mxu1 %v40023_v2 }
 0x55c   : > { %33838 = vmatpush3.bf16.msra.mxu1 %v40030_v29 }
 0x55d   : > { %33840 = vmatprep.subr.bf16.mxu1 %v40037_v54 }
 0x560   : > { %33842 = vmatpush3.bf16.msra.mxu1 %v40044_v27 }
 0x561   : > { %33844 = vmatprep.subr.bf16.mxu1 %v40051_v36 }
 0x564   : > { %33846 = vmatpush3.bf16.msra.mxu1 %v40058_v20 }
 0x565   : > { %33848 = vmatprep.subr.bf16.mxu1 %v42869_v63 }
 0x567   : > { %12654 = vmatmul.mubr.f32.vlgmr.msra.gmra.mrb[26].mxu1 %v39725_v57 }
 0x568   : > { %33850 = vmatpush3.bf16.msra.mxu1 %v42870_v12  ;;  %12756 = vmatprep.mubr.f32.mxu1 %v39737_v18  ;;  %v42942_v18 = vld [vmem:[#allocation20_spill] sm:$0xff] }
 0x569   : > { %33852 = vmatprep.subr.bf16.mxu1 %v42872_v8 }
 0x56c   : > { %33854 = vmatpush3.bf16.msra.mxu1 %v42873_v31 }
 0x56d   : > { %33856 = vmatprep.subr.bf16.mxu1 %v42874_v32 }
 0x570   : > { %33858 = vmatpush3.bf16.msra.mxu1 %v42875_v48 }
 0x571   : > { %33860 = vmatprep.subr.bf16.mxu1 %v42876_v22 }
 0x574   : > { %33862 = vmatpush3.bf16.msra.mxu1 %v39202_v37 }
 0x575   : > { %33864 = vmatprep.subr.bf16.mxu1 %v39213_v42 }
 0x578   : > { %33866 = vmatpush3.bf16.msra.mxu1 %v39222_v35 }
 0x579   : > { %33868 = vmatprep.subr.bf16.mxu1 %v39507_v0 }
 0x57c   : > { %33870 = vmatpush3.bf16.msra.mxu1 %v39509_v43 }
 0x57d   : > { %33872 = vmatprep.subr.bf16.mxu1 %v39513_v50 }
 0x580   : > { %33874 = vmatpush3.bf16.msra.mxu1 %v39525_v6 }
 0x581   : > { %33876 = vmatprep.subr.bf16.mxu1 %v42877_v10 }
 0x584   : > { %33878 = vmatpush3.bf16.msra.mxu1 %v42883_v39 }
 0x585   : > { %33904 = vmatprep.subr.bf16.mxu1 %v42942_v18 }
 0x587   : > { %12758 = vmatmul.mubr.f32.vlgmr.msra.gmra.mrb[28].mxu1 %v39725_v57 }
 0x588   : > { %33906 = vmatpush1.bf16.msra.mxu1 %v42943_v59  ;;  %13339 = vmatprep.mubr.f32.mxu1 %v42944_v49 }
 0x589   : > { %33908 = vmatprep.subr.bf16.mxu1 %v42945_v55 }
 0x5ba   : > { %v32417_v23 = vpop.f32.mrb[18].mxu1 }
 0x5bb   : > { %v32418_v45 = vpop.f32.mrb[19].mxu1 }
 0x5bc   : > { %v32419_v47 = vadd.f32 %v32418_v45, %v32417_v23 }
 0x5da   : > { %v32452_v61 = vpop.f32.mrb[20].mxu1 }
 0x5db   : > { %v32453_v16 = vpop.f32.mrb[21].mxu1 }
 0x5dc   : > { %v32454_v28 = vadd.f32 %v32453_v16, %v32452_v61 }
 0x5de   : > { %v12242_v46 = vadd.f32 %v32454_v28, %v32419_v47 }
 0x5fa   : > { %v32487_v51 = vpop.f32.mrb[22].mxu1 }
 0x5fb   : > { %v32488_v24 = vpop.f32.mrb[23].mxu1 }
 0x5fc   : > { %v32489_v1 = vadd.f32 %v32488_v24, %v32487_v51 }
 0x5fe   : > { %v12380_v60 = vadd.f32 %v32489_v1, %v12242_v46 }
 0x61a   : > { %v32522_v20 = vpop.f32.mrb[24].mxu1 }
 0x61b   : > { %v32523_v36 = vpop.f32.mrb[25].mxu1 }
 0x61c   : > { %v32524_v57 = vadd.f32 %v32523_v36, %v32522_v20 }
 0x61e   : > { %v12488_v27 = vadd.f32 %v32524_v57, %v12380_v60  ;;  %v42947_v60 = vld [vmem:[#allocation28_spill] sm:$0xff]  ;;  %v42948_v57 = vld [vmem:[#allocation26_spill] sm:$0xff] }
 0x63a   : > { %v32557_v54 = vpop.f32.mrb[26].mxu1 }
 0x63b   : > { %v32558_v29 = vpop.f32.mrb[27].mxu1 }
 0x63c   : > { %v32559_v2 = vadd.f32 %v32558_v29, %v32557_v54 }
 0x63e   : > { %v12656_v58 = vadd.f32 %v32559_v2, %v12488_v27 }
 0x65a   : > { %v32592_v55 = vpop.f32.mrb[28].mxu1 }
 0x65b   : > { %v32593_v15 = vpop.f32.mrb[29].mxu1 }
 0x65c   : > { %v32594_v17 = vadd.f32 %v32593_v15, %v32592_v55  ;;  %v42946_v55 = vld [vmem:[#allocation24_spill] sm:$0xff] }
 0x65e   : > { %v12760_v23 = vadd.f32 %v32594_v17, %v12656_v58 }
 0x660   : > { %12763 = vadd.xlane.f32.xlu0 %v12760_v23  ;;  %v12766_v45 = vmul.f32 %v12760_v23, %v12760_v23 }
 0x664   : > { %12767 = vadd.xlane.f32.xlu0 %v12766_v45  ;;  %v42950_v45 = vld [vmem:[#allocation27_spill] sm:$0xff] }
 0x6ed   : > { %v12764_v47 = vpop.xlane.xlu0 %12763 }
 0x6ee   : > { %v12765_v61 = vmul.f32 0.0625, %v12764_v47  ;;  %v42951_v47 = vld [vmem:[#allocation30_spill] sm:$0xff] }
 0x6f0   : > { %v12770_v28 = vmul.f32 %v12765_v61, %v12765_v61  ;;  %v12773_v20 = vsub.f32 %v12760_v23, %v12765_v61  ;;  %v42949_v23 = vld [vmem:[#allocation29_spill] sm:$0xff]  ;;  %v42952_v61 = vld [vmem:[#allocation19_spill] sm:$0xff] }
 0x6f1   : > { %v12768_v16 = vpop.xlane.xlu0 %12767 }
 0x6f2   : > { %v12769_v46 = vmul.f32 0.0625, %v12768_v16  ;;  %v42953_v16 = vld [vmem:[#allocation21_spill] sm:$0xff] }
 0x6f4   : > { %v12771_v51 = vsub.f32 %v12769_v46, %v12770_v28  ;;  %v42954_v28 = vld [vmem:[#allocation31_spill] sm:$0xff]  ;;  %v42955_v46 = vld [vmem:[#allocation33_spill] sm:$0xff] }
 0x6f6   : > { %v12772_v24 = vmax.f32 %v12771_v51, 0.0  ;;  %v42956_v51 = vld [vmem:[#allocation32_spill] sm:$0xff] }
 0x6f8   : > { %v12774_v36 = vadd.f32 1e-05, %v12772_v24  ;;  %v42957_v24 = vld [vmem:[#allocation34_spill] sm:$0xff] }
 0x6fa   : > { %36050 = vrsqrt.f32 %v12774_v36  ;;  %v42958_v36 = vld [vmem:[#allocation36_spill] sm:$0xff] }
 0x704   : > { %v36051_v1 = vpop.eup %36050 }
 0x705   : > { %v12776_v29 = vmul.f32 %v36051_v1, %v12773_v20  ;;  %v42959_v20 = vld [vmem:[#allocation37_spill] sm:$0xff]  ;;  %v42960_v1 = vld [vmem:[#allocation38_spill] sm:$0xff] }
 0x707   : > { %v12778_v2 = vsel %vm1651_vm1, %v12776_v29, 0  ;;  %v42961_v29 = vld [vmem:[#allocation39_spill] sm:$0xff] }
 0x708   : > { %v40086_v54 = vand.u32 4294901760, %v12778_v2 }
 0x70a   : > { %v40089_v17 = vsub.f32 %v12778_v2, %v40086_v54  ;;  %v42962_v2 = vld [vmem:[#allocation40_spill] sm:$0xff] }
 0x70c   : > { %v40092_v15 = vand.u32 4294901760, %v40089_v17 }
 0x70e   : > { %v12852_v58 = vsub.f32 %v40089_v17, %v40092_v15 }
 0x710   : > { %v40096_v27 = vand.u32 4294901760, %v12852_v58  ;;  %v42963_v58 = vld [vmem:[#allocation41_spill] sm:$0xff] }
 0x712   : > { %12854 = vmatmul.mubr.f32.vlgmr.msra.gmra.mrb[20].mxu0 %v40096_v27  ;;  %13345 = vmatmul.mubr.f32.vlgmr.msra.gmra.mrb[30].mxu1 %v40096_v27 }
 0x713   : > { %33886 = vmatpush1.bf16.msra.mxu0 %v42946_v55  ;;  %33910 = vmatpush1.bf16.msra.mxu1 %v42947_v60  ;;  %v43041_v60 = vld [vmem:[#allocation121_spill] sm:$0xff] }
 0x714   : > { %12944 = vmatprep.mubr.f32.mxu0 %v42944_v49  ;;  %13435 = vmatprep.mubr.f32.mxu1 %v42944_v49 }
 0x715   : > { %33888 = vmatprep.subr.bf16.mxu0 %v42948_v57  ;;  %33912 = vmatprep.subr.bf16.mxu1 %v42949_v23 }
 0x71a   : > { %12946 = vmatmul.mubr.f32.vlgmr.msra.gmra.mrb[20].mxu0 %v40086_v54  ;;  %13437 = vmatmul.mubr.f32.vlgmr.msra.gmra.mrb[30].mxu1 %v40086_v54 }
 0x71b   : > { %33890 = vmatpush1.bf16.msra.mxu0 %v42950_v45  ;;  %33914 = vmatpush1.bf16.msra.mxu1 %v42951_v47  ;;  %v43039_v47 = vld [vmem:[#allocation119_spill] sm:$0xff] }
 0x71c   : > { %13024 = vmatprep.mubr.f32.mxu0 %v42944_v49  ;;  %13515 = vmatprep.mubr.f32.mxu1 %v42944_v49 }
 0x71d   : > { %33892 = vmatprep.subr.bf16.mxu0 %v42952_v61  ;;  %33916 = vmatprep.subr.bf16.mxu1 %v42942_v18 }
 0x722   : > { %13027 = vmatmul.mubr.f32.vlgmr.msra.gmra.mrb[20].mxu0 %v40089_v17  ;;  %13518 = vmatmul.mubr.f32.vlgmr.msra.gmra.mrb[30].mxu1 %v40089_v17 }
 0x723   : > { %33894 = vmatpush1.bf16.msra.mxu0 %v42953_v16  ;;  %33918 = vmatpush1.bf16.msra.mxu1 %v42943_v59 }
 0x724   : > { %13101 = vmatprep.mubr.f32.mxu0 %v42944_v49  ;;  %13592 = vmatprep.mubr.f32.mxu1 %v42944_v49 }
 0x725   : > { %33896 = vmatprep.subr.bf16.mxu0 %v42954_v28  ;;  %33920 = vmatprep.subr.bf16.mxu1 %v42955_v46  ;;  %v42966_v46 = vld [vmem:[#allocation44_spill] sm:$0xff]  ;;  %v42967_v28 = vld [vmem:[#allocation45_spill] sm:$0xff] }
 0x72a   : > { %13105 = vmatmul.mubr.f32.vlgmr.msra.gmra.mrb[20].mxu0 %v40092_v15  ;;  %13596 = vmatmul.mubr.f32.vlgmr.msra.gmra.mrb[30].mxu1 %v40092_v15 }
 0x72b   : > { %33898 = vmatpush1.bf16.msra.mxu0 %v42956_v51  ;;  %33922 = vmatpush1.bf16.msra.mxu1 %v42957_v24  ;;  %v42964_v24 = vld [vmem:[#allocation42_spill] sm:$0xff]  ;;  %v42965_v51 = vld [vmem:[#allocation43_spill] sm:$0xff] }
 0x72c   : > { %13187 = vmatprep.mubr.f32.mxu0 %v42944_v49  ;;  %13678 = vmatprep.mubr.f32.mxu1 %v42944_v49 }
 0x72d   : > { %33900 = vmatprep.subr.bf16.mxu0 %v42952_v61  ;;  %33924 = vmatprep.subr.bf16.mxu1 %v42942_v18  ;;  %v43063_v18 = vld [vmem:[#allocation143_spill] sm:$0xff] }
 0x732   : > { %13189 = vmatmul.mubr.f32.vlgmr.msra.gmra.mrb[20].mxu0 %v40086_v54  ;;  %13680 = vmatmul.mubr.f32.vlgmr.msra.gmra.mrb[30].mxu1 %v40086_v54 }
 0x733   : > { %33902 = vmatpush1.bf16.msra.mxu0 %v42953_v16  ;;  %33926 = vmatpush1.bf16.msra.mxu1 %v42943_v59  ;;  %v43062_v59 = vld [vmem:[#allocation142_spill] sm:$0xff] }
 0x734   : > { %13263 = vmatprep.mubr.f32.mxu0 %v42944_v49  ;;  %13754 = vmatprep.mubr.f32.mxu1 %v42944_v49 }
 0x735   : > { %33928 = vmatprep.subr.bf16.mxu0 %v42958_v36  ;;  %33952 = vmatprep.subr.bf16.mxu1 %v42959_v20 }
 0x73a   : > { %13265 = vmatmul.mubr.f32.vlgmr.msra.gmra.mrb[20].mxu0 %v40086_v54  ;;  %13756 = vmatmul.mubr.f32.vlgmr.msra.gmra.mrb[30].mxu1 %v40086_v54 }
 0x73b   : > { %33930 = vmatpush1.bf16.msra.mxu0 %v42960_v1  ;;  %33954 = vmatpush1.bf16.msra.mxu1 %v42961_v29 }
 0x73c   : > { %13830 = vmatprep.mubr.f32.mxu0 %v42944_v49  ;;  %14321 = vmatprep.mubr.f32.mxu1 %v42944_v49 }
 0x73d   : > { %33932 = vmatprep.subr.bf16.mxu0 %v42962_v2  ;;  %33956 = vmatprep.subr.bf16.mxu1 %v42963_v58  ;;  %v42968_v58 = vld [vmem:[#allocation46_spill] sm:$0xff]  ;;  %v42969_v2 = vld [vmem:[#allocation47_spill] sm:$0xff] }
 0x73e   : > { %13836 = vmatmul.mubr.f32.vlgmr.msra.gmra.mrb[22].mxu0 %v40096_v27  ;;  %14327 = vmatmul.mubr.f32.vlgmr.msra.gmra.mrb[32].mxu1 %v40096_v27 }
 0x73f   : > { %33934 = vmatpush1.bf16.msra.mxu0 %v42964_v24  ;;  %33958 = vmatpush1.bf16.msra.mxu1 %v42965_v51  ;;  %v42978_v51 = vld [vmem:[#allocation56_spill] sm:$0xff]  ;;  %v42979_v24 = vld [vmem:[#allocation57_spill] sm:$0xff] }
 0x740   : > { %13926 = vmatprep.mubr.f32.mxu0 %v42944_v49  ;;  %14417 = vmatprep.mubr.f32.mxu1 %v42944_v49 }
 0x741   : > { %33936 = vmatprep.subr.bf16.mxu0 %v42966_v46  ;;  %33960 = vmatprep.subr.bf16.mxu1 %v42967_v28  ;;  %v42972_v28 = vld [vmem:[#allocation50_spill] sm:$0xff]  ;;  %v42973_v46 = vld [vmem:[#allocation51_spill] sm:$0xff] }
 0x746   : > { %13928 = vmatmul.mubr.f32.vlgmr.msra.gmra.mrb[22].mxu0 %v40086_v54  ;;  %14419 = vmatmul.mubr.f32.vlgmr.msra.gmra.mrb[32].mxu1 %v40086_v54 }
 0x747   : > { %33938 = vmatpush1.bf16.msra.mxu0 %v42968_v58  ;;  %33962 = vmatpush1.bf16.msra.mxu1 %v42969_v2  ;;  %v42970_v2 = vld [vmem:[#allocation48_spill] sm:$0xff]  ;;  %v42971_v58 = vld [vmem:[#allocation49_spill] sm:$0xff] }
 0x748   : > { %14006 = vmatprep.mubr.f32.mxu0 %v42944_v49  ;;  %14497 = vmatprep.mubr.f32.mxu1 %v42944_v49 }
 0x749   : > { %33940 = vmatprep.subr.bf16.mxu0 %v42958_v36  ;;  %33964 = vmatprep.subr.bf16.mxu1 %v42959_v20 }
 0x74e   : > { %14009 = vmatmul.mubr.f32.vlgmr.msra.gmra.mrb[22].mxu0 %v40089_v17  ;;  %14500 = vmatmul.mubr.f32.vlgmr.msra.gmra.mrb[32].mxu1 %v40089_v17 }
 0x74f   : > { %33942 = vmatpush1.bf16.msra.mxu0 %v42960_v1  ;;  %33966 = vmatpush1.bf16.msra.mxu1 %v42961_v29 }
 0x750   : > { %14083 = vmatprep.mubr.f32.mxu0 %v42944_v49  ;;  %14574 = vmatprep.mubr.f32.mxu1 %v42944_v49 }
 0x751   : > { %33944 = vmatprep.subr.bf16.mxu0 %v42970_v2  ;;  %33968 = vmatprep.subr.bf16.mxu1 %v42971_v58  ;;  %v42976_v58 = vld [vmem:[#allocation54_spill] sm:$0xff]  ;;  %v42977_v2 = vld [vmem:[#allocation55_spill] sm:$0xff] }
 0x756   : > { %14087 = vmatmul.mubr.f32.vlgmr.msra.gmra.mrb[22].mxu0 %v40092_v15  ;;  %14578 = vmatmul.mubr.f32.vlgmr.msra.gmra.mrb[32].mxu1 %v40092_v15 }
 0x757   : > { %33946 = vmatpush1.bf16.msra.mxu0 %v42972_v28  ;;  %33970 = vmatpush1.bf16.msra.mxu1 %v42973_v46  ;;  %v42974_v46 = vld [vmem:[#allocation52_spill] sm:$0xff]  ;;  %v42975_v28 = vld [vmem:[#allocation53_spill] sm:$0xff] }
 0x758   : > { %14169 = vmatprep.mubr.f32.mxu0 %v42944_v49  ;;  %14660 = vmatprep.mubr.f32.mxu1 %v42944_v49 }
 0x759   : > { %33948 = vmatprep.subr.bf16.mxu0 %v42958_v36  ;;  %33972 = vmatprep.subr.bf16.mxu1 %v42959_v20  ;;  %v42982_v20 = vld [vmem:[#allocation60_spill] sm:$0xff]  ;;  %v42983_v36 = vld [vmem:[#allocation61_spill] sm:$0xff] }
 0x75e   : > { %14171 = vmatmul.mubr.f32.vlgmr.msra.gmra.mrb[22].mxu0 %v40086_v54  ;;  %14662 = vmatmul.mubr.f32.vlgmr.msra.gmra.mrb[32].mxu1 %v40086_v54 }
 0x75f   : > { %33950 = vmatpush1.bf16.msra.mxu0 %v42960_v1  ;;  %33974 = vmatpush1.bf16.msra.mxu1 %v42961_v29  ;;  %v42980_v29 = vld [vmem:[#allocation58_spill] sm:$0xff]  ;;  %v42981_v1 = vld [vmem:[#allocation59_spill] sm:$0xff] }
 0x760   : > { %14245 = vmatprep.mubr.f32.mxu0 %v42944_v49  ;;  %14736 = vmatprep.mubr.f32.mxu1 %v42944_v49 }
 0x761   : > { %33976 = vmatprep.subr.bf16.mxu0 %v42974_v46  ;;  %34000 = vmatprep.subr.bf16.mxu1 %v42975_v28 }
 0x766   : > { %14247 = vmatmul.mubr.f32.vlgmr.msra.gmra.mrb[22].mxu0 %v40086_v54  ;;  %14738 = vmatmul.mubr.f32.vlgmr.msra.gmra.mrb[32].mxu1 %v40086_v54 }
 0x767   : > { %33978 = vmatpush1.bf16.msra.mxu0 %v42976_v58  ;;  %34002 = vmatpush1.bf16.msra.mxu1 %v42977_v2 }
 0x768   : > { %14812 = vmatprep.mubr.f32.mxu0 %v42944_v49  ;;  %15303 = vmatprep.mubr.f32.mxu1 %v42944_v49 }
 0x769   : > { %33980 = vmatprep.subr.bf16.mxu0 %v42978_v51  ;;  %34004 = vmatprep.subr.bf16.mxu1 %v42979_v24  ;;  %v42984_v24 = vld [vmem:[#allocation62_spill] sm:$0xff]  ;;  %v42985_v51 = vld [vmem:[#allocation63_spill] sm:$0xff] }
 0x76a   : > { %14818 = vmatmul.mubr.f32.vlgmr.msra.gmra.mrb[24].mxu0 %v40096_v27  ;;  %15309 = vmatmul.mubr.f32.vlgmr.msra.gmra.mrb[34].mxu1 %v40096_v27 }
 0x76b   : > { %33982 = vmatpush1.bf16.msra.mxu0 %v42980_v29  ;;  %34006 = vmatpush1.bf16.msra.mxu1 %v42981_v1  ;;  %v42994_v1 = vld [vmem:[#allocation74_spill] sm:$0xff]  ;;  %v42995_v29 = vld [vmem:[#allocation75_spill] sm:$0xff] }
 0x76c   : > { %14908 = vmatprep.mubr.f32.mxu0 %v42944_v49  ;;  %15399 = vmatprep.mubr.f32.mxu1 %v42944_v49 }
 0x76d   : > { %33984 = vmatprep.subr.bf16.mxu0 %v42982_v20  ;;  %34008 = vmatprep.subr.bf16.mxu1 %v42983_v36  ;;  %v42988_v36 = vld [vmem:[#allocation66_spill] sm:$0xff]  ;;  %v42989_v20 = vld [vmem:[#allocation67_spill] sm:$0xff] }
 0x772   : > { %14910 = vmatmul.mubr.f32.vlgmr.msra.gmra.mrb[24].mxu0 %v40086_v54  ;;  %15401 = vmatmul.mubr.f32.vlgmr.msra.gmra.mrb[34].mxu1 %v40086_v54 }
 0x773   : > { %33986 = vmatpush1.bf16.msra.mxu0 %v42984_v24  ;;  %34010 = vmatpush1.bf16.msra.mxu1 %v42985_v51  ;;  %v42986_v51 = vld [vmem:[#allocation64_spill] sm:$0xff]  ;;  %v42987_v24 = vld [vmem:[#allocation65_spill] sm:$0xff] }
 0x774   : > { %14988 = vmatprep.mubr.f32.mxu0 %v42944_v49  ;;  %15479 = vmatprep.mubr.f32.mxu1 %v42944_v49 }
 0x775   : > { %33988 = vmatprep.subr.bf16.mxu0 %v42974_v46  ;;  %34012 = vmatprep.subr.bf16.mxu1 %v42975_v28 }
 0x77a   : > { %14991 = vmatmul.mubr.f32.vlgmr.msra.gmra.mrb[24].mxu0 %v40089_v17  ;;  %15482 = vmatmul.mubr.f32.vlgmr.msra.gmra.mrb[34].mxu1 %v40089_v17 }
 0x77b   : > { %33990 = vmatpush1.bf16.msra.mxu0 %v42976_v58  ;;  %34014 = vmatpush1.bf16.msra.mxu1 %v42977_v2 }
 0x77c   : > { %15065 = vmatprep.mubr.f32.mxu0 %v42944_v49  ;;  %15556 = vmatprep.mubr.f32.mxu1 %v42944_v49 }
 0x77d   : > { %33992 = vmatprep.subr.bf16.mxu0 %v42986_v51  ;;  %34016 = vmatprep.subr.bf16.mxu1 %v42987_v24  ;;  %v42992_v24 = vld [vmem:[#allocation72_spill] sm:$0xff]  ;;  %v42993_v51 = vld [vmem:[#allocation73_spill] sm:$0xff] }
 0x782   : > { %15069 = vmatmul.mubr.f32.vlgmr.msra.gmra.mrb[24].mxu0 %v40092_v15  ;;  %15560 = vmatmul.mubr.f32.vlgmr.msra.gmra.mrb[34].mxu1 %v40092_v15 }
 0x783   : > { %33994 = vmatpush1.bf16.msra.mxu0 %v42988_v36  ;;  %34018 = vmatpush1.bf16.msra.mxu1 %v42989_v20  ;;  %v42990_v20 = vld [vmem:[#allocation69_spill] sm:$0xff]  ;;  %v42991_v36 = vld [vmem:[#allocation70_spill] sm:$0xff] }
 0x784   : > { %15151 = vmatprep.mubr.f32.mxu0 %v42944_v49  ;;  %15642 = vmatprep.mubr.f32.mxu1 %v42944_v49 }
 0x785   : > { %33996 = vmatprep.subr.bf16.mxu0 %v42974_v46  ;;  %34020 = vmatprep.subr.bf16.mxu1 %v42975_v28  ;;  %v42998_v28 = vld [vmem:[#allocation78_spill] sm:$0xff]  ;;  %v42999_v46 = vld [vmem:[#allocation79_spill] sm:$0xff] }
 0x78a   : > { %15153 = vmatmul.mubr.f32.vlgmr.msra.gmra.mrb[24].mxu0 %v40086_v54  ;;  %15644 = vmatmul.mubr.f32.vlgmr.msra.gmra.mrb[34].mxu1 %v40086_v54 }
 0x78b   : > { %33998 = vmatpush1.bf16.msra.mxu0 %v42976_v58  ;;  %34022 = vmatpush1.bf16.msra.mxu1 %v42977_v2  ;;  %v42996_v2 = vld [vmem:[#allocation76_spill] sm:$0xff]  ;;  %v42997_v58 = vld [vmem:[#allocation77_spill] sm:$0xff] }
 0x78c   : > { %15227 = vmatprep.mubr.f32.mxu0 %v42944_v49  ;;  %15718 = vmatprep.mubr.f32.mxu1 %v42944_v49 }
 0x78d   : > { %34024 = vmatprep.subr.bf16.mxu0 %v42990_v20  ;;  %34048 = vmatprep.subr.bf16.mxu1 %v42991_v36 }
 0x792   : > { %15229 = vmatmul.mubr.f32.vlgmr.msra.gmra.mrb[24].mxu0 %v40086_v54  ;;  %15720 = vmatmul.mubr.f32.vlgmr.msra.gmra.mrb[34].mxu1 %v40086_v54 }
 0x793   : > { %34026 = vmatpush1.bf16.msra.mxu0 %v42992_v24  ;;  %34050 = vmatpush1.bf16.msra.mxu1 %v42993_v51 }
 0x794   : > { %15794 = vmatprep.mubr.f32.mxu0 %v42944_v49  ;;  %16285 = vmatprep.mubr.f32.mxu1 %v42944_v49 }
 0x795   : > { %34028 = vmatprep.subr.bf16.mxu0 %v42994_v1  ;;  %34052 = vmatprep.subr.bf16.mxu1 %v42995_v29  ;;  %v43000_v29 = vld [vmem:[#allocation80_spill] sm:$0xff]  ;;  %v43001_v1 = vld [vmem:[#allocation81_spill] sm:$0xff] }
 0x796   : > { %15800 = vmatmul.mubr.f32.vlgmr.msra.gmra.mrb[26].mxu0 %v40096_v27  ;;  %16291 = vmatmul.mubr.f32.vlgmr.msra.gmra.mrb[36].mxu1 %v40096_v27 }
 0x797   : > { %34030 = vmatpush1.bf16.msra.mxu0 %v42996_v2  ;;  %34054 = vmatpush1.bf16.msra.mxu1 %v42997_v58  ;;  %v43010_v58 = vld [vmem:[#allocation90_spill] sm:$0xff]  ;;  %v43011_v2 = vld [vmem:[#allocation91_spill] sm:$0xff] }
 0x798   : > { %15890 = vmatprep.mubr.f32.mxu0 %v42944_v49  ;;  %16381 = vmatprep.mubr.f32.mxu1 %v42944_v49 }
 0x799   : > { %34032 = vmatprep.subr.bf16.mxu0 %v42998_v28  ;;  %34056 = vmatprep.subr.bf16.mxu1 %v42999_v46  ;;  %v43004_v46 = vld [vmem:[#allocation84_spill] sm:$0xff]  ;;  %v43005_v28 = vld [vmem:[#allocation85_spill] sm:$0xff] }
 0x79e   : > { %15892 = vmatmul.mubr.f32.vlgmr.msra.gmra.mrb[26].mxu0 %v40086_v54  ;;  %16383 = vmatmul.mubr.f32.vlgmr.msra.gmra.mrb[36].mxu1 %v40086_v54 }
 0x79f   : > { %34034 = vmatpush1.bf16.msra.mxu0 %v43000_v29  ;;  %34058 = vmatpush1.bf16.msra.mxu1 %v43001_v1  ;;  %v43002_v1 = vld [vmem:[#allocation82_spill] sm:$0xff]  ;;  %v43003_v29 = vld [vmem:[#allocation83_spill] sm:$0xff] }
 0x7a0   : > { %15970 = vmatprep.mubr.f32.mxu0 %v42944_v49  ;;  %16461 = vmatprep.mubr.f32.mxu1 %v42944_v49 }
 0x7a1   : > { %34036 = vmatprep.subr.bf16.mxu0 %v42990_v20  ;;  %34060 = vmatprep.subr.bf16.mxu1 %v42991_v36 }
 0x7a6   : > { %15973 = vmatmul.mubr.f32.vlgmr.msra.gmra.mrb[26].mxu0 %v40089_v17  ;;  %16464 = vmatmul.mubr.f32.vlgmr.msra.gmra.mrb[36].mxu1 %v40089_v17 }
 0x7a7   : > { %34038 = vmatpush1.bf16.msra.mxu0 %v42992_v24  ;;  %34062 = vmatpush1.bf16.msra.mxu1 %v42993_v51 }
 0x7a8   : > { %16047 = vmatprep.mubr.f32.mxu0 %v42944_v49  ;;  %16538 = vmatprep.mubr.f32.mxu1 %v42944_v49 }
 0x7a9   : > { %34040 = vmatprep.subr.bf16.mxu0 %v43002_v1  ;;  %34064 = vmatprep.subr.bf16.mxu1 %v43003_v29  ;;  %v43008_v29 = vld [vmem:[#allocation88_spill] sm:$0xff]  ;;  %v43009_v1 = vld [vmem:[#allocation89_spill] sm:$0xff] }
 0x7ae   : > { %16051 = vmatmul.mubr.f32.vlgmr.msra.gmra.mrb[26].mxu0 %v40092_v15  ;;  %16542 = vmatmul.mubr.f32.vlgmr.msra.gmra.mrb[36].mxu1 %v40092_v15 }
 0x7af   : > { %34042 = vmatpush1.bf16.msra.mxu0 %v43004_v46  ;;  %34066 = vmatpush1.bf16.msra.mxu1 %v43005_v28  ;;  %v43006_v28 = vld [vmem:[#allocation86_spill] sm:$0xff]  ;;  %v43007_v46 = vld [vmem:[#allocation87_spill] sm:$0xff] }
 0x7b0   : > { %16133 = vmatprep.mubr.f32.mxu0 %v42944_v49  ;;  %16624 = vmatprep.mubr.f32.mxu1 %v42944_v49 }
 0x7b1   : > { %34044 = vmatprep.subr.bf16.mxu0 %v42990_v20  ;;  %34068 = vmatprep.subr.bf16.mxu1 %v42991_v36  ;;  %v43014_v36 = vld [vmem:[#allocation94_spill] sm:$0xff]  ;;  %v43015_v20 = vld [vmem:[#allocation95_spill] sm:$0xff] }
 0x7b6   : > { %16135 = vmatmul.mubr.f32.vlgmr.msra.gmra.mrb[26].mxu0 %v40086_v54  ;;  %16626 = vmatmul.mubr.f32.vlgmr.msra.gmra.mrb[36].mxu1 %v40086_v54 }
 0x7b7   : > { %34046 = vmatpush1.bf16.msra.mxu0 %v42992_v24  ;;  %34070 = vmatpush1.bf16.msra.mxu1 %v42993_v51  ;;  %v43012_v51 = vld [vmem:[#allocation92_spill] sm:$0xff]  ;;  %v43013_v24 = vld [vmem:[#allocation93_spill] sm:$0xff] }
 0x7b8   : > { %16209 = vmatprep.mubr.f32.mxu0 %v42944_v49  ;;  %16700 = vmatprep.mubr.f32.mxu1 %v42944_v49 }
 0x7b9   : > { %34072 = vmatprep.subr.bf16.mxu0 %v43006_v28  ;;  %34096 = vmatprep.subr.bf16.mxu1 %v43007_v46 }
 0x7be   : > { %16211 = vmatmul.mubr.f32.vlgmr.msra.gmra.mrb[26].mxu0 %v40086_v54  ;;  %16702 = vmatmul.mubr.f32.vlgmr.msra.gmra.mrb[36].mxu1 %v40086_v54 }
 0x7bf   : > { %34074 = vmatpush1.bf16.msra.mxu0 %v43008_v29  ;;  %34098 = vmatpush1.bf16.msra.mxu1 %v43009_v1 }
 0x7c0   : > { %16776 = vmatprep.mubr.f32.mxu0 %v42944_v49  ;;  %17267 = vmatprep.mubr.f32.mxu1 %v42944_v49 }
 0x7c1   : > { %34076 = vmatprep.subr.bf16.mxu0 %v43010_v58  ;;  %34100 = vmatprep.subr.bf16.mxu1 %v43011_v2  ;;  %v43016_v2 = vld [vmem:[#allocation96_spill] sm:$0xff]  ;;  %v43017_v58 = vld [vmem:[#allocation97_spill] sm:$0xff] }
 0x7c2   : > { %16782 = vmatmul.mubr.f32.vlgmr.msra.gmra.mrb[28].mxu0 %v40096_v27  ;;  %17273 = vmatmul.mubr.f32.vlgmr.msra.gmra.mrb[38].mxu1 %v40096_v27 }
 0x7c3   : > { %34078 = vmatpush1.bf16.msra.mxu0 %v43012_v51  ;;  %34102 = vmatpush1.bf16.msra.mxu1 %v43013_v24  ;;  %v43026_v24 = vld [vmem:[#allocation106_spill] sm:$0xff]  ;;  %v43027_v51 = vld [vmem:[#allocation107_spill] sm:$0xff] }
 0x7c4   : > { %16872 = vmatprep.mubr.f32.mxu0 %v42944_v49  ;;  %17363 = vmatprep.mubr.f32.mxu1 %v42944_v49 }
 0x7c5   : > { %34080 = vmatprep.subr.bf16.mxu0 %v43014_v36  ;;  %34104 = vmatprep.subr.bf16.mxu1 %v43015_v20  ;;  %v43020_v20 = vld [vmem:[#allocation100_spill] sm:$0xff]  ;;  %v43021_v36 = vld [vmem:[#allocation101_spill] sm:$0xff] }
 0x7ca   : > { %16874 = vmatmul.mubr.f32.vlgmr.msra.gmra.mrb[28].mxu0 %v40086_v54  ;;  %17365 = vmatmul.mubr.f32.vlgmr.msra.gmra.mrb[38].mxu1 %v40086_v54 }
 0x7cb   : > { %34082 = vmatpush1.bf16.msra.mxu0 %v43016_v2  ;;  %34106 = vmatpush1.bf16.msra.mxu1 %v43017_v58  ;;  %v43018_v58 = vld [vmem:[#allocation98_spill] sm:$0xff]  ;;  %v43019_v2 = vld [vmem:[#allocation99_spill] sm:$0xff] }
 0x7cc   : > { %16952 = vmatprep.mubr.f32.mxu0 %v42944_v49  ;;  %17443 = vmatprep.mubr.f32.mxu1 %v42944_v49 }
 0x7cd   : > { %34084 = vmatprep.subr.bf16.mxu0 %v43006_v28  ;;  %34108 = vmatprep.subr.bf16.mxu1 %v43007_v46 }
 0x7d2   : > { %16955 = vmatmul.mubr.f32.vlgmr.msra.gmra.mrb[28].mxu0 %v40089_v17  ;;  %17446 = vmatmul.mubr.f32.vlgmr.msra.gmra.mrb[38].mxu1 %v40089_v17 }
 0x7d3   : > { %34086 = vmatpush1.bf16.msra.mxu0 %v43008_v29  ;;  %34110 = vmatpush1.bf16.msra.mxu1 %v43009_v1 }
 0x7d4   : > { %17029 = vmatprep.mubr.f32.mxu0 %v42944_v49  ;;  %17520 = vmatprep.mubr.f32.mxu1 %v42944_v49 }
 0x7d5   : > { %34088 = vmatprep.subr.bf16.mxu0 %v43018_v58  ;;  %34112 = vmatprep.subr.bf16.mxu1 %v43019_v2  ;;  %v43024_v2 = vld [vmem:[#allocation104_spill] sm:$0xff]  ;;  %v43025_v58 = vld [vmem:[#allocation105_spill] sm:$0xff] }
 0x7da   : > { %17033 = vmatmul.mubr.f32.vlgmr.msra.gmra.mrb[28].mxu0 %v40092_v15  ;;  %17524 = vmatmul.mubr.f32.vlgmr.msra.gmra.mrb[38].mxu1 %v40092_v15 }
 0x7db   : > { %34090 = vmatpush1.bf16.msra.mxu0 %v43020_v20  ;;  %34114 = vmatpush1.bf16.msra.mxu1 %v43021_v36  ;;  %v43022_v36 = vld [vmem:[#allocation102_spill] sm:$0xff]  ;;  %v43023_v20 = vld [vmem:[#allocation103_spill] sm:$0xff] }
 0x7dc   : > { %17115 = vmatprep.mubr.f32.mxu0 %v42944_v49  ;;  %17606 = vmatprep.mubr.f32.mxu1 %v42944_v49 }
 0x7dd   : > { %34092 = vmatprep.subr.bf16.mxu0 %v43006_v28  ;;  %34116 = vmatprep.subr.bf16.mxu1 %v43007_v46  ;;  %v43030_v46 = vld [vmem:[#allocation110_spill] sm:$0xff]  ;;  %v43031_v28 = vld [vmem:[#allocation111_spill] sm:$0xff] }
 0x7e2   : > { %17117 = vmatmul.mubr.f32.vlgmr.msra.gmra.mrb[28].mxu0 %v40086_v54  ;;  %17608 = vmatmul.mubr.f32.vlgmr.msra.gmra.mrb[38].mxu1 %v40086_v54 }
 0x7e3   : > { %34094 = vmatpush1.bf16.msra.mxu0 %v43008_v29  ;;  %34118 = vmatpush1.bf16.msra.mxu1 %v43009_v1  ;;  %v43028_v1 = vld [vmem:[#allocation108_spill] sm:$0xff]  ;;  %v43029_v29 = vld [vmem:[#allocation109_spill] sm:$0xff] }
 0x7e4   : > { %17191 = vmatprep.mubr.f32.mxu0 %v42944_v49  ;;  %17682 = vmatprep.mubr.f32.mxu1 %v42944_v49 }
 0x7e5   : > { %34120 = vmatprep.subr.bf16.mxu0 %v43022_v36  ;;  %34144 = vmatprep.subr.bf16.mxu1 %v43023_v20 }
 0x7ea   : > { %17193 = vmatmul.mubr.f32.vlgmr.msra.gmra.mrb[28].mxu0 %v40086_v54  ;;  %17684 = vmatmul.mubr.f32.vlgmr.msra.gmra.mrb[38].mxu1 %v40086_v54 }
 0x7eb   : > { %34122 = vmatpush1.bf16.msra.mxu0 %v43024_v2  ;;  %34146 = vmatpush1.bf16.msra.mxu1 %v43025_v58 }
 0x7ec   : > { %17758 = vmatprep.mubr.f32.mxu0 %v42944_v49  ;;  %18249 = vmatprep.mubr.f32.mxu1 %v42944_v49 }
 0x7ed   : > { %34124 = vmatprep.subr.bf16.mxu0 %v43026_v24  ;;  %34148 = vmatprep.subr.bf16.mxu1 %v43027_v51  ;;  %v43032_v51 = vld [vmem:[#allocation112_spill] sm:$0xff]  ;;  %v43033_v24 = vld [vmem:[#allocation113_spill] sm:$0xff] }
 0x7ee   : > { %17764 = vmatmul.mubr.f32.vlgmr.msra.gmra.mrb[30].mxu0 %v40096_v27  ;;  %18255 = vmatmul.mubr.f32.vlgmr.msra.gmra.mrb[40].mxu1 %v40096_v27 }
 0x7ef   : > { %34126 = vmatpush1.bf16.msra.mxu0 %v43028_v1  ;;  %34150 = vmatpush1.bf16.msra.mxu1 %v43029_v29  ;;  %v43038_v1 = vld [vmem:[#allocation118_spill] sm:$0xff] }
 0x7f0   : > { %17854 = vmatprep.mubr.f32.mxu0 %v42944_v49  ;;  %18345 = vmatprep.mubr.f32.mxu1 %v42944_v49 }
 0x7f1   : > { %34128 = vmatprep.subr.bf16.mxu0 %v43030_v46  ;;  %34152 = vmatprep.subr.bf16.mxu1 %v43031_v28  ;;  %v43036_v28 = vld [vmem:[#allocation116_spill] sm:$0xff]  ;;  %v43037_v46 = vld [vmem:[#allocation117_spill] sm:$0xff] }
 0x7f6   : > { %17856 = vmatmul.mubr.f32.vlgmr.msra.gmra.mrb[30].mxu0 %v40086_v54  ;;  %18347 = vmatmul.mubr.f32.vlgmr.msra.gmra.mrb[40].mxu1 %v40086_v54 }
 0x7f7   : > { %34130 = vmatpush1.bf16.msra.mxu0 %v43032_v51  ;;  %34154 = vmatpush1.bf16.msra.mxu1 %v43033_v24  ;;  %v43034_v24 = vld [vmem:[#allocation114_spill] sm:$0xff]  ;;  %v43035_v51 = vld [vmem:[#allocation115_spill] sm:$0xff] }
 0x7f8   : > { %17934 = vmatprep.mubr.f32.mxu0 %v42944_v49  ;;  %18425 = vmatprep.mubr.f32.mxu1 %v42944_v49 }
 0x7f9   : > { %34132 = vmatprep.subr.bf16.mxu0 %v43022_v36  ;;  %34156 = vmatprep.subr.bf16.mxu1 %v43023_v20 }
 0x7fe   : > { %17937 = vmatmul.mubr.f32.vlgmr.msra.gmra.mrb[30].mxu0 %v40089_v17  ;;  %18428 = vmatmul.mubr.f32.vlgmr.msra.gmra.mrb[40].mxu1 %v40089_v17 }
 0x7ff   : > { %34134 = vmatpush1.bf16.msra.mxu0 %v43024_v2  ;;  %34158 = vmatpush1.bf16.msra.mxu1 %v43025_v58 }
 0x800   : > { %18011 = vmatprep.mubr.f32.mxu0 %v42944_v49  ;;  %18502 = vmatprep.mubr.f32.mxu1 %v42944_v49 }
 0x801   : > { %34136 = vmatprep.subr.bf16.mxu0 %v43034_v24  ;;  %34160 = vmatprep.subr.bf16.mxu1 %v43035_v51 }
 0x806   : > { %18015 = vmatmul.mubr.f32.vlgmr.msra.gmra.mrb[30].mxu0 %v40092_v15  ;;  %18506 = vmatmul.mubr.f32.vlgmr.msra.gmra.mrb[40].mxu1 %v40092_v15 }
 0x807   : > { %34138 = vmatpush1.bf16.msra.mxu0 %v43036_v28  ;;  %34162 = vmatpush1.bf16.msra.mxu1 %v43037_v46  ;;  %v43040_v46 = vld [vmem:[#allocation120_spill] sm:$0xff] }
 0x808   : > { %18097 = vmatprep.mubr.f32.mxu0 %v42944_v49  ;;  %18588 = vmatprep.mubr.f32.mxu1 %v42944_v49 }
 0x809   : > { %34140 = vmatprep.subr.bf16.mxu0 %v43022_v36  ;;  %34164 = vmatprep.subr.bf16.mxu1 %v43023_v20 }
 0x80d   : > { %v13266_v29 = vpop.f32.mrb[20].mxu0  ;;  %v13757_v24 = vpop.f32.mrb[30].mxu1 }
 0x80e   : > { %v20636_v51 = vmul.f32 %v13266_v29, %v43038_v1  ;;  %v20638_v45 = vmul.f32 %v13757_v24, %v43039_v47  ;;  %v13268_v23 = vpop.f32.mrb[21].mxu0  ;;  %v13759_v57 = vpop.f32.mrb[31].mxu1  ;;  %18099 = vmatmul.mubr.f32.vlgmr.msra.gmra.mrb[30].mxu0 %v40086_v54  ;;  %18590 = vmatmul.mubr.f32.vlgmr.msra.gmra.mrb[40].mxu1 %v40086_v54  ;;  %v43042_v29 = vld [vmem:[#allocation122_spill] sm:$0xff]  ;;  %v43043_v47 = vld [vmem:[#allocation123_spill] sm:$0xff] }
 0x80f   : > { %v20637_v28 = vmul.f32 %v13268_v23, %v43040_v46  ;;  %v20639_v55 = vmul.f32 %v13759_v57, %v43041_v60  ;;  %34142 = vmatpush1.bf16.msra.mxu0 %v43024_v2  ;;  %34166 = vmatpush1.bf16.msra.mxu1 %v43025_v58  ;;  %v43044_v23 = vld [vmem:[#allocation124_spill] sm:$0xff]  ;;  %v43045_v57 = vld [vmem:[#allocation125_spill] sm:$0xff]  ;;  %v43050_v60 = vld [vmem:[#allocation130_spill] sm:$0xff] }
 0x810   : > { %v20640_v20 = vadd.f32 %v20638_v45, %v20636_v51  ;;  %18173 = vmatprep.mubr.f32.mxu0 %v42944_v49  ;;  %18664 = vmatprep.mubr.f32.mxu1 %v42944_v49  ;;  %v43046_v45 = vld [vmem:[#allocation126_spill] sm:$0xff]  ;;  %v43047_v51 = vld [vmem:[#allocation127_spill] sm:$0xff] }
 0x811   : > { %v20641_v24 = vadd.f32 %v20639_v55, %v20637_v28  ;;  %34168 = vmatprep.subr.bf16.mxu0 %v43042_v29  ;;  %34192 = vmatprep.subr.bf16.mxu1 %v43043_v47  ;;  %v43048_v55 = vld [vmem:[#allocation128_spill] sm:$0xff]  ;;  %v43049_v28 = vld [vmem:[#allocation129_spill] sm:$0xff]  ;;  %v43051_v46 = vld [vmem:[#allocation131_spill] sm:$0xff] }
 0x816   : > { %18175 = vmatmul.mubr.f32.vlgmr.msra.gmra.mrb[30].mxu0 %v40086_v54  ;;  %18666 = vmatmul.mubr.f32.vlgmr.msra.gmra.mrb[40].mxu1 %v40086_v54 }
 0x817   : > { %34170 = vmatpush1.bf16.msra.mxu0 %v43044_v23  ;;  %34194 = vmatpush1.bf16.msra.mxu1 %v43045_v57 }
 0x818   : > { %18740 = vmatprep.mubr.f32.mxu0 %v42944_v49  ;;  %19231 = vmatprep.mubr.f32.mxu1 %v42944_v49 }
 0x819   : > { %34172 = vmatprep.subr.bf16.mxu0 %v43046_v45  ;;  %34196 = vmatprep.subr.bf16.mxu1 %v43047_v51  ;;  %v43052_v51 = vld [vmem:[#allocation132_spill] sm:$0xff]  ;;  %v43053_v45 = vld [vmem:[#allocation133_spill] sm:$0xff] }
 0x81a   : > { %18746 = vmatmul.mubr.f32.vlgmr.msra.gmra.mrb[32].mxu0 %v40096_v27  ;;  %19237 = vmatmul.mubr.f32.vlgmr.msra.gmra.mrb[42].mxu1 %v40096_v27 }
 0x81b   : > { %34174 = vmatpush1.bf16.msra.mxu0 %v43048_v55  ;;  %34198 = vmatpush1.bf16.msra.mxu1 %v43049_v28  ;;  %v43058_v55 = vld [vmem:[#allocation138_spill] sm:$0xff] }
 0x81c   : > { %18836 = vmatprep.mubr.f32.mxu0 %v42944_v49  ;;  %19327 = vmatprep.mubr.f32.mxu1 %v42944_v49 }
 0x81d   : > { %34176 = vmatprep.subr.bf16.mxu0 %v43050_v60  ;;  %34200 = vmatprep.subr.bf16.mxu1 %v43051_v46  ;;  %v43056_v46 = vld [vmem:[#allocation136_spill] sm:$0xff]  ;;  %v43057_v60 = vld [vmem:[#allocation137_spill] sm:$0xff] }
 0x822   : > { %18838 = vmatmul.mubr.f32.vlgmr.msra.gmra.mrb[32].mxu0 %v40086_v54  ;;  %19329 = vmatmul.mubr.f32.vlgmr.msra.gmra.mrb[42].mxu1 %v40086_v54 }
 0x823   : > { %34178 = vmatpush1.bf16.msra.mxu0 %v43052_v51  ;;  %34202 = vmatpush1.bf16.msra.mxu1 %v43053_v45  ;;  %v43054_v45 = vld [vmem:[#allocation134_spill] sm:$0xff]  ;;  %v43055_v51 = vld [vmem:[#allocation135_spill] sm:$0xff] }
 0x824   : > { %18916 = vmatprep.mubr.f32.mxu0 %v42944_v49  ;;  %19407 = vmatprep.mubr.f32.mxu1 %v42944_v49 }
 0x825   : > { %34180 = vmatprep.subr.bf16.mxu0 %v43042_v29  ;;  %34204 = vmatprep.subr.bf16.mxu1 %v43043_v47 }
 0x82a   : > { %18919 = vmatmul.mubr.f32.vlgmr.msra.gmra.mrb[32].mxu0 %v40089_v17  ;;  %19410 = vmatmul.mubr.f32.vlgmr.msra.gmra.mrb[42].mxu1 %v40089_v17 }
 0x82b   : > { %34182 = vmatpush1.bf16.msra.mxu0 %v43044_v23  ;;  %34206 = vmatpush1.bf16.msra.mxu1 %v43045_v57 }
 0x82c   : > { %18993 = vmatprep.mubr.f32.mxu0 %v42944_v49  ;;  %19484 = vmatprep.mubr.f32.mxu1 %v42944_v49 }
 0x82d   : > { %34184 = vmatprep.subr.bf16.mxu0 %v43054_v45  ;;  %34208 = vmatprep.subr.bf16.mxu1 %v43055_v51 }
 0x832   : > { %18997 = vmatmul.mubr.f32.vlgmr.msra.gmra.mrb[32].mxu0 %v40092_v15  ;;  %19488 = vmatmul.mubr.f32.vlgmr.msra.gmra.mrb[42].mxu1 %v40092_v15 }
 0x833   : > { %34186 = vmatpush1.bf16.msra.mxu0 %v43056_v46  ;;  %34210 = vmatpush1.bf16.msra.mxu1 %v43057_v60  ;;  %v43059_v46 = vld [vmem:[#allocation139_spill] sm:$0xff] }
 0x834   : > { %19079 = vmatprep.mubr.f32.mxu0 %v42944_v49  ;;  %19570 = vmatprep.mubr.f32.mxu1 %v42944_v49 }
 0x835   : > { %34188 = vmatprep.subr.bf16.mxu0 %v43042_v29  ;;  %34212 = vmatprep.subr.bf16.mxu1 %v43043_v47  ;;  %v43060_v29 = vld [vmem:[#allocation140_spill] sm:$0xff] }
 0x839   : > { %v14248_v28 = vpop.f32.mrb[22].mxu0  ;;  %v14739_v45 = vpop.f32.mrb[32].mxu1 }
 0x83a   : > { %v20642_v51 = vmul.f32 %v14248_v28, %v43058_v55  ;;  %v14250_v1 = vpop.f32.mrb[23].mxu0  ;;  %v14741_v58 = vpop.f32.mrb[33].mxu1  ;;  %19081 = vmatmul.mubr.f32.vlgmr.msra.gmra.mrb[32].mxu0 %v40086_v54  ;;  %19572 = vmatmul.mubr.f32.vlgmr.msra.gmra.mrb[42].mxu1 %v40086_v54  ;;  %v20646_v36 = vmul.f32 %v14739_v45, %v43060_v29  ;;  %v43061_v55 = vld [vmem:[#allocation141_spill] sm:$0xff]  ;;  %v43097_v29 = vld [vmem:[#allocation184_spill] sm:$0xff] }
 0x83b   : > { %v20643_v60 = vmul.f32 %v14250_v1, %v43059_v46  ;;  %34190 = vmatpush1.bf16.msra.mxu0 %v43044_v23  ;;  %34214 = vmatpush1.bf16.msra.mxu1 %v43045_v57  ;;  %v20647_v47 = vmul.f32 %v14741_v58, %v43061_v55  ;;  %v43065_v45 = vld [vmem:[#allocation145_spill] sm:$0xff]  ;;  %v43067_v58 = vld [vmem:[#allocation147_spill] sm:$0xff]  ;;  %v43099_v57 = vld [vmem:[#allocation186_spill] sm:$0xff] }
 0x83c   : > { %v20644_v2 = vadd.f32 %v20642_v51, %v20640_v20  ;;  %19155 = vmatprep.mubr.f32.mxu0 %v42944_v49  ;;  %19646 = vmatprep.mubr.f32.mxu1 %v42944_v49  ;;  %v43064_v20 = vld [vmem:[#allocation144_spill] sm:$0xff]  ;;  %v43098_v46 = vld [vmem:[#allocation185_spill] sm:$0xff] }
 0x83d   : > { %v20645_v28 = vadd.f32 %v20643_v60, %v20641_v24  ;;  %34216 = vmatprep.subr.bf16.mxu0 %v43062_v59  ;;  %34240 = vmatprep.subr.bf16.mxu1 %v43063_v18  ;;  %v43066_v60 = vld [vmem:[#allocation146_spill] sm:$0xff]  ;;  %v43071_v24 = vld [vmem:[#allocation151_spill] sm:$0xff]  ;;  %v43072_v51 = vld [vmem:[#allocation152_spill] sm:$0xff] }
 0x83e   : > { %v20648_v25 = vadd.f32 %v20646_v36, %v20644_v2  ;;  %v43069_v36 = vld [vmem:[#allocation149_spill] sm:$0xff]  ;;  %v43070_v2 = vld [vmem:[#allocation150_spill] sm:$0xff] }
 0x83f   : > { %v20649_v1 = vadd.f32 %v20647_v47, %v20645_v28  ;;  %v43068_v47 = vld [vmem:[#allocation148_spill] sm:$0xff]  ;;  %v43073_v28 = vld [vmem:[#allocation153_spill] sm:$0xff] }
 0x842   : > { %19157 = vmatmul.mubr.f32.vlgmr.msra.gmra.mrb[32].mxu0 %v40086_v54  ;;  %19648 = vmatmul.mubr.f32.vlgmr.msra.gmra.mrb[42].mxu1 %v40086_v54 }
 0x843   : > { %34218 = vmatpush1.bf16.msra.mxu0 %v43064_v20  ;;  %34242 = vmatpush1.bf16.msra.mxu1 %v43065_v45 }
 0x844   : > { %19722 = vmatprep.mubr.f32.mxu0 %v42944_v49  ;;  %20213 = vmatprep.mubr.f32.mxu1 %v42944_v49 }
 0x845   : > { %34220 = vmatprep.subr.bf16.mxu0 %v43066_v60  ;;  %34244 = vmatprep.subr.bf16.mxu1 %v43067_v58  ;;  %v43080_v58 = vld [vmem:[#allocation162_spill] sm:$0xff] }
 0x846   : > { %19728 = vmatmul.mubr.f32.vlgmr.msra.gmra.mrb[34].mxu0 %v40096_v27  ;;  %20219 = vmatmul.mubr.f32.vlgmr.msra.gmra.mrb[44].mxu1 %v40096_v27  ;;  %v43074_v27 = vld [vmem:[#allocation156_spill] sm:$0xff] }
 0x847   : > { %34222 = vmatpush1.bf16.msra.mxu0 %v43068_v47  ;;  %34246 = vmatpush1.bf16.msra.mxu1 %v43069_v36 }
 0x848   : > { %19818 = vmatprep.mubr.f32.mxu0 %v42944_v49  ;;  %20309 = vmatprep.mubr.f32.mxu1 %v42944_v49 }
 0x849   : > { %34224 = vmatprep.subr.bf16.mxu0 %v43070_v2  ;;  %34248 = vmatprep.subr.bf16.mxu1 %v43071_v24  ;;  %v43077_v24 = vld [vmem:[#allocation159_spill] sm:$0xff]  ;;  %v43078_v2 = vld [vmem:[#allocation160_spill] sm:$0xff] }
 0x84e   : > { %19820 = vmatmul.mubr.f32.vlgmr.msra.gmra.mrb[34].mxu0 %v40086_v54  ;;  %20311 = vmatmul.mubr.f32.vlgmr.msra.gmra.mrb[44].mxu1 %v40086_v54 }
 0x84f   : > { %34226 = vmatpush1.bf16.msra.mxu0 %v43072_v51  ;;  %34250 = vmatpush1.bf16.msra.mxu1 %v43073_v28  ;;  %v43075_v28 = vld [vmem:[#allocation157_spill] sm:$0xff]  ;;  %v43076_v51 = vld [vmem:[#allocation158_spill] sm:$0xff] }
 0x850   : > { %19898 = vmatprep.mubr.f32.mxu0 %v42944_v49  ;;  %20389 = vmatprep.mubr.f32.mxu1 %v42944_v49 }
 0x851   : > { %34228 = vmatprep.subr.bf16.mxu0 %v43062_v59  ;;  %34252 = vmatprep.subr.bf16.mxu1 %v43063_v18 }
 0x856   : > { %19901 = vmatmul.mubr.f32.vlgmr.msra.gmra.mrb[34].mxu0 %v40089_v17  ;;  %20392 = vmatmul.mubr.f32.vlgmr.msra.gmra.mrb[44].mxu1 %v40089_v17 }
 0x857   : > { %34230 = vmatpush1.bf16.msra.mxu0 %v43064_v20  ;;  %34254 = vmatpush1.bf16.msra.mxu1 %v43065_v45 }
 0x858   : > { %19975 = vmatprep.mubr.f32.mxu0 %v42944_v49  ;;  %20466 = vmatprep.mubr.f32.mxu1 %v42944_v49 }
 0x859   : > { %34232 = vmatprep.subr.bf16.mxu0 %v43074_v27  ;;  %34256 = vmatprep.subr.bf16.mxu1 %v43075_v28 }
 0x85e   : > { %19979 = vmatmul.mubr.f32.vlgmr.msra.gmra.mrb[34].mxu0 %v40092_v15  ;;  %20470 = vmatmul.mubr.f32.vlgmr.msra.gmra.mrb[44].mxu1 %v40092_v15  ;;  %v43079_v15 = vld [vmem:[#allocation161_spill] sm:$0xff] }
 0x85f   : > { %34234 = vmatpush1.bf16.msra.mxu0 %v43076_v51  ;;  %34258 = vmatpush1.bf16.msra.mxu1 %v43077_v24 }
 0x860   : > { %20061 = vmatprep.mubr.f32.mxu0 %v42944_v49  ;;  %20552 = vmatprep.mubr.f32.mxu1 %v42944_v49 }
 0x861   : > { %34236 = vmatprep.subr.bf16.mxu0 %v43062_v59  ;;  %34260 = vmatprep.subr.bf16.mxu1 %v43063_v18  ;;  %v43082_v59 = vld [vmem:[#allocation164_spill] sm:$0xff] }
 0x865   : > { %v15230_v17 = vpop.f32.mrb[24].mxu0  ;;  %v15721_v27 = vpop.f32.mrb[34].mxu1 }
 0x866   : > { %v20650_v28 = vmul.f32 %v15230_v17, %v43078_v2  ;;  %v15232_v36 = vpop.f32.mrb[25].mxu0  ;;  %v15723_v47 = vpop.f32.mrb[35].mxu1  ;;  %20063 = vmatmul.mubr.f32.vlgmr.msra.gmra.mrb[34].mxu0 %v40086_v54  ;;  %20554 = vmatmul.mubr.f32.vlgmr.msra.gmra.mrb[44].mxu1 %v40086_v54  ;;  %v20654_v60 = vmul.f32 %v15721_v27, %v43080_v58  ;;  %v43081_v2 = vld [vmem:[#allocation163_spill] sm:$0xff]  ;;  %v43085_v58 = vld [vmem:[#allocation168_spill] sm:$0xff] }
 0x867   : > { %v20651_v24 = vmul.f32 %v15232_v36, %v43079_v15  ;;  %34238 = vmatpush1.bf16.msra.mxu0 %v43064_v20  ;;  %34262 = vmatpush1.bf16.msra.mxu1 %v43065_v45  ;;  %v20655_v18 = vmul.f32 %v15723_v47, %v43081_v2  ;;  %v43088_v47 = vld [vmem:[#allocation175_spill] sm:$0xff]  ;;  %v43095_v15 = vld [vmem:[#allocation182_spill] sm:$0xff] }
 0x868   : > { %v20652_v51 = vadd.f32 %v20650_v28, %v20648_v25  ;;  %20137 = vmatprep.mubr.f32.mxu0 %v42944_v49  ;;  %20628 = vmatprep.mubr.f32.mxu1 %v42944_v49  ;;  %v43083_v25 = vld [vmem:[#allocation167_spill] sm:$0xff] }
 0x869   : > { %v20653_v17 = vadd.f32 %v20651_v24, %v20649_v1  ;;  %34264 = vmatprep.subr.bf16.mxu0 %v43082_v59  ;;  %34456 = vmatprep.subr.bf16.mxu1 %v42869_v63  ;;  %v43084_v28 = vld [vmem:[#allocation35_spill] sm:$0xff]  ;;  %v43086_v1 = vld [vmem:[#allocation173_spill] sm:$0xff]  ;;  %v43089_v24 = vld [vmem:[#allocation68_spill] sm:$0xff] }
 0x86a   : > { %v20656_v55 = vadd.f32 %v20654_v60, %v20652_v51  ;;  %v423_v27 = vsub.s32 2, %v43084_v28  ;;  %v43091_v28 = vld [vmem:[#allocation177_spill] sm:$0xff]  ;;  %v43096_v20 = vld [vmem:[#allocation183_spill] sm:$0xff] }
 0x86b   : > { %v20657_v36 = vadd.f32 %v20655_v18, %v20653_v17  ;;  %v36057_v18 = vld [vmem:[%s41457_s2] sm:$0xf]  ;;  %v43090_v17 = vld [vmem:[#allocation176_spill] sm:$0xff] }
 0x86c   : > { %v424_v60 = vrot.slane %v36057_v18, %v423_v27  ;;  %v43092_v27 = vld [vmem:[#allocation178_spill] sm:$0xff]  ;;  %v43093_v18 = vld [vmem:[#allocation179_spill] sm:$0xff] }
 0x86e   : > { %20139 = vmatmul.mubr.f32.vlgmr.msra.gmra.mrb[34].mxu0 %v40086_v54  ;;  %20630 = vmatmul.mubr.f32.vlgmr.msra.gmra.mrb[44].mxu1 %v40086_v54  ;;  %v43087_v54 = vld [vmem:[#allocation174_spill] sm:$0xff]  ;;  %v35417_v51 = vadd.f32 %v43089_v24, %v424_v60  ;;  %v43094_v24 = vld [vmem:[#allocation181_spill] sm:$0xff] }
 0x86f   : > { %34266 = vmatpush1.bf16.msra.mxu0 %v43083_v25  ;;  %20794 = vmatprep.mubr.f32.mxu0 %v42944_v49 }
 0x870   : > { %34268 = vmatprep.subr.bf16.mxu0 %v43085_v58  ;;  %34458 = vmatpush3.bf16.msra.mxu1 %v42870_v12  ;;  %v40507_v2 = vand.u32 4294901760, %v35417_v51 }
 0x871   : > { %34460 = vmatprep.subr.bf16.mxu1 %v42872_v8 }
 0x872   : > { %v40514_v60 = vsub.f32 %v35417_v51, %v40507_v2 }
 0x873   : > { %34270 = vmatpush1.bf16.msra.mxu0 %v43086_v1 }
 0x874   : > { %34272 = vmatprep.subr.bf16.mxu0 %v43087_v54  ;;  %34462 = vmatpush3.bf16.msra.mxu1 %v42873_v31  ;;  %v42173_v45 = vand.u32 4294901760, %v40514_v60 }
 0x875   : > { %34464 = vmatprep.subr.bf16.mxu1 %v42874_v32 }
 0x876   : > { %v20798_v51 = vsub.f32 %v40514_v60, %v42173_v45  ;;  %v43103_v45 = vld [vmem:[#allocation190_spill] sm:$0xff] }
 0x877   : > { %34274 = vmatpush1.bf16.msra.mxu0 %v43088_v47 }
 0x878   : > { %34276 = vmatprep.subr.bf16.mxu0 %v43090_v17  ;;  %34466 = vmatpush3.bf16.msra.mxu1 %v42875_v48  ;;  %v20799_v23 = vand.u32 4294901760, %v20798_v51  ;;  %v43105_v51 = vld [vmem:[#allocation191_spill] sm:$0xff]  ;;  %v43111_v48 = vld [vmem:[#allocation198_spill] sm:$0xff] }
 0x879   : > { %34468 = vmatprep.subr.bf16.mxu1 %v42876_v22  ;;  %v43110_v22 = vld [vmem:[#allocation196_spill] sm:$0xff] }
 0x87b   : > { %34278 = vmatpush1.bf16.msra.mxu0 %v43091_v28 }
 0x87c   : > { %34280 = vmatprep.subr.bf16.mxu0 %v43092_v27  ;;  %34470 = vmatpush3.bf16.msra.mxu1 %v39202_v37 }
 0x87d   : > { %34472 = vmatprep.subr.bf16.mxu1 %v39213_v42 }
 0x87f   : > { %34282 = vmatpush1.bf16.msra.mxu0 %v43093_v18 }
 0x880   : > { %34284 = vmatprep.subr.bf16.mxu0 %v43094_v24  ;;  %34474 = vmatpush3.bf16.msra.mxu1 %v39222_v35  ;;  %v43109_v35 = vld [vmem:[#allocation193_spill] sm:$0xff] }
 0x881   : > { %34476 = vmatprep.subr.bf16.mxu1 %v39507_v0  ;;  %v43107_v0 = vld [vmem:[#allocation192_spill] sm:$0xff] }
 0x883   : > { %34286 = vmatpush1.bf16.msra.mxu0 %v43095_v15 }
 0x884   : > { %34288 = vmatprep.subr.bf16.mxu0 %v43096_v20  ;;  %34478 = vmatpush3.bf16.msra.mxu1 %v39509_v43 }
 0x885   : > { %34480 = vmatprep.subr.bf16.mxu1 %v39513_v50 }
 0x887   : > { %34290 = vmatpush1.bf16.msra.mxu0 %v43097_v29 }
 0x888   : > { %34292 = vmatprep.subr.bf16.mxu0 %v43098_v46  ;;  %34482 = vmatpush3.bf16.msra.mxu1 %v39525_v6 }
 0x889   : > { %34484 = vmatprep.subr.bf16.mxu1 %v42877_v10 }
 0x88b   : > { %34294 = vmatpush1.bf16.msra.mxu0 %v43099_v57 }
 0x88c   : > { %34296 = vmatprep.subr.bf16.mxu0 %v43100_v4  ;;  %34486 = vmatpush3.bf16.msra.mxu1 %v42883_v39  ;;  %v43106_v4 = vld [vmem:[#allocation194_spill] sm:$0xff] }
 0x88d   : > { %34488 = vmatprep.subr.bf16.mxu1 %v43101_v34 }
 0x88e   : > { %20800 = vmatmul.mubr.f32.vlgmr.msra.gmra.mrb[36].mxu0 %v20799_v23  ;;  %v43108_v23 = vld [vmem:[#allocation195_spill] sm:$0xff] }
 0x88f   : > { %34298 = vmatpush1.bf16.msra.mxu0 %v43102_v3  ;;  %21030 = vmatprep.mubr.f32.mxu0 %v42944_v49 }
 0x890   : > { %34300 = vmatprep.subr.bf16.mxu0 %v43103_v45 }
 0x891   : > { %v16212_v53 = vpop.f32.mrb[26].mxu0  ;;  %v16703_v40 = vpop.f32.mrb[36].mxu1 }
 0x892   : > { %v20658_v10 = vmul.f32 %v16212_v53, %v43104_v19  ;;  %v16214_v6 = vpop.f32.mrb[27].mxu0  ;;  %v16705_v50 = vpop.f32.mrb[37].mxu1  ;;  %v20662_v34 = vmul.f32 %v16703_v40, %v43107_v0  ;;  %v43112_v53 = vld [vmem:[#allocation199_spill] sm:$0xff]  ;;  %v43113_v19 = vld [vmem:[#allocation201_spill] sm:$0xff] }
 0x893   : > { %v20659_v43 = vmul.f32 %v16214_v6, %v43105_v51  ;;  %34302 = vmatpush1.bf16.msra.mxu0 %v43106_v4  ;;  %v20663_v42 = vmul.f32 %v16705_v50, %v43109_v35  ;;  %v43114_v6 = vld [vmem:[#allocation207_spill] sm:$0xff]  ;;  %v43116_v40 = vld [vmem:[#allocation209_spill] sm:$0xff]  ;;  %v43119_v50 = vld [vmem:[#allocation212_spill] sm:$0xff] }
 0x894   : > { %v20660_v39 = vadd.f32 %v20658_v10, %v20656_v55  ;;  %34304 = vmatprep.subr.bf16.mxu0 %v43108_v23  ;;  %v43115_v10 = vld [vmem:[#allocation208_spill] sm:$0xff]  ;;  %v43117_v55 = vld [vmem:[#allocation210_spill] sm:$0xff]  ;;  %v43136_v4 = vld [vmem:[#allocation223_spill] sm:$0xff] }
 0x895   : > { %v20661_v3 = vadd.f32 %v20659_v43, %v20657_v36  ;;  %v43118_v43 = vld [vmem:[#allocation211_spill] sm:$0xff]  ;;  %v43124_v36 = vld [vmem:[#allocation170_spill] sm:$0xff]  ;;  %v43137_v51 = vld [vmem:[#allocation224_spill] sm:$0xff] }
 0x896   : > { %v20664_v37 = vadd.f32 %v20662_v34, %v20660_v39  ;;  %v43121_v39 = vld [vmem:[#allocation165_spill] sm:$0xff]  ;;  %v43135_v23 = vld [vmem:[#allocation222_spill] sm:$0xff] }
 0x897   : > { %v20665_v45 = vadd.f32 %v20663_v42, %v20661_v3  ;;  %34306 = vmatpush1.bf16.msra.mxu0 %v43110_v22  ;;  %v43120_v42 = vld [vmem:[#allocation213_spill] sm:$0xff]  ;;  %v43122_v3 = vld [vmem:[#allocation166_spill] sm:$0xff]  ;;  %v43132_v22 = vld [vmem:[#allocation219_spill] sm:$0xff] }
 0x898   : > { %34308 = vmatprep.subr.bf16.mxu0 %v43111_v48  ;;  %v43123_v34 = vld [vmem:[#allocation169_spill] sm:$0xff]  ;;  %v43131_v48 = vld [vmem:[#allocation218_spill] sm:$0xff] }
 0x89b   : > { %34310 = vmatpush1.bf16.msra.mxu0 %v43112_v53 }
 0x89c   : > { %34312 = vmatprep.subr.bf16.mxu0 %v43113_v19 }
 0x89f   : > { %34314 = vmatpush1.bf16.msra.mxu0 %v43114_v6  ;;  %v43130_v6 = vld [vmem:[#allocation217_spill] sm:$0xff] }
 0x8a0   : > { %34316 = vmatprep.subr.bf16.mxu0 %v43115_v10 }
 0x8a3   : > { %34318 = vmatpush1.bf16.msra.mxu0 %v43116_v40  ;;  %v43125_v40 = vld [vmem:[#allocation171_spill] sm:$0xff] }
 0x8a4   : > { %34320 = vmatprep.subr.bf16.mxu0 %v43117_v55  ;;  %v43126_v55 = vld [vmem:[#allocation172_spill] sm:$0xff] }
 0x8a7   : > { %34322 = vmatpush1.bf16.msra.mxu0 %v43118_v43  ;;  %v43127_v43 = vld [vmem:[#allocation214_spill] sm:$0xff] }
 0x8a8   : > { %34324 = vmatprep.subr.bf16.mxu0 %v43119_v50  ;;  %v43128_v50 = vld [vmem:[#allocation215_spill] sm:$0xff] }
 0x8ab   : > { %34326 = vmatpush1.bf16.msra.mxu0 %v43120_v42  ;;  %v43129_v42 = vld [vmem:[#allocation216_spill] sm:$0xff] }
 0x8ac   : > { %34328 = vmatprep.subr.bf16.mxu0 %v43121_v39 }
 0x8ae   : > { %21032 = vmatmul.mubr.f32.vlgmr.msra.gmra.mrb[36].mxu0 %v40507_v2 }
 0x8af   : > { %34330 = vmatpush1.bf16.msra.mxu0 %v43122_v3  ;;  %21166 = vmatprep.mubr.f32.mxu0 %v42944_v49 }
 0x8b0   : > { %34332 = vmatprep.subr.bf16.mxu0 %v43123_v34 }
 0x8b3   : > { %34334 = vmatpush1.bf16.msra.mxu0 %v43124_v36 }
 0x8b4   : > { %34336 = vmatprep.subr.bf16.mxu0 %v43125_v40  ;;  %v43133_v40 = vld [vmem:[#allocation220_spill] sm:$0xff] }
 0x8b7   : > { %34338 = vmatpush1.bf16.msra.mxu0 %v43126_v55  ;;  %v43134_v55 = vld [vmem:[#allocation221_spill] sm:$0xff] }
 0x8b8   : > { %34340 = vmatprep.subr.bf16.mxu0 %v43127_v43 }
 0x8bb   : > { %34342 = vmatpush1.bf16.msra.mxu0 %v43128_v50 }
 0x8bc   : > { %34344 = vmatprep.subr.bf16.mxu0 %v43129_v42 }
 0x8bd   : > { %v17194_v39 = vpop.f32.mrb[28].mxu0  ;;  %v17685_v10 = vpop.f32.mrb[38].mxu1 }
 0x8be   : > { %v20666_v3 = vmul.f32 %v17194_v39, %v43130_v6  ;;  %v17196_v19 = vpop.f32.mrb[29].mxu0  ;;  %v17687_v53 = vpop.f32.mrb[39].mxu1  ;;  %v20670_v35 = vmul.f32 %v17685_v10, %v43133_v40  ;;  %v43138_v39 = vld [vmem:[#allocation225_spill] sm:$0xff]  ;;  %v43139_v6 = vld [vmem:[#allocation226_spill] sm:$0xff] }
 0x8bf   : > { %v20667_v34 = vmul.f32 %v17196_v19, %v43131_v48  ;;  %34346 = vmatpush1.bf16.msra.mxu0 %v43132_v22  ;;  %v20671_v50 = vmul.f32 %v17687_v53, %v43135_v23  ;;  %v43140_v19 = vld [vmem:[#allocation233_spill] sm:$0xff] }
 0x8c0   : > { %v20668_v36 = vadd.f32 %v20666_v3, %v20664_v37  ;;  %34348 = vmatprep.subr.bf16.mxu0 %v43134_v55  ;;  %v43146_v55 = vand.u32 4294901760, %v40514_v60 }
 0x8c1   : > { %v20669_v43 = vadd.f32 %v20667_v34, %v20665_v45  ;;  %v43141_v45 = vld [vmem:[#allocation254_spill] sm:$0xff] }
 0x8c2   : > { %v20672_v0 = vadd.f32 %v20670_v35, %v20668_v36  ;;  %v43143_v36 = vld [vmem:[#allocation256_spill] sm:$0xff] }
 0x8c3   : > { %v20673_v42 = vadd.f32 %v20671_v50, %v20669_v43  ;;  %34350 = vmatpush1.bf16.msra.mxu0 %v43136_v4  ;;  %v43142_v50 = vld [vmem:[#allocation255_spill] sm:$0xff] }
 0x8c4   : > { %34352 = vmatprep.subr.bf16.mxu0 %v43137_v51  ;;  %v43145_v51 = vld [vmem:[#allocation258_spill] sm:$0xff] }
 0x8c7   : > { %34354 = vmatpush1.bf16.msra.mxu0 %v43138_v39 }
 0x8c8   : > { %34356 = vmatprep.subr.bf16.mxu0 %v43139_v6  ;;  %v43144_v6 = vld [vmem:[#allocation257_spill] sm:$0xff] }
 0x8cb   : > { %34358 = vmatpush1.bf16.msra.mxu0 %v43140_v19 }
 0x8cc   : > { %34360 = vmatprep.subr.bf16.mxu0 %v43082_v59 }
 0x8ce   : > { %21169 = vmatmul.mubr.f32.vlgmr.msra.gmra.mrb[36].mxu0 %v40514_v60  ;;  %v43155_v60 = vld [vmem:[#allocation267_spill] sm:$0xff] }
 0x8cf   : > { %34362 = vmatpush1.bf16.msra.mxu0 %v43083_v25  ;;  %21271 = vmatprep.mubr.f32.mxu0 %v42944_v49 }
 0x8d0   : > { %34364 = vmatprep.subr.bf16.mxu0 %v43085_v58 }
 0x8d3   : > { %34366 = vmatpush1.bf16.msra.mxu0 %v43086_v1 }
 0x8d4   : > { %34368 = vmatprep.subr.bf16.mxu0 %v43087_v54 }
 0x8d7   : > { %34370 = vmatpush1.bf16.msra.mxu0 %v43088_v47 }
 0x8d8   : > { %34372 = vmatprep.subr.bf16.mxu0 %v43090_v17 }
 0x8db   : > { %34374 = vmatpush1.bf16.msra.mxu0 %v43091_v28 }
 0x8dc   : > { %34376 = vmatprep.subr.bf16.mxu0 %v43092_v27 }
 0x8df   : > { %34378 = vmatpush1.bf16.msra.mxu0 %v43093_v18 }
 0x8e0   : > { %34380 = vmatprep.subr.bf16.mxu0 %v43094_v24 }
 0x8e3   : > { %34382 = vmatpush1.bf16.msra.mxu0 %v43095_v15 }
 0x8e4   : > { %34384 = vmatprep.subr.bf16.mxu0 %v43096_v20 }
 0x8e7   : > { %34386 = vmatpush1.bf16.msra.mxu0 %v43097_v29 }
 0x8e8   : > { %34388 = vmatprep.subr.bf16.mxu0 %v43098_v46 }
 0x8e9   : > { %v18176_v37 = vpop.f32.mrb[30].mxu0  ;;  %v18667_v35 = vpop.f32.mrb[40].mxu1 }
 0x8ea   : > { %v20674_v53 = vmul.f32 %v18176_v37, %v43141_v45  ;;  %v18178_v10 = vpop.f32.mrb[31].mxu0  ;;  %v18669_v43 = vpop.f32.mrb[41].mxu1  ;;  %v20678_v19 = vmul.f32 %v18667_v35, %v43143_v36  ;;  %v43147_v37 = vld [vmem:[#allocation259_spill] sm:$0xff] }
 0x8eb   : > { %v20675_v3 = vmul.f32 %v18178_v10, %v43142_v50  ;;  %34390 = vmatpush1.bf16.msra.mxu0 %v43099_v57  ;;  %v20679_v4 = vmul.f32 %v18669_v43, %v43145_v51  ;;  %v43148_v10 = vld [vmem:[#allocation260_spill] sm:$0xff]  ;;  %v43149_v50 = vld [vmem:[#allocation261_spill] sm:$0xff]  ;;  %v43151_v35 = vld [vmem:[#allocation263_spill] sm:$0xff] }
 0x8ec   : > { %v20676_v34 = vadd.f32 %v20674_v53, %v20672_v0  ;;  %34392 = vmatprep.subr.bf16.mxu0 %v43144_v6  ;;  %v43150_v0 = vld [vmem:[#allocation262_spill] sm:$0xff]  ;;  %v43153_v53 = vld [vmem:[#allocation265_spill] sm:$0xff]  ;;  %v43159_v43 = vld [vmem:[#allocation200_spill] sm:$0xff] }
 0x8ed   : > { %v20677_v39 = vadd.f32 %v20675_v3, %v20673_v42  ;;  %v43152_v42 = vld [vmem:[#allocation264_spill] sm:$0xff]  ;;  %v43160_v3 = vld [vmem:[#allocation202_spill] sm:$0xff] }
 0x8ee   : > { %v20680_v23 = vadd.f32 %v20678_v19, %v20676_v34  ;;  %21275 = vmatmul.mubr.f32.vlgmr.msra.gmra.mrb[36].mxu0 %v43146_v55  ;;  %v43154_v19 = vld [vmem:[#allocation266_spill] sm:$0xff]  ;;  %v43157_v55 = vld [vmem:[#allocation269_spill] sm:$0xff]  ;;  %v43161_v34 = vld [vmem:[#allocation203_spill] sm:$0xff] }
 0x8ef   : > { %v20681_v40 = vadd.f32 %v20679_v4, %v20677_v39  ;;  %34394 = vmatpush1.bf16.msra.mxu0 %v43147_v37  ;;  %21441 = vmatprep.mubr.f32.mxu0 %v42944_v49  ;;  %v43156_v4 = vld [vmem:[#allocation268_spill] sm:$0xff]  ;;  %v43158_v39 = vld [vmem:[#allocation197_spill] sm:$0xff] }
 0x8f0   : > { %34396 = vmatprep.subr.bf16.mxu0 %v43148_v10 }
 0x8f3   : > { %34398 = vmatpush1.bf16.msra.mxu0 %v43149_v50  ;;  %v43165_v50 = vld [vmem:[#allocation180_spill] sm:$0xff] }
 0x8f4   : > { %34400 = vmatprep.subr.bf16.mxu0 %v43150_v0 }
 0x8f7   : > { %34402 = vmatpush1.bf16.msra.mxu0 %v43151_v35 }
 0x8f8   : > { %34404 = vmatprep.subr.bf16.mxu0 %v43152_v42  ;;  %v43164_v42 = vld [vmem:[#allocation206_spill] sm:$0xff] }
 0x8fb   : > { %34406 = vmatpush1.bf16.msra.mxu0 %v43153_v53 }
 0x8fc   : > { %34408 = vmatprep.subr.bf16.mxu0 %v43154_v19 }
 0x8ff   : > { %34410 = vmatpush1.bf16.msra.mxu0 %v43155_v60  ;;  %v43163_v60 = vld [vmem:[#allocation205_spill] sm:$0xff] }
 0x900   : > { %34412 = vmatprep.subr.bf16.mxu0 %v43156_v4 }
 0x903   : > { %34414 = vmatpush1.bf16.msra.mxu0 %v43157_v55  ;;  %v43162_v55 = vld [vmem:[#allocation204_spill] sm:$0xff] }
 0x904   : > { %34416 = vmatprep.subr.bf16.mxu0 %v43158_v39 }
 0x907   : > { %34418 = vmatpush1.bf16.msra.mxu0 %v43159_v43 }
 0x908   : > { %34420 = vmatprep.subr.bf16.mxu0 %v43160_v3 }
 0x90b   : > { %34422 = vmatpush1.bf16.msra.mxu0 %v43161_v34 }
 0x90c   : > { %34424 = vmatprep.subr.bf16.mxu0 %v43082_v59 }
 0x90e   : > { %21443 = vmatmul.mubr.f32.vlgmr.msra.gmra.mrb[36].mxu0 %v40507_v2 }
 0x90f   : > { %34426 = vmatpush1.bf16.msra.mxu0 %v43083_v25  ;;  %21545 = vmatprep.mubr.f32.mxu0 %v42944_v49 }
 0x910   : > { %34428 = vmatprep.subr.bf16.mxu0 %v43085_v58 }
 0x913   : > { %34430 = vmatpush1.bf16.msra.mxu0 %v43086_v1 }
 0x914   : > { %34432 = vmatprep.subr.bf16.mxu0 %v43087_v54 }
 0x915   : > { %v19158_v39 = vpop.f32.mrb[32].mxu0  ;;  %v19649_v43 = vpop.f32.mrb[42].mxu1 }
 0x916   : > { %v20682_v3 = vmul.f32 %v19158_v39, %v43162_v55  ;;  %v19160_v4 = vpop.f32.mrb[33].mxu0  ;;  %v19651_v34 = vpop.f32.mrb[43].mxu1  ;;  %v20686_v35 = vmul.f32 %v19649_v43, %v43164_v42  ;;  %v43170_v42 = vld [vmem:[#allocation272_spill] sm:$0xff] }
 0x917   : > { %v20683_v19 = vmul.f32 %v19160_v4, %v43163_v60  ;;  %34434 = vmatpush1.bf16.msra.mxu0 %v43088_v47  ;;  %v20687_v10 = vmul.f32 %v19651_v34, %v43165_v50  ;;  %v43168_v4 = vld [vmem:[#allocation270_spill] sm:$0xff] }
 0x918   : > { %v20684_v53 = vadd.f32 %v20682_v3, %v20680_v23  ;;  %34436 = vmatprep.subr.bf16.mxu0 %v43090_v17  ;;  %v43166_v23 = vld [vmem:[#allocation23_spill] sm:$0xff] }
 0x919   : > { %v20685_v0 = vadd.f32 %v20683_v19, %v20681_v40  ;;  %v43169_v3 = vld [vmem:[#allocation271_spill] sm:$0xff] }
 0x91a   : > { %v20688_v37 = vadd.f32 %v20686_v35, %v20684_v53 }
 0x91b   : > { %v20689_v51 = vadd.f32 %v20687_v10, %v20685_v0  ;;  %34438 = vmatpush1.bf16.msra.mxu0 %v43091_v28  ;;  %v43167_v0 = vld [vmem:[#allocation154_spill] sm:$0xff] }
 0x91c   : > { %34440 = vmatprep.subr.bf16.mxu0 %v43092_v27 }
 0x91f   : > { %34442 = vmatpush1.bf16.msra.mxu0 %v43093_v18 }
 0x920   : > { %34444 = vmatprep.subr.bf16.mxu0 %v43094_v24 }
 0x923   : > { %34446 = vmatpush1.bf16.msra.mxu0 %v43095_v15 }
 0x924   : > { %34448 = vmatprep.subr.bf16.mxu0 %v43096_v20 }
 0x927   : > { %34450 = vmatpush1.bf16.msra.mxu0 %v43097_v29 }
 0x928   : > { %34452 = vmatprep.subr.bf16.mxu0 %v43098_v46 }
 0x92b   : > { %34454 = vmatpush1.bf16.msra.mxu0 %v43099_v57 }
 0x92c   : > { %34648 = vmatprep.subr.bf16.mxu0 %v42952_v61 }
 0x92e   : > { %21547 = vmatmul.mubr.f32.vlgmr.msra.gmra.mrb[36].mxu0 %v40507_v2 }
 0x92f   : > { %34650 = vmatpush1.bf16.msra.mxu0 %v42953_v16  ;;  %22502 = vmatprep.mubr.f32.mxu0 %v42944_v49 }
 0x930   : > { %34652 = vmatprep.subr.bf16.mxu0 %v43166_v23 }
 0x941   : > { %v20140_v40 = vpop.f32.mrb[34].mxu0  ;;  %v20631_v10 = vpop.f32.mrb[44].mxu1 }
 0x942   : > { %v20690_v35 = vmul.f32 %v20140_v40, %v43167_v0  ;;  %v20142_v53 = vpop.f32.mrb[35].mxu0  ;;  %v20633_v19 = vpop.f32.mrb[45].mxu1  ;;  %v20694_v34 = vmul.f32 %v20631_v10, %v43169_v3 }
 0x943   : > { %v20691_v39 = vmul.f32 %v20142_v53, %v43168_v4  ;;  %v20695_v2 = vmul.f32 %v20633_v19, %v43170_v42 }
 0x944   : > { %v20692_v43 = vadd.f32 %v20690_v35, %v20688_v37 }
 0x945   : > { %v20693_v50 = vadd.f32 %v20691_v39, %v20689_v51  ;;  %v43176_v39 = vld [vmem:[#allocation248_spill] sm:$0xff] }
 0x946   : > { %v20696_v60 = vadd.f32 %v20694_v34, %v20692_v43  ;;  %v43177_v43 = vld [vmem:[#allocation155_spill] sm:$0xff]  ;;  %v43178_v34 = vld [vmem:[#allocation305_spill] sm:$0xff] }
 0x947   : > { %v20697_v55 = vadd.f32 %v20695_v2, %v20693_v50  ;;  %v43179_v2 = vld [vmem:[#allocation306_spill] sm:$0xff] }
 0xa01   : > { %v21548_v6 = vpop.f32.mrb[36].mxu0 }
 0xa02   : > { %v21553_v36 = vmul.f32 %v21548_v6, %v20696_v60  ;;  %v21550_v45 = vpop.f32.mrb[37].mxu0  ;;  %v43171_v6 = vld [vmem:[#allocation239_spill] sm:$0xff] }
 0xa03   : > { %v21554_v23 = vmul.f32 %v21550_v45, %v20697_v55  ;;  %v43172_v45 = vld [vmem:[#allocation240_spill] sm:$0xff]  ;;  %v43174_v60 = vld [vmem:[#allocation243_spill] sm:$0xff] }
 0xa04   : > { %v40649_v22 = vand.u32 4294901760, %v21553_v36  ;;  %v43175_v55 = vld [vmem:[#allocation247_spill] sm:$0xff] }
 0xa05   : > { %v40651_v48 = vand.u32 4294901760, %v21554_v23 }
 0xa06   : > { %v40654_v40 = vsub.f32 %v21553_v36, %v40649_v22  ;;  %v43173_v36 = vld [vmem:[#allocation242_spill] sm:$0xff] }
 0xa07   : > { %v21652_v37 = vsub.f32 %v21554_v23, %v40651_v48  ;;  %v43180_v23 = vld [vmem:[#allocation299_spill] sm:$0xff] }
 0xa08   : > { %v21659_v10 = vand.u32 4294901760, %v40654_v40 }
 0xa09   : > { %v21653_v51 = vand.u32 4294901760, %v21652_v37 }
 0xa0a   : > { %v21660_v35 = vsub.f32 %v40654_v40, %v21659_v10 }
 0xa0b   : > { %v21654_v53 = vsub.f32 %v21652_v37, %v21653_v51 }
 0xa0c   : > { %v21661_v19 = vand.u32 4294901760, %v21660_v35  ;;  %v43181_v35 = vld [vmem:[#allocation300_spill] sm:$0xff] }
 0xa0d   : > { %v21655_v50 = vand.u32 4294901760, %v21654_v53  ;;  %v43183_v53 = vld [vmem:[#allocation302_spill] sm:$0xff] }
 0xa0f   : > { %21656 = vmatprep.mubr.f32.mxu1 %v21655_v50  ;;  %v43184_v50 = vld [vmem:[#allocation303_spill] sm:$0xff] }
 0xa10   : > { %21662 = vmatmul.mubr.f32.vlgmr.msra.gmra.mrb[46].mxu1 %v21661_v19  ;;  %v43185_v19 = vld [vmem:[#allocation304_spill] sm:$0xff] }
 0xa11   : > { %34490 = vmatpush3.bf16.msra.mxu1 %v39745_v62  ;;  %21892 = vmatprep.mubr.f32.mxu1 %v40651_v48 }
 0xa12   : > { %34492 = vmatprep.subr.bf16.mxu1 %v39774_v41 }
 0xa15   : > { %34494 = vmatpush3.bf16.msra.mxu1 %v39824_v56 }
 0xa16   : > { %34496 = vmatprep.subr.bf16.mxu1 %v39826_v14 }
 0xa19   : > { %34498 = vmatpush3.bf16.msra.mxu1 %v39845_v5 }
 0xa1a   : > { %34500 = vmatprep.subr.bf16.mxu1 %v39855_v13 }
 0xa1d   : > { %34502 = vmatpush3.bf16.msra.mxu1 %v39858_v44 }
 0xa1e   : > { %34504 = vmatprep.subr.bf16.mxu1 %v39861_v30 }
 0xa21   : > { %34506 = vmatpush3.bf16.msra.mxu1 %v39864_v21 }
 0xa22   : > { %34508 = vmatprep.subr.bf16.mxu1 %v39586_v9 }
 0xa25   : > { %34510 = vmatpush3.bf16.msra.mxu1 %v39598_v26 }
 0xa26   : > { %34512 = vmatprep.subr.bf16.mxu1 %v39611_v38 }
 0xa29   : > { %34514 = vmatpush3.bf16.msra.mxu1 %v39618_v11  ;;  %v43209_v11 = vld [vmem:[#allocation282_spill] sm:$0xff] }
 0xa2a   : > { %34516 = vmatprep.subr.bf16.mxu1 %v39626_v33  ;;  %v43205_v33 = vld [vmem:[#allocation308_spill] sm:$0xff] }
 0xa2d   : > { %34518 = vmatpush3.bf16.msra.mxu1 %v39632_v7  ;;  %v43204_v7 = vld [vmem:[#allocation307_spill] sm:$0xff] }
 0xa2e   : > { %34520 = vmatprep.subr.bf16.mxu1 %v39630_v52  ;;  %v43203_v52 = vld [vmem:[#allocation228_spill] sm:$0xff] }
 0xa30   : > { %21894 = vmatmul.mubr.f32.vlgmr.msra.gmra.mrb[48].mxu1 %v40649_v22 }
 0xa31   : > { %34522 = vmatpush3.bf16.msra.mxu1 %v43171_v6  ;;  %22029 = vmatprep.mubr.f32.mxu1 %v21652_v37  ;;  %v43182_v37 = vld [vmem:[#allocation301_spill] sm:$0xff]  ;;  %v43202_v6 = vld [vmem:[#allocation227_spill] sm:$0xff] }
 0xa32   : > { %34524 = vmatprep.subr.bf16.mxu1 %v43172_v45  ;;  %v43201_v45 = vld [vmem:[#allocation246_spill] sm:$0xff] }
 0xa35   : > { %34526 = vmatpush3.bf16.msra.mxu1 %v43173_v36  ;;  %v43200_v36 = vld [vmem:[#allocation245_spill] sm:$0xff] }
 0xa36   : > { %34528 = vmatprep.subr.bf16.mxu1 %v43174_v60  ;;  %v43199_v60 = vld [vmem:[#allocation244_spill] sm:$0xff] }
 0xa39   : > { %34530 = vmatpush3.bf16.msra.mxu1 %v43175_v55  ;;  %v43198_v55 = vld [vmem:[#allocation241_spill] sm:$0xff] }
 0xa3a   : > { %34532 = vmatprep.subr.bf16.mxu1 %v43176_v39  ;;  %v43197_v39 = vld [vmem:[#allocation238_spill] sm:$0xff] }
 0xa3d   : > { %34534 = vmatpush3.bf16.msra.mxu1 %v43177_v43  ;;  %v43196_v43 = vld [vmem:[#allocation278_spill] sm:$0xff] }
 0xa3e   : > { %34536 = vmatprep.subr.bf16.mxu1 %v43178_v34  ;;  %v43195_v34 = vld [vmem:[#allocation277_spill] sm:$0xff] }
 0xa41   : > { %34538 = vmatpush3.bf16.msra.mxu1 %v43179_v2  ;;  %v43194_v2 = vld [vmem:[#allocation276_spill] sm:$0xff] }
 0xa42   : > { %34540 = vmatprep.subr.bf16.mxu1 %v43180_v23  ;;  %v43192_v23 = vld [vmem:[#allocation274_spill] sm:$0xff] }
 0xa45   : > { %34542 = vmatpush3.bf16.msra.mxu1 %v43181_v35  ;;  %v43190_v35 = vld [vmem:[#allocation253_spill] sm:$0xff] }
 0xa46   : > { %34544 = vmatprep.subr.bf16.mxu1 %v43182_v37  ;;  %v43186_v37 = vld [vmem:[#allocation249_spill] sm:$0xff] }
 0xa49   : > { %34546 = vmatpush3.bf16.msra.mxu1 %v43183_v53  ;;  %v43187_v53 = vld [vmem:[#allocation250_spill] sm:$0xff] }
 0xa4a   : > { %34548 = vmatprep.subr.bf16.mxu1 %v43184_v50  ;;  %v43188_v50 = vld [vmem:[#allocation251_spill] sm:$0xff] }
 0xa4d   : > { %34550 = vmatpush3.bf16.msra.mxu1 %v43185_v19  ;;  %v43189_v19 = vld [vmem:[#allocation252_spill] sm:$0xff] }
 0xa4e   : > { %34552 = vmatprep.subr.bf16.mxu1 %v42869_v63 }
 0xa50   : > { %22032 = vmatmul.mubr.f32.vlgmr.msra.gmra.mrb[50].mxu1 %v40654_v40  ;;  %v43191_v40 = vld [vmem:[#allocation273_spill] sm:$0xff] }
 0xa51   : > { %34554 = vmatpush3.bf16.msra.mxu1 %v42870_v12  ;;  %22136 = vmatprep.mubr.f32.mxu1 %v21653_v51  ;;  %v43193_v51 = vld [vmem:[#allocation275_spill] sm:$0xff] }
 0xa52   : > { %34556 = vmatprep.subr.bf16.mxu1 %v42872_v8 }
 0xa55   : > { %34558 = vmatpush3.bf16.msra.mxu1 %v42873_v31 }
 0xa56   : > { %34560 = vmatprep.subr.bf16.mxu1 %v42874_v32 }
 0xa59   : > { %34562 = vmatpush3.bf16.msra.mxu1 %v43186_v37 }
 0xa5a   : > { %34564 = vmatprep.subr.bf16.mxu1 %v43187_v53 }
 0xa5d   : > { %34566 = vmatpush3.bf16.msra.mxu1 %v43188_v50 }
 0xa5e   : > { %34568 = vmatprep.subr.bf16.mxu1 %v43189_v19 }
 0xa61   : > { %34570 = vmatpush3.bf16.msra.mxu1 %v43190_v35 }
 0xa62   : > { %34572 = vmatprep.subr.bf16.mxu1 %v43191_v40 }
 0xa65   : > { %34574 = vmatpush3.bf16.msra.mxu1 %v43192_v23 }
 0xa66   : > { %34576 = vmatprep.subr.bf16.mxu1 %v43193_v51 }
 0xa69   : > { %34578 = vmatpush3.bf16.msra.mxu1 %v43194_v2 }
 0xa6a   : > { %34580 = vmatprep.subr.bf16.mxu1 %v43195_v34 }
 0xa6d   : > { %34582 = vmatpush3.bf16.msra.mxu1 %v43196_v43 }
 0xa6e   : > { %34584 = vmatprep.subr.bf16.mxu1 %v43197_v39  ;;  %v43206_v39 = vld [vmem:[#allocation309_spill] sm:$0xff] }
 0xa70   : > { %22140 = vmatmul.mubr.f32.vlgmr.msra.gmra.mrb[52].mxu1 %v21659_v10  ;;  %v43207_v10 = vld [vmem:[#allocation280_spill] sm:$0xff] }
 0xa71   : > { %34586 = vmatpush3.bf16.msra.mxu1 %v43198_v55  ;;  %22306 = vmatprep.mubr.f32.mxu1 %v40651_v48  ;;  %v43208_v55 = vld [vmem:[#allocation281_spill] sm:$0xff] }
 0xa72   : > { %34588 = vmatprep.subr.bf16.mxu1 %v43199_v60  ;;  %v43210_v60 = vld [vmem:[#allocation283_spill] sm:$0xff] }
 0xa75   : > { %34590 = vmatpush3.bf16.msra.mxu1 %v43200_v36  ;;  %v43211_v36 = vld [vmem:[#allocation284_spill] sm:$0xff] }
 0xa76   : > { %34592 = vmatprep.subr.bf16.mxu1 %v43201_v45  ;;  %v43212_v45 = vld [vmem:[#allocation285_spill] sm:$0xff] }
 0xa79   : > { %34594 = vmatpush3.bf16.msra.mxu1 %v43202_v6 }
 0xa7a   : > { %34596 = vmatprep.subr.bf16.mxu1 %v43203_v52 }
 0xa7d   : > { %34598 = vmatpush3.bf16.msra.mxu1 %v43204_v7 }
 0xa7e   : > { %34600 = vmatprep.subr.bf16.mxu1 %v43205_v33 }
 0xa81   : > { %34602 = vmatpush3.bf16.msra.mxu1 %v43206_v39 }
 0xa82   : > { %34604 = vmatprep.subr.bf16.mxu1 %v43207_v10 }
 0xa85   : > { %34606 = vmatpush3.bf16.msra.mxu1 %v43208_v55 }
 0xa86   : > { %34608 = vmatprep.subr.bf16.mxu1 %v43209_v11 }
 0xa89   : > { %34610 = vmatpush3.bf16.msra.mxu1 %v43210_v60 }
 0xa8a   : > { %34612 = vmatprep.subr.bf16.mxu1 %v43211_v36  ;;  %v43215_v36 = vld [vmem:[#allocation25_spill] sm:$0xff] }
 0xa8d   : > { %34614 = vmatpush3.bf16.msra.mxu1 %v43212_v45  ;;  %v43214_v45 = vld [vmem:[#allocation22_spill] sm:$0xff] }
 0xa8e   : > { %34616 = vmatprep.subr.bf16.mxu1 %v42869_v63 }
 0xa90   : > { %22308 = vmatmul.mubr.f32.vlgmr.msra.gmra.mrb[54].mxu1 %v40649_v22 }
 0xa91   : > { %34618 = vmatpush3.bf16.msra.mxu1 %v42870_v12  ;;  %22410 = vmatprep.mubr.f32.mxu1 %v40651_v48  ;;  %v43213_v48 = vld [vmem:[#allocation20_spill] sm:$0xff] }
 0xa92   : > { %34620 = vmatprep.subr.bf16.mxu1 %v42872_v8 }
 0xa95   : > { %34622 = vmatpush3.bf16.msra.mxu1 %v42873_v31 }
 0xa96   : > { %34624 = vmatprep.subr.bf16.mxu1 %v42874_v32 }
 0xa99   : > { %34626 = vmatpush3.bf16.msra.mxu1 %v43186_v37 }
 0xa9a   : > { %34628 = vmatprep.subr.bf16.mxu1 %v43187_v53 }
 0xa9d   : > { %34630 = vmatpush3.bf16.msra.mxu1 %v43188_v50 }
 0xa9e   : > { %34632 = vmatprep.subr.bf16.mxu1 %v43189_v19 }
 0xaa1   : > { %34634 = vmatpush3.bf16.msra.mxu1 %v43190_v35 }
 0xaa2   : > { %34636 = vmatprep.subr.bf16.mxu1 %v43191_v40 }
 0xaa5   : > { %34638 = vmatpush3.bf16.msra.mxu1 %v43192_v23 }
 0xaa6   : > { %34640 = vmatprep.subr.bf16.mxu1 %v43193_v51 }
 0xaa9   : > { %34642 = vmatpush3.bf16.msra.mxu1 %v43194_v2 }
 0xaaa   : > { %34644 = vmatprep.subr.bf16.mxu1 %v43195_v34 }
 0xaad   : > { %34646 = vmatpush3.bf16.msra.mxu1 %v43196_v43 }
 0xaae   : > { %34672 = vmatprep.subr.bf16.mxu1 %v43213_v48 }
 0xab0   : > { %22412 = vmatmul.mubr.f32.vlgmr.msra.gmra.mrb[56].mxu1 %v40649_v22 }
 0xab1   : > { %34674 = vmatpush1.bf16.msra.mxu1 %v43214_v45  ;;  %22993 = vmatprep.mubr.f32.mxu1 %v42944_v49 }
 0xab2   : > { %34676 = vmatprep.subr.bf16.mxu1 %v43215_v36 }
 0xae3   : > { %v32627_v60 = vpop.f32.mrb[46].mxu1 }
 0xae4   : > { %v32628_v11 = vpop.f32.mrb[47].mxu1 }
 0xae5   : > { %v32629_v55 = vadd.f32 %v32628_v11, %v32627_v60 }
 0xb03   : > { %v32662_v10 = vpop.f32.mrb[48].mxu1 }
 0xb04   : > { %v32663_v39 = vpop.f32.mrb[49].mxu1 }
 0xb05   : > { %v32664_v33 = vadd.f32 %v32663_v39, %v32662_v10  ;;  %v43216_v10 = vld [vmem:[#allocation24_spill] sm:$0xff] }
 0xb07   : > { %v21896_v7 = vadd.f32 %v32664_v33, %v32629_v55 }
 0xb23   : > { %v32697_v52 = vpop.f32.mrb[50].mxu1 }
 0xb24   : > { %v32698_v6 = vpop.f32.mrb[51].mxu1 }
 0xb25   : > { %v32699_v38 = vadd.f32 %v32698_v6, %v32697_v52 }
 0xb27   : > { %v22034_v26 = vadd.f32 %v32699_v38, %v21896_v7 }
 0xb43   : > { %v32732_v9 = vpop.f32.mrb[52].mxu1 }
 0xb44   : > { %v32733_v21 = vpop.f32.mrb[53].mxu1 }
 0xb45   : > { %v32734_v22 = vadd.f32 %v32733_v21, %v32732_v9 }
 0xb47   : > { %v22142_v30 = vadd.f32 %v32734_v22, %v22034_v26  ;;  %v43217_v22 = vld [vmem:[#allocation28_spill] sm:$0xff] }
 0xb63   : > { %v32767_v44 = vpop.f32.mrb[54].mxu1 }
 0xb64   : > { %v32768_v13 = vpop.f32.mrb[55].mxu1 }
 0xb65   : > { %v32769_v5 = vadd.f32 %v32768_v13, %v32767_v44 }
 0xb67   : > { %v22310_v14 = vadd.f32 %v32769_v5, %v22142_v30 }
 0xb83   : > { %v32802_v36 = vpop.f32.mrb[56].mxu1 }
 0xb84   : > { %v32803_v56 = vpop.f32.mrb[57].mxu1 }
 0xb85   : > { %v32804_v41 = vadd.f32 %v32803_v56, %v32802_v36  ;;  %v43218_v36 = vld [vmem:[#allocation26_spill] sm:$0xff] }
 0xb87   : > { %v22414_v11 = vadd.f32 %v32804_v41, %v22310_v14 }
 0xb89   : > { %22417 = vadd.xlane.f32.xlu1 %v22414_v11  ;;  %v22420_v60 = vmul.f32 %v22414_v11, %v22414_v11 }
 0xb8d   : > { %22421 = vadd.xlane.f32.xlu1 %v22420_v60  ;;  %v43220_v60 = vld [vmem:[#allocation27_spill] sm:$0xff] }
 0xc16   : > { %v22418_v33 = vpop.xlane.xlu1 %22417 }
 0xc17   : > { %v22419_v55 = vmul.f32 0.0625, %v22418_v33  ;;  %v43221_v33 = vld [vmem:[#allocation30_spill] sm:$0xff] }
 0xc19   : > { %v22424_v52 = vmul.f32 %v22419_v55, %v22419_v55  ;;  %v22427_v26 = vsub.f32 %v22414_v11, %v22419_v55  ;;  %v43219_v11 = vld [vmem:[#allocation29_spill] sm:$0xff]  ;;  %v43222_v55 = vld [vmem:[#allocation31_spill] sm:$0xff] }
 0xc1a   : > { %v22422_v39 = vpop.xlane.xlu1 %22421 }
 0xc1b   : > { %v22423_v7 = vmul.f32 0.0625, %v22422_v39  ;;  %v43223_v39 = vld [vmem:[#allocation33_spill] sm:$0xff] }
 0xc1d   : > { %v22425_v38 = vsub.f32 %v22423_v7, %v22424_v52  ;;  %v43224_v52 = vld [vmem:[#allocation32_spill] sm:$0xff]  ;;  %v43225_v7 = vld [vmem:[#allocation34_spill] sm:$0xff] }
 0xc1f   : > { %v22426_v6 = vmax.f32 %v22425_v38, 0.0  ;;  %v43226_v38 = vld [vmem:[#allocation36_spill] sm:$0xff] }
 0xc21   : > { %v22428_v9 = vadd.f32 1e-05, %v22426_v6  ;;  %v43227_v6 = vld [vmem:[#allocation37_spill] sm:$0xff] }
 0xc23   : > { %36052 = vrsqrt.f32 %v22428_v9  ;;  %v43232_v9 = vld [vmem:[#allocation42_spill] sm:$0xff] }
 0xc2d   : > { %v36053_v21 = vpop.eup %36052 }
 0xc2e   : > { %v22430_v13 = vmul.f32 %v36053_v21, %v22427_v26  ;;  %v43233_v26 = vld [vmem:[#allocation43_spill] sm:$0xff]  ;;  %v43234_v21 = vld [vmem:[#allocation44_spill] sm:$0xff] }
 0xc30   : > { %v22432_v5 = vsel %vm1651_vm1, %v22430_v13, 0  ;;  %v43235_v13 = vld [vmem:[#allocation45_spill] sm:$0xff] }
 0xc31   : > { %v40750_v44 = vand.u32 4294901760, %v22432_v5 }
 0xc33   : > { %v40753_v56 = vsub.f32 %v22432_v5, %v40750_v44  ;;  %v43236_v5 = vld [vmem:[#allocation46_spill] sm:$0xff] }
 0xc35   : > { %v40756_v41 = vand.u32 4294901760, %v40753_v56 }
 0xc37   : > { %v22506_v14 = vsub.f32 %v40753_v56, %v40756_v41 }
 0xc39   : > { %v40760_v30 = vand.u32 4294901760, %v22506_v14  ;;  %v43237_v14 = vld [vmem:[#allocation47_spill] sm:$0xff] }
 0xc3b   : > { %22508 = vmatmul.mubr.f32.vlgmr.msra.gmra.mrb[38].mxu0 %v40760_v30  ;;  %22999 = vmatmul.mubr.f32.vlgmr.msra.gmra.mrb[58].mxu1 %v40760_v30 }
 0xc3c   : > { %34654 = vmatpush1.bf16.msra.mxu0 %v43216_v10  ;;  %34678 = vmatpush1.bf16.msra.mxu1 %v43217_v22  ;;  %v43238_v10 = vld [vmem:[#allocation48_spill] sm:$0xff]  ;;  %v43239_v22 = vld [vmem:[#allocation49_spill] sm:$0xff] }
 0xc3d   : > { %22598 = vmatprep.mubr.f32.mxu0 %v42944_v49  ;;  %23089 = vmatprep.mubr.f32.mxu1 %v42944_v49 }
 0xc3e   : > { %34656 = vmatprep.subr.bf16.mxu0 %v43218_v36  ;;  %34680 = vmatprep.subr.bf16.mxu1 %v43219_v11  ;;  %v43240_v36 = vld [vmem:[#allocation50_spill] sm:$0xff]  ;;  %v43241_v11 = vld [vmem:[#allocation51_spill] sm:$0xff] }
 0xc43   : > { %22600 = vmatmul.mubr.f32.vlgmr.msra.gmra.mrb[38].mxu0 %v40750_v44  ;;  %23091 = vmatmul.mubr.f32.vlgmr.msra.gmra.mrb[58].mxu1 %v40750_v44 }
 0xc44   : > { %34658 = vmatpush1.bf16.msra.mxu0 %v43220_v60  ;;  %34682 = vmatpush1.bf16.msra.mxu1 %v43221_v33  ;;  %v43242_v60 = vld [vmem:[#allocation52_spill] sm:$0xff]  ;;  %v43243_v33 = vld [vmem:[#allocation53_spill] sm:$0xff] }
 0xc45   : > { %22678 = vmatprep.mubr.f32.mxu0 %v42944_v49  ;;  %23169 = vmatprep.mubr.f32.mxu1 %v42944_v49 }
 0xc46   : > { %34660 = vmatprep.subr.bf16.mxu0 %v42952_v61  ;;  %34684 = vmatprep.subr.bf16.mxu1 %v43213_v48 }
 0xc4b   : > { %22681 = vmatmul.mubr.f32.vlgmr.msra.gmra.mrb[38].mxu0 %v40753_v56  ;;  %23172 = vmatmul.mubr.f32.vlgmr.msra.gmra.mrb[58].mxu1 %v40753_v56 }
 0xc4c   : > { %34662 = vmatpush1.bf16.msra.mxu0 %v42953_v16  ;;  %34686 = vmatpush1.bf16.msra.mxu1 %v43214_v45 }
 0xc4d   : > { %22755 = vmatprep.mubr.f32.mxu0 %v42944_v49  ;;  %23246 = vmatprep.mubr.f32.mxu1 %v42944_v49 }
 0xc4e   : > { %34664 = vmatprep.subr.bf16.mxu0 %v43222_v55  ;;  %34688 = vmatprep.subr.bf16.mxu1 %v43223_v39  ;;  %v43244_v55 = vld [vmem:[#allocation54_spill] sm:$0xff]  ;;  %v43245_v39 = vld [vmem:[#allocation55_spill] sm:$0xff] }
 0xc53   : > { %22759 = vmatmul.mubr.f32.vlgmr.msra.gmra.mrb[38].mxu0 %v40756_v41  ;;  %23250 = vmatmul.mubr.f32.vlgmr.msra.gmra.mrb[58].mxu1 %v40756_v41 }
 0xc54   : > { %34666 = vmatpush1.bf16.msra.mxu0 %v43224_v52  ;;  %34690 = vmatpush1.bf16.msra.mxu1 %v43225_v7  ;;  %v43246_v52 = vld [vmem:[#allocation56_spill] sm:$0xff]  ;;  %v43247_v7 = vld [vmem:[#allocation57_spill] sm:$0xff] }
 0xc55   : > { %22841 = vmatprep.mubr.f32.mxu0 %v42944_v49  ;;  %23332 = vmatprep.mubr.f32.mxu1 %v42944_v49 }
 0xc56   : > { %34668 = vmatprep.subr.bf16.mxu0 %v42952_v61  ;;  %34692 = vmatprep.subr.bf16.mxu1 %v43213_v48  ;;  %v43228_v61 = vld [vmem:[#allocation38_spill] sm:$0xff]  ;;  %v43229_v48 = vld [vmem:[#allocation39_spill] sm:$0xff] }
 0xc5b   : > { %22843 = vmatmul.mubr.f32.vlgmr.msra.gmra.mrb[38].mxu0 %v40750_v44  ;;  %23334 = vmatmul.mubr.f32.vlgmr.msra.gmra.mrb[58].mxu1 %v40750_v44 }
 0xc5c   : > { %34670 = vmatpush1.bf16.msra.mxu0 %v42953_v16  ;;  %34694 = vmatpush1.bf16.msra.mxu1 %v43214_v45  ;;  %v43230_v16 = vld [vmem:[#allocation40_spill] sm:$0xff]  ;;  %v43231_v45 = vld [vmem:[#allocation41_spill] sm:$0xff] }
 0xc5d   : > { %22917 = vmatprep.mubr.f32.mxu0 %v42944_v49  ;;  %23408 = vmatprep.mubr.f32.mxu1 %v42944_v49 }
 0xc5e   : > { %34696 = vmatprep.subr.bf16.mxu0 %v43226_v38  ;;  %34720 = vmatprep.subr.bf16.mxu1 %v43227_v6 }
 0xc63   : > { %22919 = vmatmul.mubr.f32.vlgmr.msra.gmra.mrb[38].mxu0 %v40750_v44  ;;  %23410 = vmatmul.mubr.f32.vlgmr.msra.gmra.mrb[58].mxu1 %v40750_v44 }
 0xc64   : > { %34698 = vmatpush1.bf16.msra.mxu0 %v43228_v61  ;;  %34722 = vmatpush1.bf16.msra.mxu1 %v43229_v48 }
 0xc65   : > { %23484 = vmatprep.mubr.f32.mxu0 %v42944_v49  ;;  %23975 = vmatprep.mubr.f32.mxu1 %v42944_v49 }
 0xc66   : > { %34700 = vmatprep.subr.bf16.mxu0 %v43230_v16  ;;  %34724 = vmatprep.subr.bf16.mxu1 %v43231_v45  ;;  %v43252_v16 = vld [vmem:[#allocation62_spill] sm:$0xff]  ;;  %v43253_v45 = vld [vmem:[#allocation63_spill] sm:$0xff] }
 0xc67   : > { %23490 = vmatmul.mubr.f32.vlgmr.msra.gmra.mrb[40].mxu0 %v40760_v30  ;;  %23981 = vmatmul.mubr.f32.vlgmr.msra.gmra.mrb[60].mxu1 %v40760_v30 }
 0xc68   : > { %34702 = vmatpush1.bf16.msra.mxu0 %v43232_v9  ;;  %34726 = vmatpush1.bf16.msra.mxu1 %v43233_v26  ;;  %v43254_v9 = vld [vmem:[#allocation64_spill] sm:$0xff]  ;;  %v43255_v26 = vld [vmem:[#allocation65_spill] sm:$0xff] }
 0xc69   : > { %23580 = vmatprep.mubr.f32.mxu0 %v42944_v49  ;;  %24071 = vmatprep.mubr.f32.mxu1 %v42944_v49 }
 0xc6a   : > { %34704 = vmatprep.subr.bf16.mxu0 %v43234_v21  ;;  %34728 = vmatprep.subr.bf16.mxu1 %v43235_v13  ;;  %v43256_v21 = vld [vmem:[#allocation66_spill] sm:$0xff]  ;;  %v43257_v13 = vld [vmem:[#allocation67_spill] sm:$0xff] }
 0xc6f   : > { %23582 = vmatmul.mubr.f32.vlgmr.msra.gmra.mrb[40].mxu0 %v40750_v44  ;;  %24073 = vmatmul.mubr.f32.vlgmr.msra.gmra.mrb[60].mxu1 %v40750_v44 }
 0xc70   : > { %34706 = vmatpush1.bf16.msra.mxu0 %v43236_v5  ;;  %34730 = vmatpush1.bf16.msra.mxu1 %v43237_v14  ;;  %v43258_v5 = vld [vmem:[#allocation69_spill] sm:$0xff]  ;;  %v43259_v14 = vld [vmem:[#allocation70_spill] sm:$0xff] }
 0xc71   : > { %23660 = vmatprep.mubr.f32.mxu0 %v42944_v49  ;;  %24151 = vmatprep.mubr.f32.mxu1 %v42944_v49 }
 0xc72   : > { %34708 = vmatprep.subr.bf16.mxu0 %v43226_v38  ;;  %34732 = vmatprep.subr.bf16.mxu1 %v43227_v6 }
 0xc77   : > { %23663 = vmatmul.mubr.f32.vlgmr.msra.gmra.mrb[40].mxu0 %v40753_v56  ;;  %24154 = vmatmul.mubr.f32.vlgmr.msra.gmra.mrb[60].mxu1 %v40753_v56 }
 0xc78   : > { %34710 = vmatpush1.bf16.msra.mxu0 %v43228_v61  ;;  %34734 = vmatpush1.bf16.msra.mxu1 %v43229_v48 }
 0xc79   : > { %23737 = vmatprep.mubr.f32.mxu0 %v42944_v49  ;;  %24228 = vmatprep.mubr.f32.mxu1 %v42944_v49 }
 0xc7a   : > { %34712 = vmatprep.subr.bf16.mxu0 %v43238_v10  ;;  %34736 = vmatprep.subr.bf16.mxu1 %v43239_v22  ;;  %v43260_v10 = vld [vmem:[#allocation72_spill] sm:$0xff]  ;;  %v43261_v22 = vld [vmem:[#allocation73_spill] sm:$0xff] }
 0xc7f   : > { %23741 = vmatmul.mubr.f32.vlgmr.msra.gmra.mrb[40].mxu0 %v40756_v41  ;;  %24232 = vmatmul.mubr.f32.vlgmr.msra.gmra.mrb[60].mxu1 %v40756_v41 }
 0xc80   : > { %34714 = vmatpush1.bf16.msra.mxu0 %v43240_v36  ;;  %34738 = vmatpush1.bf16.msra.mxu1 %v43241_v11  ;;  %v43262_v36 = vld [vmem:[#allocation74_spill] sm:$0xff]  ;;  %v43263_v11 = vld [vmem:[#allocation75_spill] sm:$0xff] }
 0xc81   : > { %23823 = vmatprep.mubr.f32.mxu0 %v42944_v49  ;;  %24314 = vmatprep.mubr.f32.mxu1 %v42944_v49 }
 0xc82   : > { %34716 = vmatprep.subr.bf16.mxu0 %v43226_v38  ;;  %34740 = vmatprep.subr.bf16.mxu1 %v43227_v6  ;;  %v43248_v38 = vld [vmem:[#allocation58_spill] sm:$0xff]  ;;  %v43249_v6 = vld [vmem:[#allocation59_spill] sm:$0xff] }
 0xc87   : > { %23825 = vmatmul.mubr.f32.vlgmr.msra.gmra.mrb[40].mxu0 %v40750_v44  ;;  %24316 = vmatmul.mubr.f32.vlgmr.msra.gmra.mrb[60].mxu1 %v40750_v44 }
 0xc88   : > { %34718 = vmatpush1.bf16.msra.mxu0 %v43228_v61  ;;  %34742 = vmatpush1.bf16.msra.mxu1 %v43229_v48  ;;  %v43250_v61 = vld [vmem:[#allocation60_spill] sm:$0xff]  ;;  %v43251_v48 = vld [vmem:[#allocation61_spill] sm:$0xff] }
 0xc89   : > { %23899 = vmatprep.mubr.f32.mxu0 %v42944_v49  ;;  %24390 = vmatprep.mubr.f32.mxu1 %v42944_v49 }
 0xc8a   : > { %34744 = vmatprep.subr.bf16.mxu0 %v43242_v60  ;;  %34768 = vmatprep.subr.bf16.mxu1 %v43243_v33 }
 0xc8f   : > { %23901 = vmatmul.mubr.f32.vlgmr.msra.gmra.mrb[40].mxu0 %v40750_v44  ;;  %24392 = vmatmul.mubr.f32.vlgmr.msra.gmra.mrb[60].mxu1 %v40750_v44 }
 0xc90   : > { %34746 = vmatpush1.bf16.msra.mxu0 %v43244_v55  ;;  %34770 = vmatpush1.bf16.msra.mxu1 %v43245_v39 }
 0xc91   : > { %24466 = vmatprep.mubr.f32.mxu0 %v42944_v49  ;;  %24957 = vmatprep.mubr.f32.mxu1 %v42944_v49 }
 0xc92   : > { %34748 = vmatprep.subr.bf16.mxu0 %v43246_v52  ;;  %34772 = vmatprep.subr.bf16.mxu1 %v43247_v7  ;;  %v43268_v52 = vld [vmem:[#allocation80_spill] sm:$0xff]  ;;  %v43269_v7 = vld [vmem:[#allocation81_spill] sm:$0xff] }
 0xc93   : > { %24472 = vmatmul.mubr.f32.vlgmr.msra.gmra.mrb[42].mxu0 %v40760_v30  ;;  %24963 = vmatmul.mubr.f32.vlgmr.msra.gmra.mrb[62].mxu1 %v40760_v30 }
 0xc94   : > { %34750 = vmatpush1.bf16.msra.mxu0 %v43248_v38  ;;  %34774 = vmatpush1.bf16.msra.mxu1 %v43249_v6  ;;  %v43270_v38 = vld [vmem:[#allocation82_spill] sm:$0xff]  ;;  %v43271_v6 = vld [vmem:[#allocation83_spill] sm:$0xff] }
 0xc95   : > { %24562 = vmatprep.mubr.f32.mxu0 %v42944_v49  ;;  %25053 = vmatprep.mubr.f32.mxu1 %v42944_v49 }
 0xc96   : > { %34752 = vmatprep.subr.bf16.mxu0 %v43250_v61  ;;  %34776 = vmatprep.subr.bf16.mxu1 %v43251_v48  ;;  %v43272_v61 = vld [vmem:[#allocation84_spill] sm:$0xff]  ;;  %v43273_v48 = vld [vmem:[#allocation85_spill] sm:$0xff] }
 0xc9b   : > { %24564 = vmatmul.mubr.f32.vlgmr.msra.gmra.mrb[42].mxu0 %v40750_v44  ;;  %25055 = vmatmul.mubr.f32.vlgmr.msra.gmra.mrb[62].mxu1 %v40750_v44 }
 0xc9c   : > { %34754 = vmatpush1.bf16.msra.mxu0 %v43252_v16  ;;  %34778 = vmatpush1.bf16.msra.mxu1 %v43253_v45  ;;  %v43274_v16 = vld [vmem:[#allocation86_spill] sm:$0xff]  ;;  %v43275_v45 = vld [vmem:[#allocation87_spill] sm:$0xff] }
 0xc9d   : > { %24642 = vmatprep.mubr.f32.mxu0 %v42944_v49  ;;  %25133 = vmatprep.mubr.f32.mxu1 %v42944_v49 }
 0xc9e   : > { %34756 = vmatprep.subr.bf16.mxu0 %v43242_v60  ;;  %34780 = vmatprep.subr.bf16.mxu1 %v43243_v33 }
 0xca3   : > { %24645 = vmatmul.mubr.f32.vlgmr.msra.gmra.mrb[42].mxu0 %v40753_v56  ;;  %25136 = vmatmul.mubr.f32.vlgmr.msra.gmra.mrb[62].mxu1 %v40753_v56 }
 0xca4   : > { %34758 = vmatpush1.bf16.msra.mxu0 %v43244_v55  ;;  %34782 = vmatpush1.bf16.msra.mxu1 %v43245_v39 }
 0xca5   : > { %24719 = vmatprep.mubr.f32.mxu0 %v42944_v49  ;;  %25210 = vmatprep.mubr.f32.mxu1 %v42944_v49 }
 0xca6   : > { %34760 = vmatprep.subr.bf16.mxu0 %v43254_v9  ;;  %34784 = vmatprep.subr.bf16.mxu1 %v43255_v26  ;;  %v43276_v9 = vld [vmem:[#allocation88_spill] sm:$0xff]  ;;  %v43277_v26 = vld [vmem:[#allocation89_spill] sm:$0xff] }
 0xcab   : > { %24723 = vmatmul.mubr.f32.vlgmr.msra.gmra.mrb[42].mxu0 %v40756_v41  ;;  %25214 = vmatmul.mubr.f32.vlgmr.msra.gmra.mrb[62].mxu1 %v40756_v41 }
 0xcac   : > { %34762 = vmatpush1.bf16.msra.mxu0 %v43256_v21  ;;  %34786 = vmatpush1.bf16.msra.mxu1 %v43257_v13  ;;  %v43278_v21 = vld [vmem:[#allocation90_spill] sm:$0xff]  ;;  %v43279_v13 = vld [vmem:[#allocation91_spill] sm:$0xff] }
 0xcad   : > { %24805 = vmatprep.mubr.f32.mxu0 %v42944_v49  ;;  %25296 = vmatprep.mubr.f32.mxu1 %v42944_v49 }
 0xcae   : > { %34764 = vmatprep.subr.bf16.mxu0 %v43242_v60  ;;  %34788 = vmatprep.subr.bf16.mxu1 %v43243_v33  ;;  %v43264_v60 = vld [vmem:[#allocation76_spill] sm:$0xff]  ;;  %v43265_v33 = vld [vmem:[#allocation77_spill] sm:$0xff] }
 0xcb3   : > { %24807 = vmatmul.mubr.f32.vlgmr.msra.gmra.mrb[42].mxu0 %v40750_v44  ;;  %25298 = vmatmul.mubr.f32.vlgmr.msra.gmra.mrb[62].mxu1 %v40750_v44 }
 0xcb4   : > { %34766 = vmatpush1.bf16.msra.mxu0 %v43244_v55  ;;  %34790 = vmatpush1.bf16.msra.mxu1 %v43245_v39  ;;  %v43266_v55 = vld [vmem:[#allocation78_spill] sm:$0xff]  ;;  %v43267_v39 = vld [vmem:[#allocation79_spill] sm:$0xff] }
 0xcb5   : > { %24881 = vmatprep.mubr.f32.mxu0 %v42944_v49  ;;  %25372 = vmatprep.mubr.f32.mxu1 %v42944_v49 }
 0xcb6   : > { %34792 = vmatprep.subr.bf16.mxu0 %v43258_v5  ;;  %34816 = vmatprep.subr.bf16.mxu1 %v43259_v14 }
 0xcbb   : > { %24883 = vmatmul.mubr.f32.vlgmr.msra.gmra.mrb[42].mxu0 %v40750_v44  ;;  %25374 = vmatmul.mubr.f32.vlgmr.msra.gmra.mrb[62].mxu1 %v40750_v44 }
 0xcbc   : > { %34794 = vmatpush1.bf16.msra.mxu0 %v43260_v10  ;;  %34818 = vmatpush1.bf16.msra.mxu1 %v43261_v22 }
 0xcbd   : > { %25448 = vmatprep.mubr.f32.mxu0 %v42944_v49  ;;  %25939 = vmatprep.mubr.f32.mxu1 %v42944_v49 }
 0xcbe   : > { %34796 = vmatprep.subr.bf16.mxu0 %v43262_v36  ;;  %34820 = vmatprep.subr.bf16.mxu1 %v43263_v11  ;;  %v43284_v36 = vld [vmem:[#allocation96_spill] sm:$0xff]  ;;  %v43285_v11 = vld [vmem:[#allocation97_spill] sm:$0xff] }
 0xcbf   : > { %25454 = vmatmul.mubr.f32.vlgmr.msra.gmra.mrb[44].mxu0 %v40760_v30  ;;  %25945 = vmatmul.mubr.f32.vlgmr.msra.gmra.mrb[64].mxu1 %v40760_v30 }
 0xcc0   : > { %34798 = vmatpush1.bf16.msra.mxu0 %v43264_v60  ;;  %34822 = vmatpush1.bf16.msra.mxu1 %v43265_v33  ;;  %v43286_v60 = vld [vmem:[#allocation98_spill] sm:$0xff]  ;;  %v43287_v33 = vld [vmem:[#allocation99_spill] sm:$0xff] }
 0xcc1   : > { %25544 = vmatprep.mubr.f32.mxu0 %v42944_v49  ;;  %26035 = vmatprep.mubr.f32.mxu1 %v42944_v49 }
 0xcc2   : > { %34800 = vmatprep.subr.bf16.mxu0 %v43266_v55  ;;  %34824 = vmatprep.subr.bf16.mxu1 %v43267_v39  ;;  %v43288_v55 = vld [vmem:[#allocation100_spill] sm:$0xff]  ;;  %v43289_v39 = vld [vmem:[#allocation101_spill] sm:$0xff] }
 0xcc7   : > { %25546 = vmatmul.mubr.f32.vlgmr.msra.gmra.mrb[44].mxu0 %v40750_v44  ;;  %26037 = vmatmul.mubr.f32.vlgmr.msra.gmra.mrb[64].mxu1 %v40750_v44 }
 0xcc8   : > { %34802 = vmatpush1.bf16.msra.mxu0 %v43268_v52  ;;  %34826 = vmatpush1.bf16.msra.mxu1 %v43269_v7  ;;  %v43290_v52 = vld [vmem:[#allocation102_spill] sm:$0xff]  ;;  %v43291_v7 = vld [vmem:[#allocation103_spill] sm:$0xff] }
 0xcc9   : > { %25624 = vmatprep.mubr.f32.mxu0 %v42944_v49  ;;  %26115 = vmatprep.mubr.f32.mxu1 %v42944_v49 }
 0xcca   : > { %34804 = vmatprep.subr.bf16.mxu0 %v43258_v5  ;;  %34828 = vmatprep.subr.bf16.mxu1 %v43259_v14 }
 0xccf   : > { %25627 = vmatmul.mubr.f32.vlgmr.msra.gmra.mrb[44].mxu0 %v40753_v56  ;;  %26118 = vmatmul.mubr.f32.vlgmr.msra.gmra.mrb[64].mxu1 %v40753_v56 }
 0xcd0   : > { %34806 = vmatpush1.bf16.msra.mxu0 %v43260_v10  ;;  %34830 = vmatpush1.bf16.msra.mxu1 %v43261_v22 }
 0xcd1   : > { %25701 = vmatprep.mubr.f32.mxu0 %v42944_v49  ;;  %26192 = vmatprep.mubr.f32.mxu1 %v42944_v49 }
 0xcd2   : > { %34808 = vmatprep.subr.bf16.mxu0 %v43270_v38  ;;  %34832 = vmatprep.subr.bf16.mxu1 %v43271_v6  ;;  %v43292_v38 = vld [vmem:[#allocation104_spill] sm:$0xff]  ;;  %v43293_v6 = vld [vmem:[#allocation105_spill] sm:$0xff] }
 0xcd7   : > { %25705 = vmatmul.mubr.f32.vlgmr.msra.gmra.mrb[44].mxu0 %v40756_v41  ;;  %26196 = vmatmul.mubr.f32.vlgmr.msra.gmra.mrb[64].mxu1 %v40756_v41 }
 0xcd8   : > { %34810 = vmatpush1.bf16.msra.mxu0 %v43272_v61  ;;  %34834 = vmatpush1.bf16.msra.mxu1 %v43273_v48  ;;  %v43294_v61 = vld [vmem:[#allocation106_spill] sm:$0xff]  ;;  %v43295_v48 = vld [vmem:[#allocation107_spill] sm:$0xff] }
 0xcd9   : > { %25787 = vmatprep.mubr.f32.mxu0 %v42944_v49  ;;  %26278 = vmatprep.mubr.f32.mxu1 %v42944_v49 }
 0xcda   : > { %34812 = vmatprep.subr.bf16.mxu0 %v43258_v5  ;;  %34836 = vmatprep.subr.bf16.mxu1 %v43259_v14  ;;  %v43280_v5 = vld [vmem:[#allocation92_spill] sm:$0xff]  ;;  %v43281_v14 = vld [vmem:[#allocation93_spill] sm:$0xff] }
 0xcdf   : > { %25789 = vmatmul.mubr.f32.vlgmr.msra.gmra.mrb[44].mxu0 %v40750_v44  ;;  %26280 = vmatmul.mubr.f32.vlgmr.msra.gmra.mrb[64].mxu1 %v40750_v44 }
 0xce0   : > { %34814 = vmatpush1.bf16.msra.mxu0 %v43260_v10  ;;  %34838 = vmatpush1.bf16.msra.mxu1 %v43261_v22  ;;  %v43282_v10 = vld [vmem:[#allocation94_spill] sm:$0xff]  ;;  %v43283_v22 = vld [vmem:[#allocation95_spill] sm:$0xff] }
 0xce1   : > { %25863 = vmatprep.mubr.f32.mxu0 %v42944_v49  ;;  %26354 = vmatprep.mubr.f32.mxu1 %v42944_v49 }
 0xce2   : > { %34840 = vmatprep.subr.bf16.mxu0 %v43274_v16  ;;  %34864 = vmatprep.subr.bf16.mxu1 %v43275_v45 }
 0xce7   : > { %25865 = vmatmul.mubr.f32.vlgmr.msra.gmra.mrb[44].mxu0 %v40750_v44  ;;  %26356 = vmatmul.mubr.f32.vlgmr.msra.gmra.mrb[64].mxu1 %v40750_v44 }
 0xce8   : > { %34842 = vmatpush1.bf16.msra.mxu0 %v43276_v9  ;;  %34866 = vmatpush1.bf16.msra.mxu1 %v43277_v26 }
 0xce9   : > { %26430 = vmatprep.mubr.f32.mxu0 %v42944_v49  ;;  %26921 = vmatprep.mubr.f32.mxu1 %v42944_v49 }
 0xcea   : > { %34844 = vmatprep.subr.bf16.mxu0 %v43278_v21  ;;  %34868 = vmatprep.subr.bf16.mxu1 %v43279_v13  ;;  %v43300_v21 = vld [vmem:[#allocation112_spill] sm:$0xff]  ;;  %v43301_v13 = vld [vmem:[#allocation113_spill] sm:$0xff] }
 0xceb   : > { %26436 = vmatmul.mubr.f32.vlgmr.msra.gmra.mrb[46].mxu0 %v40760_v30  ;;  %26927 = vmatmul.mubr.f32.vlgmr.msra.gmra.mrb[66].mxu1 %v40760_v30 }
 0xcec   : > { %34846 = vmatpush1.bf16.msra.mxu0 %v43280_v5  ;;  %34870 = vmatpush1.bf16.msra.mxu1 %v43281_v14  ;;  %v43302_v5 = vld [vmem:[#allocation114_spill] sm:$0xff]  ;;  %v43303_v14 = vld [vmem:[#allocation115_spill] sm:$0xff] }
 0xced   : > { %26526 = vmatprep.mubr.f32.mxu0 %v42944_v49  ;;  %27017 = vmatprep.mubr.f32.mxu1 %v42944_v49 }
 0xcee   : > { %34848 = vmatprep.subr.bf16.mxu0 %v43282_v10  ;;  %34872 = vmatprep.subr.bf16.mxu1 %v43283_v22  ;;  %v43304_v10 = vld [vmem:[#allocation116_spill] sm:$0xff]  ;;  %v43305_v22 = vld [vmem:[#allocation117_spill] sm:$0xff] }
 0xcf3   : > { %26528 = vmatmul.mubr.f32.vlgmr.msra.gmra.mrb[46].mxu0 %v40750_v44  ;;  %27019 = vmatmul.mubr.f32.vlgmr.msra.gmra.mrb[66].mxu1 %v40750_v44 }
 0xcf4   : > { %34850 = vmatpush1.bf16.msra.mxu0 %v43284_v36  ;;  %34874 = vmatpush1.bf16.msra.mxu1 %v43285_v11 }
 0xcf5   : > { %26606 = vmatprep.mubr.f32.mxu0 %v42944_v49  ;;  %27097 = vmatprep.mubr.f32.mxu1 %v42944_v49 }
 0xcf6   : > { %34852 = vmatprep.subr.bf16.mxu0 %v43274_v16  ;;  %34876 = vmatprep.subr.bf16.mxu1 %v43275_v45 }
 0xcfb   : > { %26609 = vmatmul.mubr.f32.vlgmr.msra.gmra.mrb[46].mxu0 %v40753_v56  ;;  %27100 = vmatmul.mubr.f32.vlgmr.msra.gmra.mrb[66].mxu1 %v40753_v56 }
 0xcfc   : > { %34854 = vmatpush1.bf16.msra.mxu0 %v43276_v9  ;;  %34878 = vmatpush1.bf16.msra.mxu1 %v43277_v26 }
 0xcfd   : > { %26683 = vmatprep.mubr.f32.mxu0 %v42944_v49  ;;  %27174 = vmatprep.mubr.f32.mxu1 %v42944_v49 }
 0xcfe   : > { %34856 = vmatprep.subr.bf16.mxu0 %v43286_v60  ;;  %34880 = vmatprep.subr.bf16.mxu1 %v43287_v33  ;;  %v43306_v60 = vld [vmem:[#allocation118_spill] sm:$0xff] }
 0xd03   : > { %26687 = vmatmul.mubr.f32.vlgmr.msra.gmra.mrb[46].mxu0 %v40756_v41  ;;  %27178 = vmatmul.mubr.f32.vlgmr.msra.gmra.mrb[66].mxu1 %v40756_v41 }
 0xd04   : > { %34858 = vmatpush1.bf16.msra.mxu0 %v43288_v55  ;;  %34882 = vmatpush1.bf16.msra.mxu1 %v43289_v39  ;;  %v43307_v55 = vld [vmem:[#allocation119_spill] sm:$0xff] }
 0xd05   : > { %26769 = vmatprep.mubr.f32.mxu0 %v42944_v49  ;;  %27260 = vmatprep.mubr.f32.mxu1 %v42944_v49 }
 0xd06   : > { %34860 = vmatprep.subr.bf16.mxu0 %v43274_v16  ;;  %34884 = vmatprep.subr.bf16.mxu1 %v43275_v45  ;;  %v43296_v16 = vld [vmem:[#allocation108_spill] sm:$0xff]  ;;  %v43297_v45 = vld [vmem:[#allocation109_spill] sm:$0xff] }
 0xd0b   : > { %26771 = vmatmul.mubr.f32.vlgmr.msra.gmra.mrb[46].mxu0 %v40750_v44  ;;  %27262 = vmatmul.mubr.f32.vlgmr.msra.gmra.mrb[66].mxu1 %v40750_v44 }
 0xd0c   : > { %34862 = vmatpush1.bf16.msra.mxu0 %v43276_v9  ;;  %34886 = vmatpush1.bf16.msra.mxu1 %v43277_v26  ;;  %v43298_v9 = vld [vmem:[#allocation110_spill] sm:$0xff]  ;;  %v43299_v26 = vld [vmem:[#allocation111_spill] sm:$0xff] }
 0xd0d   : > { %26845 = vmatprep.mubr.f32.mxu0 %v42944_v49  ;;  %27336 = vmatprep.mubr.f32.mxu1 %v42944_v49 }
 0xd0e   : > { %34888 = vmatprep.subr.bf16.mxu0 %v43290_v52  ;;  %34912 = vmatprep.subr.bf16.mxu1 %v43291_v7 }
 0xd13   : > { %26847 = vmatmul.mubr.f32.vlgmr.msra.gmra.mrb[46].mxu0 %v40750_v44  ;;  %27338 = vmatmul.mubr.f32.vlgmr.msra.gmra.mrb[66].mxu1 %v40750_v44 }
 0xd14   : > { %34890 = vmatpush1.bf16.msra.mxu0 %v43292_v38  ;;  %34914 = vmatpush1.bf16.msra.mxu1 %v43293_v6 }
 0xd15   : > { %27412 = vmatprep.mubr.f32.mxu0 %v42944_v49  ;;  %27903 = vmatprep.mubr.f32.mxu1 %v42944_v49 }
 0xd16   : > { %34892 = vmatprep.subr.bf16.mxu0 %v43294_v61  ;;  %34916 = vmatprep.subr.bf16.mxu1 %v43295_v48 }
 0xd17   : > { %27418 = vmatmul.mubr.f32.vlgmr.msra.gmra.mrb[48].mxu0 %v40760_v30  ;;  %27909 = vmatmul.mubr.f32.vlgmr.msra.gmra.mrb[68].mxu1 %v40760_v30 }
 0xd18   : > { %34894 = vmatpush1.bf16.msra.mxu0 %v43296_v16  ;;  %34918 = vmatpush1.bf16.msra.mxu1 %v43297_v45  ;;  %v43308_v16 = vld [vmem:[#allocation120_spill] sm:$0xff] }
 0xd19   : > { %27508 = vmatprep.mubr.f32.mxu0 %v42944_v49  ;;  %27999 = vmatprep.mubr.f32.mxu1 %v42944_v49 }
 0xd1a   : > { %34896 = vmatprep.subr.bf16.mxu0 %v43298_v9  ;;  %34920 = vmatprep.subr.bf16.mxu1 %v43299_v26  ;;  %v43309_v9 = vld [vmem:[#allocation121_spill] sm:$0xff] }
 0xd1f   : > { %27510 = vmatmul.mubr.f32.vlgmr.msra.gmra.mrb[48].mxu0 %v40750_v44  ;;  %28001 = vmatmul.mubr.f32.vlgmr.msra.gmra.mrb[68].mxu1 %v40750_v44 }
 0xd20   : > { %34898 = vmatpush1.bf16.msra.mxu0 %v43300_v21  ;;  %34922 = vmatpush1.bf16.msra.mxu1 %v43301_v13  ;;  %v43310_v21 = vld [vmem:[#allocation122_spill] sm:$0xff]  ;;  %v43311_v13 = vld [vmem:[#allocation123_spill] sm:$0xff] }
 0xd21   : > { %27588 = vmatprep.mubr.f32.mxu0 %v42944_v49  ;;  %28079 = vmatprep.mubr.f32.mxu1 %v42944_v49 }
 0xd22   : > { %34900 = vmatprep.subr.bf16.mxu0 %v43290_v52  ;;  %34924 = vmatprep.subr.bf16.mxu1 %v43291_v7 }
 0xd27   : > { %27591 = vmatmul.mubr.f32.vlgmr.msra.gmra.mrb[48].mxu0 %v40753_v56  ;;  %28082 = vmatmul.mubr.f32.vlgmr.msra.gmra.mrb[68].mxu1 %v40753_v56 }
 0xd28   : > { %34902 = vmatpush1.bf16.msra.mxu0 %v43292_v38  ;;  %34926 = vmatpush1.bf16.msra.mxu1 %v43293_v6 }
 0xd29   : > { %27665 = vmatprep.mubr.f32.mxu0 %v42944_v49  ;;  %28156 = vmatprep.mubr.f32.mxu1 %v42944_v49 }
 0xd2a   : > { %34904 = vmatprep.subr.bf16.mxu0 %v43302_v5  ;;  %34928 = vmatprep.subr.bf16.mxu1 %v43303_v14  ;;  %v43312_v5 = vld [vmem:[#allocation124_spill] sm:$0xff]  ;;  %v43313_v14 = vld [vmem:[#allocation125_spill] sm:$0xff] }
 0xd2f   : > { %27669 = vmatmul.mubr.f32.vlgmr.msra.gmra.mrb[48].mxu0 %v40756_v41  ;;  %28160 = vmatmul.mubr.f32.vlgmr.msra.gmra.mrb[68].mxu1 %v40756_v41 }
 0xd30   : > { %34906 = vmatpush1.bf16.msra.mxu0 %v43304_v10  ;;  %34930 = vmatpush1.bf16.msra.mxu1 %v43305_v22  ;;  %v43316_v10 = vld [vmem:[#allocation128_spill] sm:$0xff]  ;;  %v43317_v22 = vld [vmem:[#allocation129_spill] sm:$0xff] }
 0xd31   : > { %27751 = vmatprep.mubr.f32.mxu0 %v42944_v49  ;;  %28242 = vmatprep.mubr.f32.mxu1 %v42944_v49 }
 0xd32   : > { %34908 = vmatprep.subr.bf16.mxu0 %v43290_v52  ;;  %34932 = vmatprep.subr.bf16.mxu1 %v43291_v7 }
 0xd36   : > { %v22920_v36 = vpop.f32.mrb[38].mxu0  ;;  %v23411_v11 = vpop.f32.mrb[58].mxu1 }
 0xd37   : > { %v30290_v33 = vmul.f32 %v22920_v36, %v43306_v60  ;;  %v30292_v39 = vmul.f32 %v23411_v11, %v43307_v55  ;;  %v22922_v61 = vpop.f32.mrb[39].mxu0  ;;  %v23413_v48 = vpop.f32.mrb[59].mxu1  ;;  %27753 = vmatmul.mubr.f32.vlgmr.msra.gmra.mrb[48].mxu0 %v40750_v44  ;;  %28244 = vmatmul.mubr.f32.vlgmr.msra.gmra.mrb[68].mxu1 %v40750_v44  ;;  %v43318_v36 = vld [vmem:[#allocation130_spill] sm:$0xff]  ;;  %v43319_v11 = vld [vmem:[#allocation131_spill] sm:$0xff]  ;;  %v43320_v60 = vld [vmem:[#allocation132_spill] sm:$0xff] }
 0xd38   : > { %v30291_v45 = vmul.f32 %v22922_v61, %v43308_v16  ;;  %v30293_v26 = vmul.f32 %v23413_v48, %v43309_v9  ;;  %34910 = vmatpush1.bf16.msra.mxu0 %v43292_v38  ;;  %34934 = vmatpush1.bf16.msra.mxu1 %v43293_v6  ;;  %v43314_v38 = vld [vmem:[#allocation126_spill] sm:$0xff]  ;;  %v43315_v6 = vld [vmem:[#allocation127_spill] sm:$0xff]  ;;  %v43324_v61 = vld [vmem:[#allocation136_spill] sm:$0xff] }
 0xd39   : > { %v30294_v52 = vadd.f32 %v30292_v39, %v30290_v33  ;;  %27827 = vmatprep.mubr.f32.mxu0 %v42944_v49  ;;  %28318 = vmatprep.mubr.f32.mxu1 %v42944_v49  ;;  %v43321_v33 = vld [vmem:[#allocation133_spill] sm:$0xff]  ;;  %v43322_v55 = vld [vmem:[#allocation134_spill] sm:$0xff]  ;;  %v43323_v39 = vld [vmem:[#allocation135_spill] sm:$0xff] }
 0xd3a   : > { %v30295_v7 = vadd.f32 %v30293_v26, %v30291_v45  ;;  %34936 = vmatprep.subr.bf16.mxu0 %v43310_v21  ;;  %34960 = vmatprep.subr.bf16.mxu1 %v43311_v13  ;;  %v43325_v48 = vld [vmem:[#allocation137_spill] sm:$0xff]  ;;  %v43326_v9 = vld [vmem:[#allocation138_spill] sm:$0xff] }
 0xd3f   : > { %27829 = vmatmul.mubr.f32.vlgmr.msra.gmra.mrb[48].mxu0 %v40750_v44  ;;  %28320 = vmatmul.mubr.f32.vlgmr.msra.gmra.mrb[68].mxu1 %v40750_v44 }
 0xd40   : > { %34938 = vmatpush1.bf16.msra.mxu0 %v43312_v5  ;;  %34962 = vmatpush1.bf16.msra.mxu1 %v43313_v14 }
 0xd41   : > { %28394 = vmatprep.mubr.f32.mxu0 %v42944_v49  ;;  %28885 = vmatprep.mubr.f32.mxu1 %v42944_v49 }
 0xd42   : > { %34940 = vmatprep.subr.bf16.mxu0 %v43314_v38  ;;  %34964 = vmatprep.subr.bf16.mxu1 %v43315_v6 }
 0xd43   : > { %28400 = vmatmul.mubr.f32.vlgmr.msra.gmra.mrb[50].mxu0 %v40760_v30  ;;  %28891 = vmatmul.mubr.f32.vlgmr.msra.gmra.mrb[70].mxu1 %v40760_v30 }
 0xd44   : > { %34942 = vmatpush1.bf16.msra.mxu0 %v43316_v10  ;;  %34966 = vmatpush1.bf16.msra.mxu1 %v43317_v22  ;;  %v43327_v10 = vld [vmem:[#allocation139_spill] sm:$0xff] }
 0xd45   : > { %28490 = vmatprep.mubr.f32.mxu0 %v42944_v49  ;;  %28981 = vmatprep.mubr.f32.mxu1 %v42944_v49 }
 0xd46   : > { %34944 = vmatprep.subr.bf16.mxu0 %v43318_v36  ;;  %34968 = vmatprep.subr.bf16.mxu1 %v43319_v11 }
 0xd4b   : > { %28492 = vmatmul.mubr.f32.vlgmr.msra.gmra.mrb[50].mxu0 %v40750_v44  ;;  %28983 = vmatmul.mubr.f32.vlgmr.msra.gmra.mrb[70].mxu1 %v40750_v44 }
 0xd4c   : > { %34946 = vmatpush1.bf16.msra.mxu0 %v43320_v60  ;;  %34970 = vmatpush1.bf16.msra.mxu1 %v43321_v33  ;;  %v43329_v60 = vld [vmem:[#allocation141_spill] sm:$0xff] }
 0xd4d   : > { %28570 = vmatprep.mubr.f32.mxu0 %v42944_v49  ;;  %29061 = vmatprep.mubr.f32.mxu1 %v42944_v49 }
 0xd4e   : > { %34948 = vmatprep.subr.bf16.mxu0 %v43310_v21  ;;  %34972 = vmatprep.subr.bf16.mxu1 %v43311_v13 }
 0xd53   : > { %28573 = vmatmul.mubr.f32.vlgmr.msra.gmra.mrb[50].mxu0 %v40753_v56  ;;  %29064 = vmatmul.mubr.f32.vlgmr.msra.gmra.mrb[70].mxu1 %v40753_v56 }
 0xd54   : > { %34950 = vmatpush1.bf16.msra.mxu0 %v43312_v5  ;;  %34974 = vmatpush1.bf16.msra.mxu1 %v43313_v14 }
 0xd55   : > { %28647 = vmatprep.mubr.f32.mxu0 %v42944_v49  ;;  %29138 = vmatprep.mubr.f32.mxu1 %v42944_v49 }
 0xd56   : > { %34952 = vmatprep.subr.bf16.mxu0 %v43322_v55  ;;  %34976 = vmatprep.subr.bf16.mxu1 %v43323_v39  ;;  %v43330_v55 = vld [vmem:[#allocation142_spill] sm:$0xff]  ;;  %v43331_v39 = vld [vmem:[#allocation143_spill] sm:$0xff] }
 0xd5b   : > { %28651 = vmatmul.mubr.f32.vlgmr.msra.gmra.mrb[50].mxu0 %v40756_v41  ;;  %29142 = vmatmul.mubr.f32.vlgmr.msra.gmra.mrb[70].mxu1 %v40756_v41 }
 0xd5c   : > { %34954 = vmatpush1.bf16.msra.mxu0 %v43324_v61  ;;  %34978 = vmatpush1.bf16.msra.mxu1 %v43325_v48 }
 0xd5d   : > { %28733 = vmatprep.mubr.f32.mxu0 %v42944_v49  ;;  %29224 = vmatprep.mubr.f32.mxu1 %v42944_v49 }
 0xd5e   : > { %34956 = vmatprep.subr.bf16.mxu0 %v43310_v21  ;;  %34980 = vmatprep.subr.bf16.mxu1 %v43311_v13  ;;  %v43328_v21 = vld [vmem:[#allocation140_spill] sm:$0xff] }
 0xd62   : > { %v23902_v16 = vpop.f32.mrb[40].mxu0  ;;  %v24393_v45 = vpop.f32.mrb[60].mxu1 }
 0xd63   : > { %v30296_v26 = vmul.f32 %v23902_v16, %v43326_v9  ;;  %v23904_v38 = vpop.f32.mrb[41].mxu0  ;;  %v24395_v6 = vpop.f32.mrb[61].mxu1  ;;  %28735 = vmatmul.mubr.f32.vlgmr.msra.gmra.mrb[50].mxu0 %v40750_v44  ;;  %29226 = vmatmul.mubr.f32.vlgmr.msra.gmra.mrb[70].mxu1 %v40750_v44  ;;  %v30300_v11 = vmul.f32 %v24393_v45, %v43328_v21  ;;  %v43336_v16 = vld [vmem:[#allocation148_spill] sm:$0xff]  ;;  %v43337_v45 = vld [vmem:[#allocation149_spill] sm:$0xff]  ;;  %v43338_v9 = vld [vmem:[#allocation150_spill] sm:$0xff] }
 0xd64   : > { %v30297_v22 = vmul.f32 %v23904_v38, %v43327_v10  ;;  %34958 = vmatpush1.bf16.msra.mxu0 %v43312_v5  ;;  %34982 = vmatpush1.bf16.msra.mxu1 %v43313_v14  ;;  %v30301_v33 = vmul.f32 %v24395_v6, %v43329_v60  ;;  %v43333_v5 = vld [vmem:[#allocation145_spill] sm:$0xff]  ;;  %v43335_v14 = vld [vmem:[#allocation147_spill] sm:$0xff]  ;;  %v43340_v38 = vld [vmem:[#allocation152_spill] sm:$0xff] }
 0xd65   : > { %v30298_v36 = vadd.f32 %v30296_v26, %v30294_v52  ;;  %28809 = vmatprep.mubr.f32.mxu0 %v42944_v49  ;;  %29300 = vmatprep.mubr.f32.mxu1 %v42944_v49  ;;  %v43332_v52 = vld [vmem:[#allocation144_spill] sm:$0xff]  ;;  %v43339_v26 = vld [vmem:[#allocation151_spill] sm:$0xff]  ;;  %v43341_v6 = vld [vmem:[#allocation153_spill] sm:$0xff] }
 0xd66   : > { %v30299_v13 = vadd.f32 %v30297_v22, %v30295_v7  ;;  %34984 = vmatprep.subr.bf16.mxu0 %v43330_v55  ;;  %35008 = vmatprep.subr.bf16.mxu1 %v43331_v39  ;;  %v43334_v7 = vld [vmem:[#allocation146_spill] sm:$0xff]  ;;  %v43343_v10 = vld [vmem:[#allocation157_spill] sm:$0xff] }
 0xd67   : > { %v30302_v61 = vadd.f32 %v30300_v11, %v30298_v36  ;;  %v43344_v22 = vld [vmem:[#allocation158_spill] sm:$0xff]  ;;  %v43345_v36 = vld [vmem:[#allocation159_spill] sm:$0xff]  ;;  %v43346_v11 = vld [vmem:[#allocation160_spill] sm:$0xff] }
 0xd68   : > { %v30303_v48 = vadd.f32 %v30301_v33, %v30299_v13 }
 0xd6b   : > { %28811 = vmatmul.mubr.f32.vlgmr.msra.gmra.mrb[50].mxu0 %v40750_v44  ;;  %29302 = vmatmul.mubr.f32.vlgmr.msra.gmra.mrb[70].mxu1 %v40750_v44 }
 0xd6c   : > { %34986 = vmatpush1.bf16.msra.mxu0 %v43332_v52  ;;  %35010 = vmatpush1.bf16.msra.mxu1 %v43333_v5 }
 0xd6d   : > { %29376 = vmatprep.mubr.f32.mxu0 %v42944_v49  ;;  %29867 = vmatprep.mubr.f32.mxu1 %v42944_v49 }
 0xd6e   : > { %34988 = vmatprep.subr.bf16.mxu0 %v43334_v7  ;;  %35012 = vmatprep.subr.bf16.mxu1 %v43335_v14 }
 0xd6f   : > { %29382 = vmatmul.mubr.f32.vlgmr.msra.gmra.mrb[52].mxu0 %v40760_v30  ;;  %29873 = vmatmul.mubr.f32.vlgmr.msra.gmra.mrb[72].mxu1 %v40760_v30  ;;  %v43342_v30 = vld [vmem:[#allocation156_spill] sm:$0xff] }
 0xd70   : > { %34990 = vmatpush1.bf16.msra.mxu0 %v43336_v16  ;;  %35014 = vmatpush1.bf16.msra.mxu1 %v43337_v45  ;;  %v43349_v45 = vld [vmem:[#allocation163_spill] sm:$0xff] }
 0xd71   : > { %29472 = vmatprep.mubr.f32.mxu0 %v42944_v49  ;;  %29963 = vmatprep.mubr.f32.mxu1 %v42944_v49 }
 0xd72   : > { %34992 = vmatprep.subr.bf16.mxu0 %v43338_v9  ;;  %35016 = vmatprep.subr.bf16.mxu1 %v43339_v26 }
 0xd77   : > { %29474 = vmatmul.mubr.f32.vlgmr.msra.gmra.mrb[52].mxu0 %v40750_v44  ;;  %29965 = vmatmul.mubr.f32.vlgmr.msra.gmra.mrb[72].mxu1 %v40750_v44 }
 0xd78   : > { %34994 = vmatpush1.bf16.msra.mxu0 %v43340_v38  ;;  %35018 = vmatpush1.bf16.msra.mxu1 %v43341_v6 }
 0xd79   : > { %29552 = vmatprep.mubr.f32.mxu0 %v42944_v49  ;;  %30043 = vmatprep.mubr.f32.mxu1 %v42944_v49 }
 0xd7a   : > { %34996 = vmatprep.subr.bf16.mxu0 %v43330_v55  ;;  %35020 = vmatprep.subr.bf16.mxu1 %v43331_v39 }
 0xd7f   : > { %29555 = vmatmul.mubr.f32.vlgmr.msra.gmra.mrb[52].mxu0 %v40753_v56  ;;  %30046 = vmatmul.mubr.f32.vlgmr.msra.gmra.mrb[72].mxu1 %v40753_v56 }
 0xd80   : > { %34998 = vmatpush1.bf16.msra.mxu0 %v43332_v52  ;;  %35022 = vmatpush1.bf16.msra.mxu1 %v43333_v5 }
 0xd81   : > { %29629 = vmatprep.mubr.f32.mxu0 %v42944_v49  ;;  %30120 = vmatprep.mubr.f32.mxu1 %v42944_v49 }
 0xd82   : > { %35000 = vmatprep.subr.bf16.mxu0 %v43342_v30  ;;  %35024 = vmatprep.subr.bf16.mxu1 %v43343_v10 }
 0xd87   : > { %29633 = vmatmul.mubr.f32.vlgmr.msra.gmra.mrb[52].mxu0 %v40756_v41  ;;  %30124 = vmatmul.mubr.f32.vlgmr.msra.gmra.mrb[72].mxu1 %v40756_v41  ;;  %v43347_v41 = vld [vmem:[#allocation161_spill] sm:$0xff] }
 0xd88   : > { %35002 = vmatpush1.bf16.msra.mxu0 %v43344_v22  ;;  %35026 = vmatpush1.bf16.msra.mxu1 %v43345_v36 }
 0xd89   : > { %29715 = vmatprep.mubr.f32.mxu0 %v42944_v49  ;;  %30206 = vmatprep.mubr.f32.mxu1 %v42944_v49 }
 0xd8a   : > { %35004 = vmatprep.subr.bf16.mxu0 %v43330_v55  ;;  %35028 = vmatprep.subr.bf16.mxu1 %v43331_v39  ;;  %v43348_v55 = vld [vmem:[#allocation162_spill] sm:$0xff] }
 0xd8e   : > { %v24884_v56 = vpop.f32.mrb[42].mxu0  ;;  %v25375_v21 = vpop.f32.mrb[62].mxu1 }
 0xd8f   : > { %v30304_v13 = vmul.f32 %v24884_v56, %v43346_v11  ;;  %v24886_v60 = vpop.f32.mrb[43].mxu0  ;;  %v25377_v33 = vpop.f32.mrb[63].mxu1  ;;  %29717 = vmatmul.mubr.f32.vlgmr.msra.gmra.mrb[52].mxu0 %v40750_v44  ;;  %30208 = vmatmul.mubr.f32.vlgmr.msra.gmra.mrb[72].mxu1 %v40750_v44  ;;  %v30308_v16 = vmul.f32 %v25375_v21, %v43348_v55  ;;  %v43352_v21 = vld [vmem:[#allocation187_spill] sm:$0xff] }
 0xd90   : > { %v30305_v7 = vmul.f32 %v24886_v60, %v43347_v41  ;;  %35006 = vmatpush1.bf16.msra.mxu0 %v43332_v52  ;;  %35030 = vmatpush1.bf16.msra.mxu1 %v43333_v5  ;;  %v30309_v9 = vmul.f32 %v25377_v33, %v43349_v45  ;;  %v43353_v11 = vld [vmem:[#allocation279_spill] sm:$0xff]  ;;  %v43355_v60 = vld [vmem:[#allocation190_spill] sm:$0xff] }
 0xd91   : > { %v30306_v14 = vadd.f32 %v30304_v13, %v30302_v61  ;;  %29791 = vmatprep.mubr.f32.mxu0 %v42944_v49  ;;  %30282 = vmatprep.mubr.f32.mxu1 %v42944_v49  ;;  %v43350_v61 = vld [vmem:[#allocation35_spill] sm:$0xff]  ;;  %v43354_v13 = vld [vmem:[#allocation188_spill] sm:$0xff] }
 0xd92   : > { %v30307_v39 = vadd.f32 %v30305_v7, %v30303_v48  ;;  %35032 = vmatprep.subr.bf16.mxu0 %v43082_v59  ;;  %35224 = vmatprep.subr.bf16.mxu1 %v42869_v63  ;;  %v427_v52 = vsub.s32 3, %v43350_v61  ;;  %v36058_v48 = vld [vmem:[%s41457_s2] sm:$0xf]  ;;  %v43356_v7 = vld [vmem:[#allocation189_spill] sm:$0xff] }
 0xd93   : > { %v30310_v26 = vadd.f32 %v30308_v16, %v30306_v14 }
 0xd94   : > { %v30311_v38 = vadd.f32 %v30309_v9, %v30307_v39  ;;  %v428_v5 = vrot.slane %v36058_v48, %v427_v52  ;;  %v43357_v39 = vld [vmem:[#allocation191_spill] sm:$0xff]  ;;  %v43358_v9 = vld [vmem:[#allocation194_spill] sm:$0xff]  ;;  %v43359_v52 = vld [vmem:[#allocation192_spill] sm:$0xff] }
 0xd97   : > { %29793 = vmatmul.mubr.f32.vlgmr.msra.gmra.mrb[52].mxu0 %v40750_v44  ;;  %30284 = vmatmul.mubr.f32.vlgmr.msra.gmra.mrb[72].mxu1 %v40750_v44  ;;  %v43351_v44 = vld [vmem:[#allocation71_spill] sm:$0xff] }
 0xd98   : > { %35034 = vmatpush1.bf16.msra.mxu0 %v43083_v25  ;;  %30448 = vmatprep.mubr.f32.mxu0 %v42944_v49  ;;  %v35418_v6 = vadd.f32 %v43351_v44, %v428_v5  ;;  %v43360_v5 = vld [vmem:[#allocation195_spill] sm:$0xff] }
 0xd99   : > { %35036 = vmatprep.subr.bf16.mxu0 %v43085_v58  ;;  %35226 = vmatpush3.bf16.msra.mxu1 %v42870_v12 }
 0xd9a   : > { %35228 = vmatprep.subr.bf16.mxu1 %v42872_v8  ;;  %v41171_v30 = vand.u32 4294901760, %v35418_v6 }
 0xd9c   : > { %35038 = vmatpush1.bf16.msra.mxu0 %v43086_v1  ;;  %v41178_v10 = vsub.f32 %v35418_v6, %v41171_v30  ;;  %v43361_v6 = vld [vmem:[#allocation193_spill] sm:$0xff] }
 0xd9d   : > { %35040 = vmatprep.subr.bf16.mxu0 %v43087_v54  ;;  %35230 = vmatpush3.bf16.msra.mxu1 %v42873_v31 }
 0xd9e   : > { %35232 = vmatprep.subr.bf16.mxu1 %v42874_v32  ;;  %v30451_v22 = vand.u32 4294901760, %v41178_v10 }
 0xda0   : > { %35042 = vmatpush1.bf16.msra.mxu0 %v43088_v47  ;;  %v30452_v36 = vsub.f32 %v41178_v10, %v30451_v22 }
 0xda1   : > { %35044 = vmatprep.subr.bf16.mxu0 %v43090_v17  ;;  %35234 = vmatpush3.bf16.msra.mxu1 %v43186_v37 }
 0xda2   : > { %35236 = vmatprep.subr.bf16.mxu1 %v43187_v53  ;;  %v30453_v56 = vand.u32 4294901760, %v30452_v36 }
 0xda4   : > { %35046 = vmatpush1.bf16.msra.mxu0 %v43091_v28 }
 0xda5   : > { %35048 = vmatprep.subr.bf16.mxu0 %v43092_v27  ;;  %35238 = vmatpush3.bf16.msra.mxu1 %v43188_v50 }
 0xda6   : > { %35240 = vmatprep.subr.bf16.mxu1 %v43189_v19 }
 0xda8   : > { %35050 = vmatpush1.bf16.msra.mxu0 %v43093_v18 }
 0xda9   : > { %35052 = vmatprep.subr.bf16.mxu0 %v43094_v24  ;;  %35242 = vmatpush3.bf16.msra.mxu1 %v43190_v35 }
 0xdaa   : > { %35244 = vmatprep.subr.bf16.mxu1 %v43191_v40 }
 0xdac   : > { %35054 = vmatpush1.bf16.msra.mxu0 %v43095_v15 }
 0xdad   : > { %35056 = vmatprep.subr.bf16.mxu0 %v43096_v20  ;;  %35246 = vmatpush3.bf16.msra.mxu1 %v43192_v23 }
 0xdae   : > { %35248 = vmatprep.subr.bf16.mxu1 %v43193_v51 }
 0xdb0   : > { %35058 = vmatpush1.bf16.msra.mxu0 %v43097_v29 }
 0xdb1   : > { %35060 = vmatprep.subr.bf16.mxu0 %v43098_v46  ;;  %35250 = vmatpush3.bf16.msra.mxu1 %v43194_v2 }
 0xdb2   : > { %35252 = vmatprep.subr.bf16.mxu1 %v43195_v34 }
 0xdb4   : > { %35062 = vmatpush1.bf16.msra.mxu0 %v43099_v57 }
 0xdb5   : > { %35064 = vmatprep.subr.bf16.mxu0 %v43352_v21  ;;  %35254 = vmatpush3.bf16.msra.mxu1 %v43196_v43 }
 0xdb6   : > { %35256 = vmatprep.subr.bf16.mxu1 %v43353_v11  ;;  %v43362_v11 = vld [vmem:[#allocation196_spill] sm:$0xff] }
 0xdb7   : > { %30454 = vmatmul.mubr.f32.vlgmr.msra.gmra.mrb[54].mxu0 %v30453_v56 }
 0xdb8   : > { %35066 = vmatpush1.bf16.msra.mxu0 %v43354_v13  ;;  %30684 = vmatprep.mubr.f32.mxu0 %v42944_v49  ;;  %v43363_v13 = vld [vmem:[#allocation198_spill] sm:$0xff] }
 0xdb9   : > { %35068 = vmatprep.subr.bf16.mxu0 %v43355_v60  ;;  %v43364_v60 = vld [vmem:[#allocation199_spill] sm:$0xff] }
 0xdba   : > { %v25866_v33 = vpop.f32.mrb[44].mxu0  ;;  %v26357_v41 = vpop.f32.mrb[64].mxu1 }
 0xdbb   : > { %v30312_v14 = vmul.f32 %v25866_v33, %v43356_v7  ;;  %v25868_v55 = vpop.f32.mrb[45].mxu0  ;;  %v26359_v16 = vpop.f32.mrb[65].mxu1  ;;  %v30316_v48 = vmul.f32 %v26357_v41, %v43359_v52  ;;  %v43365_v33 = vld [vmem:[#allocation201_spill] sm:$0xff]  ;;  %v43366_v7 = vld [vmem:[#allocation207_spill] sm:$0xff] }
 0xdbc   : > { %v30313_v45 = vmul.f32 %v25868_v55, %v43357_v39  ;;  %35070 = vmatpush1.bf16.msra.mxu0 %v43358_v9  ;;  %v30317_v36 = vmul.f32 %v26359_v16, %v43361_v6  ;;  %v43368_v41 = vld [vmem:[#allocation209_spill] sm:$0xff]  ;;  %v43371_v55 = vld [vmem:[#allocation212_spill] sm:$0xff]  ;;  %v43377_v52 = vld [vmem:[#allocation171_spill] sm:$0xff] }
 0xdbd   : > { %v30314_v61 = vadd.f32 %v30312_v14, %v30310_v26  ;;  %35072 = vmatprep.subr.bf16.mxu0 %v43360_v5  ;;  %v43367_v26 = vld [vmem:[#allocation208_spill] sm:$0xff]  ;;  %v43369_v14 = vld [vmem:[#allocation210_spill] sm:$0xff]  ;;  %v43372_v16 = vld [vmem:[#allocation213_spill] sm:$0xff] }
 0xdbe   : > { %v30315_v44 = vadd.f32 %v30313_v45, %v30311_v38  ;;  %v43370_v38 = vld [vmem:[#allocation211_spill] sm:$0xff]  ;;  %v43373_v39 = vld [vmem:[#allocation165_spill] sm:$0xff]  ;;  %v43374_v45 = vld [vmem:[#allocation166_spill] sm:$0xff] }
 0xdbf   : > { %v30318_v56 = vadd.f32 %v30316_v48, %v30314_v61  ;;  %v43375_v9 = vld [vmem:[#allocation169_spill] sm:$0xff]  ;;  %v43376_v61 = vld [vmem:[#allocation170_spill] sm:$0xff]  ;;  %v43378_v48 = vld [vmem:[#allocation172_spill] sm:$0xff] }
 0xdc0   : > { %v30319_v21 = vadd.f32 %v30317_v36, %v30315_v44  ;;  %35074 = vmatpush1.bf16.msra.mxu0 %v43362_v11  ;;  %v43379_v5 = vld [vmem:[#allocation214_spill] sm:$0xff]  ;;  %v43380_v44 = vld [vmem:[#allocation215_spill] sm:$0xff]  ;;  %v43381_v6 = vld [vmem:[#allocation216_spill] sm:$0xff] }
 0xdc1   : > { %35076 = vmatprep.subr.bf16.mxu0 %v43363_v13  ;;  %v43382_v13 = vld [vmem:[#allocation217_spill] sm:$0xff] }
 0xdc4   : > { %35078 = vmatpush1.bf16.msra.mxu0 %v43364_v60 }
 0xdc5   : > { %35080 = vmatprep.subr.bf16.mxu0 %v43365_v33 }
 0xdc8   : > { %35082 = vmatpush1.bf16.msra.mxu0 %v43366_v7 }
 0xdc9   : > { %35084 = vmatprep.subr.bf16.mxu0 %v43367_v26  ;;  %v43383_v26 = vld [vmem:[#allocation218_spill] sm:$0xff] }
 0xdcc   : > { %35086 = vmatpush1.bf16.msra.mxu0 %v43368_v41 }
 0xdcd   : > { %35088 = vmatprep.subr.bf16.mxu0 %v43369_v14  ;;  %v43384_v14 = vld [vmem:[#allocation219_spill] sm:$0xff] }
 0xdd0   : > { %35090 = vmatpush1.bf16.msra.mxu0 %v43370_v38 }
 0xdd1   : > { %35092 = vmatprep.subr.bf16.mxu0 %v43371_v55  ;;  %v43385_v55 = vld [vmem:[#allocation220_spill] sm:$0xff] }
 0xdd4   : > { %35094 = vmatpush1.bf16.msra.mxu0 %v43372_v16 }
 0xdd5   : > { %35096 = vmatprep.subr.bf16.mxu0 %v43373_v39  ;;  %v43386_v39 = vld [vmem:[#allocation221_spill] sm:$0xff] }
 0xdd7   : > { %30686 = vmatmul.mubr.f32.vlgmr.msra.gmra.mrb[54].mxu0 %v41171_v30 }
 0xdd8   : > { %35098 = vmatpush1.bf16.msra.mxu0 %v43374_v45  ;;  %30820 = vmatprep.mubr.f32.mxu0 %v42944_v49 }
 0xdd9   : > { %35100 = vmatprep.subr.bf16.mxu0 %v43375_v9  ;;  %v43387_v9 = vld [vmem:[#allocation222_spill] sm:$0xff] }
 0xddc   : > { %35102 = vmatpush1.bf16.msra.mxu0 %v43376_v61 }
 0xddd   : > { %35104 = vmatprep.subr.bf16.mxu0 %v43377_v52 }
 0xde0   : > { %35106 = vmatpush1.bf16.msra.mxu0 %v43378_v48 }
 0xde1   : > { %35108 = vmatprep.subr.bf16.mxu0 %v43379_v5  ;;  %v43388_v5 = vld [vmem:[#allocation223_spill] sm:$0xff] }
 0xde4   : > { %35110 = vmatpush1.bf16.msra.mxu0 %v43380_v44  ;;  %v43389_v44 = vld [vmem:[#allocation224_spill] sm:$0xff] }
 0xde5   : > { %35112 = vmatprep.subr.bf16.mxu0 %v43381_v6  ;;  %v43390_v6 = vld [vmem:[#allocation225_spill] sm:$0xff] }
 0xde6   : > { %v26848_v36 = vpop.f32.mrb[46].mxu0  ;;  %v27339_v11 = vpop.f32.mrb[66].mxu1 }
 0xde7   : > { %v30320_v60 = vmul.f32 %v26848_v36, %v43382_v13  ;;  %v26850_v33 = vpop.f32.mrb[47].mxu0  ;;  %v27341_v7 = vpop.f32.mrb[67].mxu1  ;;  %v30324_v16 = vmul.f32 %v27339_v11, %v43385_v55  ;;  %v43391_v36 = vld [vmem:[#allocation226_spill] sm:$0xff]  ;;  %v43392_v13 = vld [vmem:[#allocation233_spill] sm:$0xff] }
 0xde8   : > { %v30321_v41 = vmul.f32 %v26850_v33, %v43383_v26  ;;  %35114 = vmatpush1.bf16.msra.mxu0 %v43384_v14  ;;  %v30325_v61 = vmul.f32 %v27341_v7, %v43387_v9  ;;  %v43393_v11 = vld [vmem:[#allocation254_spill] sm:$0xff]  ;;  %v43394_v26 = vld [vmem:[#allocation255_spill] sm:$0xff] }
 0xde9   : > { %v30322_v38 = vadd.f32 %v30320_v60, %v30318_v56  ;;  %35116 = vmatprep.subr.bf16.mxu0 %v43386_v39 }
 0xdea   : > { %v30323_v45 = vadd.f32 %v30321_v41, %v30319_v21 }
 0xdeb   : > { %v30326_v52 = vadd.f32 %v30324_v16, %v30322_v38  ;;  %v43395_v38 = vld [vmem:[#allocation256_spill] sm:$0xff]  ;;  %v43396_v16 = vld [vmem:[#allocation257_spill] sm:$0xff] }
 0xdec   : > { %v30327_v48 = vadd.f32 %v30325_v61, %v30323_v45  ;;  %35118 = vmatpush1.bf16.msra.mxu0 %v43388_v5  ;;  %v43397_v45 = vld [vmem:[#allocation258_spill] sm:$0xff] }
 0xded   : > { %35120 = vmatprep.subr.bf16.mxu0 %v43389_v44  ;;  %v43398_v44 = vld [vmem:[#allocation259_spill] sm:$0xff] }
 0xdf0   : > { %35122 = vmatpush1.bf16.msra.mxu0 %v43390_v6  ;;  %v43399_v6 = vld [vmem:[#allocation260_spill] sm:$0xff] }
 0xdf1   : > { %35124 = vmatprep.subr.bf16.mxu0 %v43391_v36  ;;  %v43400_v36 = vld [vmem:[#allocation261_spill] sm:$0xff] }
 0xdf4   : > { %35126 = vmatpush1.bf16.msra.mxu0 %v43392_v13  ;;  %v43402_v13 = vld [vmem:[#allocation263_spill] sm:$0xff] }
 0xdf5   : > { %35128 = vmatprep.subr.bf16.mxu0 %v43082_v59 }
 0xdf7   : > { %30823 = vmatmul.mubr.f32.vlgmr.msra.gmra.mrb[54].mxu0 %v41178_v10  ;;  %v43406_v10 = vld [vmem:[#allocation267_spill] sm:$0xff] }
 0xdf8   : > { %35130 = vmatpush1.bf16.msra.mxu0 %v43083_v25  ;;  %30925 = vmatprep.mubr.f32.mxu0 %v42944_v49 }
 0xdf9   : > { %35132 = vmatprep.subr.bf16.mxu0 %v43085_v58 }
 0xdfc   : > { %35134 = vmatpush1.bf16.msra.mxu0 %v43086_v1 }
 0xdfd   : > { %35136 = vmatprep.subr.bf16.mxu0 %v43087_v54 }
 0xe00   : > { %35138 = vmatpush1.bf16.msra.mxu0 %v43088_v47 }
 0xe01   : > { %35140 = vmatprep.subr.bf16.mxu0 %v43090_v17 }
 0xe04   : > { %35142 = vmatpush1.bf16.msra.mxu0 %v43091_v28 }
 0xe05   : > { %35144 = vmatprep.subr.bf16.mxu0 %v43092_v27 }
 0xe08   : > { %35146 = vmatpush1.bf16.msra.mxu0 %v43093_v18 }
 0xe09   : > { %35148 = vmatprep.subr.bf16.mxu0 %v43094_v24 }
 0xe0c   : > { %35150 = vmatpush1.bf16.msra.mxu0 %v43095_v15 }
 0xe0d   : > { %35152 = vmatprep.subr.bf16.mxu0 %v43096_v20 }
 0xe10   : > { %35154 = vmatpush1.bf16.msra.mxu0 %v43097_v29 }
 0xe11   : > { %35156 = vmatprep.subr.bf16.mxu0 %v43098_v46 }
 0xe12   : > { %v27830_v56 = vpop.f32.mrb[48].mxu0  ;;  %v28321_v21 = vpop.f32.mrb[68].mxu1 }
 0xe13   : > { %v30328_v60 = vmul.f32 %v27830_v56, %v43393_v11  ;;  %v27832_v33 = vpop.f32.mrb[49].mxu0  ;;  %v28323_v7 = vpop.f32.mrb[69].mxu1  ;;  %v30332_v55 = vmul.f32 %v28321_v21, %v43395_v38  ;;  %v43404_v56 = vld [vmem:[#allocation265_spill] sm:$0xff]  ;;  %v43405_v21 = vld [vmem:[#allocation266_spill] sm:$0xff]  ;;  %v43413_v38 = vld [vmem:[#allocation204_spill] sm:$0xff] }
 0xe14   : > { %v30329_v41 = vmul.f32 %v27832_v33, %v43394_v26  ;;  %35158 = vmatpush1.bf16.msra.mxu0 %v43099_v57  ;;  %v30333_v9 = vmul.f32 %v28323_v7, %v43397_v45  ;;  %v43408_v11 = vld [vmem:[#allocation269_spill] sm:$0xff]  ;;  %v43410_v33 = vld [vmem:[#allocation200_spill] sm:$0xff]  ;;  %v43411_v7 = vld [vmem:[#allocation202_spill] sm:$0xff] }
 0xe15   : > { %v30330_v14 = vadd.f32 %v30328_v60, %v30326_v52  ;;  %35160 = vmatprep.subr.bf16.mxu0 %v43396_v16  ;;  %v43401_v52 = vld [vmem:[#allocation262_spill] sm:$0xff]  ;;  %v43409_v60 = vld [vmem:[#allocation197_spill] sm:$0xff]  ;;  %v43412_v26 = vld [vmem:[#allocation203_spill] sm:$0xff] }
 0xe16   : > { %v30331_v39 = vadd.f32 %v30329_v41, %v30327_v48  ;;  %v43403_v48 = vld [vmem:[#allocation264_spill] sm:$0xff]  ;;  %v43414_v45 = vld [vmem:[#allocation205_spill] sm:$0xff] }
 0xe17   : > { %v30334_v61 = vadd.f32 %v30332_v55, %v30330_v14  ;;  %30929 = vmatmul.mubr.f32.vlgmr.msra.gmra.mrb[54].mxu0 %v30451_v22  ;;  %v43407_v22 = vld [vmem:[#allocation268_spill] sm:$0xff] }
 0xe18   : > { %v30335_v5 = vadd.f32 %v30333_v9, %v30331_v39  ;;  %35162 = vmatpush1.bf16.msra.mxu0 %v43398_v44  ;;  %31095 = vmatprep.mubr.f32.mxu0 %v42944_v49 }
 0xe19   : > { %35164 = vmatprep.subr.bf16.mxu0 %v43399_v6 }
 0xe1c   : > { %35166 = vmatpush1.bf16.msra.mxu0 %v43400_v36 }
 0xe1d   : > { %35168 = vmatprep.subr.bf16.mxu0 %v43401_v52 }
 0xe20   : > { %35170 = vmatpush1.bf16.msra.mxu0 %v43402_v13 }
 0xe21   : > { %35172 = vmatprep.subr.bf16.mxu0 %v43403_v48 }
 0xe24   : > { %35174 = vmatpush1.bf16.msra.mxu0 %v43404_v56 }
 0xe25   : > { %35176 = vmatprep.subr.bf16.mxu0 %v43405_v21 }
 0xe28   : > { %35178 = vmatpush1.bf16.msra.mxu0 %v43406_v10 }
 0xe29   : > { %35180 = vmatprep.subr.bf16.mxu0 %v43407_v22 }
 0xe2c   : > { %35182 = vmatpush1.bf16.msra.mxu0 %v43408_v11  ;;  %v43417_v11 = vld [vmem:[#allocation229_spill] sm:$0xff] }
 0xe2d   : > { %35184 = vmatprep.subr.bf16.mxu0 %v43409_v60  ;;  %v43418_v60 = vld [vmem:[#allocation230_spill] sm:$0xff] }
 0xe30   : > { %35186 = vmatpush1.bf16.msra.mxu0 %v43410_v33  ;;  %v43419_v33 = vld [vmem:[#allocation231_spill] sm:$0xff] }
 0xe31   : > { %35188 = vmatprep.subr.bf16.mxu0 %v43411_v7  ;;  %v43420_v7 = vld [vmem:[#allocation232_spill] sm:$0xff] }
 0xe34   : > { %35190 = vmatpush1.bf16.msra.mxu0 %v43412_v26  ;;  %v43421_v26 = vld [vmem:[#allocation234_spill] sm:$0xff] }
 0xe35   : > { %35192 = vmatprep.subr.bf16.mxu0 %v43082_v59 }
 0xe37   : > { %31097 = vmatmul.mubr.f32.vlgmr.msra.gmra.mrb[54].mxu0 %v41171_v30 }
 0xe38   : > { %35194 = vmatpush1.bf16.msra.mxu0 %v43083_v25  ;;  %31199 = vmatprep.mubr.f32.mxu0 %v42944_v49  ;;  %v43415_v25 = vld [vmem:[#allocation206_spill] sm:$0xff] }
 0xe39   : > { %35196 = vmatprep.subr.bf16.mxu0 %v43085_v58  ;;  %v43416_v58 = vld [vmem:[#allocation180_spill] sm:$0xff] }
 0xe3c   : > { %35198 = vmatpush1.bf16.msra.mxu0 %v43086_v1 }
 0xe3d   : > { %35200 = vmatprep.subr.bf16.mxu0 %v43087_v54 }
 0xe3e   : > { %v28812_v41 = vpop.f32.mrb[50].mxu0  ;;  %v29303_v14 = vpop.f32.mrb[70].mxu1 }
 0xe3f   : > { %v30336_v55 = vmul.f32 %v28812_v41, %v43413_v38  ;;  %v28814_v16 = vpop.f32.mrb[51].mxu0  ;;  %v29305_v39 = vpop.f32.mrb[71].mxu1  ;;  %v30340_v44 = vmul.f32 %v29303_v14, %v43415_v25  ;;  %v43422_v41 = vld [vmem:[#allocation235_spill] sm:$0xff]  ;;  %v43423_v14 = vld [vmem:[#allocation236_spill] sm:$0xff]  ;;  %v43424_v38 = vld [vmem:[#allocation237_spill] sm:$0xff] }
 0xe40   : > { %v30337_v59 = vmul.f32 %v28814_v16, %v43414_v45  ;;  %35202 = vmatpush1.bf16.msra.mxu0 %v43088_v47  ;;  %v30341_v1 = vmul.f32 %v29305_v39, %v43416_v58  ;;  %v43427_v16 = vld [vmem:[#allocation294_spill] sm:$0xff]  ;;  %v43428_v39 = vld [vmem:[#allocation295_spill] sm:$0xff]  ;;  %v43429_v45 = vld [vmem:[#allocation296_spill] sm:$0xff] }
 0xe41   : > { %v30338_v9 = vadd.f32 %v30336_v55, %v30334_v61  ;;  %35204 = vmatprep.subr.bf16.mxu0 %v43090_v17  ;;  %v43425_v55 = vld [vmem:[#allocation289_spill] sm:$0xff]  ;;  %v43432_v25 = vld [vmem:[#allocation239_spill] sm:$0xff] }
 0xe42   : > { %v30339_v49 = vadd.f32 %v30337_v59, %v30335_v5  ;;  %v43430_v59 = vld [vmem:[#allocation298_spill] sm:$0xff]  ;;  %v43435_v58 = vld [vmem:[#allocation243_spill] sm:$0xff] }
 0xe43   : > { %v30342_v6 = vadd.f32 %v30340_v44, %v30338_v9  ;;  %v43431_v9 = vld [vmem:[#allocation297_spill] sm:$0xff]  ;;  %v43433_v44 = vld [vmem:[#allocation240_spill] sm:$0xff] }
 0xe44   : > { %v30343_v54 = vadd.f32 %v30341_v1, %v30339_v49  ;;  %35206 = vmatpush1.bf16.msra.mxu0 %v43091_v28  ;;  %v43434_v49 = vld [vmem:[#allocation242_spill] sm:$0xff]  ;;  %v43436_v1 = vld [vmem:[#allocation247_spill] sm:$0xff] }
 0xe45   : > { %35208 = vmatprep.subr.bf16.mxu0 %v43092_v27 }
 0xe48   : > { %35210 = vmatpush1.bf16.msra.mxu0 %v43093_v18 }
 0xe49   : > { %35212 = vmatprep.subr.bf16.mxu0 %v43094_v24 }
 0xe4c   : > { %35214 = vmatpush1.bf16.msra.mxu0 %v43095_v15 }
 0xe4d   : > { %35216 = vmatprep.subr.bf16.mxu0 %v43096_v20 }
 0xe50   : > { %35218 = vmatpush1.bf16.msra.mxu0 %v43097_v29 }
 0xe51   : > { %35220 = vmatprep.subr.bf16.mxu0 %v43098_v46 }
 0xe54   : > { %35222 = vmatpush1.bf16.msra.mxu0 %v43099_v57 }
 0xe57   : > { %31201 = vmatmul.mubr.f32.vlgmr.msra.gmra.mrb[54].mxu0 %v41171_v30 }
 0xe6a   : > { %v29794_v47 = vpop.f32.mrb[52].mxu0  ;;  %v30285_v28 = vpop.f32.mrb[72].mxu1 }
 0xe6b   : > { %v30344_v17 = vmul.f32 %v29794_v47, %v43167_v0  ;;  %v29796_v27 = vpop.f32.mrb[53].mxu0  ;;  %v30287_v18 = vpop.f32.mrb[73].mxu1  ;;  %v30348_v15 = vmul.f32 %v30285_v28, %v43169_v3  ;;  %v43439_v47 = vld [vmem:[#allocation305_spill] sm:$0xff]  ;;  %v43440_v28 = vld [vmem:[#allocation306_spill] sm:$0xff] }
 0xe6c   : > { %v30345_v24 = vmul.f32 %v29796_v27, %v43168_v4  ;;  %v30349_v29 = vmul.f32 %v30287_v18, %v43170_v42  ;;  %v43442_v27 = vld [vmem:[#allocation300_spill] sm:$0xff]  ;;  %v43443_v18 = vld [vmem:[#allocation301_spill] sm:$0xff] }
 0xe6d   : > { %v30346_v61 = vadd.f32 %v30344_v17, %v30342_v6  ;;  %v43437_v6 = vld [vmem:[#allocation248_spill] sm:$0xff]  ;;  %v43441_v17 = vld [vmem:[#allocation299_spill] sm:$0xff] }
 0xe6e   : > { %v30347_v20 = vadd.f32 %v30345_v24, %v30343_v54  ;;  %v43438_v54 = vld [vmem:[#allocation155_spill] sm:$0xff]  ;;  %v43444_v24 = vld [vmem:[#allocation302_spill] sm:$0xff] }
 0xe6f   : > { %v30350_v5 = vadd.f32 %v30348_v15, %v30346_v61  ;;  %v43445_v61 = vld [vmem:[#allocation303_spill] sm:$0xff]  ;;  %v43446_v15 = vld [vmem:[#allocation304_spill] sm:$0xff] }
 0xe70   : > { %v30351_v46 = vadd.f32 %v30349_v29, %v30347_v20  ;;  %v43447_v20 = vld [vmem:[#allocation238_spill] sm:$0xff]  ;;  %v43448_v29 = vld [vmem:[#allocation241_spill] sm:$0xff] }
 0xf2a   : > { %v31202_v36 = vpop.f32.mrb[54].mxu0 }
 0xf2b   : > { %v31207_v57 = vmul.f32 %v31202_v36, %v30350_v5  ;;  %v31204_v52 = vpop.f32.mrb[55].mxu0  ;;  %v43449_v5 = vld [vmem:[#allocation244_spill] sm:$0xff]  ;;  %v43451_v36 = vld [vmem:[#allocation246_spill] sm:$0xff] }
 0xf2c   : > { %v31208_v30 = vmul.f32 %v31204_v52, %v30351_v46  ;;  %v43450_v46 = vld [vmem:[#allocation245_spill] sm:$0xff]  ;;  %v43453_v52 = vld [vmem:[#allocation228_spill] sm:$0xff] }
 0xf2d   : > { %v41309_v13 = vand.u32 4294901760, %v31207_v57 }
 0xf2e   : > { %v41311_v48 = vand.u32 4294901760, %v31208_v30 }
 0xf2f   : > { %v41314_v0 = vsub.f32 %v31207_v57, %v41309_v13  ;;  %v43452_v57 = vld [vmem:[#allocation227_spill] sm:$0xff] }
 0xf30   : > { %v31306_v4 = vsub.f32 %v31208_v30, %v41311_v48  ;;  %v43454_v30 = vld [vmem:[#allocation307_spill] sm:$0xff] }
 0xf31   : > { %v31313_v3 = vand.u32 4294901760, %v41314_v0 }
 0xf32   : > { %v31307_v56 = vand.u32 4294901760, %v31306_v4 }
 0xf33   : > { %v31314_v42 = vsub.f32 %v41314_v0, %v31313_v3 }
 0xf34   : > { %v31308_v21 = vsub.f32 %v31306_v4, %v31307_v56 }
 0xf35   : > { %v31315_v22 = vand.u32 4294901760, %v31314_v42  ;;  %v43459_v42 = vld [vmem:[#allocation282_spill] sm:$0xff] }
 0xf36   : > { %v31309_v10 = vand.u32 4294901760, %v31308_v21  ;;  %v43460_v21 = vld [vmem:[#allocation283_spill] sm:$0xff] }
 0xf38   : > { %31310 = vmatprep.mubr.f32.mxu1 %v31309_v10  ;;  %v43461_v10 = vld [vmem:[#allocation284_spill] sm:$0xff] }
 0xf39   : > { %31316 = vmatmul.mubr.f32.vlgmr.msra.gmra.mrb[74].mxu1 %v31315_v22  ;;  %v43462_v22 = vld [vmem:[#allocation285_spill] sm:$0xff] }
 0xf3a   : > { %35258 = vmatpush3.bf16.msra.mxu1 %v39745_v62  ;;  %31546 = vmatprep.mubr.f32.mxu1 %v41311_v48  ;;  %v43426_v62 = vld [vmem:[#allocation291_spill] sm:$0xff] }
 0xf3b   : > { %35260 = vmatprep.subr.bf16.mxu1 %v43417_v11 }
 0xf3e   : > { %35262 = vmatpush3.bf16.msra.mxu1 %v43418_v60 }
 0xf3f   : > { %35264 = vmatprep.subr.bf16.mxu1 %v43419_v33 }
 0xf42   : > { %35266 = vmatpush3.bf16.msra.mxu1 %v43420_v7 }
 0xf43   : > { %35268 = vmatprep.subr.bf16.mxu1 %v43421_v26 }
 0xf46   : > { %35270 = vmatpush3.bf16.msra.mxu1 %v43422_v41 }
 0xf47   : > { %35272 = vmatprep.subr.bf16.mxu1 %v43423_v14 }
 0xf4a   : > { %35274 = vmatpush3.bf16.msra.mxu1 %v43424_v38 }
 0xf4b   : > { %35276 = vmatprep.subr.bf16.mxu1 %v43425_v55 }
 0xf4e   : > { %35278 = vmatpush3.bf16.msra.mxu1 %v43426_v62 }
 0xf4f   : > { %35280 = vmatprep.subr.bf16.mxu1 %v43427_v16 }
 0xf52   : > { %35282 = vmatpush3.bf16.msra.mxu1 %v43428_v39 }
 0xf53   : > { %35284 = vmatprep.subr.bf16.mxu1 %v43429_v45 }
 0xf56   : > { %35286 = vmatpush3.bf16.msra.mxu1 %v43430_v59 }
 0xf57   : > { %35288 = vmatprep.subr.bf16.mxu1 %v43431_v9 }
 0xf59   : > { %31548 = vmatmul.mubr.f32.vlgmr.msra.gmra.mrb[76].mxu1 %v41309_v13 }
 0xf5a   : > { %35290 = vmatpush3.bf16.msra.mxu1 %v43432_v25  ;;  %31683 = vmatprep.mubr.f32.mxu1 %v31306_v4  ;;  %v43456_v4 = vld [vmem:[#allocation309_spill] sm:$0xff] }
 0xf5b   : > { %35292 = vmatprep.subr.bf16.mxu1 %v43433_v44 }
 0xf5e   : > { %35294 = vmatpush3.bf16.msra.mxu1 %v43434_v49 }
 0xf5f   : > { %35296 = vmatprep.subr.bf16.mxu1 %v43435_v58 }
 0xf62   : > { %35298 = vmatpush3.bf16.msra.mxu1 %v43436_v1 }
 0xf63   : > { %35300 = vmatprep.subr.bf16.mxu1 %v43437_v6 }
 0xf66   : > { %35302 = vmatpush3.bf16.msra.mxu1 %v43438_v54 }
 0xf67   : > { %35304 = vmatprep.subr.bf16.mxu1 %v43439_v47 }
 0xf6a   : > { %35306 = vmatpush3.bf16.msra.mxu1 %v43440_v28 }
 0xf6b   : > { %35308 = vmatprep.subr.bf16.mxu1 %v43441_v17 }
 0xf6e   : > { %35310 = vmatpush3.bf16.msra.mxu1 %v43442_v27 }
 0xf6f   : > { %35312 = vmatprep.subr.bf16.mxu1 %v43443_v18 }
 0xf72   : > { %35314 = vmatpush3.bf16.msra.mxu1 %v43444_v24 }
 0xf73   : > { %35316 = vmatprep.subr.bf16.mxu1 %v43445_v61 }
 0xf76   : > { %35318 = vmatpush3.bf16.msra.mxu1 %v43446_v15 }
 0xf77   : > { %35320 = vmatprep.subr.bf16.mxu1 %v42869_v63 }
 0xf79   : > { %31686 = vmatmul.mubr.f32.vlgmr.msra.gmra.mrb[78].mxu1 %v41314_v0  ;;  %v43455_v0 = vld [vmem:[#allocation308_spill] sm:$0xff] }
 0xf7a   : > { %35322 = vmatpush3.bf16.msra.mxu1 %v42870_v12  ;;  %31790 = vmatprep.mubr.f32.mxu1 %v31307_v56  ;;  %v43458_v56 = vld [vmem:[#allocation281_spill] sm:$0xff] }
 0xf7b   : > { %35324 = vmatprep.subr.bf16.mxu1 %v42872_v8 }
 0xf7e   : > { %35326 = vmatpush3.bf16.msra.mxu1 %v42873_v31 }
 0xf7f   : > { %35328 = vmatprep.subr.bf16.mxu1 %v42874_v32 }
 0xf82   : > { %35330 = vmatpush3.bf16.msra.mxu1 %v43186_v37 }
 0xf83   : > { %35332 = vmatprep.subr.bf16.mxu1 %v43187_v53 }
 0xf86   : > { %35334 = vmatpush3.bf16.msra.mxu1 %v43188_v50 }
 0xf87   : > { %35336 = vmatprep.subr.bf16.mxu1 %v43189_v19 }
 0xf8a   : > { %35338 = vmatpush3.bf16.msra.mxu1 %v43190_v35 }
 0xf8b   : > { %35340 = vmatprep.subr.bf16.mxu1 %v43191_v40 }
 0xf8e   : > { %35342 = vmatpush3.bf16.msra.mxu1 %v43192_v23 }
 0xf8f   : > { %35344 = vmatprep.subr.bf16.mxu1 %v43193_v51 }
 0xf92   : > { %35346 = vmatpush3.bf16.msra.mxu1 %v43194_v2 }
 0xf93   : > { %35348 = vmatprep.subr.bf16.mxu1 %v43195_v34 }
 0xf96   : > { %35350 = vmatpush3.bf16.msra.mxu1 %v43196_v43 }
 0xf97   : > { %35352 = vmatprep.subr.bf16.mxu1 %v43447_v20 }
 0xf99   : > { %31794 = vmatmul.mubr.f32.vlgmr.msra.gmra.mrb[80].mxu1 %v31313_v3  ;;  %v43457_v3 = vld [vmem:[#allocation280_spill] sm:$0xff] }
 0xf9a   : > { %35354 = vmatpush3.bf16.msra.mxu1 %v43448_v29  ;;  %31960 = vmatprep.mubr.f32.mxu1 %v41311_v48 }
 0xf9b   : > { %35356 = vmatprep.subr.bf16.mxu1 %v43449_v5 }
 0xf9e   : > { %35358 = vmatpush3.bf16.msra.mxu1 %v43450_v46 }
 0xf9f   : > { %35360 = vmatprep.subr.bf16.mxu1 %v43451_v36 }
 0xfa2   : > { %35362 = vmatpush3.bf16.msra.mxu1 %v43452_v57 }
 0xfa3   : > { %35364 = vmatprep.subr.bf16.mxu1 %v43453_v52 }
 0xfa6   : > { %35366 = vmatpush3.bf16.msra.mxu1 %v43454_v30 }
 0xfa7   : > { %35368 = vmatprep.subr.bf16.mxu1 %v43455_v0 }
 0xfaa   : > { %35370 = vmatpush3.bf16.msra.mxu1 %v43456_v4 }
 0xfab   : > { %35372 = vmatprep.subr.bf16.mxu1 %v43457_v3 }
 0xfae   : > { %35374 = vmatpush3.bf16.msra.mxu1 %v43458_v56 }
 0xfaf   : > { %35376 = vmatprep.subr.bf16.mxu1 %v43459_v42 }
 0xfb2   : > { %35378 = vmatpush3.bf16.msra.mxu1 %v43460_v21 }
 0xfb3   : > { %35380 = vmatprep.subr.bf16.mxu1 %v43461_v10 }
 0xfb6   : > { %35382 = vmatpush3.bf16.msra.mxu1 %v43462_v22 }
 0xfb7   : > { %35384 = vmatprep.subr.bf16.mxu1 %v42869_v63 }
 0xfb9   : > { %31962 = vmatmul.mubr.f32.vlgmr.msra.gmra.mrb[82].mxu1 %v41309_v13 }
 0xfba   : > { %35386 = vmatpush3.bf16.msra.mxu1 %v42870_v12  ;;  %32064 = vmatprep.mubr.f32.mxu1 %v41311_v48 }
 0xfbb   : > { %35388 = vmatprep.subr.bf16.mxu1 %v42872_v8 }
 0xfbe   : > { %35390 = vmatpush3.bf16.msra.mxu1 %v42873_v31 }
 0xfbf   : > { %35392 = vmatprep.subr.bf16.mxu1 %v42874_v32 }
 0xfc2   : > { %35394 = vmatpush3.bf16.msra.mxu1 %v43186_v37 }
 0xfc3   : > { %35396 = vmatprep.subr.bf16.mxu1 %v43187_v53 }
 0xfc6   : > { %35398 = vmatpush3.bf16.msra.mxu1 %v43188_v50 }
 0xfc7   : > { %35400 = vmatprep.subr.bf16.mxu1 %v43189_v19 }
 0xfca   : > { %35402 = vmatpush3.bf16.msra.mxu1 %v43190_v35 }
 0xfcb   : > { %35404 = vmatprep.subr.bf16.mxu1 %v43191_v40 }
 0xfce   : > { %35406 = vmatpush3.bf16.msra.mxu1 %v43192_v23 }
 0xfcf   : > { %35408 = vmatprep.subr.bf16.mxu1 %v43193_v51 }
 0xfd2   : > { %35410 = vmatpush3.bf16.msra.mxu1 %v43194_v2 }
 0xfd3   : > { %35412 = vmatprep.subr.bf16.mxu1 %v43195_v34 }
 0xfd6   : > { %35414 = vmatpush3.bf16.msra.mxu1 %v43196_v43 }
 0xfd9   : > { %32066 = vmatmul.mubr.f32.vlgmr.msra.gmra.mrb[84].mxu1 %v41309_v13 }
0x100c   : > { %v32837_v31 = vpop.f32.mrb[74].mxu1 }
0x100d   : > { %v32838_v32 = vpop.f32.mrb[75].mxu1 }
0x100e   : > { %v32839_v8 = vadd.f32 %v32838_v32, %v32837_v31 }
0x102c   : > { %v32872_v63 = vpop.f32.mrb[76].mxu1 }
0x102d   : > { %v32873_v12 = vpop.f32.mrb[77].mxu1 }
0x102e   : > { %v32874_v35 = vadd.f32 %v32873_v12, %v32872_v63 }
0x1030   : > { %v31550_v37 = vadd.f32 %v32874_v35, %v32839_v8 }
0x104c   : > { %v32907_v53 = vpop.f32.mrb[78].mxu1 }
0x104d   : > { %v32908_v50 = vpop.f32.mrb[79].mxu1 }
0x104e   : > { %v32909_v23 = vadd.f32 %v32908_v50, %v32907_v53 }
0x1050   : > { %v31688_v19 = vadd.f32 %v32909_v23, %v31550_v37 }
0x106c   : > { %v32942_v40 = vpop.f32.mrb[80].mxu1 }
0x106d   : > { %v32943_v51 = vpop.f32.mrb[81].mxu1 }
0x106e   : > { %v32944_v2 = vadd.f32 %v32943_v51, %v32942_v40 }
0x1070   : > { %v31796_v48 = vadd.f32 %v32944_v2, %v31688_v19 }
0x108c   : > { %v32977_v34 = vpop.f32.mrb[82].mxu1 }
0x108d   : > { %v32978_v11 = vpop.f32.mrb[83].mxu1 }
0x108e   : > { %v32979_v43 = vadd.f32 %v32978_v11, %v32977_v34 }
0x1090   : > { %v31964_v60 = vadd.f32 %v32979_v43, %v31796_v48 }
0x10ac   : > { %v33012_v13 = vpop.f32.mrb[84].mxu1 }
0x10ad   : > { %v33013_v33 = vpop.f32.mrb[85].mxu1 }
0x10ae   : > { %v33014_v7 = vadd.f32 %v33013_v33, %v33012_v13 }
0x10b0   : > { %v32068_v26 = vadd.f32 %v33014_v7, %v31964_v60 }
0x10b2   : > { %32071 = vadd.xlane.f32.xlu0 %v32068_v26  ;;  %v32074_v41 = vmul.f32 %v32068_v26, %v32068_v26 }
0x10b4   : > { %32075 = vadd.xlane.f32.xlu1 %v32074_v41 }
0x113f   : > { %v32072_v14 = vpop.xlane.xlu0 %32071 }
0x1140   : > { %v32073_v38 = vmul.f32 0.0625, %v32072_v14 }
0x1141   : > { %v32076_v55 = vpop.xlane.xlu1 %32075 }
0x1142   : > { %v32078_v62 = vmul.f32 %v32073_v38, %v32073_v38  ;;  %v32077_v16 = vmul.f32 0.0625, %v32076_v55  ;;  %v32081_v9 = vsub.f32 %v32068_v26, %v32073_v38 }
0x1144   : > { %v32079_v39 = vsub.f32 %v32077_v16, %v32078_v62 }
0x1146   : > { %v32080_v45 = vmax.f32 %v32079_v39, 0.0 }
0x1148   : > { %v32082_v59 = vadd.f32 1e-05, %v32080_v45 }
0x114a   : > { %36054 = vrsqrt.f32 %v32082_v59 }
0x1154   : > { %v36055_v25 = vpop.eup %36054 }
0x1155   : > { %v32084_v44 = vmul.f32 %v36055_v25, %v32081_v9 }
0x1157   : > { %32085 = vst [vmem:[%s392_s15] sm:$0xff] %v32084_v44 }
0x1158   : > { %36244 = shalt.err (!%p36241_p5)
}
0x1159   : > { %s36245_s10 = scalar_lea.hbm %s41411_s18, 128  ;;  %s36249_s16 = scalar_lea.hbm %s41462_s7, 256 }
0x115a   : > { %p36246_p7 = scmp.ne.s32.totalorder %s41411_s18, %s36245_s10  ;;  %p36250_p3 = scmp.lt.u32.totalorder %s41411_s18, %s41462_s7 }
0x115b   : > { %p36251_p10 = scmp.lt.u32.totalorder %s36249_s16, %s36245_s10  ;;  %p36253_p2 = scmp.lt.u32.totalorder %s36245_s10, %s41411_s18 }
0x115c   : > { %p36247_p8 = pnand %p36246_p7, %p43463_p11 }
0x115d   : > { %p36252_p1 = por %p36251_p10, %p36250_p3 }
0x115e   : > { %p36248_p4 = pneg %p36247_p8 }
0x115f   : > { %p36254_p12 = por %p36253_p2, %p36252_p1 }
0x1161   : > { %p36255_p13 = pnand %p36254_p12, %p36248_p4 }
0x1163   : > { %36258 = shalt.err (!%p36255_p13)
}
0x1164   : > { %35969 = dma.vmem_to_hbm [thread:$0]  (%p43463_p11), %s41413_s11, 128, %s41411_s18, %s32087_s9  }
0x1165 PF: > { %s32112_s29 = sand.u32 1, %s36297_s24   ;;  %p43464_p6 = scmp.ne.s32.totalorder %s42222_s20, 0 }
0x1166   : > { %p43465_p9 = scmp.ge.s32.totalorder %s36309_s27, 2  ;;  %s32113_s15 = scalar_lea.sflag [#allocation4], %s32112_s29 }
0x1168   : > { %p35992_p0 = pnand %p43465_p9, %p43464_p6 }
0x116a   : > { %36292 = dma.done.wait (!%p35992_p0), %s32113_s15, 128  }
0x116b   : > { %36294 = vsyncadd (!%p35992_p0), %s32113_s15, 4294967168  ;;  %p25_p5 = scmp.ge.s32.totalorder %s36507_s14, 4   ;;  %s43466_s24 = smov %s36301_s25 }
0x116c   : > { %s43467_s25 = smov %s36305_s26  ;;  %s43468_s26 = smov %s36519_s17 }
0x116d   : > { %s43469_s27 = smov %s36507_s14  ;;  %27 = sbr.rel (!%p25_p5) target bundleno = 12 (0xc), region = 249 }
0x1174   :  { %32118 = vsyncpa [#allocation3], 1 }
0x1175   :  { %32120 = vsyncpa [#allocation3 + $0x1], 1 }
0x1176   :  { %32121 = vsyncpa [#allocation6], 1 }
0x1177   :  { %32122 = vsyncpa [#allocation9], 1 }
0x1178   :  { %32123 = vsyncpa [#allocation12], 1 }
0x1179   :  { %32125 = vsyncpa [#allocation12 + $0x1], 1 }
0x117a   :  { %32126 = vsyncpa [#allocation4], 1 }
0x117b   :  { %32128 = vsyncpa [#allocation4 + $0x1], 1 }

</bundles_post_ra>
